<compile_context>
chip_gen: v7x
topology: tpu7x:2x2x1
jax: 0.10.0
libtpu: 0.0.40
codegen_flags: <defaults>
</compile_context>

<pallas_src>
import jax
import jax.numpy as jnp
import numpy as np
from jax.experimental import pallas as pl
from jax.experimental.pallas import tpu as pltpu

_EPS = 1e-5
_PAR = pltpu.CompilerParams(dimension_semantics=("parallel",))


# ----------------------------- one-hot geometry matrices -----------------------------

def _conv3x3_shift(h, w):
    """S[t, src, dst] = 1 iff output pixel dst=(y,x) pulls from src=(y+di-1, x+dj-1); t=di*3+dj."""
    m = h * w
    s = np.zeros((9, m, m), np.float32)
    for di in range(3):
        for dj in range(3):
            t = di * 3 + dj
            for y in range(h):
                yy = y + di - 1
                if not (0 <= yy < h):
                    continue
                for x in range(w):
                    xx = x + dj - 1
                    if 0 <= xx < w:
                        s[t, yy * w + xx, y * w + x] = 1.0
    active = tuple(t for t in range(9) if s[t].any())
    return jnp.asarray(s), active


def _maxpool_select(hi, wi):
    """3x3/s2/p1 max-pool tap selectors: S[t, src, dst]=1 iff dst=(yo,xo) reads (2yo+di-1, 2xo+dj-1)."""
    ho = (hi + 2 - 3) // 2 + 1
    wo = (wi + 2 - 3) // 2 + 1
    s = np.zeros((9, hi * wi, ho * wo), np.float32)
    for di in range(3):
        for dj in range(3):
            t = di * 3 + dj
            for yo in range(ho):
                yi = 2 * yo + di - 1
                if not (0 <= yi < hi):
                    continue
                for xo in range(wo):
                    xi = 2 * xo + dj - 1
                    if 0 <= xi < wi:
                        s[t, yi * wi + xi, yo * wo + xo] = 1.0
    return jnp.asarray(s), ho, wo


def _avgpool_matrix(hi, wi):
    ho, wo = hi // 2, wi // 2
    p = np.zeros((hi * wi, ho * wo), np.float32)
    for yo in range(ho):
        for xo in range(wo):
            for dy in range(2):
                for dx in range(2):
                    p[(2 * yo + dy) * wi + (2 * xo + dx), yo * wo + xo] = 0.25
    return jnp.asarray(p), ho, wo


# ------------------------------- Pallas kernels -------------------------------

def _stem_kernel(p_ref, w_ref, b_ref, sel_ref, o_ref):
    # relu(W0_folded @ patches + b0) then maxpool 3x3/s2/p1 as a max over one-hot tap-selection
    # matmuls (exact: post-ReLU values are >= 0, so the 0 produced at invalid taps never wins).
    y = jnp.maximum(
        jnp.dot(w_ref[...], p_ref[0], preferred_element_type=jnp.float32) + b_ref[...], 0.0)
    out = jnp.dot(y, sel_ref[0], preferred_element_type=jnp.float32)
    for t in range(1, 9):
        out = jnp.maximum(out, jnp.dot(y, sel_ref[t], preferred_element_type=jnp.float32))
    o_ref[0] = out


def _make_dense_block_kernel(c_in, growth, num_layers, m, active_taps):
    def kernel(x_ref, s1_ref, b1_ref, w1_ref, s2_ref, b2_ref, w2_ref, sh_ref, o_ref, feat_ref):
        # feat_ref: (c_total, m) resident feature slab.  Rows beyond the current channel count
        # stay 0, so the zero-padded stacked per-layer params make full-width matmuls exact.
        feat_ref[...] = jnp.zeros_like(feat_ref)
        feat_ref[0:c_in, :] = x_ref[0]
        for l in range(num_layers):
            c_l = c_in + l * growth
            a = jnp.maximum(feat_ref[...] * s1_ref[l] + b1_ref[l], 0.0)       # norm1 + relu1
            h = jnp.dot(w1_ref[l], a, preferred_element_type=jnp.float32)     # conv1 (1x1)
            h = jnp.maximum(h * s2_ref[l] + b2_ref[l], 0.0)                   # norm2 + relu2
            if m == 1:                                                        # 1x1 spatial map
                acc = jnp.dot(w2_ref[l * 9 + 4], h, preferred_element_type=jnp.float32)
            else:                                                             # conv2 (3x3, p=1)
                acc = None
                for t in active_taps:
                    g = jnp.dot(w2_ref[l * 9 + t], h, preferred_element_type=jnp.float32)
                    g = jnp.dot(g, sh_ref[t], preferred_element_type=jnp.float32)
                    acc = g if acc is None else acc + g
            feat_ref[c_l:c_l + growth, :] = acc                               # aligned channel append
        o_ref[0] = feat_ref[...]
    return kernel


def _transition_kernel(x_ref, s_ref, b_ref, w_ref, p_ref, o_ref):
    # norm -> relu -> (avgpool 2x2 then 1x1 conv); pooling and the 1x1 conv commute.
    a = jnp.maximum(x_ref[0] * s_ref[...] + b_ref[...], 0.0)
    pooled = jnp.dot(a, p_ref[...], preferred_element_type=jnp.float32)
    o_ref[0] = jnp.dot(w_ref[...], pooled, preferred_element_type=jnp.float32)


# ------------------------------- call helpers ---------------------------------

def _img_spec(shape):
    nd = len(shape)
    return pl.BlockSpec((1,) + tuple(shape[1:]), lambda i, _nd=nd: (i,) + (0,) * (_nd - 1))


def _full_spec(shape):
    nd = len(shape)
    return pl.BlockSpec(tuple(shape), lambda i, _nd=nd: (0,) * _nd)


def _per_image_call(kernel, img_args, shared_args, out_shape, scratch_shapes=()):
    n = img_args[0].shape[0]
    return pl.pallas_call(
        kernel,
        grid=(n,),
        in_specs=[_img_spec(a.shape) for a in img_args]
                 + [_full_spec(a.shape) for a in shared_args],
        out_specs=_img_spec(out_shape),
        out_shape=jax.ShapeDtypeStruct(out_shape, jnp.float32),
        scratch_shapes=list(scratch_shapes),
        compiler_params=_PAR,
    )(*img_args, *shared_args)


def _pack_dense_block(layers, c_in, growth, cmid):
    num_layers = len(layers)
    c_total = c_in + growth * num_layers
    s1s, b1s, w1s, s2s, b2s, w2s = [], [], [], [], [], []
    for l, (s1, b1, w1, s2, b2, w2) in enumerate(layers):
        c_l = c_in + growth * l
        pad = c_total - c_l
        s1s.append(jnp.pad(s1.reshape(c_l, 1), ((0, pad), (0, 0))))
        b1s.append(jnp.pad(b1.reshape(c_l, 1), ((0, pad), (0, 0))))
        w1s.append(jnp.pad(w1[0, 0].T, ((0, 0), (0, pad))))                 # (cmid, c_total)
        s2s.append(s2.reshape(cmid, 1))
        b2s.append(b2.reshape(cmid, 1))
        w2s.append(jnp.transpose(w2.reshape(9, cmid, growth), (0, 2, 1)))   # (9, growth, cmid)
    return (jnp.stack(s1s), jnp.stack(b1s), jnp.stack(w1s),
            jnp.stack(s2s), jnp.stack(b2s), jnp.concatenate(w2s, axis=0))


# ------------------------------- forward pass ---------------------------------

def densenet_bc_forward(x_nchw, params):
    n, cin0, hi, wi = x_nchw.shape
    x = x_nchw.astype(jnp.float32)

    # ---- stem: conv0 7x7/s2 (BN scale folded into weights) + bias + relu + maxpool, one kernel.
    c0 = params['conv0_w'].shape[-1]
    h0 = (hi + 6 - 7) // 2 + 1
    w0 = (wi + 6 - 7) // 2 + 1
    scale0, bias0 = params['norm0']
    w0_fold = (params['conv0_w'] * scale0.reshape(1, 1, 1, c0)).reshape(49 * cin0, c0).T
    b0 = bias0.reshape(c0, 1)
    xp = jnp.pad(x, ((0, 0), (0, 0), (3, 3), (3, 3)))
    taps = []
    for di in range(7):
        for dj in range(7):
            taps.append(xp[:, :, di:di + 2 * (h0 - 1) + 1:2,
                              dj:dj + 2 * (w0 - 1) + 1:2].reshape(n, cin0, h0 * w0))
    patches = jnp.concatenate(taps, axis=1)                       # (N, 49*cin0, h0*w0)
    sel, h, w = _maxpool_select(h0, w0)
    feat = _per_image_call(_stem_kernel, [patches], [w0_fold, b0, sel], (n, c0, h * w))

    outs = []
    shift_cache = {}
    for bi in (1, 2, 3, 4, 5):
        layers = params['block%d' % bi]
        c_in = feat.shape[1]
        cmid = layers[0][5].shape[2]
        growth = layers[0][5].shape[3]
        num_layers = len(layers)
        c_total = c_in + growth * num_layers
        if (h, w) not in shift_cache:
            shift_cache[(h, w)] = _conv3x3_shift(h, w)
        shifts, active = shift_cache[(h, w)]
        packed = _pack_dense_block(layers, c_in, growth, cmid)
        kernel = _make_dense_block_kernel(c_in, growth, num_layers, h * w, active)
        feat = _per_image_call(
            kernel, [feat], list(packed) + [shifts], (n, c_total, h * w),
            scratch_shapes=[pltpu.VMEM((c_total, h * w), jnp.float32)])
        outs.append(feat.reshape(n, c_total, h, w))               # already NCHW layout

        tname = 'trans%d' % bi
        if tname in params:
            s, b, wt = params[tname]
            c_out = wt.shape[-1]
            pmat, ho, wo = _avgpool_matrix(h, w)
            feat = _per_image_call(
                _transition_kernel, [feat],
                [s.reshape(-1, 1), b.reshape(-1, 1), wt[0, 0].T, pmat],
                (n, c_out, ho * wo))
            h, w = ho, wo
    return tuple(outs)


# ----------------------------- parameter building ------------------------------

def _bn_params(c):
    gamma = jnp.ones((c,), jnp.float32)
    beta = jnp.zeros((c,), jnp.float32)
    running_mean = jnp.zeros((c,), jnp.float32)
    running_var = jnp.ones((c,), jnp.float32)
    scale = gamma / jnp.sqrt(running_var + _EPS)
    bias = beta - running_mean * scale
    return scale.reshape(1, c), bias.reshape(1, c)


def _conv_weight(key, kh, kw, cin, cout):
    fan_in = kh * kw * cin
    std = (2.0 / fan_in) ** 0.5  # kaiming_init (fan_in, relu)
    return std * jax.random.normal(key, (kh, kw, cin, cout), jnp.float32)


def make_params(key, growth_rate, block_config, bn_size, theta):
    params = {}
    num_feature = 2 * growth_rate
    key, k = jax.random.split(key)
    params['conv0_w'] = _conv_weight(k, 7, 7, 3, num_feature)
    params['norm0'] = _bn_params(num_feature)
    for i, num_layers in enumerate(block_config):
        layers = []
        for l in range(num_layers):
            cin = num_feature + growth_rate * l
            key, k1, k2 = jax.random.split(key, 3)
            s1, b1 = _bn_params(cin)
            w1 = _conv_weight(k1, 1, 1, cin, bn_size * growth_rate)
            s2, b2 = _bn_params(bn_size * growth_rate)
            w2 = _conv_weight(k2, 3, 3, bn_size * growth_rate, growth_rate)
            layers.append((s1, b1, w1, s2, b2, w2))
        params['block%d' % (i + 1)] = layers
        num_feature = num_feature + growth_rate * num_layers
        if i != len(block_config) - 1 and i != 2:
            cout = int(num_feature * theta)
            key, k = jax.random.split(key)
            st, bt = _bn_params(num_feature)
            params['trans%d' % (i + 1)] = (st, bt, _conv_weight(k, 1, 1, num_feature, cout))
            num_feature = cout
    return params


# ----------------------------- pure-JAX reference ------------------------------

def _ref_bn_relu(x, s, b):
    return jnp.maximum(x * s.reshape(1, 1, 1, -1) + b.reshape(1, 1, 1, -1), 0.0)


def _ref_conv(x, w4, stride, pad):
    return jax.lax.conv_general_dilated(
        x, w4, (stride, stride), [(pad, pad), (pad, pad)],
        dimension_numbers=('NHWC', 'HWIO', 'NHWC'))


def _ref_maxpool(x):
    return jax.lax.reduce_window(x, -jnp.inf, jax.lax.max, (1, 3, 3, 1), (1, 2, 2, 1),
                                 [(0, 0), (1, 1), (1, 1), (0, 0)])


def _ref_avgpool(x):
    s = jax.lax.reduce_window(x, 0.0, jax.lax.add, (1, 2, 2, 1), (1, 2, 2, 1),
                              [(0, 0), (0, 0), (0, 0), (0, 0)])
    return s / 4.0


def _ref_dense_layer(x, lp):
    s1, b1, w1, s2, b2, w2 = lp
    h = _ref_conv(_ref_bn_relu(x, s1, b1), w1, 1, 0)
    nf = _ref_conv(_ref_bn_relu(h, s2, b2), w2, 1, 1)
    return jnp.concatenate([x, nf], axis=-1)


def _ref_block(x, lps):
    for lp in lps:
        x = _ref_dense_layer(x, lp)
    return x


def _ref_transition(x, tp):
    s, b, w = tp
    return _ref_avgpool(_ref_conv(_ref_bn_relu(x, s, b), w, 1, 0))


def _ref_forward(x_nchw, params):
    x = jnp.transpose(x_nchw, (0, 2, 3, 1)).astype(jnp.float32)
    x = _ref_bn_relu(_ref_conv(x, params['conv0_w'], 2, 3), *params['norm0'])
    x = _ref_maxpool(x)
    x1 = _ref_block(x, params['block1'])
    x2 = _ref_block(_ref_transition(x1, params['trans1']), params['block2'])
    x3 = _ref_block(_ref_transition(x2, params['trans2']), params['block3'])
    x4 = _ref_block(x3, params['block4'])
    x5 = _ref_block(_ref_transition(x4, params['trans4']), params['block5'])
    return tuple(jnp.transpose(t, (0, 3, 1, 2)) for t in (x1, x2, x3, x4, x5))


# ------------------------------------ main -------------------------------------

if __name__ == "__main__":
    growth_rate, block_config, bn_size, theta = 8, (2, 2, 2, 2, 2), 2, 0.5
    key = jax.random.PRNGKey(0)
    pkey, xkey = jax.random.split(key)
    params = make_params(pkey, growth_rate, block_config, bn_size, theta)
    x = jax.random.normal(xkey, (2, 3, 32, 32), jnp.float32)   # NCHW, like PyTorch

    fwd = jax.jit(densenet_bc_forward)
    outs = jax.block_until_ready(fwd(x, params))
    refs = jax.block_until_ready(_ref_forward(x, params))

    for o, r in zip(outs, refs):
        assert o.shape == r.shape, (o.shape, r.shape)
        np.testing.assert_allclose(np.asarray(o), np.asarray(r), rtol=1e-2, atol=1e-2)

    print("KERNEL_OK")
</pallas_src>

<mosaic_0001>
module attributes {stable_mosaic.version = 11 : i64} {
  func.func @_stem_kernel(%arg0: i32, %arg1: memref<1x147x256xf32, #tpu.memory_space<vmem>>, %arg2: memref<16x147xf32, #tpu.memory_space<vmem>>, %arg3: memref<16x1xf32, #tpu.memory_space<vmem>>, %arg4: memref<9x256x64xf32, #tpu.memory_space<vmem>>, %arg5: memref<1x16x64xf32, #tpu.memory_space<vmem>>) attributes {dimension_semantics = [#tpu.dimension_semantics<parallel>], iteration_bounds = array<i64: 2>, scalar_prefetch = 0 : i64, scratch_operands = 0 : i64, tpu.core_type = #tpu.core_type<tc>, window_params = [{transform_indices = @transform_0, window_bounds = array<i64: 1, 147, 256>}, {pipeline_mode = #tpu.pipeline_mode<synchronous>, transform_indices = @transform_1, window_bounds = array<i64: 16, 147>}, {pipeline_mode = #tpu.pipeline_mode<synchronous>, transform_indices = @transform_2, window_bounds = array<i64: 16, 1>}, {pipeline_mode = #tpu.pipeline_mode<synchronous>, transform_indices = @transform_3, window_bounds = array<i64: 9, 256, 64>}, {transform_indices = @transform_4, window_bounds = array<i64: 1, 16, 64>}]} {
    %c0 = arith.constant 0 : index
    %c0_0 = arith.constant 0 : index
    %0 = vector.load %arg2[%c0, %c0_0] : memref<16x147xf32, #tpu.memory_space<vmem>>, vector<16x147xf32>
    %c0_1 = arith.constant 0 : index
    %c0_2 = arith.constant 0 : index
    %c0_3 = arith.constant 0 : index
    %1 = vector.load %arg1[%c0_1, %c0_2, %c0_3] : memref<1x147x256xf32, #tpu.memory_space<vmem>>, vector<1x147x256xf32>
    %2 = vector.shape_cast %1 : vector<1x147x256xf32> to vector<147x256xf32>
    %cst = arith.constant dense<0.000000e+00> : vector<16x256xf32>
    %3 = tpu.matmul %0, %2, %cst {dimension_numbers = #tpu.dot_dimension_numbers<[1], [0], [0], [1], [0, 0, 1, 1], [], []>} : vector<16x147xf32>, vector<147x256xf32>, vector<16x256xf32> -> vector<16x256xf32>
    %c0_4 = arith.constant 0 : index
    %c0_5 = arith.constant 0 : index
    %4 = vector.load %arg3[%c0_4, %c0_5] : memref<16x1xf32, #tpu.memory_space<vmem>>, vector<16x1xf32>
    %5 = vector.broadcast %4 : vector<16x1xf32> to vector<16x256xf32>
    %6 = arith.addf %3, %5 : vector<16x256xf32>
    %cst_6 = arith.constant 0.000000e+00 : f32
    %7 = vector.broadcast %cst_6 : f32 to vector<16x256xf32>
    %8 = arith.maximumf %6, %7 : vector<16x256xf32>
    %c0_7 = arith.constant 0 : index
    %c0_8 = arith.constant 0 : index
    %c0_9 = arith.constant 0 : index
    %9 = vector.load %arg4[%c0_7, %c0_8, %c0_9] : memref<9x256x64xf32, #tpu.memory_space<vmem>>, vector<1x256x64xf32>
    %10 = vector.shape_cast %9 : vector<1x256x64xf32> to vector<256x64xf32>
    %cst_10 = arith.constant dense<0.000000e+00> : vector<16x64xf32>
    %11 = tpu.matmul %8, %10, %cst_10 {dimension_numbers = #tpu.dot_dimension_numbers<[1], [0], [0], [1], [0, 0, 1, 1], [], []>} : vector<16x256xf32>, vector<256x64xf32>, vector<16x64xf32> -> vector<16x64xf32>
    %c1 = arith.constant 1 : index
    %c0_11 = arith.constant 0 : index
    %c0_12 = arith.constant 0 : index
    %12 = vector.load %arg4[%c1, %c0_11, %c0_12] : memref<9x256x64xf32, #tpu.memory_space<vmem>>, vector<1x256x64xf32>
    %13 = vector.shape_cast %12 : vector<1x256x64xf32> to vector<256x64xf32>
    %cst_13 = arith.constant dense<0.000000e+00> : vector<16x64xf32>
    %14 = tpu.matmul %8, %13, %cst_13 {dimension_numbers = #tpu.dot_dimension_numbers<[1], [0], [0], [1], [0, 0, 1, 1], [], []>} : vector<16x256xf32>, vector<256x64xf32>, vector<16x64xf32> -> vector<16x64xf32>
    %15 = arith.maximumf %11, %14 : vector<16x64xf32>
    %c2 = arith.constant 2 : index
    %c0_14 = arith.constant 0 : index
    %c0_15 = arith.constant 0 : index
    %16 = vector.load %arg4[%c2, %c0_14, %c0_15] : memref<9x256x64xf32, #tpu.memory_space<vmem>>, vector<1x256x64xf32>
    %17 = vector.shape_cast %16 : vector<1x256x64xf32> to vector<256x64xf32>
    %cst_16 = arith.constant dense<0.000000e+00> : vector<16x64xf32>
    %18 = tpu.matmul %8, %17, %cst_16 {dimension_numbers = #tpu.dot_dimension_numbers<[1], [0], [0], [1], [0, 0, 1, 1], [], []>} : vector<16x256xf32>, vector<256x64xf32>, vector<16x64xf32> -> vector<16x64xf32>
    %19 = arith.maximumf %15, %18 : vector<16x64xf32>
    %c3 = arith.constant 3 : index
    %c0_17 = arith.constant 0 : index
    %c0_18 = arith.constant 0 : index
    %20 = vector.load %arg4[%c3, %c0_17, %c0_18] : memref<9x256x64xf32, #tpu.memory_space<vmem>>, vector<1x256x64xf32>
    %21 = vector.shape_cast %20 : vector<1x256x64xf32> to vector<256x64xf32>
    %cst_19 = arith.constant dense<0.000000e+00> : vector<16x64xf32>
    %22 = tpu.matmul %8, %21, %cst_19 {dimension_numbers = #tpu.dot_dimension_numbers<[1], [0], [0], [1], [0, 0, 1, 1], [], []>} : vector<16x256xf32>, vector<256x64xf32>, vector<16x64xf32> -> vector<16x64xf32>
    %23 = arith.maximumf %19, %22 : vector<16x64xf32>
    %c4 = arith.constant 4 : index
    %c0_20 = arith.constant 0 : index
    %c0_21 = arith.constant 0 : index
    %24 = vector.load %arg4[%c4, %c0_20, %c0_21] : memref<9x256x64xf32, #tpu.memory_space<vmem>>, vector<1x256x64xf32>
    %25 = vector.shape_cast %24 : vector<1x256x64xf32> to vector<256x64xf32>
    %cst_22 = arith.constant dense<0.000000e+00> : vector<16x64xf32>
    %26 = tpu.matmul %8, %25, %cst_22 {dimension_numbers = #tpu.dot_dimension_numbers<[1], [0], [0], [1], [0, 0, 1, 1], [], []>} : vector<16x256xf32>, vector<256x64xf32>, vector<16x64xf32> -> vector<16x64xf32>
    %27 = arith.maximumf %23, %26 : vector<16x64xf32>
    %c5 = arith.constant 5 : index
    %c0_23 = arith.constant 0 : index
    %c0_24 = arith.constant 0 : index
    %28 = vector.load %arg4[%c5, %c0_23, %c0_24] : memref<9x256x64xf32, #tpu.memory_space<vmem>>, vector<1x256x64xf32>
    %29 = vector.shape_cast %28 : vector<1x256x64xf32> to vector<256x64xf32>
    %cst_25 = arith.constant dense<0.000000e+00> : vector<16x64xf32>
    %30 = tpu.matmul %8, %29, %cst_25 {dimension_numbers = #tpu.dot_dimension_numbers<[1], [0], [0], [1], [0, 0, 1, 1], [], []>} : vector<16x256xf32>, vector<256x64xf32>, vector<16x64xf32> -> vector<16x64xf32>
    %31 = arith.maximumf %27, %30 : vector<16x64xf32>
    %c6 = arith.constant 6 : index
    %c0_26 = arith.constant 0 : index
    %c0_27 = arith.constant 0 : index
    %32 = vector.load %arg4[%c6, %c0_26, %c0_27] : memref<9x256x64xf32, #tpu.memory_space<vmem>>, vector<1x256x64xf32>
    %33 = vector.shape_cast %32 : vector<1x256x64xf32> to vector<256x64xf32>
    %cst_28 = arith.constant dense<0.000000e+00> : vector<16x64xf32>
    %34 = tpu.matmul %8, %33, %cst_28 {dimension_numbers = #tpu.dot_dimension_numbers<[1], [0], [0], [1], [0, 0, 1, 1], [], []>} : vector<16x256xf32>, vector<256x64xf32>, vector<16x64xf32> -> vector<16x64xf32>
    %35 = arith.maximumf %31, %34 : vector<16x64xf32>
    %c7 = arith.constant 7 : index
    %c0_29 = arith.constant 0 : index
    %c0_30 = arith.constant 0 : index
    %36 = vector.load %arg4[%c7, %c0_29, %c0_30] : memref<9x256x64xf32, #tpu.memory_space<vmem>>, vector<1x256x64xf32>
    %37 = vector.shape_cast %36 : vector<1x256x64xf32> to vector<256x64xf32>
    %cst_31 = arith.constant dense<0.000000e+00> : vector<16x64xf32>
    %38 = tpu.matmul %8, %37, %cst_31 {dimension_numbers = #tpu.dot_dimension_numbers<[1], [0], [0], [1], [0, 0, 1, 1], [], []>} : vector<16x256xf32>, vector<256x64xf32>, vector<16x64xf32> -> vector<16x64xf32>
    %39 = arith.maximumf %35, %38 : vector<16x64xf32>
    %c8 = arith.constant 8 : index
    %c0_32 = arith.constant 0 : index
    %c0_33 = arith.constant 0 : index
    %40 = vector.load %arg4[%c8, %c0_32, %c0_33] : memref<9x256x64xf32, #tpu.memory_space<vmem>>, vector<1x256x64xf32>
    %41 = vector.shape_cast %40 : vector<1x256x64xf32> to vector<256x64xf32>
    %cst_34 = arith.constant dense<0.000000e+00> : vector<16x64xf32>
    %42 = tpu.matmul %8, %41, %cst_34 {dimension_numbers = #tpu.dot_dimension_numbers<[1], [0], [0], [1], [0, 0, 1, 1], [], []>} : vector<16x256xf32>, vector<256x64xf32>, vector<16x64xf32> -> vector<16x64xf32>
    %43 = arith.maximumf %39, %42 : vector<16x64xf32>
    %c0_35 = arith.constant 0 : index
    %c0_36 = arith.constant 0 : index
    %c0_37 = arith.constant 0 : index
    %44 = vector.load %arg5[%c0_35, %c0_36, %c0_37] : memref<1x16x64xf32, #tpu.memory_space<vmem>>, vector<1x16x64xf32>
    %45 = vector.shape_cast %44 : vector<1x16x64xf32> to vector<16x64xf32>
    %46 = vector.shape_cast %43 : vector<16x64xf32> to vector<1x16x64xf32>
    tpu.vector_store %arg5[%c0_35, %c0_36, %c0_37], %46 {strides = array<i32>} : memref<1x16x64xf32, #tpu.memory_space<vmem>>, vector<1x16x64xf32>,
    return
  }
  func.func @transform_0(%arg0: i32) -> (i32, i32, i32) {
    %c0_i32 = arith.constant 0 : i32
    %c0_i32_0 = arith.constant 0 : i32
    %c0_i32_1 = arith.constant 0 : i32
    return %arg0, %c0_i32, %c0_i32_0 : i32, i32, i32
  }
  func.func @transform_1(%arg0: i32) -> (i32, i32) {
    %c0_i32 = arith.constant 0 : i32
    %c0_i32_0 = arith.constant 0 : i32
    %c0_i32_1 = arith.constant 0 : i32
    return %c0_i32, %c0_i32_0 : i32, i32
  }
  func.func @transform_2(%arg0: i32) -> (i32, i32) {
    %c0_i32 = arith.constant 0 : i32
    %c0_i32_0 = arith.constant 0 : i32
    %c0_i32_1 = arith.constant 0 : i32
    return %c0_i32, %c0_i32_0 : i32, i32
  }
  func.func @transform_3(%arg0: i32) -> (i32, i32, i32) {
    %c0_i32 = arith.constant 0 : i32
    %c0_i32_0 = arith.constant 0 : i32
    %c0_i32_1 = arith.constant 0 : i32
    %c0_i32_2 = arith.constant 0 : i32
    return %c0_i32, %c0_i32_0, %c0_i32_1 : i32, i32, i32
  }
  func.func @transform_4(%arg0: i32) -> (i32, i32, i32) {
    %c0_i32 = arith.constant 0 : i32
    %c0_i32_0 = arith.constant 0 : i32
    %c0_i32_1 = arith.constant 0 : i32
    return %arg0, %c0_i32, %c0_i32_0 : i32, i32, i32
  }
}

module attributes {stable_mosaic.version = 11 : i64} {
  func.func @_transition_kernel(%arg0: i32, %arg1: memref<1x32x64xf32, #tpu.memory_space<vmem>>, %arg2: memref<32x1xf32, #tpu.memory_space<vmem>>, %arg3: memref<32x1xf32, #tpu.memory_space<vmem>>, %arg4: memref<16x32xf32, #tpu.memory_space<vmem>>, %arg5: memref<64x16xf32, #tpu.memory_space<vmem>>, %arg6: memref<1x16x16xf32, #tpu.memory_space<vmem>>) attributes {dimension_semantics = [#tpu.dimension_semantics<parallel>], iteration_bounds = array<i64: 2>, scalar_prefetch = 0 : i64, scratch_operands = 0 : i64, tpu.core_type = #tpu.core_type<tc>, window_params = [{transform_indices = @transform_0, window_bounds = array<i64: 1, 32, 64>}, {pipeline_mode = #tpu.pipeline_mode<synchronous>, transform_indices = @transform_1, window_bounds = array<i64: 32, 1>}, {pipeline_mode = #tpu.pipeline_mode<synchronous>, transform_indices = @transform_2, window_bounds = array<i64: 32, 1>}, {pipeline_mode = #tpu.pipeline_mode<synchronous>, transform_indices = @transform_3, window_bounds = array<i64: 16, 32>}, {pipeline_mode = #tpu.pipeline_mode<synchronous>, transform_indices = @transform_4, window_bounds = array<i64: 64, 16>}, {transform_indices = @transform_5, window_bounds = array<i64: 1, 16, 16>}]} {
    %c0 = arith.constant 0 : index
    %c0_0 = arith.constant 0 : index
    %c0_1 = arith.constant 0 : index
    %0 = vector.load %arg1[%c0, %c0_0, %c0_1] : memref<1x32x64xf32, #tpu.memory_space<vmem>>, vector<1x32x64xf32>
    %1 = vector.shape_cast %0 : vector<1x32x64xf32> to vector<32x64xf32>
    %c0_2 = arith.constant 0 : index
    %c0_3 = arith.constant 0 : index
    %2 = vector.load %arg2[%c0_2, %c0_3] : memref<32x1xf32, #tpu.memory_space<vmem>>, vector<32x1xf32>
    %3 = vector.broadcast %2 : vector<32x1xf32> to vector<32x64xf32>
    %4 = arith.mulf %1, %3 : vector<32x64xf32>
    %c0_4 = arith.constant 0 : index
    %c0_5 = arith.constant 0 : index
    %5 = vector.load %arg3[%c0_4, %c0_5] : memref<32x1xf32, #tpu.memory_space<vmem>>, vector<32x1xf32>
    %6 = vector.broadcast %5 : vector<32x1xf32> to vector<32x64xf32>
    %7 = arith.addf %4, %6 : vector<32x64xf32>
    %cst = arith.constant 0.000000e+00 : f32
    %8 = vector.broadcast %cst : f32 to vector<32x64xf32>
    %9 = arith.maximumf %7, %8 : vector<32x64xf32>
    %c0_6 = arith.constant 0 : index
    %c0_7 = arith.constant 0 : index
    %10 = vector.load %arg5[%c0_6, %c0_7] : memref<64x16xf32, #tpu.memory_space<vmem>>, vector<64x16xf32>
    %cst_8 = arith.constant dense<0.000000e+00> : vector<32x16xf32>
    %11 = tpu.matmul %9, %10, %cst_8 {dimension_numbers = #tpu.dot_dimension_numbers<[1], [0], [0], [1], [0, 0, 1, 1], [], []>} : vector<32x64xf32>, vector<64x16xf32>, vector<32x16xf32> -> vector<32x16xf32>
    %c0_9 = arith.constant 0 : index
    %c0_10 = arith.constant 0 : index
    %12 = vector.load %arg4[%c0_9, %c0_10] : memref<16x32xf32, #tpu.memory_space<vmem>>, vector<16x32xf32>
    %cst_11 = arith.constant dense<0.000000e+00> : vector<16x16xf32>
    %13 = tpu.matmul %12, %11, %cst_11 {dimension_numbers = #tpu.dot_dimension_numbers<[1], [0], [0], [1], [0, 0, 1, 1], [], []>} : vector<16x32xf32>, vector<32x16xf32>, vector<16x16xf32> -> vector<16x16xf32>
    %c0_12 = arith.constant 0 : index
    %c0_13 = arith.constant 0 : index
    %c0_14 = arith.constant 0 : index
    %14 = vector.load %arg6[%c0_12, %c0_13, %c0_14] : memref<1x16x16xf32, #tpu.memory_space<vmem>>, vector<1x16x16xf32>
    %15 = vector.shape_cast %14 : vector<1x16x16xf32> to vector<16x16xf32>
    %16 = vector.shape_cast %13 : vector<16x16xf32> to vector<1x16x16xf32>
    tpu.vector_store %arg6[%c0_12, %c0_13, %c0_14], %16 {strides = array<i32>} : memref<1x16x16xf32, #tpu.memory_space<vmem>>, vector<1x16x16xf32>,
    return
  }
  func.func @transform_0(%arg0: i32) -> (i32, i32, i32) {
    %c0_i32 = arith.constant 0 : i32
    %c0_i32_0 = arith.constant 0 : i32
    %c0_i32_1 = arith.constant 0 : i32
    return %arg0, %c0_i32, %c0_i32_0 : i32, i32, i32
  }
  func.func @transform_1(%arg0: i32) -> (i32, i32) {
    %c0_i32 = arith.constant 0 : i32
    %c0_i32_0 = arith.constant 0 : i32
    %c0_i32_1 = arith.constant 0 : i32
    return %c0_i32, %c0_i32_0 : i32, i32
  }
  func.func @transform_2(%arg0: i32) -> (i32, i32) {
    %c0_i32 = arith.constant 0 : i32
    %c0_i32_0 = arith.constant 0 : i32
    %c0_i32_1 = arith.constant 0 : i32
    return %c0_i32, %c0_i32_0 : i32, i32
  }
  func.func @transform_3(%arg0: i32) -> (i32, i32) {
    %c0_i32 = arith.constant 0 : i32
    %c0_i32_0 = arith.constant 0 : i32
    %c0_i32_1 = arith.constant 0 : i32
    return %c0_i32, %c0_i32_0 : i32, i32
  }
  func.func @transform_4(%arg0: i32) -> (i32, i32) {
    %c0_i32 = arith.constant 0 : i32
    %c0_i32_0 = arith.constant 0 : i32
    %c0_i32_1 = arith.constant 0 : i32
    return %c0_i32, %c0_i32_0 : i32, i32
  }
  func.func @transform_5(%arg0: i32) -> (i32, i32, i32) {
    %c0_i32 = arith.constant 0 : i32
    %c0_i32_0 = arith.constant 0 : i32
    %c0_i32_1 = arith.constant 0 : i32
    return %arg0, %c0_i32, %c0_i32_0 : i32, i32, i32
  }
}

module attributes {stable_mosaic.version = 11 : i64} {
  func.func @kernel(%arg0: i32, %arg1: memref<1x16x64xf32, #tpu.memory_space<vmem>>, %arg2: memref<2x32x1xf32, #tpu.memory_space<vmem>>, %arg3: memref<2x32x1xf32, #tpu.memory_space<vmem>>, %arg4: memref<2x16x32xf32, #tpu.memory_space<vmem>>, %arg5: memref<2x16x1xf32, #tpu.memory_space<vmem>>, %arg6: memref<2x16x1xf32, #tpu.memory_space<vmem>>, %arg7: memref<18x8x16xf32, #tpu.memory_space<vmem>>, %arg8: memref<9x64x64xf32, #tpu.memory_space<vmem>>, %arg9: memref<1x32x64xf32, #tpu.memory_space<vmem>>, %arg10: memref<32x64xf32, #tpu.memory_space<vmem>>) attributes {dimension_semantics = [#tpu.dimension_semantics<parallel>], iteration_bounds = array<i64: 2>, scalar_prefetch = 0 : i64, scratch_operands = 1 : i64, tpu.core_type = #tpu.core_type<tc>, window_params = [{transform_indices = @transform_0, window_bounds = array<i64: 1, 16, 64>}, {pipeline_mode = #tpu.pipeline_mode<synchronous>, transform_indices = @transform_1, window_bounds = array<i64: 2, 32, 1>}, {pipeline_mode = #tpu.pipeline_mode<synchronous>, transform_indices = @transform_2, window_bounds = array<i64: 2, 32, 1>}, {pipeline_mode = #tpu.pipeline_mode<synchronous>, transform_indices = @transform_3, window_bounds = array<i64: 2, 16, 32>}, {pipeline_mode = #tpu.pipeline_mode<synchronous>, transform_indices = @transform_4, window_bounds = array<i64: 2, 16, 1>}, {pipeline_mode = #tpu.pipeline_mode<synchronous>, transform_indices = @transform_5, window_bounds = array<i64: 2, 16, 1>}, {pipeline_mode = #tpu.pipeline_mode<synchronous>, transform_indices = @transform_6, window_bounds = array<i64: 18, 8, 16>}, {pipeline_mode = #tpu.pipeline_mode<synchronous>, transform_indices = @transform_7, window_bounds = array<i64: 9, 64, 64>}, {transform_indices = @transform_8, window_bounds = array<i64: 1, 32, 64>}]} {
    %cst = arith.constant 0.000000e+00 : f32
    %0 = vector.broadcast %cst : f32 to vector<32x64xf32>
    %c0 = arith.constant 0 : index
    %c0_0 = arith.constant 0 : index
    %1 = vector.load %arg10[%c0, %c0_0] : memref<32x64xf32, #tpu.memory_space<vmem>>, vector<32x64xf32>
    tpu.vector_store %arg10[%c0, %c0_0], %0 {strides = array<i32>} : memref<32x64xf32, #tpu.memory_space<vmem>>, vector<32x64xf32>,
    %c0_1 = arith.constant 0 : index
    %c0_2 = arith.constant 0 : index
    %c0_3 = arith.constant 0 : index
    %2 = vector.load %arg1[%c0_1, %c0_2, %c0_3] : memref<1x16x64xf32, #tpu.memory_space<vmem>>, vector<1x16x64xf32>
    %3 = vector.shape_cast %2 : vector<1x16x64xf32> to vector<16x64xf32>
    %c0_4 = arith.constant 0 : index
    %c0_5 = arith.constant 0 : index
    %4 = vector.load %arg10[%c0_4, %c0_5] : memref<32x64xf32, #tpu.memory_space<vmem>>, vector<16x64xf32>
    tpu.vector_store %arg10[%c0_4, %c0_5], %3 {strides = array<i32>} : memref<32x64xf32, #tpu.memory_space<vmem>>, vector<16x64xf32>,
    %c0_6 = arith.constant 0 : index
    %c0_7 = arith.constant 0 : index
    %5 = vector.load %arg10[%c0_6, %c0_7] : memref<32x64xf32, #tpu.memory_space<vmem>>, vector<32x64xf32>
    %c0_8 = arith.constant 0 : index
    %c0_9 = arith.constant 0 : index
    %c0_10 = arith.constant 0 : index
    %6 = vector.load %arg2[%c0_8, %c0_9, %c0_10] : memref<2x32x1xf32, #tpu.memory_space<vmem>>, vector<1x32x1xf32>
    %7 = vector.shape_cast %6 : vector<1x32x1xf32> to vector<32x1xf32>
    %8 = vector.broadcast %7 : vector<32x1xf32> to vector<32x64xf32>
    %9 = arith.mulf %5, %8 : vector<32x64xf32>
    %c0_11 = arith.constant 0 : index
    %c0_12 = arith.constant 0 : index
    %c0_13 = arith.constant 0 : index
    %10 = vector.load %arg3[%c0_11, %c0_12, %c0_13] : memref<2x32x1xf32, #tpu.memory_space<vmem>>, vector<1x32x1xf32>
    %11 = vector.shape_cast %10 : vector<1x32x1xf32> to vector<32x1xf32>
    %12 = vector.broadcast %11 : vector<32x1xf32> to vector<32x64xf32>
    %13 = arith.addf %9, %12 : vector<32x64xf32>
    %cst_14 = arith.constant 0.000000e+00 : f32
    %14 = vector.broadcast %cst_14 : f32 to vector<32x64xf32>
    %15 = arith.maximumf %13, %14 : vector<32x64xf32>
    %c0_15 = arith.constant 0 : index
    %c0_16 = arith.constant 0 : index
    %c0_17 = arith.constant 0 : index
    %16 = vector.load %arg4[%c0_15, %c0_16, %c0_17] : memref<2x16x32xf32, #tpu.memory_space<vmem>>, vector<1x16x32xf32>
    %17 = vector.shape_cast %16 : vector<1x16x32xf32> to vector<16x32xf32>
    %cst_18 = arith.constant dense<0.000000e+00> : vector<16x64xf32>
    %18 = tpu.matmul %17, %15, %cst_18 {dimension_numbers = #tpu.dot_dimension_numbers<[1], [0], [0], [1], [0, 0, 1, 1], [], []>} : vector<16x32xf32>, vector<32x64xf32>, vector<16x64xf32> -> vector<16x64xf32>
    %c0_19 = arith.constant 0 : index
    %c0_20 = arith.constant 0 : index
    %c0_21 = arith.constant 0 : index
    %19 = vector.load %arg5[%c0_19, %c0_20, %c0_21] : memref<2x16x1xf32, #tpu.memory_space<vmem>>, vector<1x16x1xf32>
    %20 = vector.shape_cast %19 : vector<1x16x1xf32> to vector<16x1xf32>
    %21 = vector.broadcast %20 : vector<16x1xf32> to vector<16x64xf32>
    %22 = arith.mulf %18, %21 : vector<16x64xf32>
    %c0_22 = arith.constant 0 : index
    %c0_23 = arith.constant 0 : index
    %c0_24 = arith.constant 0 : index
    %23 = vector.load %arg6[%c0_22, %c0_23, %c0_24] : memref<2x16x1xf32, #tpu.memory_space<vmem>>, vector<1x16x1xf32>
    %24 = vector.shape_cast %23 : vector<1x16x1xf32> to vector<16x1xf32>
    %25 = vector.broadcast %24 : vector<16x1xf32> to vector<16x64xf32>
    %26 = arith.addf %22, %25 : vector<16x64xf32>
    %cst_25 = arith.constant 0.000000e+00 : f32
    %27 = vector.broadcast %cst_25 : f32 to vector<16x64xf32>
    %28 = arith.maximumf %26, %27 : vector<16x64xf32>
    %c0_26 = arith.constant 0 : index
    %c0_27 = arith.constant 0 : index
    %c0_28 = arith.constant 0 : index
    %29 = vector.load %arg7[%c0_26, %c0_27, %c0_28] : memref<18x8x16xf32, #tpu.memory_space<vmem>>, vector<1x8x16xf32>
    %30 = vector.shape_cast %29 : vector<1x8x16xf32> to vector<8x16xf32>
    %cst_29 = arith.constant dense<0.000000e+00> : vector<8x64xf32>
    %31 = tpu.matmul %30, %28, %cst_29 {dimension_numbers = #tpu.dot_dimension_numbers<[1], [0], [0], [1], [0, 0, 1, 1], [], []>} : vector<8x16xf32>, vector<16x64xf32>, vector<8x64xf32> -> vector<8x64xf32>
    %c0_30 = arith.constant 0 : index
    %c0_31 = arith.constant 0 : index
    %c0_32 = arith.constant 0 : index
    %32 = vector.load %arg8[%c0_30, %c0_31, %c0_32] : memref<9x64x64xf32, #tpu.memory_space<vmem>>, vector<1x64x64xf32>
    %33 = vector.shape_cast %32 : vector<1x64x64xf32> to vector<64x64xf32>
    %cst_33 = arith.constant dense<0.000000e+00> : vector<8x64xf32>
    %34 = tpu.matmul %31, %33, %cst_33 {dimension_numbers = #tpu.dot_dimension_numbers<[1], [0], [0], [1], [0, 0, 1, 1], [], []>} : vector<8x64xf32>, vector<64x64xf32>, vector<8x64xf32> -> vector<8x64xf32>
    %c1 = arith.constant 1 : index
    %c0_34 = arith.constant 0 : index
    %c0_35 = arith.constant 0 : index
    %35 = vector.load %arg7[%c1, %c0_34, %c0_35] : memref<18x8x16xf32, #tpu.memory_space<vmem>>, vector<1x8x16xf32>
    %36 = vector.shape_cast %35 : vector<1x8x16xf32> to vector<8x16xf32>
    %cst_36 = arith.constant dense<0.000000e+00> : vector<8x64xf32>
    %37 = tpu.matmul %36, %28, %cst_36 {dimension_numbers = #tpu.dot_dimension_numbers<[1], [0], [0], [1], [0, 0, 1, 1], [], []>} : vector<8x16xf32>, vector<16x64xf32>, vector<8x64xf32> -> vector<8x64xf32>
    %c1_37 = arith.constant 1 : index
    %c0_38 = arith.constant 0 : index
    %c0_39 = arith.constant 0 : index
    %38 = vector.load %arg8[%c1_37, %c0_38, %c0_39] : memref<9x64x64xf32, #tpu.memory_space<vmem>>, vector<1x64x64xf32>
    %39 = vector.shape_cast %38 : vector<1x64x64xf32> to vector<64x64xf32>
    %cst_40 = arith.constant dense<0.000000e+00> : vector<8x64xf32>
    %40 = tpu.matmul %37, %39, %cst_40 {dimension_numbers = #tpu.dot_dimension_numbers<[1], [0], [0], [1], [0, 0, 1, 1], [], []>} : vector<8x64xf32>, vector<64x64xf32>, vector<8x64xf32> -> vector<8x64xf32>
    %41 = arith.addf %34, %40 : vector<8x64xf32>
    %c2 = arith.constant 2 : index
    %c0_41 = arith.constant 0 : index
    %c0_42 = arith.constant 0 : index
    %42 = vector.load %arg7[%c2, %c0_41, %c0_42] : memref<18x8x16xf32, #tpu.memory_space<vmem>>, vector<1x8x16xf32>
    %43 = vector.shape_cast %42 : vector<1x8x16xf32> to vector<8x16xf32>
    %cst_43 = arith.constant dense<0.000000e+00> : vector<8x64xf32>
    %44 = tpu.matmul %43, %28, %cst_43 {dimension_numbers = #tpu.dot_dimension_numbers<[1], [0], [0], [1], [0, 0, 1, 1], [], []>} : vector<8x16xf32>, vector<16x64xf32>, vector<8x64xf32> -> vector<8x64xf32>
    %c2_44 = arith.constant 2 : index
    %c0_45 = arith.constant 0 : index
    %c0_46 = arith.constant 0 : index
    %45 = vector.load %arg8[%c2_44, %c0_45, %c0_46] : memref<9x64x64xf32, #tpu.memory_space<vmem>>, vector<1x64x64xf32>
    %46 = vector.shape_cast %45 : vector<1x64x64xf32> to vector<64x64xf32>
    %cst_47 = arith.constant dense<0.000000e+00> : vector<8x64xf32>
    %47 = tpu.matmul %44, %46, %cst_47 {dimension_numbers = #tpu.dot_dimension_numbers<[1], [0], [0], [1], [0, 0, 1, 1], [], []>} : vector<8x64xf32>, vector<64x64xf32>, vector<8x64xf32> -> vector<8x64xf32>
    %48 = arith.addf %41, %47 : vector<8x64xf32>
    %c3 = arith.constant 3 : index
    %c0_48 = arith.constant 0 : index
    %c0_49 = arith.constant 0 : index
    %49 = vector.load %arg7[%c3, %c0_48, %c0_49] : memref<18x8x16xf32, #tpu.memory_space<vmem>>, vector<1x8x16xf32>
    %50 = vector.shape_cast %49 : vector<1x8x16xf32> to vector<8x16xf32>
    %cst_50 = arith.constant dense<0.000000e+00> : vector<8x64xf32>
    %51 = tpu.matmul %50, %28, %cst_50 {dimension_numbers = #tpu.dot_dimension_numbers<[1], [0], [0], [1], [0, 0, 1, 1], [], []>} : vector<8x16xf32>, vector<16x64xf32>, vector<8x64xf32> -> vector<8x64xf32>
    %c3_51 = arith.constant 3 : index
    %c0_52 = arith.constant 0 : index
    %c0_53 = arith.constant 0 : index
    %52 = vector.load %arg8[%c3_51, %c0_52, %c0_53] : memref<9x64x64xf32, #tpu.memory_space<vmem>>, vector<1x64x64xf32>
    %53 = vector.shape_cast %52 : vector<1x64x64xf32> to vector<64x64xf32>
    %cst_54 = arith.constant dense<0.000000e+00> : vector<8x64xf32>
    %54 = tpu.matmul %51, %53, %cst_54 {dimension_numbers = #tpu.dot_dimension_numbers<[1], [0], [0], [1], [0, 0, 1, 1], [], []>} : vector<8x64xf32>, vector<64x64xf32>, vector<8x64xf32> -> vector<8x64xf32>
    %55 = arith.addf %48, %54 : vector<8x64xf32>
    %c4 = arith.constant 4 : index
    %c0_55 = arith.constant 0 : index
    %c0_56 = arith.constant 0 : index
    %56 = vector.load %arg7[%c4, %c0_55, %c0_56] : memref<18x8x16xf32, #tpu.memory_space<vmem>>, vector<1x8x16xf32>
    %57 = vector.shape_cast %56 : vector<1x8x16xf32> to vector<8x16xf32>
    %cst_57 = arith.constant dense<0.000000e+00> : vector<8x64xf32>
    %58 = tpu.matmul %57, %28, %cst_57 {dimension_numbers = #tpu.dot_dimension_numbers<[1], [0], [0], [1], [0, 0, 1, 1], [], []>} : vector<8x16xf32>, vector<16x64xf32>, vector<8x64xf32> -> vector<8x64xf32>
    %c4_58 = arith.constant 4 : index
    %c0_59 = arith.constant 0 : index
    %c0_60 = arith.constant 0 : index
    %59 = vector.load %arg8[%c4_58, %c0_59, %c0_60] : memref<9x64x64xf32, #tpu.memory_space<vmem>>, vector<1x64x64xf32>
    %60 = vector.shape_cast %59 : vector<1x64x64xf32> to vector<64x64xf32>
    %cst_61 = arith.constant dense<0.000000e+00> : vector<8x64xf32>
    %61 = tpu.matmul %58, %60, %cst_61 {dimension_numbers = #tpu.dot_dimension_numbers<[1], [0], [0], [1], [0, 0, 1, 1], [], []>} : vector<8x64xf32>, vector<64x64xf32>, vector<8x64xf32> -> vector<8x64xf32>
    %62 = arith.addf %55, %61 : vector<8x64xf32>
    %c5 = arith.constant 5 : index
    %c0_62 = arith.constant 0 : index
    %c0_63 = arith.constant 0 : index
    %63 = vector.load %arg7[%c5, %c0_62, %c0_63] : memref<18x8x16xf32, #tpu.memory_space<vmem>>, vector<1x8x16xf32>
    %64 = vector.shape_cast %63 : vector<1x8x16xf32> to vector<8x16xf32>
    %cst_64 = arith.constant dense<0.000000e+00> : vector<8x64xf32>
    %65 = tpu.matmul %64, %28, %cst_64 {dimension_numbers = #tpu.dot_dimension_numbers<[1], [0], [0], [1], [0, 0, 1, 1], [], []>} : vector<8x16xf32>, vector<16x64xf32>, vector<8x64xf32> -> vector<8x64xf32>
    %c5_65 = arith.constant 5 : index
    %c0_66 = arith.constant 0 : index
    %c0_67 = arith.constant 0 : index
    %66 = vector.load %arg8[%c5_65, %c0_66, %c0_67] : memref<9x64x64xf32, #tpu.memory_space<vmem>>, vector<1x64x64xf32>
    %67 = vector.shape_cast %66 : vector<1x64x64xf32> to vector<64x64xf32>
    %cst_68 = arith.constant dense<0.000000e+00> : vector<8x64xf32>
    %68 = tpu.matmul %65, %67, %cst_68 {dimension_numbers = #tpu.dot_dimension_numbers<[1], [0], [0], [1], [0, 0, 1, 1], [], []>} : vector<8x64xf32>, vector<64x64xf32>, vector<8x64xf32> -> vector<8x64xf32>
    %69 = arith.addf %62, %68 : vector<8x64xf32>
    %c6 = arith.constant 6 : index
    %c0_69 = arith.constant 0 : index
    %c0_70 = arith.constant 0 : index
    %70 = vector.load %arg7[%c6, %c0_69, %c0_70] : memref<18x8x16xf32, #tpu.memory_space<vmem>>, vector<1x8x16xf32>
    %71 = vector.shape_cast %70 : vector<1x8x16xf32> to vector<8x16xf32>
    %cst_71 = arith.constant dense<0.000000e+00> : vector<8x64xf32>
    %72 = tpu.matmul %71, %28, %cst_71 {dimension_numbers = #tpu.dot_dimension_numbers<[1], [0], [0], [1], [0, 0, 1, 1], [], []>} : vector<8x16xf32>, vector<16x64xf32>, vector<8x64xf32> -> vector<8x64xf32>
    %c6_72 = arith.constant 6 : index
    %c0_73 = arith.constant 0 : index
    %c0_74 = arith.constant 0 : index
    %73 = vector.load %arg8[%c6_72, %c0_73, %c0_74] : memref<9x64x64xf32, #tpu.memory_space<vmem>>, vector<1x64x64xf32>
    %74 = vector.shape_cast %73 : vector<1x64x64xf32> to vector<64x64xf32>
    %cst_75 = arith.constant dense<0.000000e+00> : vector<8x64xf32>
    %75 = tpu.matmul %72, %74, %cst_75 {dimension_numbers = #tpu.dot_dimension_numbers<[1], [0], [0], [1], [0, 0, 1, 1], [], []>} : vector<8x64xf32>, vector<64x64xf32>, vector<8x64xf32> -> vector<8x64xf32>
    %76 = arith.addf %69, %75 : vector<8x64xf32>
    %c7 = arith.constant 7 : index
    %c0_76 = arith.constant 0 : index
    %c0_77 = arith.constant 0 : index
    %77 = vector.load %arg7[%c7, %c0_76, %c0_77] : memref<18x8x16xf32, #tpu.memory_space<vmem>>, vector<1x8x16xf32>
    %78 = vector.shape_cast %77 : vector<1x8x16xf32> to vector<8x16xf32>
    %cst_78 = arith.constant dense<0.000000e+00> : vector<8x64xf32>
    %79 = tpu.matmul %78, %28, %cst_78 {dimension_numbers = #tpu.dot_dimension_numbers<[1], [0], [0], [1], [0, 0, 1, 1], [], []>} : vector<8x16xf32>, vector<16x64xf32>, vector<8x64xf32> -> vector<8x64xf32>
    %c7_79 = arith.constant 7 : index
    %c0_80 = arith.constant 0 : index
    %c0_81 = arith.constant 0 : index
    %80 = vector.load %arg8[%c7_79, %c0_80, %c0_81] : memref<9x64x64xf32, #tpu.memory_space<vmem>>, vector<1x64x64xf32>
    %81 = vector.shape_cast %80 : vector<1x64x64xf32> to vector<64x64xf32>
    %cst_82 = arith.constant dense<0.000000e+00> : vector<8x64xf32>
    %82 = tpu.matmul %79, %81, %cst_82 {dimension_numbers = #tpu.dot_dimension_numbers<[1], [0], [0], [1], [0, 0, 1, 1], [], []>} : vector<8x64xf32>, vector<64x64xf32>, vector<8x64xf32> -> vector<8x64xf32>
    %83 = arith.addf %76, %82 : vector<8x64xf32>
    %c8 = arith.constant 8 : index
    %c0_83 = arith.constant 0 : index
    %c0_84 = arith.constant 0 : index
    %84 = vector.load %arg7[%c8, %c0_83, %c0_84] : memref<18x8x16xf32, #tpu.memory_space<vmem>>, vector<1x8x16xf32>
    %85 = vector.shape_cast %84 : vector<1x8x16xf32> to vector<8x16xf32>
    %cst_85 = arith.constant dense<0.000000e+00> : vector<8x64xf32>
    %86 = tpu.matmul %85, %28, %cst_85 {dimension_numbers = #tpu.dot_dimension_numbers<[1], [0], [0], [1], [0, 0, 1, 1], [], []>} : vector<8x16xf32>, vector<16x64xf32>, vector<8x64xf32> -> vector<8x64xf32>
    %c8_86 = arith.constant 8 : index
    %c0_87 = arith.constant 0 : index
    %c0_88 = arith.constant 0 : index
    %87 = vector.load %arg8[%c8_86, %c0_87, %c0_88] : memref<9x64x64xf32, #tpu.memory_space<vmem>>, vector<1x64x64xf32>
    %88 = vector.shape_cast %87 : vector<1x64x64xf32> to vector<64x64xf32>
    %cst_89 = arith.constant dense<0.000000e+00> : vector<8x64xf32>
    %89 = tpu.matmul %86, %88, %cst_89 {dimension_numbers = #tpu.dot_dimension_numbers<[1], [0], [0], [1], [0, 0, 1, 1], [], []>} : vector<8x64xf32>, vector<64x64xf32>, vector<8x64xf32> -> vector<8x64xf32>
    %90 = arith.addf %83, %89 : vector<8x64xf32>
    %c16 = arith.constant 16 : index
    %c0_90 = arith.constant 0 : index
    %91 = vector.load %arg10[%c16, %c0_90] : memref<32x64xf32, #tpu.memory_space<vmem>>, vector<8x64xf32>
    tpu.vector_store %arg10[%c16, %c0_90], %90 {strides = array<i32>} : memref<32x64xf32, #tpu.memory_space<vmem>>, vector<8x64xf32>,
    %c0_91 = arith.constant 0 : index
    %c0_92 = arith.constant 0 : index
    %92 = vector.load %arg10[%c0_91, %c0_92] : memref<32x64xf32, #tpu.memory_space<vmem>>, vector<32x64xf32>
    %c1_93 = arith.constant 1 : index
    %c0_94 = arith.constant 0 : index
    %c0_95 = arith.constant 0 : index
    %93 = vector.load %arg2[%c1_93, %c0_94, %c0_95] : memref<2x32x1xf32, #tpu.memory_space<vmem>>, vector<1x32x1xf32>
    %94 = vector.shape_cast %93 : vector<1x32x1xf32> to vector<32x1xf32>
    %95 = vector.broadcast %94 : vector<32x1xf32> to vector<32x64xf32>
    %96 = arith.mulf %92, %95 : vector<32x64xf32>
    %c1_96 = arith.constant 1 : index
    %c0_97 = arith.constant 0 : index
    %c0_98 = arith.constant 0 : index
    %97 = vector.load %arg3[%c1_96, %c0_97, %c0_98] : memref<2x32x1xf32, #tpu.memory_space<vmem>>, vector<1x32x1xf32>
    %98 = vector.shape_cast %97 : vector<1x32x1xf32> to vector<32x1xf32>
    %99 = vector.broadcast %98 : vector<32x1xf32> to vector<32x64xf32>
    %100 = arith.addf %96, %99 : vector<32x64xf32>
    %cst_99 = arith.constant 0.000000e+00 : f32
    %101 = vector.broadcast %cst_99 : f32 to vector<32x64xf32>
    %102 = arith.maximumf %100, %101 : vector<32x64xf32>
    %c1_100 = arith.constant 1 : index
    %c0_101 = arith.constant 0 : index
    %c0_102 = arith.constant 0 : index
    %103 = vector.load %arg4[%c1_100, %c0_101, %c0_102] : memref<2x16x32xf32, #tpu.memory_space<vmem>>, vector<1x16x32xf32>
    %104 = vector.shape_cast %103 : vector<1x16x32xf32> to vector<16x32xf32>
    %cst_103 = arith.constant dense<0.000000e+00> : vector<16x64xf32>
    %105 = tpu.matmul %104, %102, %cst_103 {dimension_numbers = #tpu.dot_dimension_numbers<[1], [0], [0], [1], [0, 0, 1, 1], [], []>} : vector<16x32xf32>, vector<32x64xf32>, vector<16x64xf32> -> vector<16x64xf32>
    %c1_104 = arith.constant 1 : index
    %c0_105 = arith.constant 0 : index
    %c0_106 = arith.constant 0 : index
    %106 = vector.load %arg5[%c1_104, %c0_105, %c0_106] : memref<2x16x1xf32, #tpu.memory_space<vmem>>, vector<1x16x1xf32>
    %107 = vector.shape_cast %106 : vector<1x16x1xf32> to vector<16x1xf32>
    %108 = vector.broadcast %107 : vector<16x1xf32> to vector<16x64xf32>
    %109 = arith.mulf %105, %108 : vector<16x64xf32>
    %c1_107 = arith.constant 1 : index
    %c0_108 = arith.constant 0 : index
    %c0_109 = arith.constant 0 : index
    %110 = vector.load %arg6[%c1_107, %c0_108, %c0_109] : memref<2x16x1xf32, #tpu.memory_space<vmem>>, vector<1x16x1xf32>
    %111 = vector.shape_cast %110 : vector<1x16x1xf32> to vector<16x1xf32>
    %112 = vector.broadcast %111 : vector<16x1xf32> to vector<16x64xf32>
    %113 = arith.addf %109, %112 : vector<16x64xf32>
    %cst_110 = arith.constant 0.000000e+00 : f32
    %114 = vector.broadcast %cst_110 : f32 to vector<16x64xf32>
    %115 = arith.maximumf %113, %114 : vector<16x64xf32>
    %c9 = arith.constant 9 : index
    %c0_111 = arith.constant 0 : index
    %c0_112 = arith.constant 0 : index
    %116 = vector.load %arg7[%c9, %c0_111, %c0_112] : memref<18x8x16xf32, #tpu.memory_space<vmem>>, vector<1x8x16xf32>
    %117 = vector.shape_cast %116 : vector<1x8x16xf32> to vector<8x16xf32>
    %cst_113 = arith.constant dense<0.000000e+00> : vector<8x64xf32>
    %118 = tpu.matmul %117, %115, %cst_113 {dimension_numbers = #tpu.dot_dimension_numbers<[1], [0], [0], [1], [0, 0, 1, 1], [], []>} : vector<8x16xf32>, vector<16x64xf32>, vector<8x64xf32> -> vector<8x64xf32>
    %c0_114 = arith.constant 0 : index
    %c0_115 = arith.constant 0 : index
    %c0_116 = arith.constant 0 : index
    %119 = vector.load %arg8[%c0_114, %c0_115, %c0_116] : memref<9x64x64xf32, #tpu.memory_space<vmem>>, vector<1x64x64xf32>
    %120 = vector.shape_cast %119 : vector<1x64x64xf32> to vector<64x64xf32>
    %cst_117 = arith.constant dense<0.000000e+00> : vector<8x64xf32>
    %121 = tpu.matmul %118, %120, %cst_117 {dimension_numbers = #tpu.dot_dimension_numbers<[1], [0], [0], [1], [0, 0, 1, 1], [], []>} : vector<8x64xf32>, vector<64x64xf32>, vector<8x64xf32> -> vector<8x64xf32>
    %c10 = arith.constant 10 : index
    %c0_118 = arith.constant 0 : index
    %c0_119 = arith.constant 0 : index
    %122 = vector.load %arg7[%c10, %c0_118, %c0_119] : memref<18x8x16xf32, #tpu.memory_space<vmem>>, vector<1x8x16xf32>
    %123 = vector.shape_cast %122 : vector<1x8x16xf32> to vector<8x16xf32>
    %cst_120 = arith.constant dense<0.000000e+00> : vector<8x64xf32>
    %124 = tpu.matmul %123, %115, %cst_120 {dimension_numbers = #tpu.dot_dimension_numbers<[1], [0], [0], [1], [0, 0, 1, 1], [], []>} : vector<8x16xf32>, vector<16x64xf32>, vector<8x64xf32> -> vector<8x64xf32>
    %c1_121 = arith.constant 1 : index
    %c0_122 = arith.constant 0 : index
    %c0_123 = arith.constant 0 : index
    %125 = vector.load %arg8[%c1_121, %c0_122, %c0_123] : memref<9x64x64xf32, #tpu.memory_space<vmem>>, vector<1x64x64xf32>
    %126 = vector.shape_cast %125 : vector<1x64x64xf32> to vector<64x64xf32>
    %cst_124 = arith.constant dense<0.000000e+00> : vector<8x64xf32>
    %127 = tpu.matmul %124, %126, %cst_124 {dimension_numbers = #tpu.dot_dimension_numbers<[1], [0], [0], [1], [0, 0, 1, 1], [], []>} : vector<8x64xf32>, vector<64x64xf32>, vector<8x64xf32> -> vector<8x64xf32>
    %128 = arith.addf %121, %127 : vector<8x64xf32>
    %c11 = arith.constant 11 : index
    %c0_125 = arith.constant 0 : index
    %c0_126 = arith.constant 0 : index
    %129 = vector.load %arg7[%c11, %c0_125, %c0_126] : memref<18x8x16xf32, #tpu.memory_space<vmem>>, vector<1x8x16xf32>
    %130 = vector.shape_cast %129 : vector<1x8x16xf32> to vector<8x16xf32>
    %cst_127 = arith.constant dense<0.000000e+00> : vector<8x64xf32>
    %131 = tpu.matmul %130, %115, %cst_127 {dimension_numbers = #tpu.dot_dimension_numbers<[1], [0], [0], [1], [0, 0, 1, 1], [], []>} : vector<8x16xf32>, vector<16x64xf32>, vector<8x64xf32> -> vector<8x64xf32>
    %c2_128 = arith.constant 2 : index
    %c0_129 = arith.constant 0 : index
    %c0_130 = arith.constant 0 : index
    %132 = vector.load %arg8[%c2_128, %c0_129, %c0_130] : memref<9x64x64xf32, #tpu.memory_space<vmem>>, vector<1x64x64xf32>
    %133 = vector.shape_cast %132 : vector<1x64x64xf32> to vector<64x64xf32>
    %cst_131 = arith.constant dense<0.000000e+00> : vector<8x64xf32>
    %134 = tpu.matmul %131, %133, %cst_131 {dimension_numbers = #tpu.dot_dimension_numbers<[1], [0], [0], [1], [0, 0, 1, 1], [], []>} : vector<8x64xf32>, vector<64x64xf32>, vector<8x64xf32> -> vector<8x64xf32>
    %135 = arith.addf %128, %134 : vector<8x64xf32>
    %c12 = arith.constant 12 : index
    %c0_132 = arith.constant 0 : index
    %c0_133 = arith.constant 0 : index
    %136 = vector.load %arg7[%c12, %c0_132, %c0_133] : memref<18x8x16xf32, #tpu.memory_space<vmem>>, vector<1x8x16xf32>
    %137 = vector.shape_cast %136 : vector<1x8x16xf32> to vector<8x16xf32>
    %cst_134 = arith.constant dense<0.000000e+00> : vector<8x64xf32>
    %138 = tpu.matmul %137, %115, %cst_134 {dimension_numbers = #tpu.dot_dimension_numbers<[1], [0], [0], [1], [0, 0, 1, 1], [], []>} : vector<8x16xf32>, vector<16x64xf32>, vector<8x64xf32> -> vector<8x64xf32>
    %c3_135 = arith.constant 3 : index
    %c0_136 = arith.constant 0 : index
    %c0_137 = arith.constant 0 : index
    %139 = vector.load %arg8[%c3_135, %c0_136, %c0_137] : memref<9x64x64xf32, #tpu.memory_space<vmem>>, vector<1x64x64xf32>
    %140 = vector.shape_cast %139 : vector<1x64x64xf32> to vector<64x64xf32>
    %cst_138 = arith.constant dense<0.000000e+00> : vector<8x64xf32>
    %141 = tpu.matmul %138, %140, %cst_138 {dimension_numbers = #tpu.dot_dimension_numbers<[1], [0], [0], [1], [0, 0, 1, 1], [], []>} : vector<8x64xf32>, vector<64x64xf32>, vector<8x64xf32> -> vector<8x64xf32>
    %142 = arith.addf %135, %141 : vector<8x64xf32>
    %c13 = arith.constant 13 : index
    %c0_139 = arith.constant 0 : index
    %c0_140 = arith.constant 0 : index
    %143 = vector.load %arg7[%c13, %c0_139, %c0_140] : memref<18x8x16xf32, #tpu.memory_space<vmem>>, vector<1x8x16xf32>
    %144 = vector.shape_cast %143 : vector<1x8x16xf32> to vector<8x16xf32>
    %cst_141 = arith.constant dense<0.000000e+00> : vector<8x64xf32>
    %145 = tpu.matmul %144, %115, %cst_141 {dimension_numbers = #tpu.dot_dimension_numbers<[1], [0], [0], [1], [0, 0, 1, 1], [], []>} : vector<8x16xf32>, vector<16x64xf32>, vector<8x64xf32> -> vector<8x64xf32>
    %c4_142 = arith.constant 4 : index
    %c0_143 = arith.constant 0 : index
    %c0_144 = arith.constant 0 : index
    %146 = vector.load %arg8[%c4_142, %c0_143, %c0_144] : memref<9x64x64xf32, #tpu.memory_space<vmem>>, vector<1x64x64xf32>
    %147 = vector.shape_cast %146 : vector<1x64x64xf32> to vector<64x64xf32>
    %cst_145 = arith.constant dense<0.000000e+00> : vector<8x64xf32>
    %148 = tpu.matmul %145, %147, %cst_145 {dimension_numbers = #tpu.dot_dimension_numbers<[1], [0], [0], [1], [0, 0, 1, 1], [], []>} : vector<8x64xf32>, vector<64x64xf32>, vector<8x64xf32> -> vector<8x64xf32>
    %149 = arith.addf %142, %148 : vector<8x64xf32>
    %c14 = arith.constant 14 : index
    %c0_146 = arith.constant 0 : index
    %c0_147 = arith.constant 0 : index
    %150 = vector.load %arg7[%c14, %c0_146, %c0_147] : memref<18x8x16xf32, #tpu.memory_space<vmem>>, vector<1x8x16xf32>
    %151 = vector.shape_cast %150 : vector<1x8x16xf32> to vector<8x16xf32>
    %cst_148 = arith.constant dense<0.000000e+00> : vector<8x64xf32>
    %152 = tpu.matmul %151, %115, %cst_148 {dimension_numbers = #tpu.dot_dimension_numbers<[1], [0], [0], [1], [0, 0, 1, 1], [], []>} : vector<8x16xf32>, vector<16x64xf32>, vector<8x64xf32> -> vector<8x64xf32>
    %c5_149 = arith.constant 5 : index
    %c0_150 = arith.constant 0 : index
    %c0_151 = arith.constant 0 : index
    %153 = vector.load %arg8[%c5_149, %c0_150, %c0_151] : memref<9x64x64xf32, #tpu.memory_space<vmem>>, vector<1x64x64xf32>
    %154 = vector.shape_cast %153 : vector<1x64x64xf32> to vector<64x64xf32>
    %cst_152 = arith.constant dense<0.000000e+00> : vector<8x64xf32>
    %155 = tpu.matmul %152, %154, %cst_152 {dimension_numbers = #tpu.dot_dimension_numbers<[1], [0], [0], [1], [0, 0, 1, 1], [], []>} : vector<8x64xf32>, vector<64x64xf32>, vector<8x64xf32> -> vector<8x64xf32>
    %156 = arith.addf %149, %155 : vector<8x64xf32>
    %c15 = arith.constant 15 : index
    %c0_153 = arith.constant 0 : index
    %c0_154 = arith.constant 0 : index
    %157 = vector.load %arg7[%c15, %c0_153, %c0_154] : memref<18x8x16xf32, #tpu.memory_space<vmem>>, vector<1x8x16xf32>
    %158 = vector.shape_cast %157 : vector<1x8x16xf32> to vector<8x16xf32>
    %cst_155 = arith.constant dense<0.000000e+00> : vector<8x64xf32>
    %159 = tpu.matmul %158, %115, %cst_155 {dimension_numbers = #tpu.dot_dimension_numbers<[1], [0], [0], [1], [0, 0, 1, 1], [], []>} : vector<8x16xf32>, vector<16x64xf32>, vector<8x64xf32> -> vector<8x64xf32>
    %c6_156 = arith.constant 6 : index
    %c0_157 = arith.constant 0 : index
    %c0_158 = arith.constant 0 : index
    %160 = vector.load %arg8[%c6_156, %c0_157, %c0_158] : memref<9x64x64xf32, #tpu.memory_space<vmem>>, vector<1x64x64xf32>
    %161 = vector.shape_cast %160 : vector<1x64x64xf32> to vector<64x64xf32>
    %cst_159 = arith.constant dense<0.000000e+00> : vector<8x64xf32>
    %162 = tpu.matmul %159, %161, %cst_159 {dimension_numbers = #tpu.dot_dimension_numbers<[1], [0], [0], [1], [0, 0, 1, 1], [], []>} : vector<8x64xf32>, vector<64x64xf32>, vector<8x64xf32> -> vector<8x64xf32>
    %163 = arith.addf %156, %162 : vector<8x64xf32>
    %c16_160 = arith.constant 16 : index
    %c0_161 = arith.constant 0 : index
    %c0_162 = arith.constant 0 : index
    %164 = vector.load %arg7[%c16_160, %c0_161, %c0_162] : memref<18x8x16xf32, #tpu.memory_space<vmem>>, vector<1x8x16xf32>
    %165 = vector.shape_cast %164 : vector<1x8x16xf32> to vector<8x16xf32>
    %cst_163 = arith.constant dense<0.000000e+00> : vector<8x64xf32>
    %166 = tpu.matmul %165, %115, %cst_163 {dimension_numbers = #tpu.dot_dimension_numbers<[1], [0], [0], [1], [0, 0, 1, 1], [], []>} : vector<8x16xf32>, vector<16x64xf32>, vector<8x64xf32> -> vector<8x64xf32>
    %c7_164 = arith.constant 7 : index
    %c0_165 = arith.constant 0 : index
    %c0_166 = arith.constant 0 : index
    %167 = vector.load %arg8[%c7_164, %c0_165, %c0_166] : memref<9x64x64xf32, #tpu.memory_space<vmem>>, vector<1x64x64xf32>
    %168 = vector.shape_cast %167 : vector<1x64x64xf32> to vector<64x64xf32>
    %cst_167 = arith.constant dense<0.000000e+00> : vector<8x64xf32>
    %169 = tpu.matmul %166, %168, %cst_167 {dimension_numbers = #tpu.dot_dimension_numbers<[1], [0], [0], [1], [0, 0, 1, 1], [], []>} : vector<8x64xf32>, vector<64x64xf32>, vector<8x64xf32> -> vector<8x64xf32>
    %170 = arith.addf %163, %169 : vector<8x64xf32>
    %c17 = arith.constant 17 : index
    %c0_168 = arith.constant 0 : index
    %c0_169 = arith.constant 0 : index
    %171 = vector.load %arg7[%c17, %c0_168, %c0_169] : memref<18x8x16xf32, #tpu.memory_space<vmem>>, vector<1x8x16xf32>
    %172 = vector.shape_cast %171 : vector<1x8x16xf32> to vector<8x16xf32>
    %cst_170 = arith.constant dense<0.000000e+00> : vector<8x64xf32>
    %173 = tpu.matmul %172, %115, %cst_170 {dimension_numbers = #tpu.dot_dimension_numbers<[1], [0], [0], [1], [0, 0, 1, 1], [], []>} : vector<8x16xf32>, vector<16x64xf32>, vector<8x64xf32> -> vector<8x64xf32>
    %c8_171 = arith.constant 8 : index
    %c0_172 = arith.constant 0 : index
    %c0_173 = arith.constant 0 : index
    %174 = vector.load %arg8[%c8_171, %c0_172, %c0_173] : memref<9x64x64xf32, #tpu.memory_space<vmem>>, vector<1x64x64xf32>
    %175 = vector.shape_cast %174 : vector<1x64x64xf32> to vector<64x64xf32>
    %cst_174 = arith.constant dense<0.000000e+00> : vector<8x64xf32>
    %176 = tpu.matmul %173, %175, %cst_174 {dimension_numbers = #tpu.dot_dimension_numbers<[1], [0], [0], [1], [0, 0, 1, 1], [], []>} : vector<8x64xf32>, vector<64x64xf32>, vector<8x64xf32> -> vector<8x64xf32>
    %177 = arith.addf %170, %176 : vector<8x64xf32>
    %c24 = arith.constant 24 : index
    %c0_175 = arith.constant 0 : index
    %178 = vector.load %arg10[%c24, %c0_175] : memref<32x64xf32, #tpu.memory_space<vmem>>, vector<8x64xf32>
    tpu.vector_store %arg10[%c24, %c0_175], %177 {strides = array<i32>} : memref<32x64xf32, #tpu.memory_space<vmem>>, vector<8x64xf32>,
    %c0_176 = arith.constant 0 : index
    %c0_177 = arith.constant 0 : index
    %179 = vector.load %arg10[%c0_176, %c0_177] : memref<32x64xf32, #tpu.memory_space<vmem>>, vector<32x64xf32>
    %c0_178 = arith.constant 0 : index
    %c0_179 = arith.constant 0 : index
    %c0_180 = arith.constant 0 : index
    %180 = vector.load %arg9[%c0_178, %c0_179, %c0_180] : memref<1x32x64xf32, #tpu.memory_space<vmem>>, vector<1x32x64xf32>
    %181 = vector.shape_cast %180 : vector<1x32x64xf32> to vector<32x64xf32>
    %182 = vector.shape_cast %179 : vector<32x64xf32> to vector<1x32x64xf32>
    tpu.vector_store %arg9[%c0_178, %c0_179, %c0_180], %182 {strides = array<i32>} : memref<1x32x64xf32, #tpu.memory_space<vmem>>, vector<1x32x64xf32>,
    return
  }
  func.func @transform_0(%arg0: i32) -> (i32, i32, i32) {
    %c0_i32 = arith.constant 0 : i32
    %c0_i32_0 = arith.constant 0 : i32
    %c0_i32_1 = arith.constant 0 : i32
    return %arg0, %c0_i32, %c0_i32_0 : i32, i32, i32
  }
  func.func @transform_1(%arg0: i32) -> (i32, i32, i32) {
    %c0_i32 = arith.constant 0 : i32
    %c0_i32_0 = arith.constant 0 : i32
    %c0_i32_1 = arith.constant 0 : i32
    %c0_i32_2 = arith.constant 0 : i32
    return %c0_i32, %c0_i32_0, %c0_i32_1 : i32, i32, i32
  }
  func.func @transform_2(%arg0: i32) -> (i32, i32, i32) {
    %c0_i32 = arith.constant 0 : i32
    %c0_i32_0 = arith.constant 0 : i32
    %c0_i32_1 = arith.constant 0 : i32
    %c0_i32_2 = arith.constant 0 : i32
    return %c0_i32, %c0_i32_0, %c0_i32_1 : i32, i32, i32
  }
  func.func @transform_3(%arg0: i32) -> (i32, i32, i32) {
    %c0_i32 = arith.constant 0 : i32
    %c0_i32_0 = arith.constant 0 : i32
    %c0_i32_1 = arith.constant 0 : i32
    %c0_i32_2 = arith.constant 0 : i32
    return %c0_i32, %c0_i32_0, %c0_i32_1 : i32, i32, i32
  }
  func.func @transform_4(%arg0: i32) -> (i32, i32, i32) {
    %c0_i32 = arith.constant 0 : i32
    %c0_i32_0 = arith.constant 0 : i32
    %c0_i32_1 = arith.constant 0 : i32
    %c0_i32_2 = arith.constant 0 : i32
    return %c0_i32, %c0_i32_0, %c0_i32_1 : i32, i32, i32
  }
  func.func @transform_5(%arg0: i32) -> (i32, i32, i32) {
    %c0_i32 = arith.constant 0 : i32
    %c0_i32_0 = arith.constant 0 : i32
    %c0_i32_1 = arith.constant 0 : i32
    %c0_i32_2 = arith.constant 0 : i32
    return %c0_i32, %c0_i32_0, %c0_i32_1 : i32, i32, i32
  }
  func.func @transform_6(%arg0: i32) -> (i32, i32, i32) {
    %c0_i32 = arith.constant 0 : i32
    %c0_i32_0 = arith.constant 0 : i32
    %c0_i32_1 = arith.constant 0 : i32
    %c0_i32_2 = arith.constant 0 : i32
    return %c0_i32, %c0_i32_0, %c0_i32_1 : i32, i32, i32
  }
  func.func @transform_7(%arg0: i32) -> (i32, i32, i32) {
    %c0_i32 = arith.constant 0 : i32
    %c0_i32_0 = arith.constant 0 : i32
    %c0_i32_1 = arith.constant 0 : i32
    %c0_i32_2 = arith.constant 0 : i32
    return %c0_i32, %c0_i32_0, %c0_i32_1 : i32, i32, i32
  }
  func.func @transform_8(%arg0: i32) -> (i32, i32, i32) {
    %c0_i32 = arith.constant 0 : i32
    %c0_i32_0 = arith.constant 0 : i32
    %c0_i32_1 = arith.constant 0 : i32
    return %arg0, %c0_i32, %c0_i32_0 : i32, i32, i32
  }
}

module attributes {stable_mosaic.version = 11 : i64} {
  func.func @kernel(%arg0: i32, %arg1: memref<1x16x16xf32, #tpu.memory_space<vmem>>, %arg2: memref<2x32x1xf32, #tpu.memory_space<vmem>>, %arg3: memref<2x32x1xf32, #tpu.memory_space<vmem>>, %arg4: memref<2x16x32xf32, #tpu.memory_space<vmem>>, %arg5: memref<2x16x1xf32, #tpu.memory_space<vmem>>, %arg6: memref<2x16x1xf32, #tpu.memory_space<vmem>>, %arg7: memref<18x8x16xf32, #tpu.memory_space<vmem>>, %arg8: memref<9x16x16xf32, #tpu.memory_space<vmem>>, %arg9: memref<1x32x16xf32, #tpu.memory_space<vmem>>, %arg10: memref<32x16xf32, #tpu.memory_space<vmem>>) attributes {dimension_semantics = [#tpu.dimension_semantics<parallel>], iteration_bounds = array<i64: 2>, scalar_prefetch = 0 : i64, scratch_operands = 1 : i64, tpu.core_type = #tpu.core_type<tc>, window_params = [{transform_indices = @transform_0, window_bounds = array<i64: 1, 16, 16>}, {pipeline_mode = #tpu.pipeline_mode<synchronous>, transform_indices = @transform_1, window_bounds = array<i64: 2, 32, 1>}, {pipeline_mode = #tpu.pipeline_mode<synchronous>, transform_indices = @transform_2, window_bounds = array<i64: 2, 32, 1>}, {pipeline_mode = #tpu.pipeline_mode<synchronous>, transform_indices = @transform_3, window_bounds = array<i64: 2, 16, 32>}, {pipeline_mode = #tpu.pipeline_mode<synchronous>, transform_indices = @transform_4, window_bounds = array<i64: 2, 16, 1>}, {pipeline_mode = #tpu.pipeline_mode<synchronous>, transform_indices = @transform_5, window_bounds = array<i64: 2, 16, 1>}, {pipeline_mode = #tpu.pipeline_mode<synchronous>, transform_indices = @transform_6, window_bounds = array<i64: 18, 8, 16>}, {pipeline_mode = #tpu.pipeline_mode<synchronous>, transform_indices = @transform_7, window_bounds = array<i64: 9, 16, 16>}, {transform_indices = @transform_8, window_bounds = array<i64: 1, 32, 16>}]} {
    %cst = arith.constant 0.000000e+00 : f32
    %0 = vector.broadcast %cst : f32 to vector<32x16xf32>
    %c0 = arith.constant 0 : index
    %c0_0 = arith.constant 0 : index
    %1 = vector.load %arg10[%c0, %c0_0] : memref<32x16xf32, #tpu.memory_space<vmem>>, vector<32x16xf32>
    tpu.vector_store %arg10[%c0, %c0_0], %0 {strides = array<i32>} : memref<32x16xf32, #tpu.memory_space<vmem>>, vector<32x16xf32>,
    %c0_1 = arith.constant 0 : index
    %c0_2 = arith.constant 0 : index
    %c0_3 = arith.constant 0 : index
    %2 = vector.load %arg1[%c0_1, %c0_2, %c0_3] : memref<1x16x16xf32, #tpu.memory_space<vmem>>, vector<1x16x16xf32>
    %3 = vector.shape_cast %2 : vector<1x16x16xf32> to vector<16x16xf32>
    %c0_4 = arith.constant 0 : index
    %c0_5 = arith.constant 0 : index
    %4 = vector.load %arg10[%c0_4, %c0_5] : memref<32x16xf32, #tpu.memory_space<vmem>>, vector<16x16xf32>
    tpu.vector_store %arg10[%c0_4, %c0_5], %3 {strides = array<i32>} : memref<32x16xf32, #tpu.memory_space<vmem>>, vector<16x16xf32>,
    %c0_6 = arith.constant 0 : index
    %c0_7 = arith.constant 0 : index
    %5 = vector.load %arg10[%c0_6, %c0_7] : memref<32x16xf32, #tpu.memory_space<vmem>>, vector<32x16xf32>
    %c0_8 = arith.constant 0 : index
    %c0_9 = arith.constant 0 : index
    %c0_10 = arith.constant 0 : index
    %6 = vector.load %arg2[%c0_8, %c0_9, %c0_10] : memref<2x32x1xf32, #tpu.memory_space<vmem>>, vector<1x32x1xf32>
    %7 = vector.shape_cast %6 : vector<1x32x1xf32> to vector<32x1xf32>
    %8 = vector.broadcast %7 : vector<32x1xf32> to vector<32x16xf32>
    %9 = arith.mulf %5, %8 : vector<32x16xf32>
    %c0_11 = arith.constant 0 : index
    %c0_12 = arith.constant 0 : index
    %c0_13 = arith.constant 0 : index
    %10 = vector.load %arg3[%c0_11, %c0_12, %c0_13] : memref<2x32x1xf32, #tpu.memory_space<vmem>>, vector<1x32x1xf32>
    %11 = vector.shape_cast %10 : vector<1x32x1xf32> to vector<32x1xf32>
    %12 = vector.broadcast %11 : vector<32x1xf32> to vector<32x16xf32>
    %13 = arith.addf %9, %12 : vector<32x16xf32>
    %cst_14 = arith.constant 0.000000e+00 : f32
    %14 = vector.broadcast %cst_14 : f32 to vector<32x16xf32>
    %15 = arith.maximumf %13, %14 : vector<32x16xf32>
    %c0_15 = arith.constant 0 : index
    %c0_16 = arith.constant 0 : index
    %c0_17 = arith.constant 0 : index
    %16 = vector.load %arg4[%c0_15, %c0_16, %c0_17] : memref<2x16x32xf32, #tpu.memory_space<vmem>>, vector<1x16x32xf32>
    %17 = vector.shape_cast %16 : vector<1x16x32xf32> to vector<16x32xf32>
    %cst_18 = arith.constant dense<0.000000e+00> : vector<16x16xf32>
    %18 = tpu.matmul %17, %15, %cst_18 {dimension_numbers = #tpu.dot_dimension_numbers<[1], [0], [0], [1], [0, 0, 1, 1], [], []>} : vector<16x32xf32>, vector<32x16xf32>, vector<16x16xf32> -> vector<16x16xf32>
    %c0_19 = arith.constant 0 : index
    %c0_20 = arith.constant 0 : index
    %c0_21 = arith.constant 0 : index
    %19 = vector.load %arg5[%c0_19, %c0_20, %c0_21] : memref<2x16x1xf32, #tpu.memory_space<vmem>>, vector<1x16x1xf32>
    %20 = vector.shape_cast %19 : vector<1x16x1xf32> to vector<16x1xf32>
    %21 = vector.broadcast %20 : vector<16x1xf32> to vector<16x16xf32>
    %22 = arith.mulf %18, %21 : vector<16x16xf32>
    %c0_22 = arith.constant 0 : index
    %c0_23 = arith.constant 0 : index
    %c0_24 = arith.constant 0 : index
    %23 = vector.load %arg6[%c0_22, %c0_23, %c0_24] : memref<2x16x1xf32, #tpu.memory_space<vmem>>, vector<1x16x1xf32>
    %24 = vector.shape_cast %23 : vector<1x16x1xf32> to vector<16x1xf32>
    %25 = vector.broadcast %24 : vector<16x1xf32> to vector<16x16xf32>
    %26 = arith.addf %22, %25 : vector<16x16xf32>
    %cst_25 = arith.constant 0.000000e+00 : f32
    %27 = vector.broadcast %cst_25 : f32 to vector<16x16xf32>
    %28 = arith.maximumf %26, %27 : vector<16x16xf32>
    %c0_26 = arith.constant 0 : index
    %c0_27 = arith.constant 0 : index
    %c0_28 = arith.constant 0 : index
    %29 = vector.load %arg7[%c0_26, %c0_27, %c0_28] : memref<18x8x16xf32, #tpu.memory_space<vmem>>, vector<1x8x16xf32>
    %30 = vector.shape_cast %29 : vector<1x8x16xf32> to vector<8x16xf32>
    %cst_29 = arith.constant dense<0.000000e+00> : vector<8x16xf32>
    %31 = tpu.matmul %30, %28, %cst_29 {dimension_numbers = #tpu.dot_dimension_numbers<[1], [0], [0], [1], [0, 0, 1, 1], [], []>} : vector<8x16xf32>, vector<16x16xf32>, vector<8x16xf32> -> vector<8x16xf32>
    %c0_30 = arith.constant 0 : index
    %c0_31 = arith.constant 0 : index
    %c0_32 = arith.constant 0 : index
    %32 = vector.load %arg8[%c0_30, %c0_31, %c0_32] : memref<9x16x16xf32, #tpu.memory_space<vmem>>, vector<1x16x16xf32>
    %33 = vector.shape_cast %32 : vector<1x16x16xf32> to vector<16x16xf32>
    %cst_33 = arith.constant dense<0.000000e+00> : vector<8x16xf32>
    %34 = tpu.matmul %31, %33, %cst_33 {dimension_numbers = #tpu.dot_dimension_numbers<[1], [0], [0], [1], [0, 0, 1, 1], [], []>} : vector<8x16xf32>, vector<16x16xf32>, vector<8x16xf32> -> vector<8x16xf32>
    %c1 = arith.constant 1 : index
    %c0_34 = arith.constant 0 : index
    %c0_35 = arith.constant 0 : index
    %35 = vector.load %arg7[%c1, %c0_34, %c0_35] : memref<18x8x16xf32, #tpu.memory_space<vmem>>, vector<1x8x16xf32>
    %36 = vector.shape_cast %35 : vector<1x8x16xf32> to vector<8x16xf32>
    %cst_36 = arith.constant dense<0.000000e+00> : vector<8x16xf32>
    %37 = tpu.matmul %36, %28, %cst_36 {dimension_numbers = #tpu.dot_dimension_numbers<[1], [0], [0], [1], [0, 0, 1, 1], [], []>} : vector<8x16xf32>, vector<16x16xf32>, vector<8x16xf32> -> vector<8x16xf32>
    %c1_37 = arith.constant 1 : index
    %c0_38 = arith.constant 0 : index
    %c0_39 = arith.constant 0 : index
    %38 = vector.load %arg8[%c1_37, %c0_38, %c0_39] : memref<9x16x16xf32, #tpu.memory_space<vmem>>, vector<1x16x16xf32>
    %39 = vector.shape_cast %38 : vector<1x16x16xf32> to vector<16x16xf32>
    %cst_40 = arith.constant dense<0.000000e+00> : vector<8x16xf32>
    %40 = tpu.matmul %37, %39, %cst_40 {dimension_numbers = #tpu.dot_dimension_numbers<[1], [0], [0], [1], [0, 0, 1, 1], [], []>} : vector<8x16xf32>, vector<16x16xf32>, vector<8x16xf32> -> vector<8x16xf32>
    %41 = arith.addf %34, %40 : vector<8x16xf32>
    %c2 = arith.constant 2 : index
    %c0_41 = arith.constant 0 : index
    %c0_42 = arith.constant 0 : index
    %42 = vector.load %arg7[%c2, %c0_41, %c0_42] : memref<18x8x16xf32, #tpu.memory_space<vmem>>, vector<1x8x16xf32>
    %43 = vector.shape_cast %42 : vector<1x8x16xf32> to vector<8x16xf32>
    %cst_43 = arith.constant dense<0.000000e+00> : vector<8x16xf32>
    %44 = tpu.matmul %43, %28, %cst_43 {dimension_numbers = #tpu.dot_dimension_numbers<[1], [0], [0], [1], [0, 0, 1, 1], [], []>} : vector<8x16xf32>, vector<16x16xf32>, vector<8x16xf32> -> vector<8x16xf32>
    %c2_44 = arith.constant 2 : index
    %c0_45 = arith.constant 0 : index
    %c0_46 = arith.constant 0 : index
    %45 = vector.load %arg8[%c2_44, %c0_45, %c0_46] : memref<9x16x16xf32, #tpu.memory_space<vmem>>, vector<1x16x16xf32>
    %46 = vector.shape_cast %45 : vector<1x16x16xf32> to vector<16x16xf32>
    %cst_47 = arith.constant dense<0.000000e+00> : vector<8x16xf32>
    %47 = tpu.matmul %44, %46, %cst_47 {dimension_numbers = #tpu.dot_dimension_numbers<[1], [0], [0], [1], [0, 0, 1, 1], [], []>} : vector<8x16xf32>, vector<16x16xf32>, vector<8x16xf32> -> vector<8x16xf32>
    %48 = arith.addf %41, %47 : vector<8x16xf32>
    %c3 = arith.constant 3 : index
    %c0_48 = arith.constant 0 : index
    %c0_49 = arith.constant 0 : index
    %49 = vector.load %arg7[%c3, %c0_48, %c0_49] : memref<18x8x16xf32, #tpu.memory_space<vmem>>, vector<1x8x16xf32>
    %50 = vector.shape_cast %49 : vector<1x8x16xf32> to vector<8x16xf32>
    %cst_50 = arith.constant dense<0.000000e+00> : vector<8x16xf32>
    %51 = tpu.matmul %50, %28, %cst_50 {dimension_numbers = #tpu.dot_dimension_numbers<[1], [0], [0], [1], [0, 0, 1, 1], [], []>} : vector<8x16xf32>, vector<16x16xf32>, vector<8x16xf32> -> vector<8x16xf32>
    %c3_51 = arith.constant 3 : index
    %c0_52 = arith.constant 0 : index
    %c0_53 = arith.constant 0 : index
    %52 = vector.load %arg8[%c3_51, %c0_52, %c0_53] : memref<9x16x16xf32, #tpu.memory_space<vmem>>, vector<1x16x16xf32>
    %53 = vector.shape_cast %52 : vector<1x16x16xf32> to vector<16x16xf32>
    %cst_54 = arith.constant dense<0.000000e+00> : vector<8x16xf32>
    %54 = tpu.matmul %51, %53, %cst_54 {dimension_numbers = #tpu.dot_dimension_numbers<[1], [0], [0], [1], [0, 0, 1, 1], [], []>} : vector<8x16xf32>, vector<16x16xf32>, vector<8x16xf32> -> vector<8x16xf32>
    %55 = arith.addf %48, %54 : vector<8x16xf32>
    %c4 = arith.constant 4 : index
    %c0_55 = arith.constant 0 : index
    %c0_56 = arith.constant 0 : index
    %56 = vector.load %arg7[%c4, %c0_55, %c0_56] : memref<18x8x16xf32, #tpu.memory_space<vmem>>, vector<1x8x16xf32>
    %57 = vector.shape_cast %56 : vector<1x8x16xf32> to vector<8x16xf32>
    %cst_57 = arith.constant dense<0.000000e+00> : vector<8x16xf32>
    %58 = tpu.matmul %57, %28, %cst_57 {dimension_numbers = #tpu.dot_dimension_numbers<[1], [0], [0], [1], [0, 0, 1, 1], [], []>} : vector<8x16xf32>, vector<16x16xf32>, vector<8x16xf32> -> vector<8x16xf32>
    %c4_58 = arith.constant 4 : index
    %c0_59 = arith.constant 0 : index
    %c0_60 = arith.constant 0 : index
    %59 = vector.load %arg8[%c4_58, %c0_59, %c0_60] : memref<9x16x16xf32, #tpu.memory_space<vmem>>, vector<1x16x16xf32>
    %60 = vector.shape_cast %59 : vector<1x16x16xf32> to vector<16x16xf32>
    %cst_61 = arith.constant dense<0.000000e+00> : vector<8x16xf32>
    %61 = tpu.matmul %58, %60, %cst_61 {dimension_numbers = #tpu.dot_dimension_numbers<[1], [0], [0], [1], [0, 0, 1, 1], [], []>} : vector<8x16xf32>, vector<16x16xf32>, vector<8x16xf32> -> vector<8x16xf32>
    %62 = arith.addf %55, %61 : vector<8x16xf32>
    %c5 = arith.constant 5 : index
    %c0_62 = arith.constant 0 : index
    %c0_63 = arith.constant 0 : index
    %63 = vector.load %arg7[%c5, %c0_62, %c0_63] : memref<18x8x16xf32, #tpu.memory_space<vmem>>, vector<1x8x16xf32>
    %64 = vector.shape_cast %63 : vector<1x8x16xf32> to vector<8x16xf32>
    %cst_64 = arith.constant dense<0.000000e+00> : vector<8x16xf32>
    %65 = tpu.matmul %64, %28, %cst_64 {dimension_numbers = #tpu.dot_dimension_numbers<[1], [0], [0], [1], [0, 0, 1, 1], [], []>} : vector<8x16xf32>, vector<16x16xf32>, vector<8x16xf32> -> vector<8x16xf32>
    %c5_65 = arith.constant 5 : index
    %c0_66 = arith.constant 0 : index
    %c0_67 = arith.constant 0 : index
    %66 = vector.load %arg8[%c5_65, %c0_66, %c0_67] : memref<9x16x16xf32, #tpu.memory_space<vmem>>, vector<1x16x16xf32>
    %67 = vector.shape_cast %66 : vector<1x16x16xf32> to vector<16x16xf32>
    %cst_68 = arith.constant dense<0.000000e+00> : vector<8x16xf32>
    %68 = tpu.matmul %65, %67, %cst_68 {dimension_numbers = #tpu.dot_dimension_numbers<[1], [0], [0], [1], [0, 0, 1, 1], [], []>} : vector<8x16xf32>, vector<16x16xf32>, vector<8x16xf32> -> vector<8x16xf32>
    %69 = arith.addf %62, %68 : vector<8x16xf32>
    %c6 = arith.constant 6 : index
    %c0_69 = arith.constant 0 : index
    %c0_70 = arith.constant 0 : index
    %70 = vector.load %arg7[%c6, %c0_69, %c0_70] : memref<18x8x16xf32, #tpu.memory_space<vmem>>, vector<1x8x16xf32>
    %71 = vector.shape_cast %70 : vector<1x8x16xf32> to vector<8x16xf32>
    %cst_71 = arith.constant dense<0.000000e+00> : vector<8x16xf32>
    %72 = tpu.matmul %71, %28, %cst_71 {dimension_numbers = #tpu.dot_dimension_numbers<[1], [0], [0], [1], [0, 0, 1, 1], [], []>} : vector<8x16xf32>, vector<16x16xf32>, vector<8x16xf32> -> vector<8x16xf32>
    %c6_72 = arith.constant 6 : index
    %c0_73 = arith.constant 0 : index
    %c0_74 = arith.constant 0 : index
    %73 = vector.load %arg8[%c6_72, %c0_73, %c0_74] : memref<9x16x16xf32, #tpu.memory_space<vmem>>, vector<1x16x16xf32>
    %74 = vector.shape_cast %73 : vector<1x16x16xf32> to vector<16x16xf32>
    %cst_75 = arith.constant dense<0.000000e+00> : vector<8x16xf32>
    %75 = tpu.matmul %72, %74, %cst_75 {dimension_numbers = #tpu.dot_dimension_numbers<[1], [0], [0], [1], [0, 0, 1, 1], [], []>} : vector<8x16xf32>, vector<16x16xf32>, vector<8x16xf32> -> vector<8x16xf32>
    %76 = arith.addf %69, %75 : vector<8x16xf32>
    %c7 = arith.constant 7 : index
    %c0_76 = arith.constant 0 : index
    %c0_77 = arith.constant 0 : index
    %77 = vector.load %arg7[%c7, %c0_76, %c0_77] : memref<18x8x16xf32, #tpu.memory_space<vmem>>, vector<1x8x16xf32>
    %78 = vector.shape_cast %77 : vector<1x8x16xf32> to vector<8x16xf32>
    %cst_78 = arith.constant dense<0.000000e+00> : vector<8x16xf32>
    %79 = tpu.matmul %78, %28, %cst_78 {dimension_numbers = #tpu.dot_dimension_numbers<[1], [0], [0], [1], [0, 0, 1, 1], [], []>} : vector<8x16xf32>, vector<16x16xf32>, vector<8x16xf32> -> vector<8x16xf32>
    %c7_79 = arith.constant 7 : index
    %c0_80 = arith.constant 0 : index
    %c0_81 = arith.constant 0 : index
    %80 = vector.load %arg8[%c7_79, %c0_80, %c0_81] : memref<9x16x16xf32, #tpu.memory_space<vmem>>, vector<1x16x16xf32>
    %81 = vector.shape_cast %80 : vector<1x16x16xf32> to vector<16x16xf32>
    %cst_82 = arith.constant dense<0.000000e+00> : vector<8x16xf32>
    %82 = tpu.matmul %79, %81, %cst_82 {dimension_numbers = #tpu.dot_dimension_numbers<[1], [0], [0], [1], [0, 0, 1, 1], [], []>} : vector<8x16xf32>, vector<16x16xf32>, vector<8x16xf32> -> vector<8x16xf32>
    %83 = arith.addf %76, %82 : vector<8x16xf32>
    %c8 = arith.constant 8 : index
    %c0_83 = arith.constant 0 : index
    %c0_84 = arith.constant 0 : index
    %84 = vector.load %arg7[%c8, %c0_83, %c0_84] : memref<18x8x16xf32, #tpu.memory_space<vmem>>, vector<1x8x16xf32>
    %85 = vector.shape_cast %84 : vector<1x8x16xf32> to vector<8x16xf32>
    %cst_85 = arith.constant dense<0.000000e+00> : vector<8x16xf32>
    %86 = tpu.matmul %85, %28, %cst_85 {dimension_numbers = #tpu.dot_dimension_numbers<[1], [0], [0], [1], [0, 0, 1, 1], [], []>} : vector<8x16xf32>, vector<16x16xf32>, vector<8x16xf32> -> vector<8x16xf32>
    %c8_86 = arith.constant 8 : index
    %c0_87 = arith.constant 0 : index
    %c0_88 = arith.constant 0 : index
    %87 = vector.load %arg8[%c8_86, %c0_87, %c0_88] : memref<9x16x16xf32, #tpu.memory_space<vmem>>, vector<1x16x16xf32>
    %88 = vector.shape_cast %87 : vector<1x16x16xf32> to vector<16x16xf32>
    %cst_89 = arith.constant dense<0.000000e+00> : vector<8x16xf32>
    %89 = tpu.matmul %86, %88, %cst_89 {dimension_numbers = #tpu.dot_dimension_numbers<[1], [0], [0], [1], [0, 0, 1, 1], [], []>} : vector<8x16xf32>, vector<16x16xf32>, vector<8x16xf32> -> vector<8x16xf32>
    %90 = arith.addf %83, %89 : vector<8x16xf32>
    %c16 = arith.constant 16 : index
    %c0_90 = arith.constant 0 : index
    %91 = vector.load %arg10[%c16, %c0_90] : memref<32x16xf32, #tpu.memory_space<vmem>>, vector<8x16xf32>
    tpu.vector_store %arg10[%c16, %c0_90], %90 {strides = array<i32>} : memref<32x16xf32, #tpu.memory_space<vmem>>, vector<8x16xf32>,
    %c0_91 = arith.constant 0 : index
    %c0_92 = arith.constant 0 : index
    %92 = vector.load %arg10[%c0_91, %c0_92] : memref<32x16xf32, #tpu.memory_space<vmem>>, vector<32x16xf32>
    %c1_93 = arith.constant 1 : index
    %c0_94 = arith.constant 0 : index
    %c0_95 = arith.constant 0 : index
    %93 = vector.load %arg2[%c1_93, %c0_94, %c0_95] : memref<2x32x1xf32, #tpu.memory_space<vmem>>, vector<1x32x1xf32>
    %94 = vector.shape_cast %93 : vector<1x32x1xf32> to vector<32x1xf32>
    %95 = vector.broadcast %94 : vector<32x1xf32> to vector<32x16xf32>
    %96 = arith.mulf %92, %95 : vector<32x16xf32>
    %c1_96 = arith.constant 1 : index
    %c0_97 = arith.constant 0 : index
    %c0_98 = arith.constant 0 : index
    %97 = vector.load %arg3[%c1_96, %c0_97, %c0_98] : memref<2x32x1xf32, #tpu.memory_space<vmem>>, vector<1x32x1xf32>
    %98 = vector.shape_cast %97 : vector<1x32x1xf32> to vector<32x1xf32>
    %99 = vector.broadcast %98 : vector<32x1xf32> to vector<32x16xf32>
    %100 = arith.addf %96, %99 : vector<32x16xf32>
    %cst_99 = arith.constant 0.000000e+00 : f32
    %101 = vector.broadcast %cst_99 : f32 to vector<32x16xf32>
    %102 = arith.maximumf %100, %101 : vector<32x16xf32>
    %c1_100 = arith.constant 1 : index
    %c0_101 = arith.constant 0 : index
    %c0_102 = arith.constant 0 : index
    %103 = vector.load %arg4[%c1_100, %c0_101, %c0_102] : memref<2x16x32xf32, #tpu.memory_space<vmem>>, vector<1x16x32xf32>
    %104 = vector.shape_cast %103 : vector<1x16x32xf32> to vector<16x32xf32>
    %cst_103 = arith.constant dense<0.000000e+00> : vector<16x16xf32>
    %105 = tpu.matmul %104, %102, %cst_103 {dimension_numbers = #tpu.dot_dimension_numbers<[1], [0], [0], [1], [0, 0, 1, 1], [], []>} : vector<16x32xf32>, vector<32x16xf32>, vector<16x16xf32> -> vector<16x16xf32>
    %c1_104 = arith.constant 1 : index
    %c0_105 = arith.constant 0 : index
    %c0_106 = arith.constant 0 : index
    %106 = vector.load %arg5[%c1_104, %c0_105, %c0_106] : memref<2x16x1xf32, #tpu.memory_space<vmem>>, vector<1x16x1xf32>
    %107 = vector.shape_cast %106 : vector<1x16x1xf32> to vector<16x1xf32>
    %108 = vector.broadcast %107 : vector<16x1xf32> to vector<16x16xf32>
    %109 = arith.mulf %105, %108 : vector<16x16xf32>
    %c1_107 = arith.constant 1 : index
    %c0_108 = arith.constant 0 : index
    %c0_109 = arith.constant 0 : index
    %110 = vector.load %arg6[%c1_107, %c0_108, %c0_109] : memref<2x16x1xf32, #tpu.memory_space<vmem>>, vector<1x16x1xf32>
    %111 = vector.shape_cast %110 : vector<1x16x1xf32> to vector<16x1xf32>
    %112 = vector.broadcast %111 : vector<16x1xf32> to vector<16x16xf32>
    %113 = arith.addf %109, %112 : vector<16x16xf32>
    %cst_110 = arith.constant 0.000000e+00 : f32
    %114 = vector.broadcast %cst_110 : f32 to vector<16x16xf32>
    %115 = arith.maximumf %113, %114 : vector<16x16xf32>
    %c9 = arith.constant 9 : index
    %c0_111 = arith.constant 0 : index
    %c0_112 = arith.constant 0 : index
    %116 = vector.load %arg7[%c9, %c0_111, %c0_112] : memref<18x8x16xf32, #tpu.memory_space<vmem>>, vector<1x8x16xf32>
    %117 = vector.shape_cast %116 : vector<1x8x16xf32> to vector<8x16xf32>
    %cst_113 = arith.constant dense<0.000000e+00> : vector<8x16xf32>
    %118 = tpu.matmul %117, %115, %cst_113 {dimension_numbers = #tpu.dot_dimension_numbers<[1], [0], [0], [1], [0, 0, 1, 1], [], []>} : vector<8x16xf32>, vector<16x16xf32>, vector<8x16xf32> -> vector<8x16xf32>
    %c0_114 = arith.constant 0 : index
    %c0_115 = arith.constant 0 : index
    %c0_116 = arith.constant 0 : index
    %119 = vector.load %arg8[%c0_114, %c0_115, %c0_116] : memref<9x16x16xf32, #tpu.memory_space<vmem>>, vector<1x16x16xf32>
    %120 = vector.shape_cast %119 : vector<1x16x16xf32> to vector<16x16xf32>
    %cst_117 = arith.constant dense<0.000000e+00> : vector<8x16xf32>
    %121 = tpu.matmul %118, %120, %cst_117 {dimension_numbers = #tpu.dot_dimension_numbers<[1], [0], [0], [1], [0, 0, 1, 1], [], []>} : vector<8x16xf32>, vector<16x16xf32>, vector<8x16xf32> -> vector<8x16xf32>
    %c10 = arith.constant 10 : index
    %c0_118 = arith.constant 0 : index
    %c0_119 = arith.constant 0 : index
    %122 = vector.load %arg7[%c10, %c0_118, %c0_119] : memref<18x8x16xf32, #tpu.memory_space<vmem>>, vector<1x8x16xf32>
    %123 = vector.shape_cast %122 : vector<1x8x16xf32> to vector<8x16xf32>
    %cst_120 = arith.constant dense<0.000000e+00> : vector<8x16xf32>
    %124 = tpu.matmul %123, %115, %cst_120 {dimension_numbers = #tpu.dot_dimension_numbers<[1], [0], [0], [1], [0, 0, 1, 1], [], []>} : vector<8x16xf32>, vector<16x16xf32>, vector<8x16xf32> -> vector<8x16xf32>
    %c1_121 = arith.constant 1 : index
    %c0_122 = arith.constant 0 : index
    %c0_123 = arith.constant 0 : index
    %125 = vector.load %arg8[%c1_121, %c0_122, %c0_123] : memref<9x16x16xf32, #tpu.memory_space<vmem>>, vector<1x16x16xf32>
    %126 = vector.shape_cast %125 : vector<1x16x16xf32> to vector<16x16xf32>
    %cst_124 = arith.constant dense<0.000000e+00> : vector<8x16xf32>
    %127 = tpu.matmul %124, %126, %cst_124 {dimension_numbers = #tpu.dot_dimension_numbers<[1], [0], [0], [1], [0, 0, 1, 1], [], []>} : vector<8x16xf32>, vector<16x16xf32>, vector<8x16xf32> -> vector<8x16xf32>
    %128 = arith.addf %121, %127 : vector<8x16xf32>
    %c11 = arith.constant 11 : index
    %c0_125 = arith.constant 0 : index
    %c0_126 = arith.constant 0 : index
    %129 = vector.load %arg7[%c11, %c0_125, %c0_126] : memref<18x8x16xf32, #tpu.memory_space<vmem>>, vector<1x8x16xf32>
    %130 = vector.shape_cast %129 : vector<1x8x16xf32> to vector<8x16xf32>
    %cst_127 = arith.constant dense<0.000000e+00> : vector<8x16xf32>
    %131 = tpu.matmul %130, %115, %cst_127 {dimension_numbers = #tpu.dot_dimension_numbers<[1], [0], [0], [1], [0, 0, 1, 1], [], []>} : vector<8x16xf32>, vector<16x16xf32>, vector<8x16xf32> -> vector<8x16xf32>
    %c2_128 = arith.constant 2 : index
    %c0_129 = arith.constant 0 : index
    %c0_130 = arith.constant 0 : index
    %132 = vector.load %arg8[%c2_128, %c0_129, %c0_130] : memref<9x16x16xf32, #tpu.memory_space<vmem>>, vector<1x16x16xf32>
    %133 = vector.shape_cast %132 : vector<1x16x16xf32> to vector<16x16xf32>
    %cst_131 = arith.constant dense<0.000000e+00> : vector<8x16xf32>
    %134 = tpu.matmul %131, %133, %cst_131 {dimension_numbers = #tpu.dot_dimension_numbers<[1], [0], [0], [1], [0, 0, 1, 1], [], []>} : vector<8x16xf32>, vector<16x16xf32>, vector<8x16xf32> -> vector<8x16xf32>
    %135 = arith.addf %128, %134 : vector<8x16xf32>
    %c12 = arith.constant 12 : index
    %c0_132 = arith.constant 0 : index
    %c0_133 = arith.constant 0 : index
    %136 = vector.load %arg7[%c12, %c0_132, %c0_133] : memref<18x8x16xf32, #tpu.memory_space<vmem>>, vector<1x8x16xf32>
    %137 = vector.shape_cast %136 : vector<1x8x16xf32> to vector<8x16xf32>
    %cst_134 = arith.constant dense<0.000000e+00> : vector<8x16xf32>
    %138 = tpu.matmul %137, %115, %cst_134 {dimension_numbers = #tpu.dot_dimension_numbers<[1], [0], [0], [1], [0, 0, 1, 1], [], []>} : vector<8x16xf32>, vector<16x16xf32>, vector<8x16xf32> -> vector<8x16xf32>
    %c3_135 = arith.constant 3 : index
    %c0_136 = arith.constant 0 : index
    %c0_137 = arith.constant 0 : index
    %139 = vector.load %arg8[%c3_135, %c0_136, %c0_137] : memref<9x16x16xf32, #tpu.memory_space<vmem>>, vector<1x16x16xf32>
    %140 = vector.shape_cast %139 : vector<1x16x16xf32> to vector<16x16xf32>
    %cst_138 = arith.constant dense<0.000000e+00> : vector<8x16xf32>
    %141 = tpu.matmul %138, %140, %cst_138 {dimension_numbers = #tpu.dot_dimension_numbers<[1], [0], [0], [1], [0, 0, 1, 1], [], []>} : vector<8x16xf32>, vector<16x16xf32>, vector<8x16xf32> -> vector<8x16xf32>
    %142 = arith.addf %135, %141 : vector<8x16xf32>
    %c13 = arith.constant 13 : index
    %c0_139 = arith.constant 0 : index
    %c0_140 = arith.constant 0 : index
    %143 = vector.load %arg7[%c13, %c0_139, %c0_140] : memref<18x8x16xf32, #tpu.memory_space<vmem>>, vector<1x8x16xf32>
    %144 = vector.shape_cast %143 : vector<1x8x16xf32> to vector<8x16xf32>
    %cst_141 = arith.constant dense<0.000000e+00> : vector<8x16xf32>
    %145 = tpu.matmul %144, %115, %cst_141 {dimension_numbers = #tpu.dot_dimension_numbers<[1], [0], [0], [1], [0, 0, 1, 1], [], []>} : vector<8x16xf32>, vector<16x16xf32>, vector<8x16xf32> -> vector<8x16xf32>
    %c4_142 = arith.constant 4 : index
    %c0_143 = arith.constant 0 : index
    %c0_144 = arith.constant 0 : index
    %146 = vector.load %arg8[%c4_142, %c0_143, %c0_144] : memref<9x16x16xf32, #tpu.memory_space<vmem>>, vector<1x16x16xf32>
    %147 = vector.shape_cast %146 : vector<1x16x16xf32> to vector<16x16xf32>
    %cst_145 = arith.constant dense<0.000000e+00> : vector<8x16xf32>
    %148 = tpu.matmul %145, %147, %cst_145 {dimension_numbers = #tpu.dot_dimension_numbers<[1], [0], [0], [1], [0, 0, 1, 1], [], []>} : vector<8x16xf32>, vector<16x16xf32>, vector<8x16xf32> -> vector<8x16xf32>
    %149 = arith.addf %142, %148 : vector<8x16xf32>
    %c14 = arith.constant 14 : index
    %c0_146 = arith.constant 0 : index
    %c0_147 = arith.constant 0 : index
    %150 = vector.load %arg7[%c14, %c0_146, %c0_147] : memref<18x8x16xf32, #tpu.memory_space<vmem>>, vector<1x8x16xf32>
    %151 = vector.shape_cast %150 : vector<1x8x16xf32> to vector<8x16xf32>
    %cst_148 = arith.constant dense<0.000000e+00> : vector<8x16xf32>
    %152 = tpu.matmul %151, %115, %cst_148 {dimension_numbers = #tpu.dot_dimension_numbers<[1], [0], [0], [1], [0, 0, 1, 1], [], []>} : vector<8x16xf32>, vector<16x16xf32>, vector<8x16xf32> -> vector<8x16xf32>
    %c5_149 = arith.constant 5 : index
    %c0_150 = arith.constant 0 : index
    %c0_151 = arith.constant 0 : index
    %153 = vector.load %arg8[%c5_149, %c0_150, %c0_151] : memref<9x16x16xf32, #tpu.memory_space<vmem>>, vector<1x16x16xf32>
    %154 = vector.shape_cast %153 : vector<1x16x16xf32> to vector<16x16xf32>
    %cst_152 = arith.constant dense<0.000000e+00> : vector<8x16xf32>
    %155 = tpu.matmul %152, %154, %cst_152 {dimension_numbers = #tpu.dot_dimension_numbers<[1], [0], [0], [1], [0, 0, 1, 1], [], []>} : vector<8x16xf32>, vector<16x16xf32>, vector<8x16xf32> -> vector<8x16xf32>
    %156 = arith.addf %149, %155 : vector<8x16xf32>
    %c15 = arith.constant 15 : index
    %c0_153 = arith.constant 0 : index
    %c0_154 = arith.constant 0 : index
    %157 = vector.load %arg7[%c15, %c0_153, %c0_154] : memref<18x8x16xf32, #tpu.memory_space<vmem>>, vector<1x8x16xf32>
    %158 = vector.shape_cast %157 : vector<1x8x16xf32> to vector<8x16xf32>
    %cst_155 = arith.constant dense<0.000000e+00> : vector<8x16xf32>
    %159 = tpu.matmul %158, %115, %cst_155 {dimension_numbers = #tpu.dot_dimension_numbers<[1], [0], [0], [1], [0, 0, 1, 1], [], []>} : vector<8x16xf32>, vector<16x16xf32>, vector<8x16xf32> -> vector<8x16xf32>
    %c6_156 = arith.constant 6 : index
    %c0_157 = arith.constant 0 : index
    %c0_158 = arith.constant 0 : index
    %160 = vector.load %arg8[%c6_156, %c0_157, %c0_158] : memref<9x16x16xf32, #tpu.memory_space<vmem>>, vector<1x16x16xf32>
    %161 = vector.shape_cast %160 : vector<1x16x16xf32> to vector<16x16xf32>
    %cst_159 = arith.constant dense<0.000000e+00> : vector<8x16xf32>
    %162 = tpu.matmul %159, %161, %cst_159 {dimension_numbers = #tpu.dot_dimension_numbers<[1], [0], [0], [1], [0, 0, 1, 1], [], []>} : vector<8x16xf32>, vector<16x16xf32>, vector<8x16xf32> -> vector<8x16xf32>
    %163 = arith.addf %156, %162 : vector<8x16xf32>
    %c16_160 = arith.constant 16 : index
    %c0_161 = arith.constant 0 : index
    %c0_162 = arith.constant 0 : index
    %164 = vector.load %arg7[%c16_160, %c0_161, %c0_162] : memref<18x8x16xf32, #tpu.memory_space<vmem>>, vector<1x8x16xf32>
    %165 = vector.shape_cast %164 : vector<1x8x16xf32> to vector<8x16xf32>
    %cst_163 = arith.constant dense<0.000000e+00> : vector<8x16xf32>
    %166 = tpu.matmul %165, %115, %cst_163 {dimension_numbers = #tpu.dot_dimension_numbers<[1], [0], [0], [1], [0, 0, 1, 1], [], []>} : vector<8x16xf32>, vector<16x16xf32>, vector<8x16xf32> -> vector<8x16xf32>
    %c7_164 = arith.constant 7 : index
    %c0_165 = arith.constant 0 : index
    %c0_166 = arith.constant 0 : index
    %167 = vector.load %arg8[%c7_164, %c0_165, %c0_166] : memref<9x16x16xf32, #tpu.memory_space<vmem>>, vector<1x16x16xf32>
    %168 = vector.shape_cast %167 : vector<1x16x16xf32> to vector<16x16xf32>
    %cst_167 = arith.constant dense<0.000000e+00> : vector<8x16xf32>
    %169 = tpu.matmul %166, %168, %cst_167 {dimension_numbers = #tpu.dot_dimension_numbers<[1], [0], [0], [1], [0, 0, 1, 1], [], []>} : vector<8x16xf32>, vector<16x16xf32>, vector<8x16xf32> -> vector<8x16xf32>
    %170 = arith.addf %163, %169 : vector<8x16xf32>
    %c17 = arith.constant 17 : index
    %c0_168 = arith.constant 0 : index
    %c0_169 = arith.constant 0 : index
    %171 = vector.load %arg7[%c17, %c0_168, %c0_169] : memref<18x8x16xf32, #tpu.memory_space<vmem>>, vector<1x8x16xf32>
    %172 = vector.shape_cast %171 : vector<1x8x16xf32> to vector<8x16xf32>
    %cst_170 = arith.constant dense<0.000000e+00> : vector<8x16xf32>
    %173 = tpu.matmul %172, %115, %cst_170 {dimension_numbers = #tpu.dot_dimension_numbers<[1], [0], [0], [1], [0, 0, 1, 1], [], []>} : vector<8x16xf32>, vector<16x16xf32>, vector<8x16xf32> -> vector<8x16xf32>
    %c8_171 = arith.constant 8 : index
    %c0_172 = arith.constant 0 : index
    %c0_173 = arith.constant 0 : index
    %174 = vector.load %arg8[%c8_171, %c0_172, %c0_173] : memref<9x16x16xf32, #tpu.memory_space<vmem>>, vector<1x16x16xf32>
    %175 = vector.shape_cast %174 : vector<1x16x16xf32> to vector<16x16xf32>
    %cst_174 = arith.constant dense<0.000000e+00> : vector<8x16xf32>
    %176 = tpu.matmul %173, %175, %cst_174 {dimension_numbers = #tpu.dot_dimension_numbers<[1], [0], [0], [1], [0, 0, 1, 1], [], []>} : vector<8x16xf32>, vector<16x16xf32>, vector<8x16xf32> -> vector<8x16xf32>
    %177 = arith.addf %170, %176 : vector<8x16xf32>
    %c24 = arith.constant 24 : index
    %c0_175 = arith.constant 0 : index
    %178 = vector.load %arg10[%c24, %c0_175] : memref<32x16xf32, #tpu.memory_space<vmem>>, vector<8x16xf32>
    tpu.vector_store %arg10[%c24, %c0_175], %177 {strides = array<i32>} : memref<32x16xf32, #tpu.memory_space<vmem>>, vector<8x16xf32>,
    %c0_176 = arith.constant 0 : index
    %c0_177 = arith.constant 0 : index
    %179 = vector.load %arg10[%c0_176, %c0_177] : memref<32x16xf32, #tpu.memory_space<vmem>>, vector<32x16xf32>
    %c0_178 = arith.constant 0 : index
    %c0_179 = arith.constant 0 : index
    %c0_180 = arith.constant 0 : index
    %180 = vector.load %arg9[%c0_178, %c0_179, %c0_180] : memref<1x32x16xf32, #tpu.memory_space<vmem>>, vector<1x32x16xf32>
    %181 = vector.shape_cast %180 : vector<1x32x16xf32> to vector<32x16xf32>
    %182 = vector.shape_cast %179 : vector<32x16xf32> to vector<1x32x16xf32>
    tpu.vector_store %arg9[%c0_178, %c0_179, %c0_180], %182 {strides = array<i32>} : memref<1x32x16xf32, #tpu.memory_space<vmem>>, vector<1x32x16xf32>,
    return
  }
  func.func @transform_0(%arg0: i32) -> (i32, i32, i32) {
    %c0_i32 = arith.constant 0 : i32
    %c0_i32_0 = arith.constant 0 : i32
    %c0_i32_1 = arith.constant 0 : i32
    return %arg0, %c0_i32, %c0_i32_0 : i32, i32, i32
  }
  func.func @transform_1(%arg0: i32) -> (i32, i32, i32) {
    %c0_i32 = arith.constant 0 : i32
    %c0_i32_0 = arith.constant 0 : i32
    %c0_i32_1 = arith.constant 0 : i32
    %c0_i32_2 = arith.constant 0 : i32
    return %c0_i32, %c0_i32_0, %c0_i32_1 : i32, i32, i32
  }
  func.func @transform_2(%arg0: i32) -> (i32, i32, i32) {
    %c0_i32 = arith.constant 0 : i32
    %c0_i32_0 = arith.constant 0 : i32
    %c0_i32_1 = arith.constant 0 : i32
    %c0_i32_2 = arith.constant 0 : i32
    return %c0_i32, %c0_i32_0, %c0_i32_1 : i32, i32, i32
  }
  func.func @transform_3(%arg0: i32) -> (i32, i32, i32) {
    %c0_i32 = arith.constant 0 : i32
    %c0_i32_0 = arith.constant 0 : i32
    %c0_i32_1 = arith.constant 0 : i32
    %c0_i32_2 = arith.constant 0 : i32
    return %c0_i32, %c0_i32_0, %c0_i32_1 : i32, i32, i32
  }
  func.func @transform_4(%arg0: i32) -> (i32, i32, i32) {
    %c0_i32 = arith.constant 0 : i32
    %c0_i32_0 = arith.constant 0 : i32
    %c0_i32_1 = arith.constant 0 : i32
    %c0_i32_2 = arith.constant 0 : i32
    return %c0_i32, %c0_i32_0, %c0_i32_1 : i32, i32, i32
  }
  func.func @transform_5(%arg0: i32) -> (i32, i32, i32) {
    %c0_i32 = arith.constant 0 : i32
    %c0_i32_0 = arith.constant 0 : i32
    %c0_i32_1 = arith.constant 0 : i32
    %c0_i32_2 = arith.constant 0 : i32
    return %c0_i32, %c0_i32_0, %c0_i32_1 : i32, i32, i32
  }
  func.func @transform_6(%arg0: i32) -> (i32, i32, i32) {
    %c0_i32 = arith.constant 0 : i32
    %c0_i32_0 = arith.constant 0 : i32
    %c0_i32_1 = arith.constant 0 : i32
    %c0_i32_2 = arith.constant 0 : i32
    return %c0_i32, %c0_i32_0, %c0_i32_1 : i32, i32, i32
  }
  func.func @transform_7(%arg0: i32) -> (i32, i32, i32) {
    %c0_i32 = arith.constant 0 : i32
    %c0_i32_0 = arith.constant 0 : i32
    %c0_i32_1 = arith.constant 0 : i32
    %c0_i32_2 = arith.constant 0 : i32
    return %c0_i32, %c0_i32_0, %c0_i32_1 : i32, i32, i32
  }
  func.func @transform_8(%arg0: i32) -> (i32, i32, i32) {
    %c0_i32 = arith.constant 0 : i32
    %c0_i32_0 = arith.constant 0 : i32
    %c0_i32_1 = arith.constant 0 : i32
    return %arg0, %c0_i32, %c0_i32_0 : i32, i32, i32
  }
}

module attributes {stable_mosaic.version = 11 : i64} {
  func.func @_transition_kernel(%arg0: i32, %arg1: memref<1x32x16xf32, #tpu.memory_space<vmem>>, %arg2: memref<32x1xf32, #tpu.memory_space<vmem>>, %arg3: memref<32x1xf32, #tpu.memory_space<vmem>>, %arg4: memref<16x32xf32, #tpu.memory_space<vmem>>, %arg5: memref<16x4xf32, #tpu.memory_space<vmem>>, %arg6: memref<1x16x4xf32, #tpu.memory_space<vmem>>) attributes {dimension_semantics = [#tpu.dimension_semantics<parallel>], iteration_bounds = array<i64: 2>, scalar_prefetch = 0 : i64, scratch_operands = 0 : i64, tpu.core_type = #tpu.core_type<tc>, window_params = [{transform_indices = @transform_0, window_bounds = array<i64: 1, 32, 16>}, {pipeline_mode = #tpu.pipeline_mode<synchronous>, transform_indices = @transform_1, window_bounds = array<i64: 32, 1>}, {pipeline_mode = #tpu.pipeline_mode<synchronous>, transform_indices = @transform_2, window_bounds = array<i64: 32, 1>}, {pipeline_mode = #tpu.pipeline_mode<synchronous>, transform_indices = @transform_3, window_bounds = array<i64: 16, 32>}, {pipeline_mode = #tpu.pipeline_mode<synchronous>, transform_indices = @transform_4, window_bounds = array<i64: 16, 4>}, {transform_indices = @transform_5, window_bounds = array<i64: 1, 16, 4>}]} {
    %c0 = arith.constant 0 : index
    %c0_0 = arith.constant 0 : index
    %c0_1 = arith.constant 0 : index
    %0 = vector.load %arg1[%c0, %c0_0, %c0_1] : memref<1x32x16xf32, #tpu.memory_space<vmem>>, vector<1x32x16xf32>
    %1 = vector.shape_cast %0 : vector<1x32x16xf32> to vector<32x16xf32>
    %c0_2 = arith.constant 0 : index
    %c0_3 = arith.constant 0 : index
    %2 = vector.load %arg2[%c0_2, %c0_3] : memref<32x1xf32, #tpu.memory_space<vmem>>, vector<32x1xf32>
    %3 = vector.broadcast %2 : vector<32x1xf32> to vector<32x16xf32>
    %4 = arith.mulf %1, %3 : vector<32x16xf32>
    %c0_4 = arith.constant 0 : index
    %c0_5 = arith.constant 0 : index
    %5 = vector.load %arg3[%c0_4, %c0_5] : memref<32x1xf32, #tpu.memory_space<vmem>>, vector<32x1xf32>
    %6 = vector.broadcast %5 : vector<32x1xf32> to vector<32x16xf32>
    %7 = arith.addf %4, %6 : vector<32x16xf32>
    %cst = arith.constant 0.000000e+00 : f32
    %8 = vector.broadcast %cst : f32 to vector<32x16xf32>
    %9 = arith.maximumf %7, %8 : vector<32x16xf32>
    %c0_6 = arith.constant 0 : index
    %c0_7 = arith.constant 0 : index
    %10 = vector.load %arg5[%c0_6, %c0_7] : memref<16x4xf32, #tpu.memory_space<vmem>>, vector<16x4xf32>
    %cst_8 = arith.constant dense<0.000000e+00> : vector<32x4xf32>
    %11 = tpu.matmul %9, %10, %cst_8 {dimension_numbers = #tpu.dot_dimension_numbers<[1], [0], [0], [1], [0, 0, 1, 1], [], []>} : vector<32x16xf32>, vector<16x4xf32>, vector<32x4xf32> -> vector<32x4xf32>
    %c0_9 = arith.constant 0 : index
    %c0_10 = arith.constant 0 : index
    %12 = vector.load %arg4[%c0_9, %c0_10] : memref<16x32xf32, #tpu.memory_space<vmem>>, vector<16x32xf32>
    %cst_11 = arith.constant dense<0.000000e+00> : vector<16x4xf32>
    %13 = tpu.matmul %12, %11, %cst_11 {dimension_numbers = #tpu.dot_dimension_numbers<[1], [0], [0], [1], [0, 0, 1, 1], [], []>} : vector<16x32xf32>, vector<32x4xf32>, vector<16x4xf32> -> vector<16x4xf32>
    %c0_12 = arith.constant 0 : index
    %c0_13 = arith.constant 0 : index
    %c0_14 = arith.constant 0 : index
    %14 = vector.load %arg6[%c0_12, %c0_13, %c0_14] : memref<1x16x4xf32, #tpu.memory_space<vmem>>, vector<1x16x4xf32>
    %15 = vector.shape_cast %14 : vector<1x16x4xf32> to vector<16x4xf32>
    %16 = vector.shape_cast %13 : vector<16x4xf32> to vector<1x16x4xf32>
    tpu.vector_store %arg6[%c0_12, %c0_13, %c0_14], %16 {strides = array<i32>} : memref<1x16x4xf32, #tpu.memory_space<vmem>>, vector<1x16x4xf32>,
    return
  }
  func.func @transform_0(%arg0: i32) -> (i32, i32, i32) {
    %c0_i32 = arith.constant 0 : i32
    %c0_i32_0 = arith.constant 0 : i32
    %c0_i32_1 = arith.constant 0 : i32
    return %arg0, %c0_i32, %c0_i32_0 : i32, i32, i32
  }
  func.func @transform_1(%arg0: i32) -> (i32, i32) {
    %c0_i32 = arith.constant 0 : i32
    %c0_i32_0 = arith.constant 0 : i32
    %c0_i32_1 = arith.constant 0 : i32
    return %c0_i32, %c0_i32_0 : i32, i32
  }
  func.func @transform_2(%arg0: i32) -> (i32, i32) {
    %c0_i32 = arith.constant 0 : i32
    %c0_i32_0 = arith.constant 0 : i32
    %c0_i32_1 = arith.constant 0 : i32
    return %c0_i32, %c0_i32_0 : i32, i32
  }
  func.func @transform_3(%arg0: i32) -> (i32, i32) {
    %c0_i32 = arith.constant 0 : i32
    %c0_i32_0 = arith.constant 0 : i32
    %c0_i32_1 = arith.constant 0 : i32
    return %c0_i32, %c0_i32_0 : i32, i32
  }
  func.func @transform_4(%arg0: i32) -> (i32, i32) {
    %c0_i32 = arith.constant 0 : i32
    %c0_i32_0 = arith.constant 0 : i32
    %c0_i32_1 = arith.constant 0 : i32
    return %c0_i32, %c0_i32_0 : i32, i32
  }
  func.func @transform_5(%arg0: i32) -> (i32, i32, i32) {
    %c0_i32 = arith.constant 0 : i32
    %c0_i32_0 = arith.constant 0 : i32
    %c0_i32_1 = arith.constant 0 : i32
    return %arg0, %c0_i32, %c0_i32_0 : i32, i32, i32
  }
}

module attributes {stable_mosaic.version = 11 : i64} {
  func.func @kernel(%arg0: i32, %arg1: memref<1x16x4xf32, #tpu.memory_space<vmem>>, %arg2: memref<2x32x1xf32, #tpu.memory_space<vmem>>, %arg3: memref<2x32x1xf32, #tpu.memory_space<vmem>>, %arg4: memref<2x16x32xf32, #tpu.memory_space<vmem>>, %arg5: memref<2x16x1xf32, #tpu.memory_space<vmem>>, %arg6: memref<2x16x1xf32, #tpu.memory_space<vmem>>, %arg7: memref<18x8x16xf32, #tpu.memory_space<vmem>>, %arg8: memref<9x4x4xf32, #tpu.memory_space<vmem>>, %arg9: memref<1x32x4xf32, #tpu.memory_space<vmem>>, %arg10: memref<32x4xf32, #tpu.memory_space<vmem>>) attributes {dimension_semantics = [#tpu.dimension_semantics<parallel>], iteration_bounds = array<i64: 2>, scalar_prefetch = 0 : i64, scratch_operands = 1 : i64, tpu.core_type = #tpu.core_type<tc>, window_params = [{transform_indices = @transform_0, window_bounds = array<i64: 1, 16, 4>}, {pipeline_mode = #tpu.pipeline_mode<synchronous>, transform_indices = @transform_1, window_bounds = array<i64: 2, 32, 1>}, {pipeline_mode = #tpu.pipeline_mode<synchronous>, transform_indices = @transform_2, window_bounds = array<i64: 2, 32, 1>}, {pipeline_mode = #tpu.pipeline_mode<synchronous>, transform_indices = @transform_3, window_bounds = array<i64: 2, 16, 32>}, {pipeline_mode = #tpu.pipeline_mode<synchronous>, transform_indices = @transform_4, window_bounds = array<i64: 2, 16, 1>}, {pipeline_mode = #tpu.pipeline_mode<synchronous>, transform_indices = @transform_5, window_bounds = array<i64: 2, 16, 1>}, {pipeline_mode = #tpu.pipeline_mode<synchronous>, transform_indices = @transform_6, window_bounds = array<i64: 18, 8, 16>}, {pipeline_mode = #tpu.pipeline_mode<synchronous>, transform_indices = @transform_7, window_bounds = array<i64: 9, 4, 4>}, {transform_indices = @transform_8, window_bounds = array<i64: 1, 32, 4>}]} {
    %cst = arith.constant 0.000000e+00 : f32
    %0 = vector.broadcast %cst : f32 to vector<32x4xf32>
    %c0 = arith.constant 0 : index
    %c0_0 = arith.constant 0 : index
    %1 = vector.load %arg10[%c0, %c0_0] : memref<32x4xf32, #tpu.memory_space<vmem>>, vector<32x4xf32>
    tpu.vector_store %arg10[%c0, %c0_0], %0 {strides = array<i32>} : memref<32x4xf32, #tpu.memory_space<vmem>>, vector<32x4xf32>,
    %c0_1 = arith.constant 0 : index
    %c0_2 = arith.constant 0 : index
    %c0_3 = arith.constant 0 : index
    %2 = vector.load %arg1[%c0_1, %c0_2, %c0_3] : memref<1x16x4xf32, #tpu.memory_space<vmem>>, vector<1x16x4xf32>
    %3 = vector.shape_cast %2 : vector<1x16x4xf32> to vector<16x4xf32>
    %c0_4 = arith.constant 0 : index
    %c0_5 = arith.constant 0 : index
    %4 = vector.load %arg10[%c0_4, %c0_5] : memref<32x4xf32, #tpu.memory_space<vmem>>, vector<16x4xf32>
    tpu.vector_store %arg10[%c0_4, %c0_5], %3 {strides = array<i32>} : memref<32x4xf32, #tpu.memory_space<vmem>>, vector<16x4xf32>,
    %c0_6 = arith.constant 0 : index
    %c0_7 = arith.constant 0 : index
    %5 = vector.load %arg10[%c0_6, %c0_7] : memref<32x4xf32, #tpu.memory_space<vmem>>, vector<32x4xf32>
    %c0_8 = arith.constant 0 : index
    %c0_9 = arith.constant 0 : index
    %c0_10 = arith.constant 0 : index
    %6 = vector.load %arg2[%c0_8, %c0_9, %c0_10] : memref<2x32x1xf32, #tpu.memory_space<vmem>>, vector<1x32x1xf32>
    %7 = vector.shape_cast %6 : vector<1x32x1xf32> to vector<32x1xf32>
    %8 = vector.broadcast %7 : vector<32x1xf32> to vector<32x4xf32>
    %9 = arith.mulf %5, %8 : vector<32x4xf32>
    %c0_11 = arith.constant 0 : index
    %c0_12 = arith.constant 0 : index
    %c0_13 = arith.constant 0 : index
    %10 = vector.load %arg3[%c0_11, %c0_12, %c0_13] : memref<2x32x1xf32, #tpu.memory_space<vmem>>, vector<1x32x1xf32>
    %11 = vector.shape_cast %10 : vector<1x32x1xf32> to vector<32x1xf32>
    %12 = vector.broadcast %11 : vector<32x1xf32> to vector<32x4xf32>
    %13 = arith.addf %9, %12 : vector<32x4xf32>
    %cst_14 = arith.constant 0.000000e+00 : f32
    %14 = vector.broadcast %cst_14 : f32 to vector<32x4xf32>
    %15 = arith.maximumf %13, %14 : vector<32x4xf32>
    %c0_15 = arith.constant 0 : index
    %c0_16 = arith.constant 0 : index
    %c0_17 = arith.constant 0 : index
    %16 = vector.load %arg4[%c0_15, %c0_16, %c0_17] : memref<2x16x32xf32, #tpu.memory_space<vmem>>, vector<1x16x32xf32>
    %17 = vector.shape_cast %16 : vector<1x16x32xf32> to vector<16x32xf32>
    %cst_18 = arith.constant dense<0.000000e+00> : vector<16x4xf32>
    %18 = tpu.matmul %17, %15, %cst_18 {dimension_numbers = #tpu.dot_dimension_numbers<[1], [0], [0], [1], [0, 0, 1, 1], [], []>} : vector<16x32xf32>, vector<32x4xf32>, vector<16x4xf32> -> vector<16x4xf32>
    %c0_19 = arith.constant 0 : index
    %c0_20 = arith.constant 0 : index
    %c0_21 = arith.constant 0 : index
    %19 = vector.load %arg5[%c0_19, %c0_20, %c0_21] : memref<2x16x1xf32, #tpu.memory_space<vmem>>, vector<1x16x1xf32>
    %20 = vector.shape_cast %19 : vector<1x16x1xf32> to vector<16x1xf32>
    %21 = vector.broadcast %20 : vector<16x1xf32> to vector<16x4xf32>
    %22 = arith.mulf %18, %21 : vector<16x4xf32>
    %c0_22 = arith.constant 0 : index
    %c0_23 = arith.constant 0 : index
    %c0_24 = arith.constant 0 : index
    %23 = vector.load %arg6[%c0_22, %c0_23, %c0_24] : memref<2x16x1xf32, #tpu.memory_space<vmem>>, vector<1x16x1xf32>
    %24 = vector.shape_cast %23 : vector<1x16x1xf32> to vector<16x1xf32>
    %25 = vector.broadcast %24 : vector<16x1xf32> to vector<16x4xf32>
    %26 = arith.addf %22, %25 : vector<16x4xf32>
    %cst_25 = arith.constant 0.000000e+00 : f32
    %27 = vector.broadcast %cst_25 : f32 to vector<16x4xf32>
    %28 = arith.maximumf %26, %27 : vector<16x4xf32>
    %c0_26 = arith.constant 0 : index
    %c0_27 = arith.constant 0 : index
    %c0_28 = arith.constant 0 : index
    %29 = vector.load %arg7[%c0_26, %c0_27, %c0_28] : memref<18x8x16xf32, #tpu.memory_space<vmem>>, vector<1x8x16xf32>
    %30 = vector.shape_cast %29 : vector<1x8x16xf32> to vector<8x16xf32>
    %cst_29 = arith.constant dense<0.000000e+00> : vector<8x4xf32>
    %31 = tpu.matmul %30, %28, %cst_29 {dimension_numbers = #tpu.dot_dimension_numbers<[1], [0], [0], [1], [0, 0, 1, 1], [], []>} : vector<8x16xf32>, vector<16x4xf32>, vector<8x4xf32> -> vector<8x4xf32>
    %c0_30 = arith.constant 0 : index
    %c0_31 = arith.constant 0 : index
    %c0_32 = arith.constant 0 : index
    %32 = vector.load %arg8[%c0_30, %c0_31, %c0_32] : memref<9x4x4xf32, #tpu.memory_space<vmem>>, vector<1x4x4xf32>
    %33 = vector.shape_cast %32 : vector<1x4x4xf32> to vector<4x4xf32>
    %cst_33 = arith.constant dense<0.000000e+00> : vector<8x4xf32>
    %34 = tpu.matmul %31, %33, %cst_33 {dimension_numbers = #tpu.dot_dimension_numbers<[1], [0], [0], [1], [0, 0, 1, 1], [], []>} : vector<8x4xf32>, vector<4x4xf32>, vector<8x4xf32> -> vector<8x4xf32>
    %c1 = arith.constant 1 : index
    %c0_34 = arith.constant 0 : index
    %c0_35 = arith.constant 0 : index
    %35 = vector.load %arg7[%c1, %c0_34, %c0_35] : memref<18x8x16xf32, #tpu.memory_space<vmem>>, vector<1x8x16xf32>
    %36 = vector.shape_cast %35 : vector<1x8x16xf32> to vector<8x16xf32>
    %cst_36 = arith.constant dense<0.000000e+00> : vector<8x4xf32>
    %37 = tpu.matmul %36, %28, %cst_36 {dimension_numbers = #tpu.dot_dimension_numbers<[1], [0], [0], [1], [0, 0, 1, 1], [], []>} : vector<8x16xf32>, vector<16x4xf32>, vector<8x4xf32> -> vector<8x4xf32>
    %c1_37 = arith.constant 1 : index
    %c0_38 = arith.constant 0 : index
    %c0_39 = arith.constant 0 : index
    %38 = vector.load %arg8[%c1_37, %c0_38, %c0_39] : memref<9x4x4xf32, #tpu.memory_space<vmem>>, vector<1x4x4xf32>
    %39 = vector.shape_cast %38 : vector<1x4x4xf32> to vector<4x4xf32>
    %cst_40 = arith.constant dense<0.000000e+00> : vector<8x4xf32>
    %40 = tpu.matmul %37, %39, %cst_40 {dimension_numbers = #tpu.dot_dimension_numbers<[1], [0], [0], [1], [0, 0, 1, 1], [], []>} : vector<8x4xf32>, vector<4x4xf32>, vector<8x4xf32> -> vector<8x4xf32>
    %41 = arith.addf %34, %40 : vector<8x4xf32>
    %c2 = arith.constant 2 : index
    %c0_41 = arith.constant 0 : index
    %c0_42 = arith.constant 0 : index
    %42 = vector.load %arg7[%c2, %c0_41, %c0_42] : memref<18x8x16xf32, #tpu.memory_space<vmem>>, vector<1x8x16xf32>
    %43 = vector.shape_cast %42 : vector<1x8x16xf32> to vector<8x16xf32>
    %cst_43 = arith.constant dense<0.000000e+00> : vector<8x4xf32>
    %44 = tpu.matmul %43, %28, %cst_43 {dimension_numbers = #tpu.dot_dimension_numbers<[1], [0], [0], [1], [0, 0, 1, 1], [], []>} : vector<8x16xf32>, vector<16x4xf32>, vector<8x4xf32> -> vector<8x4xf32>
    %c2_44 = arith.constant 2 : index
    %c0_45 = arith.constant 0 : index
    %c0_46 = arith.constant 0 : index
    %45 = vector.load %arg8[%c2_44, %c0_45, %c0_46] : memref<9x4x4xf32, #tpu.memory_space<vmem>>, vector<1x4x4xf32>
    %46 = vector.shape_cast %45 : vector<1x4x4xf32> to vector<4x4xf32>
    %cst_47 = arith.constant dense<0.000000e+00> : vector<8x4xf32>
    %47 = tpu.matmul %44, %46, %cst_47 {dimension_numbers = #tpu.dot_dimension_numbers<[1], [0], [0], [1], [0, 0, 1, 1], [], []>} : vector<8x4xf32>, vector<4x4xf32>, vector<8x4xf32> -> vector<8x4xf32>
    %48 = arith.addf %41, %47 : vector<8x4xf32>
    %c3 = arith.constant 3 : index
    %c0_48 = arith.constant 0 : index
    %c0_49 = arith.constant 0 : index
    %49 = vector.load %arg7[%c3, %c0_48, %c0_49] : memref<18x8x16xf32, #tpu.memory_space<vmem>>, vector<1x8x16xf32>
    %50 = vector.shape_cast %49 : vector<1x8x16xf32> to vector<8x16xf32>
    %cst_50 = arith.constant dense<0.000000e+00> : vector<8x4xf32>
    %51 = tpu.matmul %50, %28, %cst_50 {dimension_numbers = #tpu.dot_dimension_numbers<[1], [0], [0], [1], [0, 0, 1, 1], [], []>} : vector<8x16xf32>, vector<16x4xf32>, vector<8x4xf32> -> vector<8x4xf32>
    %c3_51 = arith.constant 3 : index
    %c0_52 = arith.constant 0 : index
    %c0_53 = arith.constant 0 : index
    %52 = vector.load %arg8[%c3_51, %c0_52, %c0_53] : memref<9x4x4xf32, #tpu.memory_space<vmem>>, vector<1x4x4xf32>
    %53 = vector.shape_cast %52 : vector<1x4x4xf32> to vector<4x4xf32>
    %cst_54 = arith.constant dense<0.000000e+00> : vector<8x4xf32>
    %54 = tpu.matmul %51, %53, %cst_54 {dimension_numbers = #tpu.dot_dimension_numbers<[1], [0], [0], [1], [0, 0, 1, 1], [], []>} : vector<8x4xf32>, vector<4x4xf32>, vector<8x4xf32> -> vector<8x4xf32>
    %55 = arith.addf %48, %54 : vector<8x4xf32>
    %c4 = arith.constant 4 : index
    %c0_55 = arith.constant 0 : index
    %c0_56 = arith.constant 0 : index
    %56 = vector.load %arg7[%c4, %c0_55, %c0_56] : memref<18x8x16xf32, #tpu.memory_space<vmem>>, vector<1x8x16xf32>
    %57 = vector.shape_cast %56 : vector<1x8x16xf32> to vector<8x16xf32>
    %cst_57 = arith.constant dense<0.000000e+00> : vector<8x4xf32>
    %58 = tpu.matmul %57, %28, %cst_57 {dimension_numbers = #tpu.dot_dimension_numbers<[1], [0], [0], [1], [0, 0, 1, 1], [], []>} : vector<8x16xf32>, vector<16x4xf32>, vector<8x4xf32> -> vector<8x4xf32>
    %c4_58 = arith.constant 4 : index
    %c0_59 = arith.constant 0 : index
    %c0_60 = arith.constant 0 : index
    %59 = vector.load %arg8[%c4_58, %c0_59, %c0_60] : memref<9x4x4xf32, #tpu.memory_space<vmem>>, vector<1x4x4xf32>
    %60 = vector.shape_cast %59 : vector<1x4x4xf32> to vector<4x4xf32>
    %cst_61 = arith.constant dense<0.000000e+00> : vector<8x4xf32>
    %61 = tpu.matmul %58, %60, %cst_61 {dimension_numbers = #tpu.dot_dimension_numbers<[1], [0], [0], [1], [0, 0, 1, 1], [], []>} : vector<8x4xf32>, vector<4x4xf32>, vector<8x4xf32> -> vector<8x4xf32>
    %62 = arith.addf %55, %61 : vector<8x4xf32>
    %c5 = arith.constant 5 : index
    %c0_62 = arith.constant 0 : index
    %c0_63 = arith.constant 0 : index
    %63 = vector.load %arg7[%c5, %c0_62, %c0_63] : memref<18x8x16xf32, #tpu.memory_space<vmem>>, vector<1x8x16xf32>
    %64 = vector.shape_cast %63 : vector<1x8x16xf32> to vector<8x16xf32>
    %cst_64 = arith.constant dense<0.000000e+00> : vector<8x4xf32>
    %65 = tpu.matmul %64, %28, %cst_64 {dimension_numbers = #tpu.dot_dimension_numbers<[1], [0], [0], [1], [0, 0, 1, 1], [], []>} : vector<8x16xf32>, vector<16x4xf32>, vector<8x4xf32> -> vector<8x4xf32>
    %c5_65 = arith.constant 5 : index
    %c0_66 = arith.constant 0 : index
    %c0_67 = arith.constant 0 : index
    %66 = vector.load %arg8[%c5_65, %c0_66, %c0_67] : memref<9x4x4xf32, #tpu.memory_space<vmem>>, vector<1x4x4xf32>
    %67 = vector.shape_cast %66 : vector<1x4x4xf32> to vector<4x4xf32>
    %cst_68 = arith.constant dense<0.000000e+00> : vector<8x4xf32>
    %68 = tpu.matmul %65, %67, %cst_68 {dimension_numbers = #tpu.dot_dimension_numbers<[1], [0], [0], [1], [0, 0, 1, 1], [], []>} : vector<8x4xf32>, vector<4x4xf32>, vector<8x4xf32> -> vector<8x4xf32>
    %69 = arith.addf %62, %68 : vector<8x4xf32>
    %c6 = arith.constant 6 : index
    %c0_69 = arith.constant 0 : index
    %c0_70 = arith.constant 0 : index
    %70 = vector.load %arg7[%c6, %c0_69, %c0_70] : memref<18x8x16xf32, #tpu.memory_space<vmem>>, vector<1x8x16xf32>
    %71 = vector.shape_cast %70 : vector<1x8x16xf32> to vector<8x16xf32>
    %cst_71 = arith.constant dense<0.000000e+00> : vector<8x4xf32>
    %72 = tpu.matmul %71, %28, %cst_71 {dimension_numbers = #tpu.dot_dimension_numbers<[1], [0], [0], [1], [0, 0, 1, 1], [], []>} : vector<8x16xf32>, vector<16x4xf32>, vector<8x4xf32> -> vector<8x4xf32>
    %c6_72 = arith.constant 6 : index
    %c0_73 = arith.constant 0 : index
    %c0_74 = arith.constant 0 : index
    %73 = vector.load %arg8[%c6_72, %c0_73, %c0_74] : memref<9x4x4xf32, #tpu.memory_space<vmem>>, vector<1x4x4xf32>
    %74 = vector.shape_cast %73 : vector<1x4x4xf32> to vector<4x4xf32>
    %cst_75 = arith.constant dense<0.000000e+00> : vector<8x4xf32>
    %75 = tpu.matmul %72, %74, %cst_75 {dimension_numbers = #tpu.dot_dimension_numbers<[1], [0], [0], [1], [0, 0, 1, 1], [], []>} : vector<8x4xf32>, vector<4x4xf32>, vector<8x4xf32> -> vector<8x4xf32>
    %76 = arith.addf %69, %75 : vector<8x4xf32>
    %c7 = arith.constant 7 : index
    %c0_76 = arith.constant 0 : index
    %c0_77 = arith.constant 0 : index
    %77 = vector.load %arg7[%c7, %c0_76, %c0_77] : memref<18x8x16xf32, #tpu.memory_space<vmem>>, vector<1x8x16xf32>
    %78 = vector.shape_cast %77 : vector<1x8x16xf32> to vector<8x16xf32>
    %cst_78 = arith.constant dense<0.000000e+00> : vector<8x4xf32>
    %79 = tpu.matmul %78, %28, %cst_78 {dimension_numbers = #tpu.dot_dimension_numbers<[1], [0], [0], [1], [0, 0, 1, 1], [], []>} : vector<8x16xf32>, vector<16x4xf32>, vector<8x4xf32> -> vector<8x4xf32>
    %c7_79 = arith.constant 7 : index
    %c0_80 = arith.constant 0 : index
    %c0_81 = arith.constant 0 : index
    %80 = vector.load %arg8[%c7_79, %c0_80, %c0_81] : memref<9x4x4xf32, #tpu.memory_space<vmem>>, vector<1x4x4xf32>
    %81 = vector.shape_cast %80 : vector<1x4x4xf32> to vector<4x4xf32>
    %cst_82 = arith.constant dense<0.000000e+00> : vector<8x4xf32>
    %82 = tpu.matmul %79, %81, %cst_82 {dimension_numbers = #tpu.dot_dimension_numbers<[1], [0], [0], [1], [0, 0, 1, 1], [], []>} : vector<8x4xf32>, vector<4x4xf32>, vector<8x4xf32> -> vector<8x4xf32>
    %83 = arith.addf %76, %82 : vector<8x4xf32>
    %c8 = arith.constant 8 : index
    %c0_83 = arith.constant 0 : index
    %c0_84 = arith.constant 0 : index
    %84 = vector.load %arg7[%c8, %c0_83, %c0_84] : memref<18x8x16xf32, #tpu.memory_space<vmem>>, vector<1x8x16xf32>
    %85 = vector.shape_cast %84 : vector<1x8x16xf32> to vector<8x16xf32>
    %cst_85 = arith.constant dense<0.000000e+00> : vector<8x4xf32>
    %86 = tpu.matmul %85, %28, %cst_85 {dimension_numbers = #tpu.dot_dimension_numbers<[1], [0], [0], [1], [0, 0, 1, 1], [], []>} : vector<8x16xf32>, vector<16x4xf32>, vector<8x4xf32> -> vector<8x4xf32>
    %c8_86 = arith.constant 8 : index
    %c0_87 = arith.constant 0 : index
    %c0_88 = arith.constant 0 : index
    %87 = vector.load %arg8[%c8_86, %c0_87, %c0_88] : memref<9x4x4xf32, #tpu.memory_space<vmem>>, vector<1x4x4xf32>
    %88 = vector.shape_cast %87 : vector<1x4x4xf32> to vector<4x4xf32>
    %cst_89 = arith.constant dense<0.000000e+00> : vector<8x4xf32>
    %89 = tpu.matmul %86, %88, %cst_89 {dimension_numbers = #tpu.dot_dimension_numbers<[1], [0], [0], [1], [0, 0, 1, 1], [], []>} : vector<8x4xf32>, vector<4x4xf32>, vector<8x4xf32> -> vector<8x4xf32>
    %90 = arith.addf %83, %89 : vector<8x4xf32>
    %c16 = arith.constant 16 : index
    %c0_90 = arith.constant 0 : index
    %91 = vector.load %arg10[%c16, %c0_90] : memref<32x4xf32, #tpu.memory_space<vmem>>, vector<8x4xf32>
    tpu.vector_store %arg10[%c16, %c0_90], %90 {strides = array<i32>} : memref<32x4xf32, #tpu.memory_space<vmem>>, vector<8x4xf32>,
    %c0_91 = arith.constant 0 : index
    %c0_92 = arith.constant 0 : index
    %92 = vector.load %arg10[%c0_91, %c0_92] : memref<32x4xf32, #tpu.memory_space<vmem>>, vector<32x4xf32>
    %c1_93 = arith.constant 1 : index
    %c0_94 = arith.constant 0 : index
    %c0_95 = arith.constant 0 : index
    %93 = vector.load %arg2[%c1_93, %c0_94, %c0_95] : memref<2x32x1xf32, #tpu.memory_space<vmem>>, vector<1x32x1xf32>
    %94 = vector.shape_cast %93 : vector<1x32x1xf32> to vector<32x1xf32>
    %95 = vector.broadcast %94 : vector<32x1xf32> to vector<32x4xf32>
    %96 = arith.mulf %92, %95 : vector<32x4xf32>
    %c1_96 = arith.constant 1 : index
    %c0_97 = arith.constant 0 : index
    %c0_98 = arith.constant 0 : index
    %97 = vector.load %arg3[%c1_96, %c0_97, %c0_98] : memref<2x32x1xf32, #tpu.memory_space<vmem>>, vector<1x32x1xf32>
    %98 = vector.shape_cast %97 : vector<1x32x1xf32> to vector<32x1xf32>
    %99 = vector.broadcast %98 : vector<32x1xf32> to vector<32x4xf32>
    %100 = arith.addf %96, %99 : vector<32x4xf32>
    %cst_99 = arith.constant 0.000000e+00 : f32
    %101 = vector.broadcast %cst_99 : f32 to vector<32x4xf32>
    %102 = arith.maximumf %100, %101 : vector<32x4xf32>
    %c1_100 = arith.constant 1 : index
    %c0_101 = arith.constant 0 : index
    %c0_102 = arith.constant 0 : index
    %103 = vector.load %arg4[%c1_100, %c0_101, %c0_102] : memref<2x16x32xf32, #tpu.memory_space<vmem>>, vector<1x16x32xf32>
    %104 = vector.shape_cast %103 : vector<1x16x32xf32> to vector<16x32xf32>
    %cst_103 = arith.constant dense<0.000000e+00> : vector<16x4xf32>
    %105 = tpu.matmul %104, %102, %cst_103 {dimension_numbers = #tpu.dot_dimension_numbers<[1], [0], [0], [1], [0, 0, 1, 1], [], []>} : vector<16x32xf32>, vector<32x4xf32>, vector<16x4xf32> -> vector<16x4xf32>
    %c1_104 = arith.constant 1 : index
    %c0_105 = arith.constant 0 : index
    %c0_106 = arith.constant 0 : index
    %106 = vector.load %arg5[%c1_104, %c0_105, %c0_106] : memref<2x16x1xf32, #tpu.memory_space<vmem>>, vector<1x16x1xf32>
    %107 = vector.shape_cast %106 : vector<1x16x1xf32> to vector<16x1xf32>
    %108 = vector.broadcast %107 : vector<16x1xf32> to vector<16x4xf32>
    %109 = arith.mulf %105, %108 : vector<16x4xf32>
    %c1_107 = arith.constant 1 : index
    %c0_108 = arith.constant 0 : index
    %c0_109 = arith.constant 0 : index
    %110 = vector.load %arg6[%c1_107, %c0_108, %c0_109] : memref<2x16x1xf32, #tpu.memory_space<vmem>>, vector<1x16x1xf32>
    %111 = vector.shape_cast %110 : vector<1x16x1xf32> to vector<16x1xf32>
    %112 = vector.broadcast %111 : vector<16x1xf32> to vector<16x4xf32>
    %113 = arith.addf %109, %112 : vector<16x4xf32>
    %cst_110 = arith.constant 0.000000e+00 : f32
    %114 = vector.broadcast %cst_110 : f32 to vector<16x4xf32>
    %115 = arith.maximumf %113, %114 : vector<16x4xf32>
    %c9 = arith.constant 9 : index
    %c0_111 = arith.constant 0 : index
    %c0_112 = arith.constant 0 : index
    %116 = vector.load %arg7[%c9, %c0_111, %c0_112] : memref<18x8x16xf32, #tpu.memory_space<vmem>>, vector<1x8x16xf32>
    %117 = vector.shape_cast %116 : vector<1x8x16xf32> to vector<8x16xf32>
    %cst_113 = arith.constant dense<0.000000e+00> : vector<8x4xf32>
    %118 = tpu.matmul %117, %115, %cst_113 {dimension_numbers = #tpu.dot_dimension_numbers<[1], [0], [0], [1], [0, 0, 1, 1], [], []>} : vector<8x16xf32>, vector<16x4xf32>, vector<8x4xf32> -> vector<8x4xf32>
    %c0_114 = arith.constant 0 : index
    %c0_115 = arith.constant 0 : index
    %c0_116 = arith.constant 0 : index
    %119 = vector.load %arg8[%c0_114, %c0_115, %c0_116] : memref<9x4x4xf32, #tpu.memory_space<vmem>>, vector<1x4x4xf32>
    %120 = vector.shape_cast %119 : vector<1x4x4xf32> to vector<4x4xf32>
    %cst_117 = arith.constant dense<0.000000e+00> : vector<8x4xf32>
    %121 = tpu.matmul %118, %120, %cst_117 {dimension_numbers = #tpu.dot_dimension_numbers<[1], [0], [0], [1], [0, 0, 1, 1], [], []>} : vector<8x4xf32>, vector<4x4xf32>, vector<8x4xf32> -> vector<8x4xf32>
    %c10 = arith.constant 10 : index
    %c0_118 = arith.constant 0 : index
    %c0_119 = arith.constant 0 : index
    %122 = vector.load %arg7[%c10, %c0_118, %c0_119] : memref<18x8x16xf32, #tpu.memory_space<vmem>>, vector<1x8x16xf32>
    %123 = vector.shape_cast %122 : vector<1x8x16xf32> to vector<8x16xf32>
    %cst_120 = arith.constant dense<0.000000e+00> : vector<8x4xf32>
    %124 = tpu.matmul %123, %115, %cst_120 {dimension_numbers = #tpu.dot_dimension_numbers<[1], [0], [0], [1], [0, 0, 1, 1], [], []>} : vector<8x16xf32>, vector<16x4xf32>, vector<8x4xf32> -> vector<8x4xf32>
    %c1_121 = arith.constant 1 : index
    %c0_122 = arith.constant 0 : index
    %c0_123 = arith.constant 0 : index
    %125 = vector.load %arg8[%c1_121, %c0_122, %c0_123] : memref<9x4x4xf32, #tpu.memory_space<vmem>>, vector<1x4x4xf32>
    %126 = vector.shape_cast %125 : vector<1x4x4xf32> to vector<4x4xf32>
    %cst_124 = arith.constant dense<0.000000e+00> : vector<8x4xf32>
    %127 = tpu.matmul %124, %126, %cst_124 {dimension_numbers = #tpu.dot_dimension_numbers<[1], [0], [0], [1], [0, 0, 1, 1], [], []>} : vector<8x4xf32>, vector<4x4xf32>, vector<8x4xf32> -> vector<8x4xf32>
    %128 = arith.addf %121, %127 : vector<8x4xf32>
    %c11 = arith.constant 11 : index
    %c0_125 = arith.constant 0 : index
    %c0_126 = arith.constant 0 : index
    %129 = vector.load %arg7[%c11, %c0_125, %c0_126] : memref<18x8x16xf32, #tpu.memory_space<vmem>>, vector<1x8x16xf32>
    %130 = vector.shape_cast %129 : vector<1x8x16xf32> to vector<8x16xf32>
    %cst_127 = arith.constant dense<0.000000e+00> : vector<8x4xf32>
    %131 = tpu.matmul %130, %115, %cst_127 {dimension_numbers = #tpu.dot_dimension_numbers<[1], [0], [0], [1], [0, 0, 1, 1], [], []>} : vector<8x16xf32>, vector<16x4xf32>, vector<8x4xf32> -> vector<8x4xf32>
    %c2_128 = arith.constant 2 : index
    %c0_129 = arith.constant 0 : index
    %c0_130 = arith.constant 0 : index
    %132 = vector.load %arg8[%c2_128, %c0_129, %c0_130] : memref<9x4x4xf32, #tpu.memory_space<vmem>>, vector<1x4x4xf32>
    %133 = vector.shape_cast %132 : vector<1x4x4xf32> to vector<4x4xf32>
    %cst_131 = arith.constant dense<0.000000e+00> : vector<8x4xf32>
    %134 = tpu.matmul %131, %133, %cst_131 {dimension_numbers = #tpu.dot_dimension_numbers<[1], [0], [0], [1], [0, 0, 1, 1], [], []>} : vector<8x4xf32>, vector<4x4xf32>, vector<8x4xf32> -> vector<8x4xf32>
    %135 = arith.addf %128, %134 : vector<8x4xf32>
    %c12 = arith.constant 12 : index
    %c0_132 = arith.constant 0 : index
    %c0_133 = arith.constant 0 : index
    %136 = vector.load %arg7[%c12, %c0_132, %c0_133] : memref<18x8x16xf32, #tpu.memory_space<vmem>>, vector<1x8x16xf32>
    %137 = vector.shape_cast %136 : vector<1x8x16xf32> to vector<8x16xf32>
    %cst_134 = arith.constant dense<0.000000e+00> : vector<8x4xf32>
    %138 = tpu.matmul %137, %115, %cst_134 {dimension_numbers = #tpu.dot_dimension_numbers<[1], [0], [0], [1], [0, 0, 1, 1], [], []>} : vector<8x16xf32>, vector<16x4xf32>, vector<8x4xf32> -> vector<8x4xf32>
    %c3_135 = arith.constant 3 : index
    %c0_136 = arith.constant 0 : index
    %c0_137 = arith.constant 0 : index
    %139 = vector.load %arg8[%c3_135, %c0_136, %c0_137] : memref<9x4x4xf32, #tpu.memory_space<vmem>>, vector<1x4x4xf32>
    %140 = vector.shape_cast %139 : vector<1x4x4xf32> to vector<4x4xf32>
    %cst_138 = arith.constant dense<0.000000e+00> : vector<8x4xf32>
    %141 = tpu.matmul %138, %140, %cst_138 {dimension_numbers = #tpu.dot_dimension_numbers<[1], [0], [0], [1], [0, 0, 1, 1], [], []>} : vector<8x4xf32>, vector<4x4xf32>, vector<8x4xf32> -> vector<8x4xf32>
    %142 = arith.addf %135, %141 : vector<8x4xf32>
    %c13 = arith.constant 13 : index
    %c0_139 = arith.constant 0 : index
    %c0_140 = arith.constant 0 : index
    %143 = vector.load %arg7[%c13, %c0_139, %c0_140] : memref<18x8x16xf32, #tpu.memory_space<vmem>>, vector<1x8x16xf32>
    %144 = vector.shape_cast %143 : vector<1x8x16xf32> to vector<8x16xf32>
    %cst_141 = arith.constant dense<0.000000e+00> : vector<8x4xf32>
    %145 = tpu.matmul %144, %115, %cst_141 {dimension_numbers = #tpu.dot_dimension_numbers<[1], [0], [0], [1], [0, 0, 1, 1], [], []>} : vector<8x16xf32>, vector<16x4xf32>, vector<8x4xf32> -> vector<8x4xf32>
    %c4_142 = arith.constant 4 : index
    %c0_143 = arith.constant 0 : index
    %c0_144 = arith.constant 0 : index
    %146 = vector.load %arg8[%c4_142, %c0_143, %c0_144] : memref<9x4x4xf32, #tpu.memory_space<vmem>>, vector<1x4x4xf32>
    %147 = vector.shape_cast %146 : vector<1x4x4xf32> to vector<4x4xf32>
    %cst_145 = arith.constant dense<0.000000e+00> : vector<8x4xf32>
    %148 = tpu.matmul %145, %147, %cst_145 {dimension_numbers = #tpu.dot_dimension_numbers<[1], [0], [0], [1], [0, 0, 1, 1], [], []>} : vector<8x4xf32>, vector<4x4xf32>, vector<8x4xf32> -> vector<8x4xf32>
    %149 = arith.addf %142, %148 : vector<8x4xf32>
    %c14 = arith.constant 14 : index
    %c0_146 = arith.constant 0 : index
    %c0_147 = arith.constant 0 : index
    %150 = vector.load %arg7[%c14, %c0_146, %c0_147] : memref<18x8x16xf32, #tpu.memory_space<vmem>>, vector<1x8x16xf32>
    %151 = vector.shape_cast %150 : vector<1x8x16xf32> to vector<8x16xf32>
    %cst_148 = arith.constant dense<0.000000e+00> : vector<8x4xf32>
    %152 = tpu.matmul %151, %115, %cst_148 {dimension_numbers = #tpu.dot_dimension_numbers<[1], [0], [0], [1], [0, 0, 1, 1], [], []>} : vector<8x16xf32>, vector<16x4xf32>, vector<8x4xf32> -> vector<8x4xf32>
    %c5_149 = arith.constant 5 : index
    %c0_150 = arith.constant 0 : index
    %c0_151 = arith.constant 0 : index
    %153 = vector.load %arg8[%c5_149, %c0_150, %c0_151] : memref<9x4x4xf32, #tpu.memory_space<vmem>>, vector<1x4x4xf32>
    %154 = vector.shape_cast %153 : vector<1x4x4xf32> to vector<4x4xf32>
    %cst_152 = arith.constant dense<0.000000e+00> : vector<8x4xf32>
    %155 = tpu.matmul %152, %154, %cst_152 {dimension_numbers = #tpu.dot_dimension_numbers<[1], [0], [0], [1], [0, 0, 1, 1], [], []>} : vector<8x4xf32>, vector<4x4xf32>, vector<8x4xf32> -> vector<8x4xf32>
    %156 = arith.addf %149, %155 : vector<8x4xf32>
    %c15 = arith.constant 15 : index
    %c0_153 = arith.constant 0 : index
    %c0_154 = arith.constant 0 : index
    %157 = vector.load %arg7[%c15, %c0_153, %c0_154] : memref<18x8x16xf32, #tpu.memory_space<vmem>>, vector<1x8x16xf32>
    %158 = vector.shape_cast %157 : vector<1x8x16xf32> to vector<8x16xf32>
    %cst_155 = arith.constant dense<0.000000e+00> : vector<8x4xf32>
    %159 = tpu.matmul %158, %115, %cst_155 {dimension_numbers = #tpu.dot_dimension_numbers<[1], [0], [0], [1], [0, 0, 1, 1], [], []>} : vector<8x16xf32>, vector<16x4xf32>, vector<8x4xf32> -> vector<8x4xf32>
    %c6_156 = arith.constant 6 : index
    %c0_157 = arith.constant 0 : index
    %c0_158 = arith.constant 0 : index
    %160 = vector.load %arg8[%c6_156, %c0_157, %c0_158] : memref<9x4x4xf32, #tpu.memory_space<vmem>>, vector<1x4x4xf32>
    %161 = vector.shape_cast %160 : vector<1x4x4xf32> to vector<4x4xf32>
    %cst_159 = arith.constant dense<0.000000e+00> : vector<8x4xf32>
    %162 = tpu.matmul %159, %161, %cst_159 {dimension_numbers = #tpu.dot_dimension_numbers<[1], [0], [0], [1], [0, 0, 1, 1], [], []>} : vector<8x4xf32>, vector<4x4xf32>, vector<8x4xf32> -> vector<8x4xf32>
    %163 = arith.addf %156, %162 : vector<8x4xf32>
    %c16_160 = arith.constant 16 : index
    %c0_161 = arith.constant 0 : index
    %c0_162 = arith.constant 0 : index
    %164 = vector.load %arg7[%c16_160, %c0_161, %c0_162] : memref<18x8x16xf32, #tpu.memory_space<vmem>>, vector<1x8x16xf32>
    %165 = vector.shape_cast %164 : vector<1x8x16xf32> to vector<8x16xf32>
    %cst_163 = arith.constant dense<0.000000e+00> : vector<8x4xf32>
    %166 = tpu.matmul %165, %115, %cst_163 {dimension_numbers = #tpu.dot_dimension_numbers<[1], [0], [0], [1], [0, 0, 1, 1], [], []>} : vector<8x16xf32>, vector<16x4xf32>, vector<8x4xf32> -> vector<8x4xf32>
    %c7_164 = arith.constant 7 : index
    %c0_165 = arith.constant 0 : index
    %c0_166 = arith.constant 0 : index
    %167 = vector.load %arg8[%c7_164, %c0_165, %c0_166] : memref<9x4x4xf32, #tpu.memory_space<vmem>>, vector<1x4x4xf32>
    %168 = vector.shape_cast %167 : vector<1x4x4xf32> to vector<4x4xf32>
    %cst_167 = arith.constant dense<0.000000e+00> : vector<8x4xf32>
    %169 = tpu.matmul %166, %168, %cst_167 {dimension_numbers = #tpu.dot_dimension_numbers<[1], [0], [0], [1], [0, 0, 1, 1], [], []>} : vector<8x4xf32>, vector<4x4xf32>, vector<8x4xf32> -> vector<8x4xf32>
    %170 = arith.addf %163, %169 : vector<8x4xf32>
    %c17 = arith.constant 17 : index
    %c0_168 = arith.constant 0 : index
    %c0_169 = arith.constant 0 : index
    %171 = vector.load %arg7[%c17, %c0_168, %c0_169] : memref<18x8x16xf32, #tpu.memory_space<vmem>>, vector<1x8x16xf32>
    %172 = vector.shape_cast %171 : vector<1x8x16xf32> to vector<8x16xf32>
    %cst_170 = arith.constant dense<0.000000e+00> : vector<8x4xf32>
    %173 = tpu.matmul %172, %115, %cst_170 {dimension_numbers = #tpu.dot_dimension_numbers<[1], [0], [0], [1], [0, 0, 1, 1], [], []>} : vector<8x16xf32>, vector<16x4xf32>, vector<8x4xf32> -> vector<8x4xf32>
    %c8_171 = arith.constant 8 : index
    %c0_172 = arith.constant 0 : index
    %c0_173 = arith.constant 0 : index
    %174 = vector.load %arg8[%c8_171, %c0_172, %c0_173] : memref<9x4x4xf32, #tpu.memory_space<vmem>>, vector<1x4x4xf32>
    %175 = vector.shape_cast %174 : vector<1x4x4xf32> to vector<4x4xf32>
    %cst_174 = arith.constant dense<0.000000e+00> : vector<8x4xf32>
    %176 = tpu.matmul %173, %175, %cst_174 {dimension_numbers = #tpu.dot_dimension_numbers<[1], [0], [0], [1], [0, 0, 1, 1], [], []>} : vector<8x4xf32>, vector<4x4xf32>, vector<8x4xf32> -> vector<8x4xf32>
    %177 = arith.addf %170, %176 : vector<8x4xf32>
    %c24 = arith.constant 24 : index
    %c0_175 = arith.constant 0 : index
    %178 = vector.load %arg10[%c24, %c0_175] : memref<32x4xf32, #tpu.memory_space<vmem>>, vector<8x4xf32>
    tpu.vector_store %arg10[%c24, %c0_175], %177 {strides = array<i32>} : memref<32x4xf32, #tpu.memory_space<vmem>>, vector<8x4xf32>,
    %c0_176 = arith.constant 0 : index
    %c0_177 = arith.constant 0 : index
    %179 = vector.load %arg10[%c0_176, %c0_177] : memref<32x4xf32, #tpu.memory_space<vmem>>, vector<32x4xf32>
    %c0_178 = arith.constant 0 : index
    %c0_179 = arith.constant 0 : index
    %c0_180 = arith.constant 0 : index
    %180 = vector.load %arg9[%c0_178, %c0_179, %c0_180] : memref<1x32x4xf32, #tpu.memory_space<vmem>>, vector<1x32x4xf32>
    %181 = vector.shape_cast %180 : vector<1x32x4xf32> to vector<32x4xf32>
    %182 = vector.shape_cast %179 : vector<32x4xf32> to vector<1x32x4xf32>
    tpu.vector_store %arg9[%c0_178, %c0_179, %c0_180], %182 {strides = array<i32>} : memref<1x32x4xf32, #tpu.memory_space<vmem>>, vector<1x32x4xf32>,
    return
  }
  func.func @transform_0(%arg0: i32) -> (i32, i32, i32) {
    %c0_i32 = arith.constant 0 : i32
    %c0_i32_0 = arith.constant 0 : i32
    %c0_i32_1 = arith.constant 0 : i32
    return %arg0, %c0_i32, %c0_i32_0 : i32, i32, i32
  }
  func.func @transform_1(%arg0: i32) -> (i32, i32, i32) {
    %c0_i32 = arith.constant 0 : i32
    %c0_i32_0 = arith.constant 0 : i32
    %c0_i32_1 = arith.constant 0 : i32
    %c0_i32_2 = arith.constant 0 : i32
    return %c0_i32, %c0_i32_0, %c0_i32_1 : i32, i32, i32
  }
  func.func @transform_2(%arg0: i32) -> (i32, i32, i32) {
    %c0_i32 = arith.constant 0 : i32
    %c0_i32_0 = arith.constant 0 : i32
    %c0_i32_1 = arith.constant 0 : i32
    %c0_i32_2 = arith.constant 0 : i32
    return %c0_i32, %c0_i32_0, %c0_i32_1 : i32, i32, i32
  }
  func.func @transform_3(%arg0: i32) -> (i32, i32, i32) {
    %c0_i32 = arith.constant 0 : i32
    %c0_i32_0 = arith.constant 0 : i32
    %c0_i32_1 = arith.constant 0 : i32
    %c0_i32_2 = arith.constant 0 : i32
    return %c0_i32, %c0_i32_0, %c0_i32_1 : i32, i32, i32
  }
  func.func @transform_4(%arg0: i32) -> (i32, i32, i32) {
    %c0_i32 = arith.constant 0 : i32
    %c0_i32_0 = arith.constant 0 : i32
    %c0_i32_1 = arith.constant 0 : i32
    %c0_i32_2 = arith.constant 0 : i32
    return %c0_i32, %c0_i32_0, %c0_i32_1 : i32, i32, i32
  }
  func.func @transform_5(%arg0: i32) -> (i32, i32, i32) {
    %c0_i32 = arith.constant 0 : i32
    %c0_i32_0 = arith.constant 0 : i32
    %c0_i32_1 = arith.constant 0 : i32
    %c0_i32_2 = arith.constant 0 : i32
    return %c0_i32, %c0_i32_0, %c0_i32_1 : i32, i32, i32
  }
  func.func @transform_6(%arg0: i32) -> (i32, i32, i32) {
    %c0_i32 = arith.constant 0 : i32
    %c0_i32_0 = arith.constant 0 : i32
    %c0_i32_1 = arith.constant 0 : i32
    %c0_i32_2 = arith.constant 0 : i32
    return %c0_i32, %c0_i32_0, %c0_i32_1 : i32, i32, i32
  }
  func.func @transform_7(%arg0: i32) -> (i32, i32, i32) {
    %c0_i32 = arith.constant 0 : i32
    %c0_i32_0 = arith.constant 0 : i32
    %c0_i32_1 = arith.constant 0 : i32
    %c0_i32_2 = arith.constant 0 : i32
    return %c0_i32, %c0_i32_0, %c0_i32_1 : i32, i32, i32
  }
  func.func @transform_8(%arg0: i32) -> (i32, i32, i32) {
    %c0_i32 = arith.constant 0 : i32
    %c0_i32_0 = arith.constant 0 : i32
    %c0_i32_1 = arith.constant 0 : i32
    return %arg0, %c0_i32, %c0_i32_0 : i32, i32, i32
  }
}

module attributes {stable_mosaic.version = 11 : i64} {
  func.func @_transition_kernel(%arg0: i32, %arg1: memref<1x48x4xf32, #tpu.memory_space<vmem>>, %arg2: memref<48x1xf32, #tpu.memory_space<vmem>>, %arg3: memref<48x1xf32, #tpu.memory_space<vmem>>, %arg4: memref<24x48xf32, #tpu.memory_space<vmem>>, %arg5: memref<4x1xf32, #tpu.memory_space<vmem>>, %arg6: memref<1x24x1xf32, #tpu.memory_space<vmem>>) attributes {dimension_semantics = [#tpu.dimension_semantics<parallel>], iteration_bounds = array<i64: 2>, scalar_prefetch = 0 : i64, scratch_operands = 0 : i64, tpu.core_type = #tpu.core_type<tc>, window_params = [{transform_indices = @transform_0, window_bounds = array<i64: 1, 48, 4>}, {pipeline_mode = #tpu.pipeline_mode<synchronous>, transform_indices = @transform_1, window_bounds = array<i64: 48, 1>}, {pipeline_mode = #tpu.pipeline_mode<synchronous>, transform_indices = @transform_2, window_bounds = array<i64: 48, 1>}, {pipeline_mode = #tpu.pipeline_mode<synchronous>, transform_indices = @transform_3, window_bounds = array<i64: 24, 48>}, {pipeline_mode = #tpu.pipeline_mode<synchronous>, transform_indices = @transform_4, window_bounds = array<i64: 4, 1>}, {transform_indices = @transform_5, window_bounds = array<i64: 1, 24, 1>}]} {
    %c0 = arith.constant 0 : index
    %c0_0 = arith.constant 0 : index
    %c0_1 = arith.constant 0 : index
    %0 = vector.load %arg1[%c0, %c0_0, %c0_1] : memref<1x48x4xf32, #tpu.memory_space<vmem>>, vector<1x48x4xf32>
    %1 = vector.shape_cast %0 : vector<1x48x4xf32> to vector<48x4xf32>
    %c0_2 = arith.constant 0 : index
    %c0_3 = arith.constant 0 : index
    %2 = vector.load %arg2[%c0_2, %c0_3] : memref<48x1xf32, #tpu.memory_space<vmem>>, vector<48x1xf32>
    %3 = vector.broadcast %2 : vector<48x1xf32> to vector<48x4xf32>
    %4 = arith.mulf %1, %3 : vector<48x4xf32>
    %c0_4 = arith.constant 0 : index
    %c0_5 = arith.constant 0 : index
    %5 = vector.load %arg3[%c0_4, %c0_5] : memref<48x1xf32, #tpu.memory_space<vmem>>, vector<48x1xf32>
    %6 = vector.broadcast %5 : vector<48x1xf32> to vector<48x4xf32>
    %7 = arith.addf %4, %6 : vector<48x4xf32>
    %cst = arith.constant 0.000000e+00 : f32
    %8 = vector.broadcast %cst : f32 to vector<48x4xf32>
    %9 = arith.maximumf %7, %8 : vector<48x4xf32>
    %c0_6 = arith.constant 0 : index
    %c0_7 = arith.constant 0 : index
    %10 = vector.load %arg5[%c0_6, %c0_7] : memref<4x1xf32, #tpu.memory_space<vmem>>, vector<4x1xf32>
    %cst_8 = arith.constant dense<0.000000e+00> : vector<48x1xf32>
    %11 = tpu.matmul %9, %10, %cst_8 {dimension_numbers = #tpu.dot_dimension_numbers<[1], [0], [0], [1], [0, 0, 1, 1], [], []>} : vector<48x4xf32>, vector<4x1xf32>, vector<48x1xf32> -> vector<48x1xf32>
    %c0_9 = arith.constant 0 : index
    %c0_10 = arith.constant 0 : index
    %12 = vector.load %arg4[%c0_9, %c0_10] : memref<24x48xf32, #tpu.memory_space<vmem>>, vector<24x48xf32>
    %cst_11 = arith.constant dense<0.000000e+00> : vector<24x1xf32>
    %13 = tpu.matmul %12, %11, %cst_11 {dimension_numbers = #tpu.dot_dimension_numbers<[1], [0], [0], [1], [0, 0, 1, 1], [], []>} : vector<24x48xf32>, vector<48x1xf32>, vector<24x1xf32> -> vector<24x1xf32>
    %c0_12 = arith.constant 0 : index
    %c0_13 = arith.constant 0 : index
    %c0_14 = arith.constant 0 : index
    %14 = vector.load %arg6[%c0_12, %c0_13, %c0_14] : memref<1x24x1xf32, #tpu.memory_space<vmem>>, vector<1x24x1xf32>
    %15 = vector.shape_cast %14 : vector<1x24x1xf32> to vector<24x1xf32>
    %16 = vector.shape_cast %13 : vector<24x1xf32> to vector<1x24x1xf32>
    tpu.vector_store %arg6[%c0_12, %c0_13, %c0_14], %16 {strides = array<i32>} : memref<1x24x1xf32, #tpu.memory_space<vmem>>, vector<1x24x1xf32>,
    return
  }
  func.func @transform_0(%arg0: i32) -> (i32, i32, i32) {
    %c0_i32 = arith.constant 0 : i32
    %c0_i32_0 = arith.constant 0 : i32
    %c0_i32_1 = arith.constant 0 : i32
    return %arg0, %c0_i32, %c0_i32_0 : i32, i32, i32
  }
  func.func @transform_1(%arg0: i32) -> (i32, i32) {
    %c0_i32 = arith.constant 0 : i32
    %c0_i32_0 = arith.constant 0 : i32
    %c0_i32_1 = arith.constant 0 : i32
    return %c0_i32, %c0_i32_0 : i32, i32
  }
  func.func @transform_2(%arg0: i32) -> (i32, i32) {
    %c0_i32 = arith.constant 0 : i32
    %c0_i32_0 = arith.constant 0 : i32
    %c0_i32_1 = arith.constant 0 : i32
    return %c0_i32, %c0_i32_0 : i32, i32
  }
  func.func @transform_3(%arg0: i32) -> (i32, i32) {
    %c0_i32 = arith.constant 0 : i32
    %c0_i32_0 = arith.constant 0 : i32
    %c0_i32_1 = arith.constant 0 : i32
    return %c0_i32, %c0_i32_0 : i32, i32
  }
  func.func @transform_4(%arg0: i32) -> (i32, i32) {
    %c0_i32 = arith.constant 0 : i32
    %c0_i32_0 = arith.constant 0 : i32
    %c0_i32_1 = arith.constant 0 : i32
    return %c0_i32, %c0_i32_0 : i32, i32
  }
  func.func @transform_5(%arg0: i32) -> (i32, i32, i32) {
    %c0_i32 = arith.constant 0 : i32
    %c0_i32_0 = arith.constant 0 : i32
    %c0_i32_1 = arith.constant 0 : i32
    return %arg0, %c0_i32, %c0_i32_0 : i32, i32, i32
  }
}

module attributes {stable_mosaic.version = 11 : i64} {
  func.func @kernel(%arg0: i32, %arg1: memref<1x32x4xf32, #tpu.memory_space<vmem>>, %arg2: memref<2x48x1xf32, #tpu.memory_space<vmem>>, %arg3: memref<2x48x1xf32, #tpu.memory_space<vmem>>, %arg4: memref<2x16x48xf32, #tpu.memory_space<vmem>>, %arg5: memref<2x16x1xf32, #tpu.memory_space<vmem>>, %arg6: memref<2x16x1xf32, #tpu.memory_space<vmem>>, %arg7: memref<18x8x16xf32, #tpu.memory_space<vmem>>, %arg8: memref<9x4x4xf32, #tpu.memory_space<vmem>>, %arg9: memref<1x48x4xf32, #tpu.memory_space<vmem>>, %arg10: memref<48x4xf32, #tpu.memory_space<vmem>>) attributes {dimension_semantics = [#tpu.dimension_semantics<parallel>], iteration_bounds = array<i64: 2>, scalar_prefetch = 0 : i64, scratch_operands = 1 : i64, tpu.core_type = #tpu.core_type<tc>, window_params = [{transform_indices = @transform_0, window_bounds = array<i64: 1, 32, 4>}, {pipeline_mode = #tpu.pipeline_mode<synchronous>, transform_indices = @transform_1, window_bounds = array<i64: 2, 48, 1>}, {pipeline_mode = #tpu.pipeline_mode<synchronous>, transform_indices = @transform_2, window_bounds = array<i64: 2, 48, 1>}, {pipeline_mode = #tpu.pipeline_mode<synchronous>, transform_indices = @transform_3, window_bounds = array<i64: 2, 16, 48>}, {pipeline_mode = #tpu.pipeline_mode<synchronous>, transform_indices = @transform_4, window_bounds = array<i64: 2, 16, 1>}, {pipeline_mode = #tpu.pipeline_mode<synchronous>, transform_indices = @transform_5, window_bounds = array<i64: 2, 16, 1>}, {pipeline_mode = #tpu.pipeline_mode<synchronous>, transform_indices = @transform_6, window_bounds = array<i64: 18, 8, 16>}, {pipeline_mode = #tpu.pipeline_mode<synchronous>, transform_indices = @transform_7, window_bounds = array<i64: 9, 4, 4>}, {transform_indices = @transform_8, window_bounds = array<i64: 1, 48, 4>}]} {
    %cst = arith.constant 0.000000e+00 : f32
    %0 = vector.broadcast %cst : f32 to vector<48x4xf32>
    %c0 = arith.constant 0 : index
    %c0_0 = arith.constant 0 : index
    %1 = vector.load %arg10[%c0, %c0_0] : memref<48x4xf32, #tpu.memory_space<vmem>>, vector<48x4xf32>
    tpu.vector_store %arg10[%c0, %c0_0], %0 {strides = array<i32>} : memref<48x4xf32, #tpu.memory_space<vmem>>, vector<48x4xf32>,
    %c0_1 = arith.constant 0 : index
    %c0_2 = arith.constant 0 : index
    %c0_3 = arith.constant 0 : index
    %2 = vector.load %arg1[%c0_1, %c0_2, %c0_3] : memref<1x32x4xf32, #tpu.memory_space<vmem>>, vector<1x32x4xf32>
    %3 = vector.shape_cast %2 : vector<1x32x4xf32> to vector<32x4xf32>
    %c0_4 = arith.constant 0 : index
    %c0_5 = arith.constant 0 : index
    %4 = vector.load %arg10[%c0_4, %c0_5] : memref<48x4xf32, #tpu.memory_space<vmem>>, vector<32x4xf32>
    tpu.vector_store %arg10[%c0_4, %c0_5], %3 {strides = array<i32>} : memref<48x4xf32, #tpu.memory_space<vmem>>, vector<32x4xf32>,
    %c0_6 = arith.constant 0 : index
    %c0_7 = arith.constant 0 : index
    %5 = vector.load %arg10[%c0_6, %c0_7] : memref<48x4xf32, #tpu.memory_space<vmem>>, vector<48x4xf32>
    %c0_8 = arith.constant 0 : index
    %c0_9 = arith.constant 0 : index
    %c0_10 = arith.constant 0 : index
    %6 = vector.load %arg2[%c0_8, %c0_9, %c0_10] : memref<2x48x1xf32, #tpu.memory_space<vmem>>, vector<1x48x1xf32>
    %7 = vector.shape_cast %6 : vector<1x48x1xf32> to vector<48x1xf32>
    %8 = vector.broadcast %7 : vector<48x1xf32> to vector<48x4xf32>
    %9 = arith.mulf %5, %8 : vector<48x4xf32>
    %c0_11 = arith.constant 0 : index
    %c0_12 = arith.constant 0 : index
    %c0_13 = arith.constant 0 : index
    %10 = vector.load %arg3[%c0_11, %c0_12, %c0_13] : memref<2x48x1xf32, #tpu.memory_space<vmem>>, vector<1x48x1xf32>
    %11 = vector.shape_cast %10 : vector<1x48x1xf32> to vector<48x1xf32>
    %12 = vector.broadcast %11 : vector<48x1xf32> to vector<48x4xf32>
    %13 = arith.addf %9, %12 : vector<48x4xf32>
    %cst_14 = arith.constant 0.000000e+00 : f32
    %14 = vector.broadcast %cst_14 : f32 to vector<48x4xf32>
    %15 = arith.maximumf %13, %14 : vector<48x4xf32>
    %c0_15 = arith.constant 0 : index
    %c0_16 = arith.constant 0 : index
    %c0_17 = arith.constant 0 : index
    %16 = vector.load %arg4[%c0_15, %c0_16, %c0_17] : memref<2x16x48xf32, #tpu.memory_space<vmem>>, vector<1x16x48xf32>
    %17 = vector.shape_cast %16 : vector<1x16x48xf32> to vector<16x48xf32>
    %cst_18 = arith.constant dense<0.000000e+00> : vector<16x4xf32>
    %18 = tpu.matmul %17, %15, %cst_18 {dimension_numbers = #tpu.dot_dimension_numbers<[1], [0], [0], [1], [0, 0, 1, 1], [], []>} : vector<16x48xf32>, vector<48x4xf32>, vector<16x4xf32> -> vector<16x4xf32>
    %c0_19 = arith.constant 0 : index
    %c0_20 = arith.constant 0 : index
    %c0_21 = arith.constant 0 : index
    %19 = vector.load %arg5[%c0_19, %c0_20, %c0_21] : memref<2x16x1xf32, #tpu.memory_space<vmem>>, vector<1x16x1xf32>
    %20 = vector.shape_cast %19 : vector<1x16x1xf32> to vector<16x1xf32>
    %21 = vector.broadcast %20 : vector<16x1xf32> to vector<16x4xf32>
    %22 = arith.mulf %18, %21 : vector<16x4xf32>
    %c0_22 = arith.constant 0 : index
    %c0_23 = arith.constant 0 : index
    %c0_24 = arith.constant 0 : index
    %23 = vector.load %arg6[%c0_22, %c0_23, %c0_24] : memref<2x16x1xf32, #tpu.memory_space<vmem>>, vector<1x16x1xf32>
    %24 = vector.shape_cast %23 : vector<1x16x1xf32> to vector<16x1xf32>
    %25 = vector.broadcast %24 : vector<16x1xf32> to vector<16x4xf32>
    %26 = arith.addf %22, %25 : vector<16x4xf32>
    %cst_25 = arith.constant 0.000000e+00 : f32
    %27 = vector.broadcast %cst_25 : f32 to vector<16x4xf32>
    %28 = arith.maximumf %26, %27 : vector<16x4xf32>
    %c0_26 = arith.constant 0 : index
    %c0_27 = arith.constant 0 : index
    %c0_28 = arith.constant 0 : index
    %29 = vector.load %arg7[%c0_26, %c0_27, %c0_28] : memref<18x8x16xf32, #tpu.memory_space<vmem>>, vector<1x8x16xf32>
    %30 = vector.shape_cast %29 : vector<1x8x16xf32> to vector<8x16xf32>
    %cst_29 = arith.constant dense<0.000000e+00> : vector<8x4xf32>
    %31 = tpu.matmul %30, %28, %cst_29 {dimension_numbers = #tpu.dot_dimension_numbers<[1], [0], [0], [1], [0, 0, 1, 1], [], []>} : vector<8x16xf32>, vector<16x4xf32>, vector<8x4xf32> -> vector<8x4xf32>
    %c0_30 = arith.constant 0 : index
    %c0_31 = arith.constant 0 : index
    %c0_32 = arith.constant 0 : index
    %32 = vector.load %arg8[%c0_30, %c0_31, %c0_32] : memref<9x4x4xf32, #tpu.memory_space<vmem>>, vector<1x4x4xf32>
    %33 = vector.shape_cast %32 : vector<1x4x4xf32> to vector<4x4xf32>
    %cst_33 = arith.constant dense<0.000000e+00> : vector<8x4xf32>
    %34 = tpu.matmul %31, %33, %cst_33 {dimension_numbers = #tpu.dot_dimension_numbers<[1], [0], [0], [1], [0, 0, 1, 1], [], []>} : vector<8x4xf32>, vector<4x4xf32>, vector<8x4xf32> -> vector<8x4xf32>
    %c1 = arith.constant 1 : index
    %c0_34 = arith.constant 0 : index
    %c0_35 = arith.constant 0 : index
    %35 = vector.load %arg7[%c1, %c0_34, %c0_35] : memref<18x8x16xf32, #tpu.memory_space<vmem>>, vector<1x8x16xf32>
    %36 = vector.shape_cast %35 : vector<1x8x16xf32> to vector<8x16xf32>
    %cst_36 = arith.constant dense<0.000000e+00> : vector<8x4xf32>
    %37 = tpu.matmul %36, %28, %cst_36 {dimension_numbers = #tpu.dot_dimension_numbers<[1], [0], [0], [1], [0, 0, 1, 1], [], []>} : vector<8x16xf32>, vector<16x4xf32>, vector<8x4xf32> -> vector<8x4xf32>
    %c1_37 = arith.constant 1 : index
    %c0_38 = arith.constant 0 : index
    %c0_39 = arith.constant 0 : index
    %38 = vector.load %arg8[%c1_37, %c0_38, %c0_39] : memref<9x4x4xf32, #tpu.memory_space<vmem>>, vector<1x4x4xf32>
    %39 = vector.shape_cast %38 : vector<1x4x4xf32> to vector<4x4xf32>
    %cst_40 = arith.constant dense<0.000000e+00> : vector<8x4xf32>
    %40 = tpu.matmul %37, %39, %cst_40 {dimension_numbers = #tpu.dot_dimension_numbers<[1], [0], [0], [1], [0, 0, 1, 1], [], []>} : vector<8x4xf32>, vector<4x4xf32>, vector<8x4xf32> -> vector<8x4xf32>
    %41 = arith.addf %34, %40 : vector<8x4xf32>
    %c2 = arith.constant 2 : index
    %c0_41 = arith.constant 0 : index
    %c0_42 = arith.constant 0 : index
    %42 = vector.load %arg7[%c2, %c0_41, %c0_42] : memref<18x8x16xf32, #tpu.memory_space<vmem>>, vector<1x8x16xf32>
    %43 = vector.shape_cast %42 : vector<1x8x16xf32> to vector<8x16xf32>
    %cst_43 = arith.constant dense<0.000000e+00> : vector<8x4xf32>
    %44 = tpu.matmul %43, %28, %cst_43 {dimension_numbers = #tpu.dot_dimension_numbers<[1], [0], [0], [1], [0, 0, 1, 1], [], []>} : vector<8x16xf32>, vector<16x4xf32>, vector<8x4xf32> -> vector<8x4xf32>
    %c2_44 = arith.constant 2 : index
    %c0_45 = arith.constant 0 : index
    %c0_46 = arith.constant 0 : index
    %45 = vector.load %arg8[%c2_44, %c0_45, %c0_46] : memref<9x4x4xf32, #tpu.memory_space<vmem>>, vector<1x4x4xf32>
    %46 = vector.shape_cast %45 : vector<1x4x4xf32> to vector<4x4xf32>
    %cst_47 = arith.constant dense<0.000000e+00> : vector<8x4xf32>
    %47 = tpu.matmul %44, %46, %cst_47 {dimension_numbers = #tpu.dot_dimension_numbers<[1], [0], [0], [1], [0, 0, 1, 1], [], []>} : vector<8x4xf32>, vector<4x4xf32>, vector<8x4xf32> -> vector<8x4xf32>
    %48 = arith.addf %41, %47 : vector<8x4xf32>
    %c3 = arith.constant 3 : index
    %c0_48 = arith.constant 0 : index
    %c0_49 = arith.constant 0 : index
    %49 = vector.load %arg7[%c3, %c0_48, %c0_49] : memref<18x8x16xf32, #tpu.memory_space<vmem>>, vector<1x8x16xf32>
    %50 = vector.shape_cast %49 : vector<1x8x16xf32> to vector<8x16xf32>
    %cst_50 = arith.constant dense<0.000000e+00> : vector<8x4xf32>
    %51 = tpu.matmul %50, %28, %cst_50 {dimension_numbers = #tpu.dot_dimension_numbers<[1], [0], [0], [1], [0, 0, 1, 1], [], []>} : vector<8x16xf32>, vector<16x4xf32>, vector<8x4xf32> -> vector<8x4xf32>
    %c3_51 = arith.constant 3 : index
    %c0_52 = arith.constant 0 : index
    %c0_53 = arith.constant 0 : index
    %52 = vector.load %arg8[%c3_51, %c0_52, %c0_53] : memref<9x4x4xf32, #tpu.memory_space<vmem>>, vector<1x4x4xf32>
    %53 = vector.shape_cast %52 : vector<1x4x4xf32> to vector<4x4xf32>
    %cst_54 = arith.constant dense<0.000000e+00> : vector<8x4xf32>
    %54 = tpu.matmul %51, %53, %cst_54 {dimension_numbers = #tpu.dot_dimension_numbers<[1], [0], [0], [1], [0, 0, 1, 1], [], []>} : vector<8x4xf32>, vector<4x4xf32>, vector<8x4xf32> -> vector<8x4xf32>
    %55 = arith.addf %48, %54 : vector<8x4xf32>
    %c4 = arith.constant 4 : index
    %c0_55 = arith.constant 0 : index
    %c0_56 = arith.constant 0 : index
    %56 = vector.load %arg7[%c4, %c0_55, %c0_56] : memref<18x8x16xf32, #tpu.memory_space<vmem>>, vector<1x8x16xf32>
    %57 = vector.shape_cast %56 : vector<1x8x16xf32> to vector<8x16xf32>
    %cst_57 = arith.constant dense<0.000000e+00> : vector<8x4xf32>
    %58 = tpu.matmul %57, %28, %cst_57 {dimension_numbers = #tpu.dot_dimension_numbers<[1], [0], [0], [1], [0, 0, 1, 1], [], []>} : vector<8x16xf32>, vector<16x4xf32>, vector<8x4xf32> -> vector<8x4xf32>
    %c4_58 = arith.constant 4 : index
    %c0_59 = arith.constant 0 : index
    %c0_60 = arith.constant 0 : index
    %59 = vector.load %arg8[%c4_58, %c0_59, %c0_60] : memref<9x4x4xf32, #tpu.memory_space<vmem>>, vector<1x4x4xf32>
    %60 = vector.shape_cast %59 : vector<1x4x4xf32> to vector<4x4xf32>
    %cst_61 = arith.constant dense<0.000000e+00> : vector<8x4xf32>
    %61 = tpu.matmul %58, %60, %cst_61 {dimension_numbers = #tpu.dot_dimension_numbers<[1], [0], [0], [1], [0, 0, 1, 1], [], []>} : vector<8x4xf32>, vector<4x4xf32>, vector<8x4xf32> -> vector<8x4xf32>
    %62 = arith.addf %55, %61 : vector<8x4xf32>
    %c5 = arith.constant 5 : index
    %c0_62 = arith.constant 0 : index
    %c0_63 = arith.constant 0 : index
    %63 = vector.load %arg7[%c5, %c0_62, %c0_63] : memref<18x8x16xf32, #tpu.memory_space<vmem>>, vector<1x8x16xf32>
    %64 = vector.shape_cast %63 : vector<1x8x16xf32> to vector<8x16xf32>
    %cst_64 = arith.constant dense<0.000000e+00> : vector<8x4xf32>
    %65 = tpu.matmul %64, %28, %cst_64 {dimension_numbers = #tpu.dot_dimension_numbers<[1], [0], [0], [1], [0, 0, 1, 1], [], []>} : vector<8x16xf32>, vector<16x4xf32>, vector<8x4xf32> -> vector<8x4xf32>
    %c5_65 = arith.constant 5 : index
    %c0_66 = arith.constant 0 : index
    %c0_67 = arith.constant 0 : index
    %66 = vector.load %arg8[%c5_65, %c0_66, %c0_67] : memref<9x4x4xf32, #tpu.memory_space<vmem>>, vector<1x4x4xf32>
    %67 = vector.shape_cast %66 : vector<1x4x4xf32> to vector<4x4xf32>
    %cst_68 = arith.constant dense<0.000000e+00> : vector<8x4xf32>
    %68 = tpu.matmul %65, %67, %cst_68 {dimension_numbers = #tpu.dot_dimension_numbers<[1], [0], [0], [1], [0, 0, 1, 1], [], []>} : vector<8x4xf32>, vector<4x4xf32>, vector<8x4xf32> -> vector<8x4xf32>
    %69 = arith.addf %62, %68 : vector<8x4xf32>
    %c6 = arith.constant 6 : index
    %c0_69 = arith.constant 0 : index
    %c0_70 = arith.constant 0 : index
    %70 = vector.load %arg7[%c6, %c0_69, %c0_70] : memref<18x8x16xf32, #tpu.memory_space<vmem>>, vector<1x8x16xf32>
    %71 = vector.shape_cast %70 : vector<1x8x16xf32> to vector<8x16xf32>
    %cst_71 = arith.constant dense<0.000000e+00> : vector<8x4xf32>
    %72 = tpu.matmul %71, %28, %cst_71 {dimension_numbers = #tpu.dot_dimension_numbers<[1], [0], [0], [1], [0, 0, 1, 1], [], []>} : vector<8x16xf32>, vector<16x4xf32>, vector<8x4xf32> -> vector<8x4xf32>
    %c6_72 = arith.constant 6 : index
    %c0_73 = arith.constant 0 : index
    %c0_74 = arith.constant 0 : index
    %73 = vector.load %arg8[%c6_72, %c0_73, %c0_74] : memref<9x4x4xf32, #tpu.memory_space<vmem>>, vector<1x4x4xf32>
    %74 = vector.shape_cast %73 : vector<1x4x4xf32> to vector<4x4xf32>
    %cst_75 = arith.constant dense<0.000000e+00> : vector<8x4xf32>
    %75 = tpu.matmul %72, %74, %cst_75 {dimension_numbers = #tpu.dot_dimension_numbers<[1], [0], [0], [1], [0, 0, 1, 1], [], []>} : vector<8x4xf32>, vector<4x4xf32>, vector<8x4xf32> -> vector<8x4xf32>
    %76 = arith.addf %69, %75 : vector<8x4xf32>
    %c7 = arith.constant 7 : index
    %c0_76 = arith.constant 0 : index
    %c0_77 = arith.constant 0 : index
    %77 = vector.load %arg7[%c7, %c0_76, %c0_77] : memref<18x8x16xf32, #tpu.memory_space<vmem>>, vector<1x8x16xf32>
    %78 = vector.shape_cast %77 : vector<1x8x16xf32> to vector<8x16xf32>
    %cst_78 = arith.constant dense<0.000000e+00> : vector<8x4xf32>
    %79 = tpu.matmul %78, %28, %cst_78 {dimension_numbers = #tpu.dot_dimension_numbers<[1], [0], [0], [1], [0, 0, 1, 1], [], []>} : vector<8x16xf32>, vector<16x4xf32>, vector<8x4xf32> -> vector<8x4xf32>
    %c7_79 = arith.constant 7 : index
    %c0_80 = arith.constant 0 : index
    %c0_81 = arith.constant 0 : index
    %80 = vector.load %arg8[%c7_79, %c0_80, %c0_81] : memref<9x4x4xf32, #tpu.memory_space<vmem>>, vector<1x4x4xf32>
    %81 = vector.shape_cast %80 : vector<1x4x4xf32> to vector<4x4xf32>
    %cst_82 = arith.constant dense<0.000000e+00> : vector<8x4xf32>
    %82 = tpu.matmul %79, %81, %cst_82 {dimension_numbers = #tpu.dot_dimension_numbers<[1], [0], [0], [1], [0, 0, 1, 1], [], []>} : vector<8x4xf32>, vector<4x4xf32>, vector<8x4xf32> -> vector<8x4xf32>
    %83 = arith.addf %76, %82 : vector<8x4xf32>
    %c8 = arith.constant 8 : index
    %c0_83 = arith.constant 0 : index
    %c0_84 = arith.constant 0 : index
    %84 = vector.load %arg7[%c8, %c0_83, %c0_84] : memref<18x8x16xf32, #tpu.memory_space<vmem>>, vector<1x8x16xf32>
    %85 = vector.shape_cast %84 : vector<1x8x16xf32> to vector<8x16xf32>
    %cst_85 = arith.constant dense<0.000000e+00> : vector<8x4xf32>
    %86 = tpu.matmul %85, %28, %cst_85 {dimension_numbers = #tpu.dot_dimension_numbers<[1], [0], [0], [1], [0, 0, 1, 1], [], []>} : vector<8x16xf32>, vector<16x4xf32>, vector<8x4xf32> -> vector<8x4xf32>
    %c8_86 = arith.constant 8 : index
    %c0_87 = arith.constant 0 : index
    %c0_88 = arith.constant 0 : index
    %87 = vector.load %arg8[%c8_86, %c0_87, %c0_88] : memref<9x4x4xf32, #tpu.memory_space<vmem>>, vector<1x4x4xf32>
    %88 = vector.shape_cast %87 : vector<1x4x4xf32> to vector<4x4xf32>
    %cst_89 = arith.constant dense<0.000000e+00> : vector<8x4xf32>
    %89 = tpu.matmul %86, %88, %cst_89 {dimension_numbers = #tpu.dot_dimension_numbers<[1], [0], [0], [1], [0, 0, 1, 1], [], []>} : vector<8x4xf32>, vector<4x4xf32>, vector<8x4xf32> -> vector<8x4xf32>
    %90 = arith.addf %83, %89 : vector<8x4xf32>
    %c32 = arith.constant 32 : index
    %c0_90 = arith.constant 0 : index
    %91 = vector.load %arg10[%c32, %c0_90] : memref<48x4xf32, #tpu.memory_space<vmem>>, vector<8x4xf32>
    tpu.vector_store %arg10[%c32, %c0_90], %90 {strides = array<i32>} : memref<48x4xf32, #tpu.memory_space<vmem>>, vector<8x4xf32>,
    %c0_91 = arith.constant 0 : index
    %c0_92 = arith.constant 0 : index
    %92 = vector.load %arg10[%c0_91, %c0_92] : memref<48x4xf32, #tpu.memory_space<vmem>>, vector<48x4xf32>
    %c1_93 = arith.constant 1 : index
    %c0_94 = arith.constant 0 : index
    %c0_95 = arith.constant 0 : index
    %93 = vector.load %arg2[%c1_93, %c0_94, %c0_95] : memref<2x48x1xf32, #tpu.memory_space<vmem>>, vector<1x48x1xf32>
    %94 = vector.shape_cast %93 : vector<1x48x1xf32> to vector<48x1xf32>
    %95 = vector.broadcast %94 : vector<48x1xf32> to vector<48x4xf32>
    %96 = arith.mulf %92, %95 : vector<48x4xf32>
    %c1_96 = arith.constant 1 : index
    %c0_97 = arith.constant 0 : index
    %c0_98 = arith.constant 0 : index
    %97 = vector.load %arg3[%c1_96, %c0_97, %c0_98] : memref<2x48x1xf32, #tpu.memory_space<vmem>>, vector<1x48x1xf32>
    %98 = vector.shape_cast %97 : vector<1x48x1xf32> to vector<48x1xf32>
    %99 = vector.broadcast %98 : vector<48x1xf32> to vector<48x4xf32>
    %100 = arith.addf %96, %99 : vector<48x4xf32>
    %cst_99 = arith.constant 0.000000e+00 : f32
    %101 = vector.broadcast %cst_99 : f32 to vector<48x4xf32>
    %102 = arith.maximumf %100, %101 : vector<48x4xf32>
    %c1_100 = arith.constant 1 : index
    %c0_101 = arith.constant 0 : index
    %c0_102 = arith.constant 0 : index
    %103 = vector.load %arg4[%c1_100, %c0_101, %c0_102] : memref<2x16x48xf32, #tpu.memory_space<vmem>>, vector<1x16x48xf32>
    %104 = vector.shape_cast %103 : vector<1x16x48xf32> to vector<16x48xf32>
    %cst_103 = arith.constant dense<0.000000e+00> : vector<16x4xf32>
    %105 = tpu.matmul %104, %102, %cst_103 {dimension_numbers = #tpu.dot_dimension_numbers<[1], [0], [0], [1], [0, 0, 1, 1], [], []>} : vector<16x48xf32>, vector<48x4xf32>, vector<16x4xf32> -> vector<16x4xf32>
    %c1_104 = arith.constant 1 : index
    %c0_105 = arith.constant 0 : index
    %c0_106 = arith.constant 0 : index
    %106 = vector.load %arg5[%c1_104, %c0_105, %c0_106] : memref<2x16x1xf32, #tpu.memory_space<vmem>>, vector<1x16x1xf32>
    %107 = vector.shape_cast %106 : vector<1x16x1xf32> to vector<16x1xf32>
    %108 = vector.broadcast %107 : vector<16x1xf32> to vector<16x4xf32>
    %109 = arith.mulf %105, %108 : vector<16x4xf32>
    %c1_107 = arith.constant 1 : index
    %c0_108 = arith.constant 0 : index
    %c0_109 = arith.constant 0 : index
    %110 = vector.load %arg6[%c1_107, %c0_108, %c0_109] : memref<2x16x1xf32, #tpu.memory_space<vmem>>, vector<1x16x1xf32>
    %111 = vector.shape_cast %110 : vector<1x16x1xf32> to vector<16x1xf32>
    %112 = vector.broadcast %111 : vector<16x1xf32> to vector<16x4xf32>
    %113 = arith.addf %109, %112 : vector<16x4xf32>
    %cst_110 = arith.constant 0.000000e+00 : f32
    %114 = vector.broadcast %cst_110 : f32 to vector<16x4xf32>
    %115 = arith.maximumf %113, %114 : vector<16x4xf32>
    %c9 = arith.constant 9 : index
    %c0_111 = arith.constant 0 : index
    %c0_112 = arith.constant 0 : index
    %116 = vector.load %arg7[%c9, %c0_111, %c0_112] : memref<18x8x16xf32, #tpu.memory_space<vmem>>, vector<1x8x16xf32>
    %117 = vector.shape_cast %116 : vector<1x8x16xf32> to vector<8x16xf32>
    %cst_113 = arith.constant dense<0.000000e+00> : vector<8x4xf32>
    %118 = tpu.matmul %117, %115, %cst_113 {dimension_numbers = #tpu.dot_dimension_numbers<[1], [0], [0], [1], [0, 0, 1, 1], [], []>} : vector<8x16xf32>, vector<16x4xf32>, vector<8x4xf32> -> vector<8x4xf32>
    %c0_114 = arith.constant 0 : index
    %c0_115 = arith.constant 0 : index
    %c0_116 = arith.constant 0 : index
    %119 = vector.load %arg8[%c0_114, %c0_115, %c0_116] : memref<9x4x4xf32, #tpu.memory_space<vmem>>, vector<1x4x4xf32>
    %120 = vector.shape_cast %119 : vector<1x4x4xf32> to vector<4x4xf32>
    %cst_117 = arith.constant dense<0.000000e+00> : vector<8x4xf32>
    %121 = tpu.matmul %118, %120, %cst_117 {dimension_numbers = #tpu.dot_dimension_numbers<[1], [0], [0], [1], [0, 0, 1, 1], [], []>} : vector<8x4xf32>, vector<4x4xf32>, vector<8x4xf32> -> vector<8x4xf32>
    %c10 = arith.constant 10 : index
    %c0_118 = arith.constant 0 : index
    %c0_119 = arith.constant 0 : index
    %122 = vector.load %arg7[%c10, %c0_118, %c0_119] : memref<18x8x16xf32, #tpu.memory_space<vmem>>, vector<1x8x16xf32>
    %123 = vector.shape_cast %122 : vector<1x8x16xf32> to vector<8x16xf32>
    %cst_120 = arith.constant dense<0.000000e+00> : vector<8x4xf32>
    %124 = tpu.matmul %123, %115, %cst_120 {dimension_numbers = #tpu.dot_dimension_numbers<[1], [0], [0], [1], [0, 0, 1, 1], [], []>} : vector<8x16xf32>, vector<16x4xf32>, vector<8x4xf32> -> vector<8x4xf32>
    %c1_121 = arith.constant 1 : index
    %c0_122 = arith.constant 0 : index
    %c0_123 = arith.constant 0 : index
    %125 = vector.load %arg8[%c1_121, %c0_122, %c0_123] : memref<9x4x4xf32, #tpu.memory_space<vmem>>, vector<1x4x4xf32>
    %126 = vector.shape_cast %125 : vector<1x4x4xf32> to vector<4x4xf32>
    %cst_124 = arith.constant dense<0.000000e+00> : vector<8x4xf32>
    %127 = tpu.matmul %124, %126, %cst_124 {dimension_numbers = #tpu.dot_dimension_numbers<[1], [0], [0], [1], [0, 0, 1, 1], [], []>} : vector<8x4xf32>, vector<4x4xf32>, vector<8x4xf32> -> vector<8x4xf32>
    %128 = arith.addf %121, %127 : vector<8x4xf32>
    %c11 = arith.constant 11 : index
    %c0_125 = arith.constant 0 : index
    %c0_126 = arith.constant 0 : index
    %129 = vector.load %arg7[%c11, %c0_125, %c0_126] : memref<18x8x16xf32, #tpu.memory_space<vmem>>, vector<1x8x16xf32>
    %130 = vector.shape_cast %129 : vector<1x8x16xf32> to vector<8x16xf32>
    %cst_127 = arith.constant dense<0.000000e+00> : vector<8x4xf32>
    %131 = tpu.matmul %130, %115, %cst_127 {dimension_numbers = #tpu.dot_dimension_numbers<[1], [0], [0], [1], [0, 0, 1, 1], [], []>} : vector<8x16xf32>, vector<16x4xf32>, vector<8x4xf32> -> vector<8x4xf32>
    %c2_128 = arith.constant 2 : index
    %c0_129 = arith.constant 0 : index
    %c0_130 = arith.constant 0 : index
    %132 = vector.load %arg8[%c2_128, %c0_129, %c0_130] : memref<9x4x4xf32, #tpu.memory_space<vmem>>, vector<1x4x4xf32>
    %133 = vector.shape_cast %132 : vector<1x4x4xf32> to vector<4x4xf32>
    %cst_131 = arith.constant dense<0.000000e+00> : vector<8x4xf32>
    %134 = tpu.matmul %131, %133, %cst_131 {dimension_numbers = #tpu.dot_dimension_numbers<[1], [0], [0], [1], [0, 0, 1, 1], [], []>} : vector<8x4xf32>, vector<4x4xf32>, vector<8x4xf32> -> vector<8x4xf32>
    %135 = arith.addf %128, %134 : vector<8x4xf32>
    %c12 = arith.constant 12 : index
    %c0_132 = arith.constant 0 : index
    %c0_133 = arith.constant 0 : index
    %136 = vector.load %arg7[%c12, %c0_132, %c0_133] : memref<18x8x16xf32, #tpu.memory_space<vmem>>, vector<1x8x16xf32>
    %137 = vector.shape_cast %136 : vector<1x8x16xf32> to vector<8x16xf32>
    %cst_134 = arith.constant dense<0.000000e+00> : vector<8x4xf32>
    %138 = tpu.matmul %137, %115, %cst_134 {dimension_numbers = #tpu.dot_dimension_numbers<[1], [0], [0], [1], [0, 0, 1, 1], [], []>} : vector<8x16xf32>, vector<16x4xf32>, vector<8x4xf32> -> vector<8x4xf32>
    %c3_135 = arith.constant 3 : index
    %c0_136 = arith.constant 0 : index
    %c0_137 = arith.constant 0 : index
    %139 = vector.load %arg8[%c3_135, %c0_136, %c0_137] : memref<9x4x4xf32, #tpu.memory_space<vmem>>, vector<1x4x4xf32>
    %140 = vector.shape_cast %139 : vector<1x4x4xf32> to vector<4x4xf32>
    %cst_138 = arith.constant dense<0.000000e+00> : vector<8x4xf32>
    %141 = tpu.matmul %138, %140, %cst_138 {dimension_numbers = #tpu.dot_dimension_numbers<[1], [0], [0], [1], [0, 0, 1, 1], [], []>} : vector<8x4xf32>, vector<4x4xf32>, vector<8x4xf32> -> vector<8x4xf32>
    %142 = arith.addf %135, %141 : vector<8x4xf32>
    %c13 = arith.constant 13 : index
    %c0_139 = arith.constant 0 : index
    %c0_140 = arith.constant 0 : index
    %143 = vector.load %arg7[%c13, %c0_139, %c0_140] : memref<18x8x16xf32, #tpu.memory_space<vmem>>, vector<1x8x16xf32>
    %144 = vector.shape_cast %143 : vector<1x8x16xf32> to vector<8x16xf32>
    %cst_141 = arith.constant dense<0.000000e+00> : vector<8x4xf32>
    %145 = tpu.matmul %144, %115, %cst_141 {dimension_numbers = #tpu.dot_dimension_numbers<[1], [0], [0], [1], [0, 0, 1, 1], [], []>} : vector<8x16xf32>, vector<16x4xf32>, vector<8x4xf32> -> vector<8x4xf32>
    %c4_142 = arith.constant 4 : index
    %c0_143 = arith.constant 0 : index
    %c0_144 = arith.constant 0 : index
    %146 = vector.load %arg8[%c4_142, %c0_143, %c0_144] : memref<9x4x4xf32, #tpu.memory_space<vmem>>, vector<1x4x4xf32>
    %147 = vector.shape_cast %146 : vector<1x4x4xf32> to vector<4x4xf32>
    %cst_145 = arith.constant dense<0.000000e+00> : vector<8x4xf32>
    %148 = tpu.matmul %145, %147, %cst_145 {dimension_numbers = #tpu.dot_dimension_numbers<[1], [0], [0], [1], [0, 0, 1, 1], [], []>} : vector<8x4xf32>, vector<4x4xf32>, vector<8x4xf32> -> vector<8x4xf32>
    %149 = arith.addf %142, %148 : vector<8x4xf32>
    %c14 = arith.constant 14 : index
    %c0_146 = arith.constant 0 : index
    %c0_147 = arith.constant 0 : index
    %150 = vector.load %arg7[%c14, %c0_146, %c0_147] : memref<18x8x16xf32, #tpu.memory_space<vmem>>, vector<1x8x16xf32>
    %151 = vector.shape_cast %150 : vector<1x8x16xf32> to vector<8x16xf32>
    %cst_148 = arith.constant dense<0.000000e+00> : vector<8x4xf32>
    %152 = tpu.matmul %151, %115, %cst_148 {dimension_numbers = #tpu.dot_dimension_numbers<[1], [0], [0], [1], [0, 0, 1, 1], [], []>} : vector<8x16xf32>, vector<16x4xf32>, vector<8x4xf32> -> vector<8x4xf32>
    %c5_149 = arith.constant 5 : index
    %c0_150 = arith.constant 0 : index
    %c0_151 = arith.constant 0 : index
    %153 = vector.load %arg8[%c5_149, %c0_150, %c0_151] : memref<9x4x4xf32, #tpu.memory_space<vmem>>, vector<1x4x4xf32>
    %154 = vector.shape_cast %153 : vector<1x4x4xf32> to vector<4x4xf32>
    %cst_152 = arith.constant dense<0.000000e+00> : vector<8x4xf32>
    %155 = tpu.matmul %152, %154, %cst_152 {dimension_numbers = #tpu.dot_dimension_numbers<[1], [0], [0], [1], [0, 0, 1, 1], [], []>} : vector<8x4xf32>, vector<4x4xf32>, vector<8x4xf32> -> vector<8x4xf32>
    %156 = arith.addf %149, %155 : vector<8x4xf32>
    %c15 = arith.constant 15 : index
    %c0_153 = arith.constant 0 : index
    %c0_154 = arith.constant 0 : index
    %157 = vector.load %arg7[%c15, %c0_153, %c0_154] : memref<18x8x16xf32, #tpu.memory_space<vmem>>, vector<1x8x16xf32>
    %158 = vector.shape_cast %157 : vector<1x8x16xf32> to vector<8x16xf32>
    %cst_155 = arith.constant dense<0.000000e+00> : vector<8x4xf32>
    %159 = tpu.matmul %158, %115, %cst_155 {dimension_numbers = #tpu.dot_dimension_numbers<[1], [0], [0], [1], [0, 0, 1, 1], [], []>} : vector<8x16xf32>, vector<16x4xf32>, vector<8x4xf32> -> vector<8x4xf32>
    %c6_156 = arith.constant 6 : index
    %c0_157 = arith.constant 0 : index
    %c0_158 = arith.constant 0 : index
    %160 = vector.load %arg8[%c6_156, %c0_157, %c0_158] : memref<9x4x4xf32, #tpu.memory_space<vmem>>, vector<1x4x4xf32>
    %161 = vector.shape_cast %160 : vector<1x4x4xf32> to vector<4x4xf32>
    %cst_159 = arith.constant dense<0.000000e+00> : vector<8x4xf32>
    %162 = tpu.matmul %159, %161, %cst_159 {dimension_numbers = #tpu.dot_dimension_numbers<[1], [0], [0], [1], [0, 0, 1, 1], [], []>} : vector<8x4xf32>, vector<4x4xf32>, vector<8x4xf32> -> vector<8x4xf32>
    %163 = arith.addf %156, %162 : vector<8x4xf32>
    %c16 = arith.constant 16 : index
    %c0_160 = arith.constant 0 : index
    %c0_161 = arith.constant 0 : index
    %164 = vector.load %arg7[%c16, %c0_160, %c0_161] : memref<18x8x16xf32, #tpu.memory_space<vmem>>, vector<1x8x16xf32>
    %165 = vector.shape_cast %164 : vector<1x8x16xf32> to vector<8x16xf32>
    %cst_162 = arith.constant dense<0.000000e+00> : vector<8x4xf32>
    %166 = tpu.matmul %165, %115, %cst_162 {dimension_numbers = #tpu.dot_dimension_numbers<[1], [0], [0], [1], [0, 0, 1, 1], [], []>} : vector<8x16xf32>, vector<16x4xf32>, vector<8x4xf32> -> vector<8x4xf32>
    %c7_163 = arith.constant 7 : index
    %c0_164 = arith.constant 0 : index
    %c0_165 = arith.constant 0 : index
    %167 = vector.load %arg8[%c7_163, %c0_164, %c0_165] : memref<9x4x4xf32, #tpu.memory_space<vmem>>, vector<1x4x4xf32>
    %168 = vector.shape_cast %167 : vector<1x4x4xf32> to vector<4x4xf32>
    %cst_166 = arith.constant dense<0.000000e+00> : vector<8x4xf32>
    %169 = tpu.matmul %166, %168, %cst_166 {dimension_numbers = #tpu.dot_dimension_numbers<[1], [0], [0], [1], [0, 0, 1, 1], [], []>} : vector<8x4xf32>, vector<4x4xf32>, vector<8x4xf32> -> vector<8x4xf32>
    %170 = arith.addf %163, %169 : vector<8x4xf32>
    %c17 = arith.constant 17 : index
    %c0_167 = arith.constant 0 : index
    %c0_168 = arith.constant 0 : index
    %171 = vector.load %arg7[%c17, %c0_167, %c0_168] : memref<18x8x16xf32, #tpu.memory_space<vmem>>, vector<1x8x16xf32>
    %172 = vector.shape_cast %171 : vector<1x8x16xf32> to vector<8x16xf32>
    %cst_169 = arith.constant dense<0.000000e+00> : vector<8x4xf32>
    %173 = tpu.matmul %172, %115, %cst_169 {dimension_numbers = #tpu.dot_dimension_numbers<[1], [0], [0], [1], [0, 0, 1, 1], [], []>} : vector<8x16xf32>, vector<16x4xf32>, vector<8x4xf32> -> vector<8x4xf32>
    %c8_170 = arith.constant 8 : index
    %c0_171 = arith.constant 0 : index
    %c0_172 = arith.constant 0 : index
    %174 = vector.load %arg8[%c8_170, %c0_171, %c0_172] : memref<9x4x4xf32, #tpu.memory_space<vmem>>, vector<1x4x4xf32>
    %175 = vector.shape_cast %174 : vector<1x4x4xf32> to vector<4x4xf32>
    %cst_173 = arith.constant dense<0.000000e+00> : vector<8x4xf32>
    %176 = tpu.matmul %173, %175, %cst_173 {dimension_numbers = #tpu.dot_dimension_numbers<[1], [0], [0], [1], [0, 0, 1, 1], [], []>} : vector<8x4xf32>, vector<4x4xf32>, vector<8x4xf32> -> vector<8x4xf32>
    %177 = arith.addf %170, %176 : vector<8x4xf32>
    %c40 = arith.constant 40 : index
    %c0_174 = arith.constant 0 : index
    %178 = vector.load %arg10[%c40, %c0_174] : memref<48x4xf32, #tpu.memory_space<vmem>>, vector<8x4xf32>
    tpu.vector_store %arg10[%c40, %c0_174], %177 {strides = array<i32>} : memref<48x4xf32, #tpu.memory_space<vmem>>, vector<8x4xf32>,
    %c0_175 = arith.constant 0 : index
    %c0_176 = arith.constant 0 : index
    %179 = vector.load %arg10[%c0_175, %c0_176] : memref<48x4xf32, #tpu.memory_space<vmem>>, vector<48x4xf32>
    %c0_177 = arith.constant 0 : index
    %c0_178 = arith.constant 0 : index
    %c0_179 = arith.constant 0 : index
    %180 = vector.load %arg9[%c0_177, %c0_178, %c0_179] : memref<1x48x4xf32, #tpu.memory_space<vmem>>, vector<1x48x4xf32>
    %181 = vector.shape_cast %180 : vector<1x48x4xf32> to vector<48x4xf32>
    %182 = vector.shape_cast %179 : vector<48x4xf32> to vector<1x48x4xf32>
    tpu.vector_store %arg9[%c0_177, %c0_178, %c0_179], %182 {strides = array<i32>} : memref<1x48x4xf32, #tpu.memory_space<vmem>>, vector<1x48x4xf32>,
    return
  }
  func.func @transform_0(%arg0: i32) -> (i32, i32, i32) {
    %c0_i32 = arith.constant 0 : i32
    %c0_i32_0 = arith.constant 0 : i32
    %c0_i32_1 = arith.constant 0 : i32
    return %arg0, %c0_i32, %c0_i32_0 : i32, i32, i32
  }
  func.func @transform_1(%arg0: i32) -> (i32, i32, i32) {
    %c0_i32 = arith.constant 0 : i32
    %c0_i32_0 = arith.constant 0 : i32
    %c0_i32_1 = arith.constant 0 : i32
    %c0_i32_2 = arith.constant 0 : i32
    return %c0_i32, %c0_i32_0, %c0_i32_1 : i32, i32, i32
  }
  func.func @transform_2(%arg0: i32) -> (i32, i32, i32) {
    %c0_i32 = arith.constant 0 : i32
    %c0_i32_0 = arith.constant 0 : i32
    %c0_i32_1 = arith.constant 0 : i32
    %c0_i32_2 = arith.constant 0 : i32
    return %c0_i32, %c0_i32_0, %c0_i32_1 : i32, i32, i32
  }
  func.func @transform_3(%arg0: i32) -> (i32, i32, i32) {
    %c0_i32 = arith.constant 0 : i32
    %c0_i32_0 = arith.constant 0 : i32
    %c0_i32_1 = arith.constant 0 : i32
    %c0_i32_2 = arith.constant 0 : i32
    return %c0_i32, %c0_i32_0, %c0_i32_1 : i32, i32, i32
  }
  func.func @transform_4(%arg0: i32) -> (i32, i32, i32) {
    %c0_i32 = arith.constant 0 : i32
    %c0_i32_0 = arith.constant 0 : i32
    %c0_i32_1 = arith.constant 0 : i32
    %c0_i32_2 = arith.constant 0 : i32
    return %c0_i32, %c0_i32_0, %c0_i32_1 : i32, i32, i32
  }
  func.func @transform_5(%arg0: i32) -> (i32, i32, i32) {
    %c0_i32 = arith.constant 0 : i32
    %c0_i32_0 = arith.constant 0 : i32
    %c0_i32_1 = arith.constant 0 : i32
    %c0_i32_2 = arith.constant 0 : i32
    return %c0_i32, %c0_i32_0, %c0_i32_1 : i32, i32, i32
  }
  func.func @transform_6(%arg0: i32) -> (i32, i32, i32) {
    %c0_i32 = arith.constant 0 : i32
    %c0_i32_0 = arith.constant 0 : i32
    %c0_i32_1 = arith.constant 0 : i32
    %c0_i32_2 = arith.constant 0 : i32
    return %c0_i32, %c0_i32_0, %c0_i32_1 : i32, i32, i32
  }
  func.func @transform_7(%arg0: i32) -> (i32, i32, i32) {
    %c0_i32 = arith.constant 0 : i32
    %c0_i32_0 = arith.constant 0 : i32
    %c0_i32_1 = arith.constant 0 : i32
    %c0_i32_2 = arith.constant 0 : i32
    return %c0_i32, %c0_i32_0, %c0_i32_1 : i32, i32, i32
  }
  func.func @transform_8(%arg0: i32) -> (i32, i32, i32) {
    %c0_i32 = arith.constant 0 : i32
    %c0_i32_0 = arith.constant 0 : i32
    %c0_i32_1 = arith.constant 0 : i32
    return %arg0, %c0_i32, %c0_i32_0 : i32, i32, i32
  }
}

module attributes {stable_mosaic.version = 11 : i64} {
  func.func @kernel(%arg0: i32, %arg1: memref<1x24x1xf32, #tpu.memory_space<vmem>>, %arg2: memref<2x40x1xf32, #tpu.memory_space<vmem>>, %arg3: memref<2x40x1xf32, #tpu.memory_space<vmem>>, %arg4: memref<2x16x40xf32, #tpu.memory_space<vmem>>, %arg5: memref<2x16x1xf32, #tpu.memory_space<vmem>>, %arg6: memref<2x16x1xf32, #tpu.memory_space<vmem>>, %arg7: memref<18x8x16xf32, #tpu.memory_space<vmem>>, %arg8: memref<9x1x1xf32, #tpu.memory_space<vmem>>, %arg9: memref<1x40x1xf32, #tpu.memory_space<vmem>>, %arg10: memref<40x1xf32, #tpu.memory_space<vmem>>) attributes {dimension_semantics = [#tpu.dimension_semantics<parallel>], iteration_bounds = array<i64: 2>, scalar_prefetch = 0 : i64, scratch_operands = 1 : i64, tpu.core_type = #tpu.core_type<tc>, window_params = [{transform_indices = @transform_0, window_bounds = array<i64: 1, 24, 1>}, {pipeline_mode = #tpu.pipeline_mode<synchronous>, transform_indices = @transform_1, window_bounds = array<i64: 2, 40, 1>}, {pipeline_mode = #tpu.pipeline_mode<synchronous>, transform_indices = @transform_2, window_bounds = array<i64: 2, 40, 1>}, {pipeline_mode = #tpu.pipeline_mode<synchronous>, transform_indices = @transform_3, window_bounds = array<i64: 2, 16, 40>}, {pipeline_mode = #tpu.pipeline_mode<synchronous>, transform_indices = @transform_4, window_bounds = array<i64: 2, 16, 1>}, {pipeline_mode = #tpu.pipeline_mode<synchronous>, transform_indices = @transform_5, window_bounds = array<i64: 2, 16, 1>}, {pipeline_mode = #tpu.pipeline_mode<synchronous>, transform_indices = @transform_6, window_bounds = array<i64: 18, 8, 16>}, {pipeline_mode = #tpu.pipeline_mode<synchronous>, transform_indices = @transform_7, window_bounds = array<i64: 9, 1, 1>}, {transform_indices = @transform_8, window_bounds = array<i64: 1, 40, 1>}]} {
    %cst = arith.constant 0.000000e+00 : f32
    %0 = vector.broadcast %cst : f32 to vector<40x1xf32>
    %c0 = arith.constant 0 : index
    %c0_0 = arith.constant 0 : index
    %1 = vector.load %arg10[%c0, %c0_0] : memref<40x1xf32, #tpu.memory_space<vmem>>, vector<40x1xf32>
    tpu.vector_store %arg10[%c0, %c0_0], %0 {strides = array<i32>} : memref<40x1xf32, #tpu.memory_space<vmem>>, vector<40x1xf32>,
    %c0_1 = arith.constant 0 : index
    %c0_2 = arith.constant 0 : index
    %c0_3 = arith.constant 0 : index
    %2 = vector.load %arg1[%c0_1, %c0_2, %c0_3] : memref<1x24x1xf32, #tpu.memory_space<vmem>>, vector<1x24x1xf32>
    %3 = vector.shape_cast %2 : vector<1x24x1xf32> to vector<24x1xf32>
    %c0_4 = arith.constant 0 : index
    %c0_5 = arith.constant 0 : index
    %4 = vector.load %arg10[%c0_4, %c0_5] : memref<40x1xf32, #tpu.memory_space<vmem>>, vector<24x1xf32>
    tpu.vector_store %arg10[%c0_4, %c0_5], %3 {strides = array<i32>} : memref<40x1xf32, #tpu.memory_space<vmem>>, vector<24x1xf32>,
    %c0_6 = arith.constant 0 : index
    %c0_7 = arith.constant 0 : index
    %5 = vector.load %arg10[%c0_6, %c0_7] : memref<40x1xf32, #tpu.memory_space<vmem>>, vector<40x1xf32>
    %c0_8 = arith.constant 0 : index
    %c0_9 = arith.constant 0 : index
    %c0_10 = arith.constant 0 : index
    %6 = vector.load %arg2[%c0_8, %c0_9, %c0_10] : memref<2x40x1xf32, #tpu.memory_space<vmem>>, vector<1x40x1xf32>
    %7 = vector.shape_cast %6 : vector<1x40x1xf32> to vector<40x1xf32>
    %8 = arith.mulf %5, %7 : vector<40x1xf32>
    %c0_11 = arith.constant 0 : index
    %c0_12 = arith.constant 0 : index
    %c0_13 = arith.constant 0 : index
    %9 = vector.load %arg3[%c0_11, %c0_12, %c0_13] : memref<2x40x1xf32, #tpu.memory_space<vmem>>, vector<1x40x1xf32>
    %10 = vector.shape_cast %9 : vector<1x40x1xf32> to vector<40x1xf32>
    %11 = arith.addf %8, %10 : vector<40x1xf32>
    %cst_14 = arith.constant 0.000000e+00 : f32
    %12 = vector.broadcast %cst_14 : f32 to vector<40x1xf32>
    %13 = arith.maximumf %11, %12 : vector<40x1xf32>
    %c0_15 = arith.constant 0 : index
    %c0_16 = arith.constant 0 : index
    %c0_17 = arith.constant 0 : index
    %14 = vector.load %arg4[%c0_15, %c0_16, %c0_17] : memref<2x16x40xf32, #tpu.memory_space<vmem>>, vector<1x16x40xf32>
    %15 = vector.shape_cast %14 : vector<1x16x40xf32> to vector<16x40xf32>
    %cst_18 = arith.constant dense<0.000000e+00> : vector<16x1xf32>
    %16 = tpu.matmul %15, %13, %cst_18 {dimension_numbers = #tpu.dot_dimension_numbers<[1], [0], [0], [1], [0, 0, 1, 1], [], []>} : vector<16x40xf32>, vector<40x1xf32>, vector<16x1xf32> -> vector<16x1xf32>
    %c0_19 = arith.constant 0 : index
    %c0_20 = arith.constant 0 : index
    %c0_21 = arith.constant 0 : index
    %17 = vector.load %arg5[%c0_19, %c0_20, %c0_21] : memref<2x16x1xf32, #tpu.memory_space<vmem>>, vector<1x16x1xf32>
    %18 = vector.shape_cast %17 : vector<1x16x1xf32> to vector<16x1xf32>
    %19 = arith.mulf %16, %18 : vector<16x1xf32>
    %c0_22 = arith.constant 0 : index
    %c0_23 = arith.constant 0 : index
    %c0_24 = arith.constant 0 : index
    %20 = vector.load %arg6[%c0_22, %c0_23, %c0_24] : memref<2x16x1xf32, #tpu.memory_space<vmem>>, vector<1x16x1xf32>
    %21 = vector.shape_cast %20 : vector<1x16x1xf32> to vector<16x1xf32>
    %22 = arith.addf %19, %21 : vector<16x1xf32>
    %cst_25 = arith.constant 0.000000e+00 : f32
    %23 = vector.broadcast %cst_25 : f32 to vector<16x1xf32>
    %24 = arith.maximumf %22, %23 : vector<16x1xf32>
    %c4 = arith.constant 4 : index
    %c0_26 = arith.constant 0 : index
    %c0_27 = arith.constant 0 : index
    %25 = vector.load %arg7[%c4, %c0_26, %c0_27] : memref<18x8x16xf32, #tpu.memory_space<vmem>>, vector<1x8x16xf32>
    %26 = vector.shape_cast %25 : vector<1x8x16xf32> to vector<8x16xf32>
    %cst_28 = arith.constant dense<0.000000e+00> : vector<8x1xf32>
    %27 = tpu.matmul %26, %24, %cst_28 {dimension_numbers = #tpu.dot_dimension_numbers<[1], [0], [0], [1], [0, 0, 1, 1], [], []>} : vector<8x16xf32>, vector<16x1xf32>, vector<8x1xf32> -> vector<8x1xf32>
    %c24 = arith.constant 24 : index
    %c0_29 = arith.constant 0 : index
    %28 = vector.load %arg10[%c24, %c0_29] : memref<40x1xf32, #tpu.memory_space<vmem>>, vector<8x1xf32>
    tpu.vector_store %arg10[%c24, %c0_29], %27 {strides = array<i32>} : memref<40x1xf32, #tpu.memory_space<vmem>>, vector<8x1xf32>,
    %c0_30 = arith.constant 0 : index
    %c0_31 = arith.constant 0 : index
    %29 = vector.load %arg10[%c0_30, %c0_31] : memref<40x1xf32, #tpu.memory_space<vmem>>, vector<40x1xf32>
    %c1 = arith.constant 1 : index
    %c0_32 = arith.constant 0 : index
    %c0_33 = arith.constant 0 : index
    %30 = vector.load %arg2[%c1, %c0_32, %c0_33] : memref<2x40x1xf32, #tpu.memory_space<vmem>>, vector<1x40x1xf32>
    %31 = vector.shape_cast %30 : vector<1x40x1xf32> to vector<40x1xf32>
    %32 = arith.mulf %29, %31 : vector<40x1xf32>
    %c1_34 = arith.constant 1 : index
    %c0_35 = arith.constant 0 : index
    %c0_36 = arith.constant 0 : index
    %33 = vector.load %arg3[%c1_34, %c0_35, %c0_36] : memref<2x40x1xf32, #tpu.memory_space<vmem>>, vector<1x40x1xf32>
    %34 = vector.shape_cast %33 : vector<1x40x1xf32> to vector<40x1xf32>
    %35 = arith.addf %32, %34 : vector<40x1xf32>
    %cst_37 = arith.constant 0.000000e+00 : f32
    %36 = vector.broadcast %cst_37 : f32 to vector<40x1xf32>
    %37 = arith.maximumf %35, %36 : vector<40x1xf32>
    %c1_38 = arith.constant 1 : index
    %c0_39 = arith.constant 0 : index
    %c0_40 = arith.constant 0 : index
    %38 = vector.load %arg4[%c1_38, %c0_39, %c0_40] : memref<2x16x40xf32, #tpu.memory_space<vmem>>, vector<1x16x40xf32>
    %39 = vector.shape_cast %38 : vector<1x16x40xf32> to vector<16x40xf32>
    %cst_41 = arith.constant dense<0.000000e+00> : vector<16x1xf32>
    %40 = tpu.matmul %39, %37, %cst_41 {dimension_numbers = #tpu.dot_dimension_numbers<[1], [0], [0], [1], [0, 0, 1, 1], [], []>} : vector<16x40xf32>, vector<40x1xf32>, vector<16x1xf32> -> vector<16x1xf32>
    %c1_42 = arith.constant 1 : index
    %c0_43 = arith.constant 0 : index
    %c0_44 = arith.constant 0 : index
    %41 = vector.load %arg5[%c1_42, %c0_43, %c0_44] : memref<2x16x1xf32, #tpu.memory_space<vmem>>, vector<1x16x1xf32>
    %42 = vector.shape_cast %41 : vector<1x16x1xf32> to vector<16x1xf32>
    %43 = arith.mulf %40, %42 : vector<16x1xf32>
    %c1_45 = arith.constant 1 : index
    %c0_46 = arith.constant 0 : index
    %c0_47 = arith.constant 0 : index
    %44 = vector.load %arg6[%c1_45, %c0_46, %c0_47] : memref<2x16x1xf32, #tpu.memory_space<vmem>>, vector<1x16x1xf32>
    %45 = vector.shape_cast %44 : vector<1x16x1xf32> to vector<16x1xf32>
    %46 = arith.addf %43, %45 : vector<16x1xf32>
    %cst_48 = arith.constant 0.000000e+00 : f32
    %47 = vector.broadcast %cst_48 : f32 to vector<16x1xf32>
    %48 = arith.maximumf %46, %47 : vector<16x1xf32>
    %c13 = arith.constant 13 : index
    %c0_49 = arith.constant 0 : index
    %c0_50 = arith.constant 0 : index
    %49 = vector.load %arg7[%c13, %c0_49, %c0_50] : memref<18x8x16xf32, #tpu.memory_space<vmem>>, vector<1x8x16xf32>
    %50 = vector.shape_cast %49 : vector<1x8x16xf32> to vector<8x16xf32>
    %cst_51 = arith.constant dense<0.000000e+00> : vector<8x1xf32>
    %51 = tpu.matmul %50, %48, %cst_51 {dimension_numbers = #tpu.dot_dimension_numbers<[1], [0], [0], [1], [0, 0, 1, 1], [], []>} : vector<8x16xf32>, vector<16x1xf32>, vector<8x1xf32> -> vector<8x1xf32>
    %c32 = arith.constant 32 : index
    %c0_52 = arith.constant 0 : index
    %52 = vector.load %arg10[%c32, %c0_52] : memref<40x1xf32, #tpu.memory_space<vmem>>, vector<8x1xf32>
    tpu.vector_store %arg10[%c32, %c0_52], %51 {strides = array<i32>} : memref<40x1xf32, #tpu.memory_space<vmem>>, vector<8x1xf32>,
    %c0_53 = arith.constant 0 : index
    %c0_54 = arith.constant 0 : index
    %53 = vector.load %arg10[%c0_53, %c0_54] : memref<40x1xf32, #tpu.memory_space<vmem>>, vector<40x1xf32>
    %c0_55 = arith.constant 0 : index
    %c0_56 = arith.constant 0 : index
    %c0_57 = arith.constant 0 : index
    %54 = vector.load %arg9[%c0_55, %c0_56, %c0_57] : memref<1x40x1xf32, #tpu.memory_space<vmem>>, vector<1x40x1xf32>
    %55 = vector.shape_cast %54 : vector<1x40x1xf32> to vector<40x1xf32>
    %56 = vector.shape_cast %53 : vector<40x1xf32> to vector<1x40x1xf32>
    tpu.vector_store %arg9[%c0_55, %c0_56, %c0_57], %56 {strides = array<i32>} : memref<1x40x1xf32, #tpu.memory_space<vmem>>, vector<1x40x1xf32>,
    return
  }
  func.func @transform_0(%arg0: i32) -> (i32, i32, i32) {
    %c0_i32 = arith.constant 0 : i32
    %c0_i32_0 = arith.constant 0 : i32
    %c0_i32_1 = arith.constant 0 : i32
    return %arg0, %c0_i32, %c0_i32_0 : i32, i32, i32
  }
  func.func @transform_1(%arg0: i32) -> (i32, i32, i32) {
    %c0_i32 = arith.constant 0 : i32
    %c0_i32_0 = arith.constant 0 : i32
    %c0_i32_1 = arith.constant 0 : i32
    %c0_i32_2 = arith.constant 0 : i32
    return %c0_i32, %c0_i32_0, %c0_i32_1 : i32, i32, i32
  }
  func.func @transform_2(%arg0: i32) -> (i32, i32, i32) {
    %c0_i32 = arith.constant 0 : i32
    %c0_i32_0 = arith.constant 0 : i32
    %c0_i32_1 = arith.constant 0 : i32
    %c0_i32_2 = arith.constant 0 : i32
    return %c0_i32, %c0_i32_0, %c0_i32_1 : i32, i32, i32
  }
  func.func @transform_3(%arg0: i32) -> (i32, i32, i32) {
    %c0_i32 = arith.constant 0 : i32
    %c0_i32_0 = arith.constant 0 : i32
    %c0_i32_1 = arith.constant 0 : i32
    %c0_i32_2 = arith.constant 0 : i32
    return %c0_i32, %c0_i32_0, %c0_i32_1 : i32, i32, i32
  }
  func.func @transform_4(%arg0: i32) -> (i32, i32, i32) {
    %c0_i32 = arith.constant 0 : i32
    %c0_i32_0 = arith.constant 0 : i32
    %c0_i32_1 = arith.constant 0 : i32
    %c0_i32_2 = arith.constant 0 : i32
    return %c0_i32, %c0_i32_0, %c0_i32_1 : i32, i32, i32
  }
  func.func @transform_5(%arg0: i32) -> (i32, i32, i32) {
    %c0_i32 = arith.constant 0 : i32
    %c0_i32_0 = arith.constant 0 : i32
    %c0_i32_1 = arith.constant 0 : i32
    %c0_i32_2 = arith.constant 0 : i32
    return %c0_i32, %c0_i32_0, %c0_i32_1 : i32, i32, i32
  }
  func.func @transform_6(%arg0: i32) -> (i32, i32, i32) {
    %c0_i32 = arith.constant 0 : i32
    %c0_i32_0 = arith.constant 0 : i32
    %c0_i32_1 = arith.constant 0 : i32
    %c0_i32_2 = arith.constant 0 : i32
    return %c0_i32, %c0_i32_0, %c0_i32_1 : i32, i32, i32
  }
  func.func @transform_7(%arg0: i32) -> (i32, i32, i32) {
    %c0_i32 = arith.constant 0 : i32
    %c0_i32_0 = arith.constant 0 : i32
    %c0_i32_1 = arith.constant 0 : i32
    %c0_i32_2 = arith.constant 0 : i32
    return %c0_i32, %c0_i32_0, %c0_i32_1 : i32, i32, i32
  }
  func.func @transform_8(%arg0: i32) -> (i32, i32, i32) {
    %c0_i32 = arith.constant 0 : i32
    %c0_i32_0 = arith.constant 0 : i32
    %c0_i32_1 = arith.constant 0 : i32
    return %arg0, %c0_i32, %c0_i32_0 : i32, i32, i32
  }
}

</mosaic_0001>

<bundles_post_ra>
// kernel: densenet_bc_forward.11
= control target key start
LH: loop header
LB: loop body
LE: loop exit
PB: predicated region body
PF: predicated region fallthrough
CT: control target
= control target key end

     0   :  { %s681_s18 = smov 0   ;;  %s764_s0 = inlined_call_operand.vmem [shape: f32[2,32,64], index: 0, kind: input, shape index: {}]   ;;  %s765_s1 = inlined_call_operand.vmem [shape: f32[32,1], index: 1, kind: input, shape index: {}]   ;;  %s766_s2 = inlined_call_operand.vmem [shape: f32[32,1], index: 2, kind: input, shape index: {}]   ;;  %s767_s3 = inlined_call_operand.vmem [shape: f32[16,32], index: 3, kind: input, shape index: {}]   ;;  %s768_s4 = inlined_call_operand.vmem [shape: f32[64,16], index: 4, kind: input, shape index: {}]   ;;  %s769_s5 = inlined_call_operand.vmem [shape: f32[2,16,16], index: 5, kind: output, shape index: {}]  }
   0x1 LB: > { %s537_s19 = sadd.s32 4294967295, %s648_s18   ;;  %p541_p0 = scmp.ge.s32.totalorder %s648_s18, 1  ;;  %s648_s18 = sphi %s681_s18, %s15_s18  }
   0x2   : > { %p187_p1 = scmp.lt.s32.totalorder %s648_s18, 3 }
   0x4   : > { %p188_p2 = pnand %p541_p0, %p187_p1 }
   0x5   : > { %v257_v0 = vld [vmem:[%s766_s2] sm:$0xff] (!%p188_p2)  ;;  %v650_v2 = vmov (!%p188_p2), 0   ;;  %v258_v3 = vld [vmem:[%s766_s2 + $0x8] sm:$0xff] (!%p188_p2)  ;;  %v291_v7 = vld [vmem:[%s768_s4 + $0x10] sm:$0xff] (!%p188_p2)  ;;  %p215_p3 = scmp.lt.s32.totalorder (!%p188_p2), %s537_s19, 1  ;;  %vm297_vm0 = vcmask (!%p188_p2), 523264  }
   0x6   : > { %191 = sbr.rel (%p188_p2) target bundleno = 585 (0x249), region = 40  ;;  %v229_v1 = vld [vmem:[%s765_s1] sm:$0xff] (!%p188_p2)  ;;  %641 = vset.pattern.permute.xlu1 (!%p188_p2), %v650_v2  ;;  %640 = vset.pattern.permute.xlu0 (!%p188_p2), %v650_v2  ;;  %v230_v4 = vld [vmem:[%s765_s1 + $0x8] sm:$0xff] (!%p188_p2)  ;;  %v292_v8 = vld [vmem:[%s768_s4 + $0x18] sm:$0xff] (!%p188_p2)  ;;  %vm397_vm1 = vcmask (!%p188_p2), 261120   ;;  %vm479_vm2 = vcmask (!%p188_p2), 130048  }
   0x7   : > { %263 = vperm.xlu1 (!%p188_p2), %641, %v257_v0   ;;  %235 = vperm.xlu0 (!%p188_p2), %640, %v229_v1   ;;  %v289_v5 = vld [vmem:[%s768_s4] sm:$0xff] (!%p188_p2)  ;;  %v290_v6 = vld [vmem:[%s768_s4 + $0x8] sm:$0xff] (!%p188_p2)  ;;  %v611_v10 = vpack.c.bf16 (!%p188_p2), %v292_v8, %v291_v7  ;;  %v232_v13 = vld [vmem:[%s765_s1 + $0x18] sm:$0xff] (!%p188_p2) }
   0x8   : > { %v607_v9 = vpack.c.bf16 (!%p188_p2), %v290_v6, %v289_v5  ;;  %v293_v11 = vld [vmem:[%s768_s4 + $0x20] sm:$0xff] (!%p188_p2)  ;;  %v294_v12 = vld [vmem:[%s768_s4 + $0x28] sm:$0xff] (!%p188_p2)  ;;  %v231_v14 = vld [vmem:[%s765_s1 + $0x10] sm:$0xff] (!%p188_p2) }
   0x9   : > { %v615_v15 = vpack.c.bf16 (!%p188_p2), %v294_v12, %v293_v11  ;;  %v295_v16 = vld [vmem:[%s768_s4 + $0x30] sm:$0xff] (!%p188_p2)  ;;  %v296_v17 = vld [vmem:[%s768_s4 + $0x38] sm:$0xff] (!%p188_p2)  ;;  %v395_v45 = vld [vmem:[%s767_s3] sm:$0xff] (!%p188_p2) }
   0xa   : > { %608 = vmatprep.subr.bf16.mxu0 (!%p188_p2), %v607_v9  ;;  %v260_v18 = vld [vmem:[%s766_s2 + $0x18] sm:$0xff] (!%p188_p2)  ;;  %v259_v19 = vld [vmem:[%s766_s2 + $0x10] sm:$0xff] (!%p188_p2)  ;;  %v619_v20 = vpack.c.bf16 (!%p188_p2), %v296_v17, %v295_v16  ;;  %604 = vmatprep.mubr.msk.f32.mxu1 (!%p188_p2), %vm397_vm1, %v395_v45  ;;  %v396_v52 = vld [vmem:[%s767_s3 + $0x8] sm:$0xff] (!%p188_p2) }
   0xb   : > { %268 = vperm.xlu1 (!%p188_p2), %641, %v258_v3   ;;  %240 = vperm.xlu0 (!%p188_p2), %640, %v230_v4  }
   0xc   : > { %610 = vmatpush3.bf16.msra.mxu0 (!%p188_p2), %v607_v9 }
   0xd   : > { %612 = vmatprep.subr.bf16.mxu0 %v611_v10  ;;  %s771_s19 = smov (!%p215_p3, %s537_s19), 1 }
   0xe   : > { %s554_s29 = sshll.u32 %s771_s19, 5  ;;  %s555_s12 = sshll.u32 %s771_s19, 4 }
   0xf   : > { %250 = vperm.xlu1 %641, %v232_v13   ;;  %245 = vperm.xlu0 %640, %v231_v14   ;;  %s219_s7 = scalar_lea.vmem %s764_s0, %s554_s29  ;;  %s224_s15 = scalar_lea.vmem %s769_s5, %s555_s12 }
  0x10   : > { %614 = vmatpush3.bf16.msra.mxu0 %v611_v10  ;;  %v225_v21 = vld [vmem:[%s219_s7] sm:$0xff]  ;;  %v226_v25 = vld [vmem:[%s219_s7 + $0x8] sm:$0xff]  ;;  %v228_v33 = vld [vmem:[%s219_s7 + $0x18] sm:$0xff] }
  0x11   : > { %616 = vmatprep.subr.bf16.mxu0 %v615_v15  ;;  %v227_v35 = vld [vmem:[%s219_s7 + $0x10] sm:$0xff] }
  0x13   : > { %278 = vperm.xlu1 %641, %v260_v18   ;;  %273 = vperm.xlu0 %640, %v259_v19  }
  0x14   : > { %618 = vmatpush3.bf16.msra.mxu0 %v615_v15 }
  0x15   : > { %620 = vmatprep.subr.bf16.mxu0 %v619_v20 }
  0x18   : > { %622 = vmatpush3.bf16.msra.mxu0 %v619_v20 }
  0x86   : > { %v264_v22 = vpop.permute.xlu1 %263  ;;  %v236_v23 = vpop.permute.xlu0 %235 }
  0x87   : > { %v253_v24 = vmul.f32 %v236_v23, %v225_v21 }
  0x89   : > { %v281_v26 = vadd.f32 %v264_v22, %v253_v24 }
  0x8a   : > { %v269_v27 = vpop.permute.xlu1 %268  ;;  %v241_v28 = vpop.permute.xlu0 %240 }
  0x8b   : > { %v254_v29 = vmul.f32 %v241_v28, %v226_v25  ;;  %v285_v30 = vmax.f32 %v281_v26, 0.0 }
  0x8d   : > { %v282_v31 = vadd.f32 %v269_v27, %v254_v29  ;;  %590 = vmatprep.mubr.msk.f32.mxu0 %vm297_vm0, %v285_v30 }
  0x8e   : > { %v251_v32 = vpop.permute.xlu1 %250  ;;  %v246_v34 = vpop.permute.xlu0 %245 }
  0x8f   : > { %v286_v36 = vmax.f32 %v282_v31, 0.0  ;;  %v256_v37 = vmul.f32 %v251_v32, %v228_v33  ;;  %v255_v38 = vmul.f32 %v246_v34, %v227_v35 }
  0x91   : > { %591 = vmatmul.mubr.msk.f32.vlgmr.msra.gmra.mrb[0].mxu0 %vm297_vm0, %v286_v36 }
  0x92   : > { %v279_v39 = vpop.permute.xlu1 %278  ;;  %v274_v40 = vpop.permute.xlu0 %273 }
  0x93   : > { %v284_v41 = vadd.f32 %v279_v39, %v256_v37  ;;  %v283_v42 = vadd.f32 %v274_v40, %v255_v38 }
  0x95   : > { %v288_v43 = vmax.f32 %v284_v41, 0.0  ;;  %v287_v44 = vmax.f32 %v283_v42, 0.0 }
  0x97   : > { %593 = vmatprep.mubr.msk.f32.mxu0 %vm297_vm0, %v287_v44 }
  0x98   : > { %594 = vmatmul.mubr.msk.f32.gmra.mrb[2].mxu0 %vm297_vm0, %v288_v43 }
 0x164   : > { %v592_v46 = vpop.f32.mrb[0].mxu0 }
 0x165   : > { %v376_v47 = vpop.f32.mrb[1].mxu0 }
 0x166   : > { %v623_v48 = vpack.c.bf16 %v592_v46, %v376_v47 }
 0x168   : > { %624 = vmatprep.subr.bf16.mxu1 %v623_v48 }
 0x169   : > { %626 = vmatpush3.bf16.msra.mxu1 %v623_v48 }
 0x16b   : > { %v595_v49 = vpop.f32.mrb[2].mxu0 }
 0x16c   : > { %v386_v50 = vpop.f32.mrb[3].mxu0 }
 0x16d   : > { %v627_v51 = vpack.c.bf16 %v595_v49, %v386_v50 }
 0x16f   : > { %628 = vmatprep.subr.bf16.mxu1 %v627_v51 }
 0x170   : > { %630 = vmatpush3.bf16.msra.mxu1 %v627_v51 }
 0x173   : > { %605 = vmatmul.mubr.msk.f32.vlgmr.msra.gmra.mrb[0].mxu1 %vm397_vm1, %v396_v52 }
 0x246   : > { %v606_v53 = vpop.f32.mrb[0].mxu1 }
 0x247   : > { %481 = vst.msk [vmem:[%s224_s15 + $0x8] sm:$0xff] %vm479_vm2, %v606_v53  ;;  %v470_v54 = vpop.f32.mrb[1].mxu1 }
 0x248   : > { %480 = vst.msk [vmem:[%s224_s15] sm:$0xff] %vm479_vm2, %v470_v54 }
 0x249 PF: > { %s15_s18 = sadd.s32 1, %s648_s18  }
 0x24a   : > { %p12_p4 = scmp.ge.s32.totalorder %s15_s18, 4  }
 0x24c   :  { %14 = sbr.rel (!%p12_p4) target bundleno = 1 (0x1), region = 70 }

// kernel: densenet_bc_forward.9
= control target key start
LH: loop header
LB: loop body
LE: loop exit
PB: predicated region body
PF: predicated region fallthrough
CT: control target
= control target key end

     0   :  { %s2374_s15 = smov 0   ;;  %s3365_s0 = inlined_call_operand.vmem [shape: f32[2,147,256], index: 0, kind: input, shape index: {}]   ;;  %s3366_s1 = inlined_call_operand.vmem [shape: f32[16,147], index: 1, kind: input, shape index: {}]   ;;  %s3367_s2 = inlined_call_operand.vmem [shape: f32[16,1], index: 2, kind: input, shape index: {}]   ;;  %s3368_s3 = inlined_call_operand.vmem [shape: f32[9,256,64], index: 3, kind: input, shape index: {}]   ;;  %s3369_s4 = inlined_call_operand.vmem [shape: f32[2,16,64], index: 4, kind: output, shape index: {}]  }
   0x1 LB: > { %s1392_s16 = sadd.s32 4294967295, %s2346_s15   ;;  %p1396_p0 = scmp.ge.s32.totalorder %s2346_s15, 1  ;;  %s2346_s15 = sphi %s2374_s15, %s14_s15  }
   0x2   : > { %p162_p1 = scmp.lt.s32.totalorder %s2346_s15, 3 }
   0x4   : > { %p163_p2 = pnand %p1396_p0, %p162_p1 }
   0x5   : > { %p188_p3 = scmp.lt.s32.totalorder (!%p163_p2), %s1392_s16, 1  ;;  %v199_v0 = vld [vmem:[%s3366_s1 + $0x8] sm:$0xff] (!%p163_p2)  ;;  %vm252_vm0 = vcmask (!%p163_p2), 154624   ;;  %v240_v1 = vld [vmem:[%s3367_s2] sm:$0xff] (!%p163_p2)  ;;  %v2348_v2 = vmov (!%p163_p2), 0   ;;  %v365_v10 = vld [vmem:[%s3368_s3 + $0x90] sm:$0xff] (!%p163_p2) }
   0x6   : > { %166 = sbr.rel (%p163_p2) target bundleno = 630 (0x276), region = 36  ;;  %1402 = vmatprep.mubr.msk.f32.mxu0 (!%p163_p2), %vm252_vm0, %v199_v0  ;;  %2339 = vset.pattern.permute.xlu0 (!%p163_p2), %v2348_v2  ;;  %v363_v3 = vld [vmem:[%s3368_s3 + $0x80] sm:$0xff] (!%p163_p2)  ;;  %v364_v4 = vld [vmem:[%s3368_s3 + $0x88] sm:$0xff] (!%p163_p2)  ;;  %v366_v11 = vld [vmem:[%s3368_s3 + $0x98] sm:$0xff] (!%p163_p2)  ;;  %vm259_vm1 = vcmask (!%p163_p2), 1042432   ;;  %vm1334_vm2 = vcmask (!%p163_p2), 523264  }
   0x7   : > { %244 = vperm.xlu0 (!%p163_p2), %2339, %v240_v1   ;;  %v2041_v5 = vpack.c.bf16 (!%p163_p2), %v364_v4, %v363_v3  ;;  %v347_v6 = vld [vmem:[%s3368_s3] sm:$0xff] (!%p163_p2)  ;;  %v348_v7 = vld [vmem:[%s3368_s3 + $0x8] sm:$0xff] (!%p163_p2)  ;;  %v2045_v12 = vpack.c.bf16 (!%p163_p2), %v366_v11, %v365_v10  ;;  %v349_v13 = vld [vmem:[%s3368_s3 + $0x10] sm:$0xff] (!%p163_p2) }
   0x8   : > { %v241_v8 = vld [vmem:[%s3367_s2 + $0x8] sm:$0xff] (!%p163_p2)  ;;  %v2043_v9 = vpack.c.bf16 (!%p163_p2), %v348_v7, %v347_v6  ;;  %v350_v14 = vld [vmem:[%s3368_s3 + $0x18] sm:$0xff] (!%p163_p2)  ;;  %v367_v46 = vld [vmem:[%s3368_s3 + $0xa0] sm:$0xff] (!%p163_p2) }
   0x9   : > { %2042 = vmatprep.subr.bf16.mxu1 (!%p163_p2), %v2041_v5  ;;  %v2047_v18 = vpack.c.bf16 (!%p163_p2), %v350_v14, %v349_v13  ;;  %v368_v47 = vld [vmem:[%s3368_s3 + $0xa8] sm:$0xff] (!%p163_p2)  ;;  %v351_v50 = vld [vmem:[%s3368_s3 + $0x20] sm:$0xff] (!%p163_p2)  ;;  %v369_v53 = vld [vmem:[%s3368_s3 + $0xb0] sm:$0xff] (!%p163_p2) }
   0xa   : > { %2044 = vmatpush3.bf16.msra.mxu1 (!%p163_p2), %v2043_v9  ;;  %v2049_v49 = vpack.c.bf16 (!%p163_p2), %v368_v47, %v367_v46  ;;  %v352_v51 = vld [vmem:[%s3368_s3 + $0x28] sm:$0xff] (!%p163_p2)  ;;  %v370_v57 = vld [vmem:[%s3368_s3 + $0xb8] sm:$0xff] (!%p163_p2)  ;;  %v353_v61 = vld [vmem:[%s3368_s3 + $0x30] sm:$0xff] (!%p163_p2) }
   0xb   : > { %249 = vperm.xlu0 (!%p163_p2), %2339, %v241_v8   ;;  %2046 = vmatprep.subr.bf16.mxu1 (!%p163_p2), %v2045_v12  ;;  %v2051_v52 = vpack.c.bf16 (!%p163_p2), %v352_v51, %v351_v50  ;;  %v2053_v60 = vpack.c.bf16 (!%p163_p2), %v370_v57, %v369_v53  ;;  %v354_v62 = vld [vmem:[%s3368_s3 + $0x38] sm:$0xff] (!%p163_p2)  ;;  %v371_v1 = vld [vmem:[%s3368_s3 + $0xc0] sm:$0xff] (!%p163_p2)  ;;  %v372_v2 = vld [vmem:[%s3368_s3 + $0xc8] sm:$0xff] (!%p163_p2) }
   0xc   : > { %v2055_v0 = vpack.c.bf16 (!%p163_p2), %v354_v62, %v353_v61  ;;  %v2057_v3 = vpack.c.bf16 (!%p163_p2), %v372_v2, %v371_v1  ;;  %v355_v4 = vld [vmem:[%s3368_s3 + $0x40] sm:$0xff] (!%p163_p2)  ;;  %v356_v8 = vld [vmem:[%s3368_s3 + $0x48] sm:$0xff] (!%p163_p2)  ;;  %v373_v12 = vld [vmem:[%s3368_s3 + $0xd0] sm:$0xff] (!%p163_p2) }
   0xd   : > { %s3371_s16 = smov (!%p188_p3, %s1392_s16), 1  ;;  %v2059_v11 = vpack.c.bf16 %v356_v8, %v355_v4  ;;  %v374_v13 = vld [vmem:[%s3368_s3 + $0xd8] sm:$0xff]  ;;  %v1456_v51 = vld [vmem:[%s3368_s3 + $0x2a0] sm:$0xff]  ;;  %v200_v53 = vld [vmem:[%s3366_s1 + $0x10] sm:$0xff] }
   0xe   : > { %s2329_s29 = smul.u32 304, %s3371_s16  ;;  %2048 = vmatpush3.bf16.msra.mxu1 %v2047_v18  ;;  %v375_v18 = vld [vmem:[%s3368_s3 + $0xe0] sm:$0xff]  ;;  %v201_v47 = vld [vmem:[%s3366_s1 + $0x18] sm:$0xff]  ;;  %v1441_v57 = vld [vmem:[%s3368_s3 + $0x228] sm:$0xff]  ;;  %s1662_s8 = sshll.u32 %s3371_s16, 4 }
   0xf   : > { %2050 = vmatprep.subr.bf16.mxu1 %v2049_v49  ;;  %v1438_v49 = vld [vmem:[%s3368_s3 + $0x210] sm:$0xff]  ;;  %v1439_v50 = vld [vmem:[%s3368_s3 + $0x218] sm:$0xff]  ;;  %v1461_v1 = vld [vmem:[%s3368_s3 + $0x2c8] sm:$0xff]  ;;  %s197_s11 = scalar_lea.vmem %s3369_s4, %s1662_s8 }
  0x10   : > { %s2416_s12 = scalar_lea.vmem %s3365_s0, %s2329_s29  ;;  %v1442_v62 = vld [vmem:[%s3368_s3 + $0x230] sm:$0xff]  ;;  %v1444_v4 = vld [vmem:[%s3368_s3 + $0x240] sm:$0xff] }
  0x11   : > { %v203_v15 = vld [vmem:[%s2416_s12 + $0x8] sm:$0xff]  ;;  %v205_v16 = vld [vmem:[%s2416_s12 + $0x18] sm:$0xff]  ;;  %v202_v17 = vld [vmem:[%s2416_s12] sm:$0xff] }
  0x12   : > { %v2005_v19 = vpack.c.bf16 %v205_v16, %v203_v15  ;;  %v204_v20 = vld [vmem:[%s2416_s12 + $0x10] sm:$0xff]  ;;  %v207_v21 = vld [vmem:[%s2416_s12 + $0x28] sm:$0xff]  ;;  %v209_v22 = vld [vmem:[%s2416_s12 + $0x38] sm:$0xff]  ;;  %2052 = vmatpush3.bf16.msra.mxu1 %v2051_v52  ;;  %v2061_v15 = vpack.c.bf16 %v374_v13, %v373_v12 }
  0x13   : > { %v2007_v23 = vpack.c.bf16 %v204_v20, %v202_v17  ;;  %v2009_v24 = vpack.c.bf16 %v209_v22, %v207_v21  ;;  %v206_v25 = vld [vmem:[%s2416_s12 + $0x20] sm:$0xff]  ;;  %v208_v26 = vld [vmem:[%s2416_s12 + $0x30] sm:$0xff]  ;;  %v211_v27 = vld [vmem:[%s2416_s12 + $0x48] sm:$0xff]  ;;  %2054 = vmatprep.subr.bf16.mxu1 %v2053_v60 }
  0x14   : > { %2006 = vmatprep.subr.bf16.mxu0 %v2005_v19  ;;  %v213_v28 = vld [vmem:[%s2416_s12 + $0x58] sm:$0xff]  ;;  %v2011_v29 = vpack.c.bf16 %v208_v26, %v206_v25  ;;  %v210_v31 = vld [vmem:[%s2416_s12 + $0x40] sm:$0xff]  ;;  %v212_v32 = vld [vmem:[%s2416_s12 + $0x50] sm:$0xff] }
  0x15   : > { %2008 = vmatpush1.bf16.msra.mxu0 %v2007_v23  ;;  %v2013_v30 = vpack.c.bf16 %v213_v28, %v211_v27  ;;  %v215_v33 = vld [vmem:[%s2416_s12 + $0x68] sm:$0xff]  ;;  %v217_v34 = vld [vmem:[%s2416_s12 + $0x78] sm:$0xff]  ;;  %v2015_v35 = vpack.c.bf16 %v212_v32, %v210_v31  ;;  %v214_v37 = vld [vmem:[%s2416_s12 + $0x60] sm:$0xff] }
  0x16   : > { %2010 = vmatprep.subr.bf16.mxu0 %v2009_v24  ;;  %v2017_v36 = vpack.c.bf16 %v217_v34, %v215_v33  ;;  %v216_v38 = vld [vmem:[%s2416_s12 + $0x70] sm:$0xff]  ;;  %v219_v39 = vld [vmem:[%s2416_s12 + $0x88] sm:$0xff]  ;;  %v221_v40 = vld [vmem:[%s2416_s12 + $0x98] sm:$0xff]  ;;  %2056 = vmatpush3.bf16.msra.mxu1 %v2055_v0 }
  0x17   : > { %v2019_v41 = vpack.c.bf16 %v216_v38, %v214_v37  ;;  %v218_v42 = vld [vmem:[%s2416_s12 + $0x80] sm:$0xff]  ;;  %v220_v43 = vld [vmem:[%s2416_s12 + $0x90] sm:$0xff]  ;;  %v2021_v44 = vpack.c.bf16 %v221_v40, %v219_v39  ;;  %v223_v45 = vld [vmem:[%s2416_s12 + $0xa8] sm:$0xff]  ;;  %2058 = vmatprep.subr.bf16.mxu1 %v2057_v3 }
  0x18   : > { %v225_v48 = vld [vmem:[%s2416_s12 + $0xb8] sm:$0xff]  ;;  %v2023_v54 = vpack.c.bf16 %v220_v43, %v218_v42  ;;  %v222_v55 = vld [vmem:[%s2416_s12 + $0xa0] sm:$0xff]  ;;  %v224_v56 = vld [vmem:[%s2416_s12 + $0xb0] sm:$0xff] }
  0x19   : > { %2012 = vmatpush1.bf16.msra.mxu0 %v2011_v29  ;;  %v2025_v58 = vpack.c.bf16 %v225_v48, %v223_v45  ;;  %v227_v59 = vld [vmem:[%s2416_s12 + $0xc8] sm:$0xff]  ;;  %v229_v63 = vld [vmem:[%s2416_s12 + $0xd8] sm:$0xff]  ;;  %v2027_v5 = vpack.c.bf16 %v224_v56, %v222_v55  ;;  %v226_v6 = vld [vmem:[%s2416_s12 + $0xc0] sm:$0xff] }
  0x1a   : > { %2014 = vmatprep.subr.bf16.mxu0 %v2013_v30  ;;  %v228_v7 = vld [vmem:[%s2416_s12 + $0xd0] sm:$0xff]  ;;  %v2029_v9 = vpack.c.bf16 %v229_v63, %v227_v59  ;;  %v231_v10 = vld [vmem:[%s2416_s12 + $0xe8] sm:$0xff]  ;;  %v233_v14 = vld [vmem:[%s2416_s12 + $0xf8] sm:$0xff]  ;;  %2060 = vmatpush3.bf16.msra.mxu1 %v2059_v11 }
  0x1b   : > { %v357_v16 = vld [vmem:[%s3368_s3 + $0x50] sm:$0xff]  ;;  %v358_v17 = vld [vmem:[%s3368_s3 + $0x58] sm:$0xff]  ;;  %v2031_v19 = vpack.c.bf16 %v228_v7, %v226_v6  ;;  %v376_v20 = vld [vmem:[%s3368_s3 + $0xe8] sm:$0xff]  ;;  %v2033_v21 = vpack.c.bf16 %v233_v14, %v231_v10  ;;  %2062 = vmatprep.subr.bf16.mxu1 %v2061_v15 }
  0x1c   : > { %v230_v22 = vld [vmem:[%s2416_s12 + $0xe0] sm:$0xff]  ;;  %v232_v23 = vld [vmem:[%s2416_s12 + $0xf0] sm:$0xff]  ;;  %v235_v24 = vld [vmem:[%s2416_s12 + $0x108] sm:$0xff]  ;;  %v2063_v25 = vpack.c.bf16 %v358_v17, %v357_v16  ;;  %v2065_v27 = vpack.c.bf16 %v376_v20, %v375_v18 }
  0x1d   : > { %2016 = vmatpush1.bf16.msra.mxu0 %v2015_v35  ;;  %v237_v26 = vld [vmem:[%s2416_s12 + $0x118] sm:$0xff]  ;;  %v359_v28 = vld [vmem:[%s3368_s3 + $0x60] sm:$0xff]  ;;  %v360_v29 = vld [vmem:[%s3368_s3 + $0x68] sm:$0xff]  ;;  %v2035_v30 = vpack.c.bf16 %v232_v23, %v230_v22 }
  0x1e   : > { %2018 = vmatprep.subr.bf16.mxu0 %v2017_v36  ;;  %v2037_v31 = vpack.c.bf16 %v237_v26, %v235_v24  ;;  %v234_v32 = vld [vmem:[%s2416_s12 + $0x100] sm:$0xff]  ;;  %v236_v33 = vld [vmem:[%s2416_s12 + $0x110] sm:$0xff]  ;;  %2064 = vmatpush3.bf16.msra.mxu1 %v2063_v25  ;;  %v2067_v34 = vpack.c.bf16 %v360_v29, %v359_v28  ;;  %v239_v36 = vld [vmem:[%s2416_s12 + $0x128] sm:$0x7] }
  0x1f   : > { %2066 = vmatprep.subr.bf16.mxu1 %v2065_v27  ;;  %v2039_v35 = vpack.c.bf16 %v236_v33, %v234_v32  ;;  %v1452_v37 = vld [vmem:[%s3368_s3 + $0x280] sm:$0xff]  ;;  %v1453_v38 = vld [vmem:[%s3368_s3 + $0x288] sm:$0xff]  ;;  %v1455_v42 = vld [vmem:[%s3368_s3 + $0x298] sm:$0xff] }
  0x20   : > { %v1436_v39 = vld [vmem:[%s3368_s3 + $0x200] sm:$0xff]  ;;  %v1437_v40 = vld [vmem:[%s3368_s3 + $0x208] sm:$0xff]  ;;  %v1459_v59 = vld [vmem:[%s3368_s3 + $0x2b8] sm:$0xff] }
  0x21   : > { %2020 = vmatpush1.bf16.msra.mxu0 %v2019_v41  ;;  %v1454_v41 = vld [vmem:[%s3368_s3 + $0x290] sm:$0xff]  ;;  %v238_v43 = vld [vmem:[%s2416_s12 + $0x120] sm:$0x7]  ;;  %v2107_v46 = vpack.c.bf16 %v1437_v40, %v1436_v39  ;;  %v1457_v52 = vld [vmem:[%s3368_s3 + $0x2a8] sm:$0xff] }
  0x22   : > { %2022 = vmatprep.subr.bf16.mxu0 %v2021_v44  ;;  %2068 = vmatpush3.bf16.msra.mxu1 %v2067_v34  ;;  %v2105_v44 = vpack.c.bf16 %v1453_v38, %v1452_v37  ;;  %v198_v45 = vld [vmem:[%s3366_s1] sm:$0xff]  ;;  %v2109_v48 = vpack.c.bf16 %v1455_v42, %v1454_v41  ;;  %v2113_v55 = vpack.c.bf16 %v1457_v52, %v1456_v51  ;;  %v1443_v63 = vld [vmem:[%s3368_s3 + $0x238] sm:$0xff]  ;;  %v1462_v6 = vld [vmem:[%s3368_s3 + $0x2d0] sm:$0xff] }
  0x23   : > { %v1440_v56 = vld [vmem:[%s3368_s3 + $0x220] sm:$0xff]  ;;  %v2119_v2 = vpack.c.bf16 %v1443_v63, %v1442_v62  ;;  %v1463_v7 = vld [vmem:[%s3368_s3 + $0x2d8] sm:$0xff]  ;;  %v1446_v10 = vld [vmem:[%s3368_s3 + $0x250] sm:$0xff] }
  0x24   : > { %v2115_v60 = vpack.c.bf16 %v1441_v57, %v1440_v56  ;;  %v1460_v0 = vld [vmem:[%s3368_s3 + $0x2c0] sm:$0xff]  ;;  %v1447_v11 = vld [vmem:[%s3368_s3 + $0x258] sm:$0xff]  ;;  %v1465_v13 = vld [vmem:[%s3368_s3 + $0x2e8] sm:$0xff] }
  0x25   : > { %2024 = vmatpush1.bf16.msra.mxu0 %v2023_v54  ;;  %v2111_v54 = vpack.c.bf16 %v1439_v50, %v1438_v49  ;;  %v2121_v3 = vpack.c.bf16 %v1461_v1, %v1460_v0  ;;  %v1464_v12 = vld [vmem:[%s3368_s3 + $0x2e0] sm:$0xff]  ;;  %v2127_v14 = vpack.c.bf16 %v1447_v11, %v1446_v10  ;;  %v1449_v17 = vld [vmem:[%s3368_s3 + $0x268] sm:$0xff]  ;;  %v378_v20 = vld [vmem:[%s3368_s3 + $0xf8] sm:$0xff] }
  0x26   : > { %2026 = vmatprep.subr.bf16.mxu0 %v2025_v58  ;;  %v1458_v58 = vld [vmem:[%s3368_s3 + $0x2b0] sm:$0xff]  ;;  %v2129_v15 = vpack.c.bf16 %v1465_v13, %v1464_v12  ;;  %v1448_v16 = vld [vmem:[%s3368_s3 + $0x260] sm:$0xff]  ;;  %v1467_v23 = vld [vmem:[%s3368_s3 + $0x2f8] sm:$0xff] }
  0x27   : > { %v2117_v61 = vpack.c.bf16 %v1459_v59, %v1458_v58  ;;  %v2131_v18 = vpack.c.bf16 %v1449_v17, %v1448_v16  ;;  %v361_v24 = vld [vmem:[%s3368_s3 + $0x70] sm:$0xff]  ;;  %v362_v25 = vld [vmem:[%s3368_s3 + $0x78] sm:$0xff]  ;;  %v1421_v32 = vld [vmem:[%s3368_s3 + $0x188] sm:$0xff] }
  0x28   : > { %v2071_v27 = vpack.c.bf16 %v362_v25, %v361_v24  ;;  %v1450_v28 = vld [vmem:[%s3368_s3 + $0x270] sm:$0xff]  ;;  %v1451_v29 = vld [vmem:[%s3368_s3 + $0x278] sm:$0xff]  ;;  %v1516_v33 = vld [vmem:[%s3368_s3 + $0x480] sm:$0xff] }
  0x29   : > { %2028 = vmatpush1.bf16.msra.mxu0 %v2027_v5  ;;  %v1445_v5 = vld [vmem:[%s3368_s3 + $0x248] sm:$0xff]  ;;  %v1404_v39 = vld [vmem:[%s3368_s3 + $0x100] sm:$0xff]  ;;  %v1519_v49 = vld [vmem:[%s3368_s3 + $0x498] sm:$0xff] }
  0x2a   : > { %2030 = vmatprep.subr.bf16.mxu0 %v2029_v9  ;;  %v2123_v8 = vpack.c.bf16 %v1445_v5, %v1444_v4  ;;  %v2125_v9 = vpack.c.bf16 %v1463_v7, %v1462_v6  ;;  %v1405_v40 = vld [vmem:[%s3368_s3 + $0x108] sm:$0xff]  ;;  %v1502_v62 = vld [vmem:[%s3368_s3 + $0x410] sm:$0xff]  ;;  %v1503_v63 = vld [vmem:[%s3368_s3 + $0x418] sm:$0xff] }
  0x2b   : > { %v1424_v1 = vld [vmem:[%s3368_s3 + $0x1a0] sm:$0xff]  ;;  %v1521_v4 = vld [vmem:[%s3368_s3 + $0x4a8] sm:$0xff]  ;;  %v2175_v7 = vpack.c.bf16 %v1503_v63, %v1502_v62  ;;  %v1426_v13 = vld [vmem:[%s3368_s3 + $0x1b0] sm:$0xff] }
  0x2c   : > { %v1504_v11 = vld [vmem:[%s3368_s3 + $0x420] sm:$0xff]  ;;  %v1505_v12 = vld [vmem:[%s3368_s3 + $0x428] sm:$0xff]  ;;  %v1427_v16 = vld [vmem:[%s3368_s3 + $0x1b8] sm:$0xff] }
  0x2d   : > { %2032 = vmatpush1.bf16.msra.mxu0 %v2031_v19  ;;  %v377_v19 = vld [vmem:[%s3368_s3 + $0xf0] sm:$0xff]  ;;  %v1512_v63 = vld [vmem:[%s3368_s3 + $0x460] sm:$0xff] }
  0x2e   : > { %2034 = vmatprep.subr.bf16.mxu0 %v2033_v21  ;;  %v1466_v21 = vld [vmem:[%s3368_s3 + $0x2f0] sm:$0xff]  ;;  %v2069_v22 = vpack.c.bf16 %v378_v20, %v377_v19  ;;  %v2179_v20 = vpack.c.bf16 %v1505_v12, %v1504_v11 }
  0x2f   : > { %v2133_v26 = vpack.c.bf16 %v1467_v23, %v1466_v21  ;;  %v1522_v17 = vld [vmem:[%s3368_s3 + $0x4b0] sm:$0xff]  ;;  %v2085_v23 = vpack.c.bf16 %v1427_v16, %v1426_v13  ;;  %v1485_v16 = vld [vmem:[%s3368_s3 + $0x388] sm:$0xff] }
  0x30   : > { %2070 = vmatprep.subr.bf16.mxu1 %v2069_v22  ;;  %v1410_v21 = vld [vmem:[%s3368_s3 + $0x130] sm:$0xff]  ;;  %v1411_v22 = vld [vmem:[%s3368_s3 + $0x138] sm:$0xff] }
  0x31   : > { %2036 = vmatpush1.bf16.msra.mxu0 %v2035_v30  ;;  %v2135_v30 = vpack.c.bf16 %v1451_v29, %v1450_v28  ;;  %2072 = vmatpush3.bf16.msra.mxu1 %v2071_v27  ;;  %v1506_v25 = vld [vmem:[%s3368_s3 + $0x430] sm:$0xff]  ;;  %v1428_v27 = vld [vmem:[%s3368_s3 + $0x1c0] sm:$0xff]  ;;  %v1429_v28 = vld [vmem:[%s3368_s3 + $0x1c8] sm:$0xff] }
  0x32   : > { %2038 = vmatprep.subr.bf16.mxu0 %v2037_v31  ;;  %v1420_v31 = vld [vmem:[%s3368_s3 + $0x180] sm:$0xff]  ;;  %v1514_v13 = vld [vmem:[%s3368_s3 + $0x470] sm:$0xff] }
  0x33   : > { %v2073_v34 = vpack.c.bf16 %v1421_v32, %v1420_v31  ;;  %v1524_v29 = vld [vmem:[%s3368_s3 + $0x4c0] sm:$0xff]  ;;  %v2087_v31 = vpack.c.bf16 %v1411_v22, %v1410_v21 }
  0x35   : > { %2040 = vmatpush1.bf16.msra.mxu0 %v2039_v35  ;;  %v1517_v35 = vld [vmem:[%s3368_s3 + $0x488] sm:$0xff]  ;;  %2074 = vmatprep.subr.bf16.mxu1 %v2073_v34 }
  0x36   : > { %1400 = vmatprep.subr.msk.mxu0 %vm259_vm1, %v239_v36  ;;  %v2169_v36 = vpack.c.bf16 %v1517_v35, %v1516_v33  ;;  %v1412_v33 = vld [vmem:[%s3368_s3 + $0x140] sm:$0xff]  ;;  %v1413_v34 = vld [vmem:[%s3368_s3 + $0x148] sm:$0xff]  ;;  %v2089_v35 = vpack.c.bf16 %v1429_v28, %v1428_v27  ;;  %v1486_v27 = vld [vmem:[%s3368_s3 + $0x390] sm:$0xff] }
  0x37   : > { %v1487_v28 = vld [vmem:[%s3368_s3 + $0x398] sm:$0xff] }
  0x39   : > { %1401 = vmatpush1.msk.msra.mxu0 %vm259_vm1, %v238_v43  ;;  %v1500_v43 = vld [vmem:[%s3368_s3 + $0x400] sm:$0xff] }
  0x3a   : > { %331 = vmatmul.mubr.f32.vlgmr.msra.gmra.mrb[0].mxu0 %v198_v45  ;;  %2106 = vmatprep.subr.bf16.mxu0 %v2105_v44  ;;  %v1501_v44 = vld [vmem:[%s3368_s3 + $0x408] sm:$0xff]  ;;  %v1422_v45 = vld [vmem:[%s3368_s3 + $0x190] sm:$0xff] }
  0x3b   : > { %1403 = vmatprep.mubr.msk.f32.mxu0 %vm252_vm0, %v201_v47  ;;  %2108 = vmatpush3.bf16.msra.mxu0 %v2107_v46  ;;  %v1423_v47 = vld [vmem:[%s3368_s3 + $0x198] sm:$0xff] }
  0x3c   : > { %2110 = vmatprep.subr.bf16.mxu0 %v2109_v48  ;;  %v1518_v48 = vld [vmem:[%s3368_s3 + $0x490] sm:$0xff]  ;;  %v2077_v59 = vpack.c.bf16 %v1423_v47, %v1422_v45 }
  0x3d   : > { %v1414_v45 = vld [vmem:[%s3368_s3 + $0x150] sm:$0xff] }
  0x3e   : > { %337 = vmatmul.mubr.f32.gmra.mrb[2].mxu0 %v200_v53  ;;  %v2075_v53 = vpack.c.bf16 %v1405_v40, %v1404_v39  ;;  %v1430_v39 = vld [vmem:[%s3368_s3 + $0x1d0] sm:$0xff]  ;;  %v1431_v40 = vld [vmem:[%s3368_s3 + $0x1d8] sm:$0xff] }
  0x3f   : > { %2112 = vmatpush3.bf16.msra.mxu0 %v2111_v54  ;;  %v2171_v54 = vpack.c.bf16 %v1501_v44, %v1500_v43  ;;  %v2091_v43 = vpack.c.bf16 %v1413_v34, %v1412_v33  ;;  %v2093_v47 = vpack.c.bf16 %v1431_v40, %v1430_v39  ;;  %v1470_v33 = vld [vmem:[%s3368_s3 + $0x310] sm:$0xff]  ;;  %v1471_v34 = vld [vmem:[%s3368_s3 + $0x318] sm:$0xff]  ;;  %v1488_v39 = vld [vmem:[%s3368_s3 + $0x3a0] sm:$0xff] }
  0x40   : > { %2114 = vmatprep.subr.bf16.mxu0 %v2113_v55  ;;  %v1406_v55 = vld [vmem:[%s3368_s3 + $0x110] sm:$0xff]  ;;  %v1489_v40 = vld [vmem:[%s3368_s3 + $0x3a8] sm:$0xff] }
  0x43   : > { %2116 = vmatpush3.bf16.msra.mxu0 %v2115_v60  ;;  %v2173_v60 = vpack.c.bf16 %v1519_v49, %v1518_v48  ;;  %v1510_v49 = vld [vmem:[%s3368_s3 + $0x450] sm:$0xff] }
  0x44   : > { %2118 = vmatprep.subr.bf16.mxu0 %v2117_v61  ;;  %v1407_v61 = vld [vmem:[%s3368_s3 + $0x118] sm:$0xff] }
  0x45   : > { %v2079_v6 = vpack.c.bf16 %v1407_v61, %v1406_v55  ;;  %v1529_v55 = vld [vmem:[%s3368_s3 + $0x4e8] sm:$0xff] }
  0x47   : > { %2120 = vmatpush3.bf16.msra.mxu0 %v2119_v2  ;;  %v1425_v2 = vld [vmem:[%s3368_s3 + $0x1a8] sm:$0xff] }
  0x48   : > { %2122 = vmatprep.subr.bf16.mxu0 %v2121_v3  ;;  %v1520_v3 = vld [vmem:[%s3368_s3 + $0x4a0] sm:$0xff] }
  0x4b   : > { %2124 = vmatpush3.bf16.msra.mxu0 %v2123_v8  ;;  %v1408_v8 = vld [vmem:[%s3368_s3 + $0x120] sm:$0xff] }
  0x4c   : > { %2126 = vmatprep.subr.bf16.mxu0 %v2125_v9  ;;  %v1409_v9 = vld [vmem:[%s3368_s3 + $0x128] sm:$0xff] }
  0x4d   : > { %v2083_v19 = vpack.c.bf16 %v1409_v9, %v1408_v8  ;;  %v1418_v8 = vld [vmem:[%s3368_s3 + $0x170] sm:$0xff]  ;;  %v1419_v9 = vld [vmem:[%s3368_s3 + $0x178] sm:$0xff] }
  0x4f   : > { %2128 = vmatpush3.bf16.msra.mxu0 %v2127_v14  ;;  %v2081_v14 = vpack.c.bf16 %v1425_v2, %v1424_v1  ;;  %v1434_v1 = vld [vmem:[%s3368_s3 + $0x1f0] sm:$0xff]  ;;  %v1435_v2 = vld [vmem:[%s3368_s3 + $0x1f8] sm:$0xff] }
  0x50   : > { %2130 = vmatprep.subr.bf16.mxu0 %v2129_v15  ;;  %v2177_v15 = vpack.c.bf16 %v1521_v4, %v1520_v3  ;;  %v1530_v3 = vld [vmem:[%s3368_s3 + $0x4f0] sm:$0xff]  ;;  %v1531_v4 = vld [vmem:[%s3368_s3 + $0x4f8] sm:$0xff]  ;;  %v2101_v11 = vpack.c.bf16 %v1435_v2, %v1434_v1  ;;  %v1492_v1 = vld [vmem:[%s3368_s3 + $0x3c0] sm:$0xff] }
  0x51   : > { %v2197_v12 = vpack.c.bf16 %v1531_v4, %v1530_v3  ;;  %v1493_v2 = vld [vmem:[%s3368_s3 + $0x3c8] sm:$0xff]  ;;  %v1588_v3 = vld [vmem:[%s3368_s3 + $0x6c0] sm:$0xff] }
  0x52   : > { %v1589_v4 = vld [vmem:[%s3368_s3 + $0x6c8] sm:$0xff] }
  0x53   : > { %2132 = vmatpush3.bf16.msra.mxu0 %v2131_v18  ;;  %v1523_v18 = vld [vmem:[%s3368_s3 + $0x4b8] sm:$0xff] }
  0x54   : > { %2134 = vmatprep.subr.bf16.mxu0 %v2133_v26  ;;  %v2181_v24 = vpack.c.bf16 %v1523_v18, %v1522_v17  ;;  %v1507_v26 = vld [vmem:[%s3368_s3 + $0x438] sm:$0xff]  ;;  %v1580_v17 = vld [vmem:[%s3368_s3 + $0x680] sm:$0xff]  ;;  %v1581_v18 = vld [vmem:[%s3368_s3 + $0x688] sm:$0xff] }
  0x55   : > { %v2183_v32 = vpack.c.bf16 %v1507_v26, %v1506_v25  ;;  %v2233_v22 = vpack.c.bf16 %v1581_v18, %v1580_v17  ;;  %v1564_v25 = vld [vmem:[%s3368_s3 + $0x600] sm:$0xff]  ;;  %v1565_v26 = vld [vmem:[%s3368_s3 + $0x608] sm:$0xff]  ;;  %v1590_v17 = vld [vmem:[%s3368_s3 + $0x6d0] sm:$0xff] }
  0x56   : > { %v1591_v18 = vld [vmem:[%s3368_s3 + $0x6d8] sm:$0xff] }
  0x57   : > { %2136 = vmatpush3.bf16.msra.mxu0 %v2135_v30  ;;  %v1525_v30 = vld [vmem:[%s3368_s3 + $0x4c8] sm:$0xff] }
  0x58   : > { %2170 = vmatprep.subr.bf16.mxu0 %v2169_v36  ;;  %v2185_v36 = vpack.c.bf16 %v1525_v30, %v1524_v29  ;;  %v1582_v29 = vld [vmem:[%s3368_s3 + $0x690] sm:$0xff]  ;;  %v1583_v30 = vld [vmem:[%s3368_s3 + $0x698] sm:$0xff] }
  0x86   : > { %v245_v37 = vpop.permute.xlu0 %244 }
  0x8a   : > { %v250_v50 = vpop.permute.xlu0 %249 }
 0x10d   : > { %v332_v38 = vpop.f32.mrb[0].mxu0 }
 0x10e   : > { %v333_v41 = vadd.f32 %v332_v38, %v245_v37  ;;  %v334_v42 = vpop.f32.mrb[1].mxu0  ;;  %v1509_v38 = vld [vmem:[%s3368_s3 + $0x448] sm:$0xff] }
 0x10f   : > { %v335_v46 = vadd.f32 %v334_v42, %v245_v37  ;;  %v1508_v37 = vld [vmem:[%s3368_s3 + $0x440] sm:$0xff]  ;;  %v1527_v42 = vld [vmem:[%s3368_s3 + $0x4d8] sm:$0xff] }
 0x110   : > { %v2683_v56 = vmax.f32 %v333_v41, 0.0  ;;  %v1526_v41 = vld [vmem:[%s3368_s3 + $0x4d0] sm:$0xff]  ;;  %v2187_v44 = vpack.c.bf16 %v1509_v38, %v1508_v37  ;;  %v1567_v38 = vld [vmem:[%s3368_s3 + $0x618] sm:$0xff] }
 0x111   : > { %v2678_v51 = vmax.f32 %v335_v46, 0.0  ;;  %v338_v52 = vpop.f32.mrb[2].mxu0  ;;  %v1415_v46 = vld [vmem:[%s3368_s3 + $0x158] sm:$0xff]  ;;  %v2189_v48 = vpack.c.bf16 %v1527_v42, %v1526_v41  ;;  %v1566_v37 = vld [vmem:[%s3368_s3 + $0x610] sm:$0xff]  ;;  %v1584_v41 = vld [vmem:[%s3368_s3 + $0x6a0] sm:$0xff] }
 0x112   : > { %v339_v57 = vadd.f32 %v338_v52, %v250_v50  ;;  %v340_v58 = vpop.f32.mrb[3].mxu0  ;;  %v1432_v52 = vld [vmem:[%s3368_s3 + $0x1e0] sm:$0xff]  ;;  %v1585_v42 = vld [vmem:[%s3368_s3 + $0x6a8] sm:$0xff] }
 0x113   : > { %v341_v0 = vadd.f32 %v340_v58, %v250_v50  ;;  %443 = vmatprep.mubr.f32.mxu1 %v2678_v51  ;;  %661 = vmatprep.mubr.f32.mxu0 %v2678_v51  ;;  %v1511_v50 = vld [vmem:[%s3368_s3 + $0x458] sm:$0xff] }
 0x114   : > { %444 = vmatmul.mubr.f32.vlgmr.msra.gmra.mrb[0].mxu1 %v2683_v56  ;;  %662 = vmatmul.mubr.f32.vlgmr.msra.gmra.mrb[4].mxu0 %v2683_v56  ;;  %v2718_v10 = vmax.f32 %v339_v57, 0.0  ;;  %v2095_v57 = vpack.c.bf16 %v1415_v46, %v1414_v45  ;;  %v2191_v58 = vpack.c.bf16 %v1511_v50, %v1510_v49  ;;  %v1472_v45 = vld [vmem:[%s3368_s3 + $0x320] sm:$0xff]  ;;  %v1473_v46 = vld [vmem:[%s3368_s3 + $0x328] sm:$0xff]  ;;  %v2241_v49 = vpack.c.bf16 %v1585_v42, %v1584_v41  ;;  %v1594_v41 = vld [vmem:[%s3368_s3 + $0x6f0] sm:$0xff] }
 0x115   : > { %v2710_v5 = vmax.f32 %v341_v0, 0.0  ;;  %2076 = vmatpush3.bf16.msra.mxu1 %v2075_v53  ;;  %2172 = vmatpush3.bf16.msra.mxu0 %v2171_v54  ;;  %v1433_v53 = vld [vmem:[%s3368_s3 + $0x1e8] sm:$0xff]  ;;  %v1528_v54 = vld [vmem:[%s3368_s3 + $0x4e0] sm:$0xff]  ;;  %v1595_v42 = vld [vmem:[%s3368_s3 + $0x6f8] sm:$0xff] }
 0x116   : > { %2078 = vmatprep.subr.bf16.mxu1 %v2077_v59  ;;  %2174 = vmatprep.subr.bf16.mxu0 %v2173_v60  ;;  %v1416_v59 = vld [vmem:[%s3368_s3 + $0x160] sm:$0xff]  ;;  %v1417_v60 = vld [vmem:[%s3368_s3 + $0x168] sm:$0xff]  ;;  %v2097_v61 = vpack.c.bf16 %v1433_v53, %v1432_v52  ;;  %v2193_v62 = vpack.c.bf16 %v1529_v55, %v1528_v54  ;;  %v1490_v52 = vld [vmem:[%s3368_s3 + $0x3b0] sm:$0xff] }
 0x117   : > { %448 = vmatprep.mubr.f32.mxu1 %v2710_v5  ;;  %666 = vmatprep.mubr.f32.mxu0 %v2710_v5  ;;  %v1513_v0 = vld [vmem:[%s3368_s3 + $0x468] sm:$0xff]  ;;  %v1491_v53 = vld [vmem:[%s3368_s3 + $0x3b8] sm:$0xff]  ;;  %v1586_v54 = vld [vmem:[%s3368_s3 + $0x6b0] sm:$0xff] }
 0x118   : > { %449 = vmatmul.mubr.f32.gmra.mrb[2].mxu1 %v2718_v10  ;;  %667 = vmatmul.mubr.f32.gmra.mrb[6].mxu0 %v2718_v10  ;;  %v1569_v50 = vld [vmem:[%s3368_s3 + $0x628] sm:$0xff]  ;;  %v1587_v55 = vld [vmem:[%s3368_s3 + $0x6b8] sm:$0xff] }
 0x119   : > { %2080 = vmatpush3.bf16.msra.mxu1 %v2079_v6  ;;  %2176 = vmatpush3.bf16.msra.mxu0 %v2175_v7  ;;  %v2099_v6 = vpack.c.bf16 %v1417_v60, %v1416_v59  ;;  %v2195_v7 = vpack.c.bf16 %v1513_v0, %v1512_v63  ;;  %v2149_v59 = vpack.c.bf16 %v1491_v53, %v1490_v52  ;;  %v1474_v60 = vld [vmem:[%s3368_s3 + $0x330] sm:$0xff]  ;;  %v1571_v0 = vld [vmem:[%s3368_s3 + $0x638] sm:$0xff]  ;;  %v1548_v52 = vld [vmem:[%s3368_s3 + $0x580] sm:$0xff] }
 0x11a   : > { %551 = vmatprep.mubr.f32.mxu1 %v2678_v51  ;;  %881 = vmatprep.mubr.f32.mxu0 %v2678_v51  ;;  %v2245_v63 = vpack.c.bf16 %v1587_v55, %v1586_v54  ;;  %v1549_v53 = vld [vmem:[%s3368_s3 + $0x588] sm:$0xff]  ;;  %v1644_v54 = vld [vmem:[%s3368_s3 + $0x880] sm:$0xff] }
 0x11b   : > { %2082 = vmatprep.subr.bf16.mxu1 %v2081_v14  ;;  %2178 = vmatprep.subr.bf16.mxu0 %v2177_v15  ;;  %v1515_v14 = vld [vmem:[%s3368_s3 + $0x478] sm:$0xff]  ;;  %v1484_v15 = vld [vmem:[%s3368_s3 + $0x380] sm:$0xff]  ;;  %v1645_v55 = vld [vmem:[%s3368_s3 + $0x888] sm:$0xff] }
 0x11c   : > { %v2137_v21 = vpack.c.bf16 %v1485_v16, %v1484_v15  ;;  %v1494_v15 = vld [vmem:[%s3368_s3 + $0x3d0] sm:$0xff]  ;;  %v1495_v16 = vld [vmem:[%s3368_s3 + $0x3d8] sm:$0xff] }
 0x11d   : > { %2084 = vmatpush3.bf16.msra.mxu1 %v2083_v19  ;;  %2180 = vmatpush3.bf16.msra.mxu0 %v2179_v20  ;;  %v2103_v19 = vpack.c.bf16 %v1419_v9, %v1418_v8  ;;  %v2199_v20 = vpack.c.bf16 %v1515_v14, %v1514_v13  ;;  %v2153_v8 = vpack.c.bf16 %v1493_v2, %v1492_v1  ;;  %v1476_v9 = vld [vmem:[%s3368_s3 + $0x340] sm:$0xff]  ;;  %v1573_v14 = vld [vmem:[%s3368_s3 + $0x648] sm:$0xff]  ;;  %v1550_v1 = vld [vmem:[%s3368_s3 + $0x590] sm:$0xff] }
 0x11e   : > { %2086 = vmatprep.subr.bf16.mxu1 %v2085_v23  ;;  %2182 = vmatprep.subr.bf16.mxu0 %v2181_v24  ;;  %v1468_v23 = vld [vmem:[%s3368_s3 + $0x300] sm:$0xff]  ;;  %v1469_v24 = vld [vmem:[%s3368_s3 + $0x308] sm:$0xff]  ;;  %v2249_v13 = vpack.c.bf16 %v1589_v4, %v1588_v3  ;;  %v1551_v2 = vld [vmem:[%s3368_s3 + $0x598] sm:$0xff] }
 0x11f   : > { %v1646_v3 = vld [vmem:[%s3368_s3 + $0x890] sm:$0xff]  ;;  %v1647_v4 = vld [vmem:[%s3368_s3 + $0x898] sm:$0xff] }
 0x121   : > { %2088 = vmatpush3.bf16.msra.mxu1 %v2087_v31  ;;  %2184 = vmatpush3.bf16.msra.mxu0 %v2183_v32  ;;  %v2139_v31 = vpack.c.bf16 %v1469_v24, %v1468_v23  ;;  %v2235_v32 = vpack.c.bf16 %v1565_v26, %v1564_v25  ;;  %v1479_v23 = vld [vmem:[%s3368_s3 + $0x358] sm:$0xff]  ;;  %v1574_v24 = vld [vmem:[%s3368_s3 + $0x650] sm:$0xff]  ;;  %v2253_v25 = vpack.c.bf16 %v1591_v18, %v1590_v17  ;;  %v1648_v17 = vld [vmem:[%s3368_s3 + $0x8a0] sm:$0xff] }
 0x122   : > { %2090 = vmatprep.subr.bf16.mxu1 %v2089_v35  ;;  %2186 = vmatprep.subr.bf16.mxu0 %v2185_v36  ;;  %v2141_v35 = vpack.c.bf16 %v1487_v28, %v1486_v27  ;;  %v2237_v36 = vpack.c.bf16 %v1583_v30, %v1582_v29  ;;  %v1575_v26 = vld [vmem:[%s3368_s3 + $0x658] sm:$0xff]  ;;  %v1496_v27 = vld [vmem:[%s3368_s3 + $0x3e0] sm:$0xff]  ;;  %v1497_v28 = vld [vmem:[%s3368_s3 + $0x3e8] sm:$0xff] }
 0x123   : > { %v1592_v29 = vld [vmem:[%s3368_s3 + $0x6e0] sm:$0xff]  ;;  %v1593_v30 = vld [vmem:[%s3368_s3 + $0x6e8] sm:$0xff] }
 0x124   : > { %v1649_v18 = vld [vmem:[%s3368_s3 + $0x8a8] sm:$0xff] }
 0x125   : > { %2092 = vmatpush3.bf16.msra.mxu1 %v2091_v43  ;;  %2188 = vmatpush3.bf16.msra.mxu0 %v2187_v44  ;;  %v2143_v43 = vpack.c.bf16 %v1471_v34, %v1470_v33  ;;  %v2239_v44 = vpack.c.bf16 %v1567_v38, %v1566_v37  ;;  %v2161_v33 = vpack.c.bf16 %v1497_v28, %v1496_v27  ;;  %v1480_v34 = vld [vmem:[%s3368_s3 + $0x360] sm:$0xff]  ;;  %v1577_v38 = vld [vmem:[%s3368_s3 + $0x668] sm:$0xff]  ;;  %v1554_v27 = vld [vmem:[%s3368_s3 + $0x5b0] sm:$0xff] }
 0x126   : > { %2094 = vmatprep.subr.bf16.mxu1 %v2093_v47  ;;  %2190 = vmatprep.subr.bf16.mxu0 %v2189_v48  ;;  %v1568_v47 = vld [vmem:[%s3368_s3 + $0x620] sm:$0xff]  ;;  %v2145_v48 = vpack.c.bf16 %v1489_v40, %v1488_v39  ;;  %v2257_v37 = vpack.c.bf16 %v1593_v30, %v1592_v29  ;;  %v1498_v39 = vld [vmem:[%s3368_s3 + $0x3f0] sm:$0xff]  ;;  %v1499_v40 = vld [vmem:[%s3368_s3 + $0x3f8] sm:$0xff] }
 0x127   : > { %v1555_v28 = vld [vmem:[%s3368_s3 + $0x5b8] sm:$0xff]  ;;  %v1650_v29 = vld [vmem:[%s3368_s3 + $0x8b0] sm:$0xff] }
 0x128   : > { %v1651_v30 = vld [vmem:[%s3368_s3 + $0x8b8] sm:$0xff] }
 0x129   : > { %2096 = vmatpush3.bf16.msra.mxu1 %v2095_v57  ;;  %2192 = vmatpush3.bf16.msra.mxu0 %v2191_v58  ;;  %v2147_v57 = vpack.c.bf16 %v1473_v46, %v1472_v45  ;;  %v2243_v58 = vpack.c.bf16 %v1569_v50, %v1568_v47  ;;  %v2165_v45 = vpack.c.bf16 %v1499_v40, %v1498_v39  ;;  %v1482_v46 = vld [vmem:[%s3368_s3 + $0x370] sm:$0xff]  ;;  %v1483_v47 = vld [vmem:[%s3368_s3 + $0x378] sm:$0xff]  ;;  %v1556_v39 = vld [vmem:[%s3368_s3 + $0x5c0] sm:$0xff] }
 0x12a   : > { %2098 = vmatprep.subr.bf16.mxu1 %v2097_v61  ;;  %2194 = vmatprep.subr.bf16.mxu0 %v2193_v62  ;;  %v1475_v61 = vld [vmem:[%s3368_s3 + $0x338] sm:$0xff]  ;;  %v1570_v62 = vld [vmem:[%s3368_s3 + $0x630] sm:$0xff]  ;;  %v1557_v40 = vld [vmem:[%s3368_s3 + $0x5c8] sm:$0xff] }
 0x12b   : > { %v1579_v50 = vld [vmem:[%s3368_s3 + $0x678] sm:$0xff] }
 0x12d   : > { %2100 = vmatpush3.bf16.msra.mxu1 %v2099_v6  ;;  %2196 = vmatpush3.bf16.msra.mxu0 %v2195_v7  ;;  %v2151_v6 = vpack.c.bf16 %v1475_v61, %v1474_v60  ;;  %v2247_v7 = vpack.c.bf16 %v1571_v0, %v1570_v62  ;;  %v2297_v60 = vpack.c.bf16 %v1645_v55, %v1644_v54  ;;  %v1532_v61 = vld [vmem:[%s3368_s3 + $0x500] sm:$0xff]  ;;  %v1533_v62 = vld [vmem:[%s3368_s3 + $0x508] sm:$0xff]  ;;  %v1654_v54 = vld [vmem:[%s3368_s3 + $0x8d0] sm:$0xff] }
 0x12e   : > { %2102 = vmatprep.subr.bf16.mxu1 %v2101_v11  ;;  %2198 = vmatprep.subr.bf16.mxu0 %v2197_v12  ;;  %v1477_v11 = vld [vmem:[%s3368_s3 + $0x348] sm:$0xff]  ;;  %v1572_v12 = vld [vmem:[%s3368_s3 + $0x640] sm:$0xff]  ;;  %v1655_v55 = vld [vmem:[%s3368_s3 + $0x8d8] sm:$0xff] }
 0x12f   : > { %v1629_v0 = vld [vmem:[%s3368_s3 + $0x808] sm:$0xff] }
 0x131   : > { %2104 = vmatpush3.bf16.msra.mxu1 %v2103_v19  ;;  %2200 = vmatpush3.bf16.msra.mxu0 %v2199_v20  ;;  %v2155_v19 = vpack.c.bf16 %v1477_v11, %v1476_v9  ;;  %v2251_v20 = vpack.c.bf16 %v1573_v14, %v1572_v12  ;;  %v1534_v9 = vld [vmem:[%s3368_s3 + $0x510] sm:$0xff]  ;;  %v1535_v11 = vld [vmem:[%s3368_s3 + $0x518] sm:$0xff] }
 0x132   : > { %2138 = vmatprep.subr.bf16.mxu1 %v2137_v21  ;;  %2234 = vmatprep.subr.bf16.mxu0 %v2233_v22  ;;  %v2157_v21 = vpack.c.bf16 %v1495_v16, %v1494_v15  ;;  %v1478_v22 = vld [vmem:[%s3368_s3 + $0x350] sm:$0xff]  ;;  %v1631_v14 = vld [vmem:[%s3368_s3 + $0x818] sm:$0xff]  ;;  %v1552_v15 = vld [vmem:[%s3368_s3 + $0x5a0] sm:$0xff] }
 0x133   : > { %v1630_v12 = vld [vmem:[%s3368_s3 + $0x810] sm:$0xff]  ;;  %v1553_v16 = vld [vmem:[%s3368_s3 + $0x5a8] sm:$0xff] }
 0x134   : > { %552 = vmatmul.mubr.f32.vlgmr.msra.gmra.mrb[4].mxu1 %v2683_v56  ;;  %882 = vmatmul.mubr.f32.vlgmr.msra.gmra.mrb[8].mxu0 %v2683_v56 }
 0x135   : > { %556 = vmatprep.mubr.f32.mxu1 %v2710_v5  ;;  %2140 = vmatpush3.bf16.msra.mxu1 %v2139_v31  ;;  %v2159_v31 = vpack.c.bf16 %v1479_v23, %v1478_v22  ;;  %v1536_v22 = vld [vmem:[%s3368_s3 + $0x520] sm:$0xff]  ;;  %v1537_v23 = vld [vmem:[%s3368_s3 + $0x528] sm:$0xff] }
 0x136   : > { %886 = vmatprep.mubr.f32.mxu0 %v2710_v5  ;;  %2236 = vmatpush3.bf16.msra.mxu0 %v2235_v32  ;;  %v2255_v32 = vpack.c.bf16 %v1575_v26, %v1574_v24  ;;  %v1632_v24 = vld [vmem:[%s3368_s3 + $0x820] sm:$0xff]  ;;  %v1633_v26 = vld [vmem:[%s3368_s3 + $0x828] sm:$0xff] }
 0x137   : > { %2142 = vmatprep.subr.bf16.mxu1 %v2141_v35  ;;  %2238 = vmatprep.subr.bf16.mxu0 %v2237_v36  ;;  %v1481_v35 = vld [vmem:[%s3368_s3 + $0x368] sm:$0xff]  ;;  %v1576_v36 = vld [vmem:[%s3368_s3 + $0x660] sm:$0xff] }
 0x138   : > { %557 = vmatmul.mubr.f32.gmra.mrb[6].mxu1 %v2718_v10  ;;  %887 = vmatmul.mubr.f32.gmra.mrb[10].mxu0 %v2718_v10 }
 0x139   : > { %2144 = vmatpush3.bf16.msra.mxu1 %v2143_v43  ;;  %771 = vmatprep.mubr.f32.mxu1 %v2678_v51  ;;  %v2163_v43 = vpack.c.bf16 %v1481_v35, %v1480_v34  ;;  %v1538_v34 = vld [vmem:[%s3368_s3 + $0x530] sm:$0xff]  ;;  %v1539_v35 = vld [vmem:[%s3368_s3 + $0x538] sm:$0xff] }
 0x13a   : > { %2240 = vmatpush3.bf16.msra.mxu0 %v2239_v44  ;;  %1101 = vmatprep.mubr.f32.mxu0 %v2678_v51  ;;  %v2259_v44 = vpack.c.bf16 %v1577_v38, %v1576_v36  ;;  %v1634_v36 = vld [vmem:[%s3368_s3 + $0x830] sm:$0xff]  ;;  %v1635_v38 = vld [vmem:[%s3368_s3 + $0x838] sm:$0xff] }
 0x13b   : > { %2146 = vmatprep.subr.bf16.mxu1 %v2145_v48  ;;  %2242 = vmatprep.subr.bf16.mxu0 %v2241_v49  ;;  %v1578_v48 = vld [vmem:[%s3368_s3 + $0x670] sm:$0xff]  ;;  %v2261_v49 = vpack.c.bf16 %v1595_v42, %v1594_v41  ;;  %v1652_v41 = vld [vmem:[%s3368_s3 + $0x8c0] sm:$0xff]  ;;  %v1653_v42 = vld [vmem:[%s3368_s3 + $0x8c8] sm:$0xff] }
 0x13d   : > { %2148 = vmatpush3.bf16.msra.mxu1 %v2147_v57  ;;  %v2167_v57 = vpack.c.bf16 %v1483_v47, %v1482_v46  ;;  %v1540_v46 = vld [vmem:[%s3368_s3 + $0x540] sm:$0xff]  ;;  %v1541_v47 = vld [vmem:[%s3368_s3 + $0x548] sm:$0xff] }
 0x13e   : > { %2244 = vmatpush3.bf16.msra.mxu0 %v2243_v58  ;;  %2150 = vmatprep.subr.bf16.mxu1 %v2149_v59  ;;  %v2263_v58 = vpack.c.bf16 %v1579_v50, %v1578_v48  ;;  %v2201_v59 = vpack.c.bf16 %v1549_v53, %v1548_v52  ;;  %v1636_v48 = vld [vmem:[%s3368_s3 + $0x840] sm:$0xff]  ;;  %v1637_v50 = vld [vmem:[%s3368_s3 + $0x848] sm:$0xff]  ;;  %v1558_v52 = vld [vmem:[%s3368_s3 + $0x5d0] sm:$0xff] }
 0x13f   : > { %2246 = vmatprep.subr.bf16.mxu0 %v2245_v63  ;;  %v1628_v63 = vld [vmem:[%s3368_s3 + $0x800] sm:$0xff]  ;;  %v1559_v53 = vld [vmem:[%s3368_s3 + $0x5d8] sm:$0xff] }
 0x141   : > { %2152 = vmatpush3.bf16.msra.mxu1 %v2151_v6  ;;  %v2203_v6 = vpack.c.bf16 %v1533_v62, %v1532_v61  ;;  %v1543_v61 = vld [vmem:[%s3368_s3 + $0x558] sm:$0xff]  ;;  %v1638_v62 = vld [vmem:[%s3368_s3 + $0x850] sm:$0xff] }
 0x142   : > { %2248 = vmatpush3.bf16.msra.mxu0 %v2247_v7  ;;  %2154 = vmatprep.subr.bf16.mxu1 %v2153_v8  ;;  %v2299_v7 = vpack.c.bf16 %v1629_v0, %v1628_v63  ;;  %v2205_v8 = vpack.c.bf16 %v1551_v2, %v1550_v1  ;;  %v2317_v63 = vpack.c.bf16 %v1655_v55, %v1654_v54  ;;  %v1639_v0 = vld [vmem:[%s3368_s3 + $0x858] sm:$0xff]  ;;  %v1560_v1 = vld [vmem:[%s3368_s3 + $0x5e0] sm:$0xff]  ;;  %v1561_v2 = vld [vmem:[%s3368_s3 + $0x5e8] sm:$0xff] }
 0x143   : > { %2250 = vmatprep.subr.bf16.mxu0 %v2249_v13  ;;  %v2301_v13 = vpack.c.bf16 %v1647_v4, %v1646_v3  ;;  %v1656_v3 = vld [vmem:[%s3368_s3 + $0x8e0] sm:$0xff]  ;;  %v1657_v4 = vld [vmem:[%s3368_s3 + $0x8e8] sm:$0xff] }
 0x145   : > { %2156 = vmatpush3.bf16.msra.mxu1 %v2155_v19  ;;  %v2207_v19 = vpack.c.bf16 %v1535_v11, %v1534_v9  ;;  %v1544_v9 = vld [vmem:[%s3368_s3 + $0x560] sm:$0xff]  ;;  %v1545_v11 = vld [vmem:[%s3368_s3 + $0x568] sm:$0xff] }
 0x146   : > { %2252 = vmatpush3.bf16.msra.mxu0 %v2251_v20  ;;  %2158 = vmatprep.subr.bf16.mxu1 %v2157_v21  ;;  %v2303_v20 = vpack.c.bf16 %v1631_v14, %v1630_v12  ;;  %v2209_v21 = vpack.c.bf16 %v1553_v16, %v1552_v15  ;;  %v1640_v12 = vld [vmem:[%s3368_s3 + $0x860] sm:$0xff]  ;;  %v1641_v14 = vld [vmem:[%s3368_s3 + $0x868] sm:$0xff]  ;;  %v1562_v15 = vld [vmem:[%s3368_s3 + $0x5f0] sm:$0xff] }
 0x147   : > { %2254 = vmatprep.subr.bf16.mxu0 %v2253_v25  ;;  %v2305_v25 = vpack.c.bf16 %v1649_v18, %v1648_v17  ;;  %v1563_v16 = vld [vmem:[%s3368_s3 + $0x5f8] sm:$0xff]  ;;  %v1658_v17 = vld [vmem:[%s3368_s3 + $0x8f0] sm:$0xff] }
 0x148   : > { %v1659_v18 = vld [vmem:[%s3368_s3 + $0x8f8] sm:$0xff] }
 0x149   : > { %2160 = vmatpush3.bf16.msra.mxu1 %v2159_v31  ;;  %v2211_v31 = vpack.c.bf16 %v1537_v23, %v1536_v22  ;;  %v1546_v22 = vld [vmem:[%s3368_s3 + $0x570] sm:$0xff]  ;;  %v1547_v23 = vld [vmem:[%s3368_s3 + $0x578] sm:$0xff] }
 0x14a   : > { %2256 = vmatpush3.bf16.msra.mxu0 %v2255_v32  ;;  %2162 = vmatprep.subr.bf16.mxu1 %v2161_v33  ;;  %v2307_v32 = vpack.c.bf16 %v1633_v26, %v1632_v24  ;;  %v2213_v33 = vpack.c.bf16 %v1555_v28, %v1554_v27  ;;  %v1642_v24 = vld [vmem:[%s3368_s3 + $0x870] sm:$0xff]  ;;  %v1643_v26 = vld [vmem:[%s3368_s3 + $0x878] sm:$0xff]  ;;  %v1612_v27 = vld [vmem:[%s3368_s3 + $0x780] sm:$0xff] }
 0x14b   : > { %2258 = vmatprep.subr.bf16.mxu0 %v2257_v37  ;;  %v2309_v37 = vpack.c.bf16 %v1651_v30, %v1650_v29  ;;  %v1613_v28 = vld [vmem:[%s3368_s3 + $0x788] sm:$0xff]  ;;  %v2231_v29 = vpack.c.bf16 %v1547_v23, %v1546_v22  ;;  %v2327_v30 = vpack.c.bf16 %v1643_v26, %v1642_v24 }
 0x14d   : > { %2164 = vmatpush3.bf16.msra.mxu1 %v2163_v43  ;;  %v2215_v43 = vpack.c.bf16 %v1539_v35, %v1538_v34  ;;  %v1614_v34 = vld [vmem:[%s3368_s3 + $0x790] sm:$0xff]  ;;  %v1615_v35 = vld [vmem:[%s3368_s3 + $0x798] sm:$0xff] }
 0x14e   : > { %2260 = vmatpush3.bf16.msra.mxu0 %v2259_v44  ;;  %2166 = vmatprep.subr.bf16.mxu1 %v2165_v45  ;;  %v2311_v44 = vpack.c.bf16 %v1635_v38, %v1634_v36  ;;  %v2217_v45 = vpack.c.bf16 %v1557_v40, %v1556_v39  ;;  %v1598_v38 = vld [vmem:[%s3368_s3 + $0x710] sm:$0xff]  ;;  %v1599_v39 = vld [vmem:[%s3368_s3 + $0x718] sm:$0xff]  ;;  %v1616_v40 = vld [vmem:[%s3368_s3 + $0x7a0] sm:$0xff] }
 0x14f   : > { %2262 = vmatprep.subr.bf16.mxu0 %v2261_v49  ;;  %v2313_v49 = vpack.c.bf16 %v1653_v42, %v1652_v41  ;;  %v1617_v41 = vld [vmem:[%s3368_s3 + $0x7a8] sm:$0xff]  ;;  %v2271_v42 = vpack.c.bf16 %v1599_v39, %v1598_v38 }
 0x151   : > { %2168 = vmatpush3.bf16.msra.mxu1 %v2167_v57  ;;  %v2219_v57 = vpack.c.bf16 %v1541_v47, %v1540_v46  ;;  %v1618_v46 = vld [vmem:[%s3368_s3 + $0x7b0] sm:$0xff]  ;;  %v1619_v47 = vld [vmem:[%s3368_s3 + $0x7b8] sm:$0xff] }
 0x152   : > { %2264 = vmatpush3.bf16.msra.mxu0 %v2263_v58  ;;  %2202 = vmatprep.subr.bf16.mxu1 %v2201_v59  ;;  %v2315_v58 = vpack.c.bf16 %v1637_v50, %v1636_v48  ;;  %v2221_v59 = vpack.c.bf16 %v1559_v53, %v1558_v52  ;;  %v1602_v50 = vld [vmem:[%s3368_s3 + $0x730] sm:$0xff]  ;;  %v1603_v52 = vld [vmem:[%s3368_s3 + $0x738] sm:$0xff]  ;;  %v1620_v53 = vld [vmem:[%s3368_s3 + $0x7c0] sm:$0xff] }
 0x153   : > { %2298 = vmatprep.subr.bf16.mxu0 %v2297_v60  ;;  %v1542_v60 = vld [vmem:[%s3368_s3 + $0x550] sm:$0xff]  ;;  %v2279_v54 = vpack.c.bf16 %v1603_v52, %v1602_v50 }
 0x154   : > { %772 = vmatmul.mubr.f32.vlgmr.msra.gmra.mrb[8].mxu1 %v2683_v56 }
 0x155   : > { %1102 = vmatmul.mubr.f32.vlgmr.msra.gmra.mrb[12].mxu0 %v2683_v56  ;;  %776 = vmatprep.mubr.f32.mxu1 %v2710_v5 }
 0x156   : > { %2204 = vmatpush3.bf16.msra.mxu1 %v2203_v6  ;;  %1106 = vmatprep.mubr.f32.mxu0 %v2710_v5  ;;  %v2223_v6 = vpack.c.bf16 %v1543_v61, %v1542_v60  ;;  %v1623_v60 = vld [vmem:[%s3368_s3 + $0x7d8] sm:$0xff] }
 0x157   : > { %2300 = vmatpush3.bf16.msra.mxu0 %v2299_v7  ;;  %2206 = vmatprep.subr.bf16.mxu1 %v2205_v8  ;;  %v2319_v7 = vpack.c.bf16 %v1639_v0, %v1638_v62  ;;  %v2225_v8 = vpack.c.bf16 %v1561_v2, %v1560_v1  ;;  %v1607_v0 = vld [vmem:[%s3368_s3 + $0x758] sm:$0xff]  ;;  %v1624_v1 = vld [vmem:[%s3368_s3 + $0x7e0] sm:$0xff]  ;;  %v1625_v2 = vld [vmem:[%s3368_s3 + $0x7e8] sm:$0xff] }
 0x158   : > { %777 = vmatmul.mubr.f32.gmra.mrb[10].mxu1 %v2718_v10  ;;  %2302 = vmatprep.subr.bf16.mxu0 %v2301_v13  ;;  %v2321_v13 = vpack.c.bf16 %v1657_v4, %v1656_v3  ;;  %v2289_v4 = vpack.c.bf16 %v1625_v2, %v1624_v1 }
 0x159   : > { %1107 = vmatmul.mubr.f32.gmra.mrb[14].mxu0 %v2718_v10  ;;  %991 = vmatprep.mubr.f32.mxu1 %v2678_v51 }
 0x15a   : > { %2208 = vmatpush3.bf16.msra.mxu1 %v2207_v19  ;;  %1321 = vmatprep.mubr.f32.mxu0 %v2678_v51  ;;  %v2227_v19 = vpack.c.bf16 %v1545_v11, %v1544_v9  ;;  %v1627_v9 = vld [vmem:[%s3368_s3 + $0x7f8] sm:$0xff] }
 0x15b   : > { %2304 = vmatpush3.bf16.msra.mxu0 %v2303_v20  ;;  %2210 = vmatprep.subr.bf16.mxu1 %v2209_v21  ;;  %v2323_v20 = vpack.c.bf16 %v1641_v14, %v1640_v12  ;;  %v2229_v21 = vpack.c.bf16 %v1563_v16, %v1562_v15  ;;  %v1611_v14 = vld [vmem:[%s3368_s3 + $0x778] sm:$0xff] }
 0x15c   : > { %2306 = vmatprep.subr.bf16.mxu0 %v2305_v25  ;;  %v2325_v25 = vpack.c.bf16 %v1659_v18, %v1658_v17 }
 0x15e   : > { %2212 = vmatpush3.bf16.msra.mxu1 %v2211_v31  ;;  %v2265_v31 = vpack.c.bf16 %v1613_v28, %v1612_v27 }
 0x15f   : > { %2308 = vmatpush3.bf16.msra.mxu0 %v2307_v32  ;;  %2214 = vmatprep.subr.bf16.mxu1 %v2213_v33  ;;  %v1596_v32 = vld [vmem:[%s3368_s3 + $0x700] sm:$0xff]  ;;  %v1597_v33 = vld [vmem:[%s3368_s3 + $0x708] sm:$0xff] }
 0x160   : > { %2310 = vmatprep.subr.bf16.mxu0 %v2309_v37  ;;  %v2267_v36 = vpack.c.bf16 %v1597_v33, %v1596_v32  ;;  %v2269_v37 = vpack.c.bf16 %v1615_v35, %v1614_v34 }
 0x162   : > { %2216 = vmatpush3.bf16.msra.mxu1 %v2215_v43  ;;  %v2273_v43 = vpack.c.bf16 %v1617_v41, %v1616_v40 }
 0x163   : > { %2312 = vmatpush3.bf16.msra.mxu0 %v2311_v44  ;;  %2218 = vmatprep.subr.bf16.mxu1 %v2217_v45  ;;  %v1600_v44 = vld [vmem:[%s3368_s3 + $0x720] sm:$0xff]  ;;  %v1601_v45 = vld [vmem:[%s3368_s3 + $0x728] sm:$0xff] }
 0x164   : > { %2314 = vmatprep.subr.bf16.mxu0 %v2313_v49  ;;  %v2275_v48 = vpack.c.bf16 %v1601_v45, %v1600_v44  ;;  %v2277_v49 = vpack.c.bf16 %v1619_v47, %v1618_v46 }
 0x166   : > { %2220 = vmatpush3.bf16.msra.mxu1 %v2219_v57  ;;  %v1604_v57 = vld [vmem:[%s3368_s3 + $0x740] sm:$0xff] }
 0x167   : > { %2316 = vmatpush3.bf16.msra.mxu0 %v2315_v58  ;;  %2222 = vmatprep.subr.bf16.mxu1 %v2221_v59  ;;  %v1605_v58 = vld [vmem:[%s3368_s3 + $0x748] sm:$0xff]  ;;  %v1622_v59 = vld [vmem:[%s3368_s3 + $0x7d0] sm:$0xff] }
 0x168   : > { %2318 = vmatprep.subr.bf16.mxu0 %v2317_v63  ;;  %v2283_v61 = vpack.c.bf16 %v1605_v58, %v1604_v57  ;;  %v2285_v62 = vpack.c.bf16 %v1623_v60, %v1622_v59  ;;  %v1606_v63 = vld [vmem:[%s3368_s3 + $0x750] sm:$0xff] }
 0x169   : > { %v2287_v3 = vpack.c.bf16 %v1607_v0, %v1606_v63 }
 0x16a   : > { %2224 = vmatpush3.bf16.msra.mxu1 %v2223_v6  ;;  %v1608_v6 = vld [vmem:[%s3368_s3 + $0x760] sm:$0xff] }
 0x16b   : > { %2320 = vmatpush3.bf16.msra.mxu0 %v2319_v7  ;;  %2226 = vmatprep.subr.bf16.mxu1 %v2225_v8  ;;  %v1609_v7 = vld [vmem:[%s3368_s3 + $0x768] sm:$0xff]  ;;  %v1626_v8 = vld [vmem:[%s3368_s3 + $0x7f0] sm:$0xff] }
 0x16c   : > { %2322 = vmatprep.subr.bf16.mxu0 %v2321_v13  ;;  %v2291_v11 = vpack.c.bf16 %v1609_v7, %v1608_v6  ;;  %v2293_v12 = vpack.c.bf16 %v1627_v9, %v1626_v8  ;;  %v1610_v13 = vld [vmem:[%s3368_s3 + $0x770] sm:$0xff] }
 0x16d   : > { %v2295_v15 = vpack.c.bf16 %v1611_v14, %v1610_v13 }
 0x16e   : > { %2228 = vmatpush3.bf16.msra.mxu1 %v2227_v19 }
 0x16f   : > { %2324 = vmatpush3.bf16.msra.mxu0 %v2323_v20  ;;  %2230 = vmatprep.subr.bf16.mxu1 %v2229_v21 }
 0x170   : > { %2326 = vmatprep.subr.bf16.mxu0 %v2325_v25 }
 0x172   : > { %2232 = vmatpush3.bf16.msra.mxu1 %v2231_v29 }
 0x173   : > { %2328 = vmatpush3.bf16.msra.mxu0 %v2327_v30  ;;  %2266 = vmatprep.subr.bf16.mxu1 %v2265_v31 }
 0x175   : > { %992 = vmatmul.mubr.f32.vlgmr.msra.gmra.mrb[12].mxu1 %v2683_v56 }
 0x176   : > { %1322 = vmatmul.mubr.f32.vlgmr.msra.gmra.mrb[16].mxu0 %v2683_v56  ;;  %996 = vmatprep.mubr.f32.mxu1 %v2710_v5 }
 0x177   : > { %2268 = vmatpush3.bf16.msra.mxu1 %v2267_v36  ;;  %1326 = vmatprep.mubr.f32.mxu0 %v2710_v5 }
 0x178   : > { %2270 = vmatprep.subr.bf16.mxu1 %v2269_v37 }
 0x179   : > { %997 = vmatmul.mubr.f32.gmra.mrb[14].mxu1 %v2718_v10 }
 0x17a   : > { %1327 = vmatmul.mubr.f32.gmra.mrb[18].mxu0 %v2718_v10  ;;  %1211 = vmatprep.mubr.f32.mxu1 %v2678_v51  ;;  %v1621_v51 = vld [vmem:[%s3368_s3 + $0x7c8] sm:$0xff] }
 0x17b   : > { %2272 = vmatpush3.bf16.msra.mxu1 %v2271_v42  ;;  %v2281_v55 = vpack.c.bf16 %v1621_v51, %v1620_v53 }
 0x17c   : > { %2274 = vmatprep.subr.bf16.mxu1 %v2273_v43 }
 0x17f   : > { %2276 = vmatpush3.bf16.msra.mxu1 %v2275_v48 }
 0x180   : > { %2278 = vmatprep.subr.bf16.mxu1 %v2277_v49 }
 0x183   : > { %2280 = vmatpush3.bf16.msra.mxu1 %v2279_v54 }
 0x184   : > { %2282 = vmatprep.subr.bf16.mxu1 %v2281_v55 }
 0x187   : > { %2284 = vmatpush3.bf16.msra.mxu1 %v2283_v61 }
 0x188   : > { %2286 = vmatprep.subr.bf16.mxu1 %v2285_v62 }
 0x18b   : > { %2288 = vmatpush3.bf16.msra.mxu1 %v2287_v3 }
 0x18c   : > { %2290 = vmatprep.subr.bf16.mxu1 %v2289_v4 }
 0x18f   : > { %2292 = vmatpush3.bf16.msra.mxu1 %v2291_v11 }
 0x190   : > { %2294 = vmatprep.subr.bf16.mxu1 %v2293_v12 }
 0x193   : > { %2296 = vmatpush3.bf16.msra.mxu1 %v2295_v15 }
 0x196   : > { %1212 = vmatmul.mubr.f32.vlgmr.msra.gmra.mrb[16].mxu1 %v2683_v56 }
 0x197   : > { %1216 = vmatprep.mubr.f32.mxu1 %v2710_v5 }
 0x19a   : > { %1217 = vmatmul.mubr.f32.gmra.mrb[18].mxu1 %v2718_v10 }
 0x1e7   : > { %v1695_v16 = vpop.f32.mrb[0].mxu1  ;;  %v1771_v17 = vpop.f32.mrb[4].mxu0 }
 0x1e8   : > { %v1696_v18 = vpop.f32.mrb[1].mxu1  ;;  %v1772_v19 = vpop.f32.mrb[5].mxu0 }
 0x1e9   : > { %v1697_v20 = vadd.f32 %v1696_v18, %v1695_v16  ;;  %v1773_v21 = vadd.f32 %v1772_v19, %v1771_v17 }
 0x1eb   : > { %v1698_v22 = vpop.f32.mrb[2].mxu1  ;;  %v1774_v23 = vpop.f32.mrb[6].mxu0 }
 0x1ec   : > { %v1699_v24 = vpop.f32.mrb[3].mxu1  ;;  %v1775_v25 = vpop.f32.mrb[7].mxu0 }
 0x1ed   : > { %v1700_v26 = vadd.f32 %v1699_v24, %v1698_v22  ;;  %v1776_v27 = vadd.f32 %v1775_v25, %v1774_v23 }
 0x207   : > { %v1733_v28 = vpop.f32.mrb[4].mxu1  ;;  %v1847_v29 = vpop.f32.mrb[8].mxu0 }
 0x208   : > { %v1734_v30 = vpop.f32.mrb[5].mxu1  ;;  %v1848_v56 = vpop.f32.mrb[9].mxu0 }
 0x209   : > { %v1735_v31 = vadd.f32 %v1734_v30, %v1733_v28  ;;  %v1849_v5 = vadd.f32 %v1848_v56, %v1847_v29 }
 0x20b   : > { %v562_v32 = vmax.f32 %v1697_v20, %v1735_v31  ;;  %v1736_v10 = vpop.f32.mrb[6].mxu1  ;;  %v1850_v33 = vpop.f32.mrb[10].mxu0 }
 0x20c   : > { %v1737_v34 = vpop.f32.mrb[7].mxu1  ;;  %v1851_v35 = vpop.f32.mrb[11].mxu0 }
 0x20d   : > { %v1738_v36 = vadd.f32 %v1737_v34, %v1736_v10  ;;  %v1852_v37 = vadd.f32 %v1851_v35, %v1850_v33  ;;  %v672_v38 = vmax.f32 %v562_v32, %v1773_v21 }
 0x20f   : > { %v563_v39 = vmax.f32 %v1700_v26, %v1738_v36 }
 0x211   : > { %v673_v40 = vmax.f32 %v563_v39, %v1776_v27 }
 0x227   : > { %v1809_v41 = vpop.f32.mrb[8].mxu1 }
 0x228   : > { %v1923_v42 = vpop.f32.mrb[12].mxu0  ;;  %v1810_v43 = vpop.f32.mrb[9].mxu1 }
 0x229   : > { %v1811_v44 = vadd.f32 %v1810_v43, %v1809_v41  ;;  %v1924_v45 = vpop.f32.mrb[13].mxu0 }
 0x22a   : > { %v1925_v46 = vadd.f32 %v1924_v45, %v1923_v42 }
 0x22b   : > { %v782_v47 = vmax.f32 %v672_v38, %v1811_v44  ;;  %v1812_v48 = vpop.f32.mrb[10].mxu1 }
 0x22c   : > { %v1926_v49 = vpop.f32.mrb[14].mxu0  ;;  %v1813_v50 = vpop.f32.mrb[11].mxu1 }
 0x22d   : > { %v1814_v52 = vadd.f32 %v1813_v50, %v1812_v48  ;;  %v1927_v53 = vpop.f32.mrb[15].mxu0  ;;  %v892_v51 = vmax.f32 %v782_v47, %v1849_v5 }
 0x22e   : > { %v1928_v54 = vadd.f32 %v1927_v53, %v1926_v49 }
 0x22f   : > { %v783_v55 = vmax.f32 %v673_v40, %v1814_v52 }
 0x231   : > { %v893_v57 = vmax.f32 %v783_v55, %v1852_v37 }
 0x248   : > { %v1885_v58 = vpop.f32.mrb[12].mxu1 }
 0x249   : > { %v1999_v59 = vpop.f32.mrb[16].mxu0  ;;  %v1886_v60 = vpop.f32.mrb[13].mxu1 }
 0x24a   : > { %v1887_v61 = vadd.f32 %v1886_v60, %v1885_v58  ;;  %v2000_v62 = vpop.f32.mrb[17].mxu0 }
 0x24b   : > { %v2001_v63 = vadd.f32 %v2000_v62, %v1999_v59 }
 0x24c   : > { %v1002_v0 = vmax.f32 %v892_v51, %v1887_v61  ;;  %v1888_v1 = vpop.f32.mrb[14].mxu1 }
 0x24d   : > { %v2002_v2 = vpop.f32.mrb[18].mxu0  ;;  %v1889_v3 = vpop.f32.mrb[15].mxu1 }
 0x24e   : > { %v1890_v4 = vadd.f32 %v1889_v3, %v1888_v1  ;;  %v2003_v6 = vpop.f32.mrb[19].mxu0  ;;  %v1112_v7 = vmax.f32 %v1002_v0, %v1925_v46 }
 0x24f   : > { %v2004_v8 = vadd.f32 %v2003_v6, %v2002_v2 }
 0x250   : > { %v1003_v9 = vmax.f32 %v893_v57, %v1890_v4 }
 0x252   : > { %v1113_v11 = vmax.f32 %v1003_v9, %v1928_v54 }
 0x269   : > { %v1961_v12 = vpop.f32.mrb[16].mxu1 }
 0x26a   : > { %v1962_v13 = vpop.f32.mrb[17].mxu1 }
 0x26b   : > { %v1963_v14 = vadd.f32 %v1962_v13, %v1961_v12 }
 0x26d   : > { %v1222_v15 = vmax.f32 %v1112_v7, %v1963_v14  ;;  %v1964_v16 = vpop.f32.mrb[18].mxu1 }
 0x26e   : > { %v1965_v17 = vpop.f32.mrb[19].mxu1 }
 0x26f   : > { %v1332_v18 = vmax.f32 %v1222_v15, %v2001_v63  ;;  %v1966_v19 = vadd.f32 %v1965_v17, %v1964_v16 }
 0x271   : > { %1335 = vst.msk [vmem:[%s197_s11] sm:$0xff] %vm1334_vm2, %v1332_v18  ;;  %v1223_v20 = vmax.f32 %v1113_v11, %v1966_v19 }
 0x273   : > { %v1333_v21 = vmax.f32 %v1223_v20, %v2004_v8 }
 0x275   : > { %1336 = vst.msk [vmem:[%s197_s11 + $0x8] sm:$0xff] %vm1334_vm2, %v1333_v21 }
 0x276 PF: > { %s14_s15 = sadd.s32 1, %s2346_s15  }
 0x277   : > { %p11_p4 = scmp.ge.s32.totalorder %s14_s15, 4  }
 0x279   :  { %13 = sbr.rel (!%p11_p4) target bundleno = 1 (0x1), region = 74 }

// kernel: densenet_bc_forward.13
= control target key start
LH: loop header
LB: loop body
LE: loop exit
PB: predicated region body
PF: predicated region fallthrough
CT: control target
= control target key end

     0   :  { %s645_s18 = smov 0   ;;  %s710_s0 = inlined_call_operand.vmem [shape: f32[2,32,16], index: 0, kind: input, shape index: {}]   ;;  %s711_s1 = inlined_call_operand.vmem [shape: f32[32,1], index: 1, kind: input, shape index: {}]   ;;  %s712_s2 = inlined_call_operand.vmem [shape: f32[32,1], index: 2, kind: input, shape index: {}]   ;;  %s713_s3 = inlined_call_operand.vmem [shape: f32[16,32], index: 3, kind: input, shape index: {}]   ;;  %s714_s4 = inlined_call_operand.vmem [shape: f32[16,4], index: 4, kind: input, shape index: {}]   ;;  %s715_s5 = inlined_call_operand.vmem [shape: f32[2,16,4], index: 5, kind: output, shape index: {}]  }
   0x1 LB: > { %s531_s19 = sadd.s32 4294967295, %s612_s18   ;;  %p535_p0 = scmp.ge.s32.totalorder %s612_s18, 1  ;;  %s612_s18 = sphi %s645_s18, %s15_s18  }
   0x2   : > { %p187_p1 = scmp.lt.s32.totalorder %s612_s18, 3 }
   0x4   : > { %p188_p2 = pnand %p535_p0, %p187_p1 }
   0x5   : > { %v257_v0 = vld [vmem:[%s712_s2] sm:$0xff] (!%p188_p2)  ;;  %v614_v2 = vmov (!%p188_p2), 0   ;;  %v258_v3 = vld [vmem:[%s712_s2 + $0x8] sm:$0xff] (!%p188_p2)  ;;  %v232_v8 = vld [vmem:[%s711_s1 + $0x18] sm:$0xff] (!%p188_p2)  ;;  %p215_p3 = scmp.lt.s32.totalorder (!%p188_p2), %s531_s19, 1  ;;  %vm291_vm0 = vcmask (!%p188_p2), 130048  }
   0x6   : > { %191 = sbr.rel (%p188_p2) target bundleno = 585 (0x249), region = 40  ;;  %v229_v1 = vld [vmem:[%s711_s1] sm:$0xff] (!%p188_p2)  ;;  %605 = vset.pattern.permute.xlu1 (!%p188_p2), %v614_v2  ;;  %604 = vset.pattern.permute.xlu0 (!%p188_p2), %v614_v2  ;;  %v230_v4 = vld [vmem:[%s711_s1 + $0x8] sm:$0xff] (!%p188_p2)  ;;  %v231_v9 = vld [vmem:[%s711_s1 + $0x10] sm:$0xff] (!%p188_p2)  ;;  %vm391_vm1 = vcmask (!%p188_p2), 261120   ;;  %vm473_vm2 = vcmask (!%p188_p2), 31744  }
   0x7   : > { %263 = vperm.xlu1 (!%p188_p2), %605, %v257_v0   ;;  %235 = vperm.xlu0 (!%p188_p2), %604, %v229_v1   ;;  %v289_v5 = vld [vmem:[%s714_s4] sm:$0xff] (!%p188_p2)  ;;  %v290_v6 = vld [vmem:[%s714_s4 + $0x8] sm:$0xff] (!%p188_p2)  ;;  %v260_v10 = vld [vmem:[%s712_s2 + $0x18] sm:$0xff] (!%p188_p2) }
   0x8   : > { %v583_v7 = vpack.c.bf16 (!%p188_p2), %v290_v6, %v289_v5  ;;  %v259_v11 = vld [vmem:[%s712_s2 + $0x10] sm:$0xff] (!%p188_p2)  ;;  %v389_v36 = vld [vmem:[%s713_s3] sm:$0xff] (!%p188_p2)  ;;  %v390_v43 = vld [vmem:[%s713_s3 + $0x8] sm:$0xff] (!%p188_p2) }
   0x9   : > { %580 = vmatprep.mubr.msk.f32.mxu1 (!%p188_p2), %vm391_vm1, %v389_v36 }
   0xa   : > { %584 = vmatprep.subr.bf16.mxu0 (!%p188_p2), %v583_v7 }
   0xb   : > { %268 = vperm.xlu1 (!%p188_p2), %605, %v258_v3   ;;  %240 = vperm.xlu0 (!%p188_p2), %604, %v230_v4  }
   0xc   : > { %586 = vmatpush3.bf16.msra.mxu0 (!%p188_p2), %v583_v7 }
   0xd   : > { %s717_s19 = smov (!%p215_p3, %s531_s19), 1 }
   0xe   : > { %s548_s15 = sshll.u32 %s717_s19, 5  ;;  %s549_s25 = sshll.u32 %s717_s19, 4 }
   0xf   : > { %250 = vperm.xlu1 %605, %v232_v8   ;;  %245 = vperm.xlu0 %604, %v231_v9   ;;  %s219_s20 = scalar_lea.vmem %s710_s0, %s548_s15  ;;  %s224_s28 = scalar_lea.vmem %s715_s5, %s549_s25 }
  0x10   : > { %v225_v12 = vld [vmem:[%s219_s20] sm:$0xff]  ;;  %v226_v16 = vld [vmem:[%s219_s20 + $0x8] sm:$0xff]  ;;  %v228_v24 = vld [vmem:[%s219_s20 + $0x18] sm:$0xff] }
  0x11   : > { %v227_v26 = vld [vmem:[%s219_s20 + $0x10] sm:$0xff] }
  0x13   : > { %278 = vperm.xlu1 %605, %v260_v10   ;;  %273 = vperm.xlu0 %604, %v259_v11  }
  0x86   : > { %v264_v13 = vpop.permute.xlu1 %263  ;;  %v236_v14 = vpop.permute.xlu0 %235 }
  0x87   : > { %v253_v15 = vmul.f32 %v236_v14, %v225_v12 }
  0x89   : > { %v281_v17 = vadd.f32 %v264_v13, %v253_v15 }
  0x8a   : > { %v269_v18 = vpop.permute.xlu1 %268  ;;  %v241_v19 = vpop.permute.xlu0 %240 }
  0x8b   : > { %v254_v20 = vmul.f32 %v241_v19, %v226_v16  ;;  %v285_v21 = vmax.f32 %v281_v17, 0.0 }
  0x8d   : > { %v282_v22 = vadd.f32 %v269_v18, %v254_v20  ;;  %566 = vmatprep.mubr.msk.f32.mxu0 %vm291_vm0, %v285_v21 }
  0x8e   : > { %v251_v23 = vpop.permute.xlu1 %250  ;;  %v246_v25 = vpop.permute.xlu0 %245 }
  0x8f   : > { %v286_v27 = vmax.f32 %v282_v22, 0.0  ;;  %v256_v28 = vmul.f32 %v251_v23, %v228_v24  ;;  %v255_v29 = vmul.f32 %v246_v25, %v227_v26 }
  0x91   : > { %567 = vmatmul.mubr.msk.f32.vlgmr.msra.gmra.mrb[0].mxu0 %vm291_vm0, %v286_v27 }
  0x92   : > { %v279_v30 = vpop.permute.xlu1 %278  ;;  %v274_v31 = vpop.permute.xlu0 %273 }
  0x93   : > { %v284_v32 = vadd.f32 %v279_v30, %v256_v28  ;;  %v283_v33 = vadd.f32 %v274_v31, %v255_v29 }
  0x95   : > { %v288_v34 = vmax.f32 %v284_v32, 0.0  ;;  %v287_v35 = vmax.f32 %v283_v33, 0.0 }
  0x97   : > { %569 = vmatprep.mubr.msk.f32.mxu0 %vm291_vm0, %v287_v35 }
  0x98   : > { %570 = vmatmul.mubr.msk.f32.gmra.mrb[2].mxu0 %vm291_vm0, %v288_v34 }
 0x164   : > { %v568_v37 = vpop.f32.mrb[0].mxu0 }
 0x165   : > { %v370_v38 = vpop.f32.mrb[1].mxu0 }
 0x166   : > { %v587_v39 = vpack.c.bf16 %v568_v37, %v370_v38 }
 0x168   : > { %588 = vmatprep.subr.bf16.mxu1 %v587_v39 }
 0x169   : > { %590 = vmatpush3.bf16.msra.mxu1 %v587_v39 }
 0x16b   : > { %v571_v40 = vpop.f32.mrb[2].mxu0 }
 0x16c   : > { %v380_v41 = vpop.f32.mrb[3].mxu0 }
 0x16d   : > { %v591_v42 = vpack.c.bf16 %v571_v40, %v380_v41 }
 0x16f   : > { %592 = vmatprep.subr.bf16.mxu1 %v591_v42 }
 0x170   : > { %594 = vmatpush3.bf16.msra.mxu1 %v591_v42 }
 0x173   : > { %581 = vmatmul.mubr.msk.f32.vlgmr.msra.gmra.mrb[0].mxu1 %vm391_vm1, %v390_v43 }
 0x246   : > { %v582_v44 = vpop.f32.mrb[0].mxu1 }
 0x247   : > { %475 = vst.msk [vmem:[%s224_s28 + $0x8] sm:$0xff] %vm473_vm2, %v582_v44  ;;  %v464_v45 = vpop.f32.mrb[1].mxu1 }
 0x248   : > { %474 = vst.msk [vmem:[%s224_s28] sm:$0xff] %vm473_vm2, %v464_v45 }
 0x249 PF: > { %s15_s18 = sadd.s32 1, %s612_s18  }
 0x24a   : > { %p12_p4 = scmp.ge.s32.totalorder %s15_s18, 4  }
 0x24c   :  { %14 = sbr.rel (!%p12_p4) target bundleno = 1 (0x1), region = 70 }

// kernel: densenet_bc_forward.10
= control target key start
LH: loop header
LB: loop body
LE: loop exit
PB: predicated region body
PF: predicated region fallthrough
CT: control target
= control target key end

     0   :  { %s4888_s27 = smov 0   ;;  %s5673_s0 = inlined_call_operand.vmem [shape: f32[2,16,64], index: 0, kind: input, shape index: {}]   ;;  %s5674_s1 = inlined_call_operand.vmem [shape: f32[2,32,1], index: 1, kind: input, shape index: {}]   ;;  %s5675_s2 = inlined_call_operand.vmem [shape: f32[2,32,1], index: 2, kind: input, shape index: {}]   ;;  %s5676_s3 = inlined_call_operand.vmem [shape: f32[2,16,32], index: 3, kind: input, shape index: {}]   ;;  %s5677_s4 = inlined_call_operand.vmem [shape: f32[2,16,1], index: 4, kind: input, shape index: {}]   ;;  %s5678_s5 = inlined_call_operand.vmem [shape: f32[2,16,1], index: 5, kind: input, shape index: {}]   ;;  %s5679_s6 = inlined_call_operand.vmem [shape: f32[18,8,16], index: 6, kind: input, shape index: {}]   ;;  %s5680_s7 = inlined_call_operand.vmem [shape: f32[9,64,64], index: 7, kind: input, shape index: {}]   ;;  %s5681_s8 = inlined_call_operand.vmem [shape: f32[2,32,64], index: 8, kind: output, shape index: {}]  }
   0x1 LB: > { %s3570_s28 = sadd.s32 4294967295, %s4837_s27   ;;  %p3574_p0 = scmp.ge.s32.totalorder %s4837_s27, 1  ;;  %s4837_s27 = sphi %s4888_s27, %s18_s27  }
   0x2   : > { %p262_p1 = scmp.lt.s32.totalorder %s4837_s27, 3 }
   0x4   : > { %p263_p2 = pnand %p3574_p0, %p262_p1 }
   0x5   : > { %v347_v0 = vld [vmem:[%s5675_s2] sm:$0xff] (!%p263_p2)  ;;  %p296_p3 = scmp.lt.s32.totalorder (!%p263_p2), %s3570_s28, 1  ;;  %vm306_vm0 = vcmask (!%p263_p2), 523264   ;;  %v4839_v2 = vmov (!%p263_p2), 0   ;;  %v4840_v3 = vmov (!%p263_p2), 0.0   ;;  %v348_v4 = vld [vmem:[%s5675_s2 + $0x8] sm:$0xff] (!%p263_p2) }
   0x6   : > { %266 = sbr.rel (%p263_p2) target bundleno = 2528 (0x9e0), region = 52  ;;  %v319_v1 = vld [vmem:[%s5674_s1] sm:$0xff] (!%p263_p2)  ;;  %4830 = vset.pattern.permute.xlu1 (!%p263_p2), %v4839_v2  ;;  %4829 = vset.pattern.permute.xlu0 (!%p263_p2), %v4839_v2  ;;  %307 = vst.msk [vmem:[#allocation2] sm:$0xff] (!%p263_p2), %vm306_vm0, %v4840_v3  ;;  %308 = vst.msk [vmem:[#allocation2 + $0x8] sm:$0xff] (!%p263_p2), %vm306_vm0, %v4840_v3  ;;  %v320_v5 = vld [vmem:[%s5674_s1 + $0x8] sm:$0xff] (!%p263_p2)  ;;  %vm381_vm1 = vcmask (!%p263_p2), 261120  }
   0x7   : > { %353 = vperm.xlu1 (!%p263_p2), %4830, %v347_v0   ;;  %325 = vperm.xlu0 (!%p263_p2), %4829, %v319_v1   ;;  %309 = vst.msk [vmem:[#allocation2 + $0x10] sm:$0xff] (!%p263_p2), %vm306_vm0, %v4840_v3  ;;  %310 = vst.msk [vmem:[#allocation2 + $0x18] sm:$0xff] (!%p263_p2), %vm306_vm0, %v4840_v3  ;;  %v322_v6 = vld [vmem:[%s5674_s1 + $0x18] sm:$0xff] (!%p263_p2)  ;;  %v321_v7 = vld [vmem:[%s5674_s1 + $0x10] sm:$0xff] (!%p263_p2)  ;;  %v4841_v56 = vmov (!%p263_p2), 0.0|0.0   ;;  %vm4842_vm2 = vmmov (!%p263_p2), 0  }
   0x8   : > { %v350_v10 = vld [vmem:[%s5675_s2 + $0x18] sm:$0xff] (!%p263_p2)  ;;  %v349_v11 = vld [vmem:[%s5675_s2 + $0x10] sm:$0xff] (!%p263_p2)  ;;  %v464_v12 = vld [vmem:[%s5677_s4 + $0x8] sm:$0xff] (!%p263_p2)  ;;  %4508 = vmatprep.subr.bf16.mxu1 (!%p263_p2), %v4841_v56  ;;  %4025 = vmatprep.mubr.msk.f32.mxu1 (!%p263_p2), %vm4842_vm2, %v4840_v3  ;;  %vm494_vm3 = vcmask (!%p263_p2), 130048  }
   0x9   : > { %v463_v13 = vld [vmem:[%s5677_s4] sm:$0xff] (!%p263_p2)  ;;  %v478_v16 = vld [vmem:[%s5678_s5 + $0x8] sm:$0xff] (!%p263_p2)  ;;  %v3674_v23 = vld [vmem:[%s5674_s1 + $0x38] sm:$0xff] (!%p263_p2) }
   0xa   : > { %v477_v17 = vld [vmem:[%s5678_s5] sm:$0xff] (!%p263_p2)  ;;  %v3672_v19 = vld [vmem:[%s5674_s1 + $0x28] sm:$0xff] (!%p263_p2)  ;;  %v3673_v24 = vld [vmem:[%s5674_s1 + $0x30] sm:$0xff] (!%p263_p2) }
   0xb   : > { %358 = vperm.xlu1 (!%p263_p2), %4830, %v348_v4   ;;  %330 = vperm.xlu0 (!%p263_p2), %4829, %v320_v5   ;;  %v379_v18 = vld [vmem:[%s5676_s3] sm:$0xff] (!%p263_p2)  ;;  %v3676_v21 = vld [vmem:[%s5675_s2 + $0x28] sm:$0xff] (!%p263_p2)  ;;  %v3678_v25 = vld [vmem:[%s5675_s2 + $0x38] sm:$0xff] (!%p263_p2) }
   0xc   : > { %v3671_v20 = vld [vmem:[%s5674_s1 + $0x20] sm:$0xff] (!%p263_p2)  ;;  %4018 = vmatprep.mubr.msk.f32.mxu0 (!%p263_p2), %vm381_vm1, %v379_v18  ;;  %v3677_v26 = vld [vmem:[%s5675_s2 + $0x30] sm:$0xff] (!%p263_p2)  ;;  %v3684_v27 = vld [vmem:[%s5677_s4 + $0x18] sm:$0xff] (!%p263_p2) }
   0xd   : > { %s5683_s28 = smov (!%p296_p3, %s3570_s28), 1  ;;  %v3675_v22 = vld [vmem:[%s5675_s2 + $0x20] sm:$0xff]  ;;  %v3683_v28 = vld [vmem:[%s5677_s4 + $0x10] sm:$0xff]  ;;  %v3686_v29 = vld [vmem:[%s5678_s5 + $0x18] sm:$0xff] }
   0xe   : > { %s3780_s15 = sshll.u32 %s5683_s28, 4  ;;  %s3781_s29 = sshll.u32 %s5683_s28, 5  ;;  %v3685_v30 = vld [vmem:[%s5678_s5 + $0x10] sm:$0xff]  ;;  %v5002_v40 = vld [vmem:[#allocation2 + $0x18] sm:$0xff]  ;;  %v380_v55 = vld [vmem:[%s5676_s3 + $0x8] sm:$0xff] }
   0xf   : > { %s300_s18 = scalar_lea.vmem %s5673_s0, %s3780_s15  ;;  %340 = vperm.xlu1 %4830, %v322_v6   ;;  %335 = vperm.xlu0 %4829, %v321_v7   ;;  %s4942_s14 = scalar_lea.vmem %s5681_s8, %s3781_s29  ;;  %v317_v42 = vld [vmem:[#allocation2 + $0x10] sm:$0xff]  ;;  %v3584_v57 = vld [vmem:[%s5680_s7 + $0x40] sm:$0xff]  ;;  %v3585_v58 = vld [vmem:[%s5680_s7 + $0x48] sm:$0xff] }
  0x10   : > { %v311_v8 = vld [vmem:[%s300_s18] sm:$0xff]  ;;  %v312_v9 = vld [vmem:[%s300_s18 + $0x8] sm:$0xff]  ;;  %v3586_v59 = vld [vmem:[%s5680_s7 + $0x50] sm:$0xff]  ;;  %v5024_v60 = vpack.c.bf16 %v3585_v58, %v3584_v57 }
  0x11   : > { %313 = vst.msk [vmem:[#allocation2] sm:$0xff] %vm306_vm0, %v311_v8  ;;  %314 = vst.msk [vmem:[#allocation2 + $0x8] sm:$0xff] %vm306_vm0, %v312_v9  ;;  %v3587_v61 = vld [vmem:[%s5680_s7 + $0x58] sm:$0xff]  ;;  %v3588_v63 = vld [vmem:[%s5680_s7 + $0x60] sm:$0xff] }
  0x12   : > { %v5030_v62 = vpack.c.bf16 %v3587_v61, %v3586_v59  ;;  %v3589_v0 = vld [vmem:[%s5680_s7 + $0x68] sm:$0xff]  ;;  %v493_v18 = vld [vmem:[%s5679_s6] sm:$0xff]  ;;  %v3598_v57 = vld [vmem:[%s5680_s7 + $0x90] sm:$0xff] }
  0x13   : > { %368 = vperm.xlu1 %4830, %v350_v10   ;;  %363 = vperm.xlu0 %4829, %v349_v11   ;;  %v5040_v1 = vpack.c.bf16 %v3589_v0, %v3588_v63  ;;  %v3599_v58 = vld [vmem:[%s5680_s7 + $0x98] sm:$0xff]  ;;  %v3600_v0 = vld [vmem:[%s5680_s7 + $0xa0] sm:$0xff] }
  0x14   : > { %v5183_v63 = vpack.c.bf16 %v3599_v58, %v3598_v57  ;;  %v3635_v57 = vld [vmem:[%s5680_s7 + $0x170] sm:$0xff]  ;;  %v3636_v58 = vld [vmem:[%s5680_s7 + $0x178] sm:$0xff] }
  0x17   : > { %472 = vperm.xlu1 %4830, %v464_v12   ;;  %467 = vperm.xlu0 %4829, %v463_v13  }
  0x18   : > { %v4944_v14 = vld [vmem:[#allocation2] sm:$0xff]  ;;  %v4946_v15 = vld [vmem:[#allocation2 + $0x8] sm:$0xff] }
  0x19   : > { %3511 = vst.msk [vmem:[%s4942_s14] sm:$0xff] %vm306_vm0, %v4944_v14  ;;  %3512 = vst.msk [vmem:[%s4942_s14 + $0x8] sm:$0xff] %vm306_vm0, %v4946_v15 }
  0x1b   : > { %486 = vperm.xlu1 %4830, %v478_v16   ;;  %481 = vperm.xlu0 %4829, %v477_v17  }
  0x1f   : > { %1929 = vperm.xlu1 %4830, %v3672_v19   ;;  %1924 = vperm.xlu0 %4829, %v3671_v20   ;;  %v3582_v19 = vld [vmem:[%s5679_s6 + $0x8] sm:$0xff]  ;;  %v3594_v20 = vld [vmem:[%s5679_s6 + $0x10] sm:$0xff] }
  0x23   : > { %1958 = vperm.xlu1 %4830, %v3676_v21   ;;  %1953 = vperm.xlu0 %4829, %v3675_v22   ;;  %v3605_v21 = vld [vmem:[%s5679_s6 + $0x18] sm:$0xff]  ;;  %v3616_v22 = vld [vmem:[%s5679_s6 + $0x20] sm:$0xff] }
  0x27   : > { %1939 = vperm.xlu1 %4830, %v3674_v23   ;;  %1934 = vperm.xlu0 %4829, %v3673_v24   ;;  %v3627_v23 = vld [vmem:[%s5679_s6 + $0x28] sm:$0xff]  ;;  %v3638_v24 = vld [vmem:[%s5679_s6 + $0x30] sm:$0xff] }
  0x2b   : > { %1968 = vperm.xlu1 %4830, %v3678_v25   ;;  %1963 = vperm.xlu0 %4829, %v3677_v26   ;;  %v3649_v25 = vld [vmem:[%s5679_s6 + $0x38] sm:$0xff]  ;;  %v3660_v26 = vld [vmem:[%s5679_s6 + $0x40] sm:$0xff] }
  0x2f   : > { %2073 = vperm.xlu1 %4830, %v3684_v27   ;;  %2068 = vperm.xlu0 %4829, %v3683_v28   ;;  %v3590_v27 = vld [vmem:[%s5680_s7 + $0x70] sm:$0xff]  ;;  %v3591_v28 = vld [vmem:[%s5680_s7 + $0x78] sm:$0xff] }
  0x33   : > { %2088 = vperm.xlu1 %4830, %v3686_v29   ;;  %2083 = vperm.xlu0 %4829, %v3685_v30   ;;  %v5114_v29 = vpack.c.bf16 %v3591_v28, %v3590_v27  ;;  %v568_v30 = vld [vmem:[%s5680_s7] sm:$0xff] }
  0x34   : > { %v3618_v28 = vld [vmem:[%s5680_s7 + $0x100] sm:$0xff] }
  0x86   : > { %v354_v31 = vpop.permute.xlu1 %353  ;;  %v326_v32 = vpop.permute.xlu0 %325 }
  0x87   : > { %v343_v33 = vmul.f32 %v326_v32, %v4944_v14 }
  0x89   : > { %v371_v36 = vadd.f32 %v354_v31, %v343_v33  ;;  %v569_v31 = vld [vmem:[%s5680_s7 + $0x8] sm:$0xff] }
  0x8a   : > { %v359_v34 = vpop.permute.xlu1 %358  ;;  %v331_v35 = vpop.permute.xlu0 %330 }
  0x8b   : > { %v344_v37 = vmul.f32 %v331_v35, %v4946_v15  ;;  %v375_v43 = vmax.f32 %v371_v36, 0.0  ;;  %v570_v35 = vld [vmem:[%s5680_s7 + $0x10] sm:$0xff]  ;;  %v571_v36 = vld [vmem:[%s5680_s7 + $0x18] sm:$0xff] }
  0x8d   : > { %v372_v38 = vadd.f32 %v359_v34, %v344_v37  ;;  %v5124_v34 = vpack.c.bf16 %v569_v31, %v568_v30  ;;  %v3619_v30 = vld [vmem:[%s5680_s7 + $0x108] sm:$0xff] }
  0x8e   : > { %v341_v39 = vpop.permute.xlu1 %340  ;;  %v336_v41 = vpop.permute.xlu0 %335  ;;  %v5264_v31 = vpack.c.bf16 %v3619_v30, %v3618_v28  ;;  %v3654_v28 = vld [vmem:[%s5680_s7 + $0x1d8] sm:$0xff] }
  0x8f   : > { %v376_v44 = vmax.f32 %v372_v38, 0.0  ;;  %v346_v45 = vmul.f32 %v341_v39, %v5002_v40  ;;  %v345_v46 = vmul.f32 %v336_v41, %v317_v42  ;;  %v5134_v39 = vpack.c.bf16 %v571_v36, %v570_v35  ;;  %v572_v41 = vld [vmem:[%s5680_s7 + $0x20] sm:$0xff]  ;;  %v573_v42 = vld [vmem:[%s5680_s7 + $0x28] sm:$0xff] }
  0x90   : > { %v3622_v36 = vld [vmem:[%s5680_s7 + $0x120] sm:$0xff] }
  0x91   : > { %v4500_v47 = vpack.c.bf16 %v376_v44, %v375_v43 }
  0x92   : > { %v369_v48 = vpop.permute.xlu1 %368  ;;  %v364_v49 = vpop.permute.xlu0 %363 }
  0x93   : > { %v374_v50 = vadd.f32 %v369_v48, %v346_v45  ;;  %v373_v51 = vadd.f32 %v364_v49, %v345_v46  ;;  %4501 = vmatprep.subr.bf16.mxu0 %v4500_v47  ;;  %v5146_v45 = vpack.c.bf16 %v573_v42, %v572_v41  ;;  %v574_v46 = vld [vmem:[%s5680_s7 + $0x30] sm:$0xff]  ;;  %v3625_v42 = vld [vmem:[%s5680_s7 + $0x138] sm:$0xff] }
  0x94   : > { %4503 = vmatpush3.bf16.msra.mxu0 %v4500_v47  ;;  %v575_v47 = vld [vmem:[%s5680_s7 + $0x38] sm:$0xff]  ;;  %v3624_v41 = vld [vmem:[%s5680_s7 + $0x130] sm:$0xff] }
  0x95   : > { %v378_v52 = vmax.f32 %v374_v50, 0.0  ;;  %v377_v53 = vmax.f32 %v373_v51, 0.0  ;;  %v5158_v50 = vpack.c.bf16 %v575_v47, %v574_v46  ;;  %v3596_v51 = vld [vmem:[%s5680_s7 + $0x80] sm:$0xff]  ;;  %v3630_v46 = vld [vmem:[%s5680_s7 + $0x148] sm:$0xff] }
  0x96   : > { %v473_v2 = vpop.permute.xlu1 %472  ;;  %v468_v4 = vpop.permute.xlu0 %467 }
  0x97   : > { %v4504_v54 = vpack.c.bf16 %v378_v52, %v377_v53  ;;  %v3597_v52 = vld [vmem:[%s5680_s7 + $0x88] sm:$0xff] }
  0x99   : > { %4505 = vmatprep.subr.bf16.mxu0 %v4504_v54 }
  0x9a   : > { %4507 = vmatpush3.bf16.msra.mxu0 %v4504_v54  ;;  %v487_v8 = vpop.permute.xlu1 %486  ;;  %v482_v10 = vpop.permute.xlu0 %481 }
  0x9b   : > { %4514 = vmatprep.subr.bf16.mxu0 %v4841_v56 }
  0x9d   : > { %4019 = vmatmul.mubr.msk.f32.vlgmr.msra.gmra.mrb[0].mxu0 %vm381_vm1, %v380_v55  ;;  %v5170_v55 = vpack.c.bf16 %v3597_v52, %v3596_v51  ;;  %v3633_v52 = vld [vmem:[%s5680_s7 + $0x160] sm:$0xff] }
  0x9e   : > { %4051 = vmatprep.mubr.msk.f32.mxu0 %vm4842_vm2, %v4840_v3  ;;  %4516 = vmatpush3.bf16.msra.mxu0 %v5024_v60 }
  0x9f   : > { %4517 = vmatprep.subr.bf16.mxu0 %v4841_v56 }
  0xa2   : > { %4519 = vmatpush3.bf16.msra.mxu0 %v5030_v62 }
  0xa3   : > { %4520 = vmatprep.subr.bf16.mxu0 %v4841_v56 }
  0xa6   : > { %4522 = vmatpush3.bf16.msra.mxu0 %v5040_v1 }
  0xa7   : > { %4523 = vmatprep.subr.bf16.mxu0 %v4841_v56 }
  0xaa   : > { %4525 = vmatpush3.bf16.msra.mxu0 %v5114_v29 }
  0xab   : > { %4526 = vmatprep.subr.bf16.mxu0 %v4841_v56 }
 0x170   : > { %v4020_v5 = vpop.f32.mrb[0].mxu0 }
 0x171   : > { %v476_v6 = vmul.f32 %v4020_v5, %v473_v2  ;;  %v454_v7 = vpop.f32.mrb[1].mxu0  ;;  %v3601_v2 = vld [vmem:[%s5680_s7 + $0xa8] sm:$0xff] }
 0x172   : > { %v475_v9 = vmul.f32 %v468_v4, %v454_v7  ;;  %v3602_v7 = vld [vmem:[%s5680_s7 + $0xb0] sm:$0xff] }
 0x173   : > { %v490_v11 = vadd.f32 %v487_v8, %v476_v6  ;;  %v5197_v6 = vpack.c.bf16 %v3601_v2, %v3600_v0  ;;  %v3603_v8 = vld [vmem:[%s5680_s7 + $0xb8] sm:$0xff]  ;;  %v3640_v0 = vld [vmem:[%s5680_s7 + $0x180] sm:$0xff]  ;;  %v3641_v2 = vld [vmem:[%s5680_s7 + $0x188] sm:$0xff] }
 0x174   : > { %v489_v12 = vadd.f32 %v482_v10, %v475_v9 }
 0x175   : > { %v492_v13 = vmax.f32 %v490_v11, 0.0  ;;  %v5209_v11 = vpack.c.bf16 %v3603_v8, %v3602_v7  ;;  %v3642_v7 = vld [vmem:[%s5680_s7 + $0x190] sm:$0xff]  ;;  %v3643_v8 = vld [vmem:[%s5680_s7 + $0x198] sm:$0xff] }
 0x176   : > { %v491_v16 = vmax.f32 %v489_v12, 0.0  ;;  %v3607_v12 = vld [vmem:[%s5680_s7 + $0xc0] sm:$0xff] }
 0x178   : > { %v4509_v17 = vpack.c.bf16 %v492_v13, %v491_v16  ;;  %v3608_v13 = vld [vmem:[%s5680_s7 + $0xc8] sm:$0xff] }
 0x17a   : > { %4510 = vmatpush3.bf16.msra.mxu1 %v4509_v17 }
 0x17b   : > { %4511 = vmatprep.subr.bf16.mxu1 %v4841_v56 }
 0x17d   : > { %4026 = vmatmul.mubr.msk.f32.vlgmr.msra.gmra.mrb[0].mxu1 %vm494_vm3, %v493_v18  ;;  %v5221_v18 = vpack.c.bf16 %v3608_v13, %v3607_v12  ;;  %v3644_v12 = vld [vmem:[%s5680_s7 + $0x1a0] sm:$0xff]  ;;  %v3645_v13 = vld [vmem:[%s5680_s7 + $0x1a8] sm:$0xff] }
 0x17e   : > { %4513 = vmatpush3.bf16.msra.mxu1 %v4509_v17  ;;  %4032 = vmatprep.mubr.msk.f32.mxu1 %vm4842_vm2, %v4840_v3 }
 0x17f   : > { %4538 = vmatprep.subr.bf16.mxu1 %v4841_v56 }
 0x181   : > { %4033 = vmatmul.mubr.msk.f32.vlgmr.msra.gmra.mrb[2].mxu1 %vm494_vm3, %v3582_v19  ;;  %v3609_v19 = vld [vmem:[%s5680_s7 + $0xd0] sm:$0xff] }
 0x182   : > { %4540 = vmatpush3.bf16.msra.mxu1 %v4509_v17  ;;  %4077 = vmatprep.mubr.msk.f32.mxu1 %vm4842_vm2, %v4840_v3 }
 0x183   : > { %4553 = vmatprep.subr.bf16.mxu1 %v4841_v56 }
 0x185   : > { %4078 = vmatmul.mubr.msk.f32.vlgmr.msra.gmra.mrb[4].mxu1 %vm494_vm3, %v3594_v20  ;;  %v3610_v20 = vld [vmem:[%s5680_s7 + $0xd8] sm:$0xff] }
 0x186   : > { %4555 = vmatpush3.bf16.msra.mxu1 %v4509_v17  ;;  %4103 = vmatprep.mubr.msk.f32.mxu1 %vm4842_vm2, %v4840_v3 }
 0x187   : > { %4568 = vmatprep.subr.bf16.mxu1 %v4841_v56 }
 0x189   : > { %4104 = vmatmul.mubr.msk.f32.vlgmr.msra.gmra.mrb[6].mxu1 %vm494_vm3, %v3605_v21  ;;  %v5232_v21 = vpack.c.bf16 %v3610_v20, %v3609_v19  ;;  %v3647_v19 = vld [vmem:[%s5680_s7 + $0x1b8] sm:$0xff] }
 0x18a   : > { %4570 = vmatpush3.bf16.msra.mxu1 %v4509_v17  ;;  %4129 = vmatprep.mubr.msk.f32.mxu1 %vm4842_vm2, %v4840_v3 }
 0x18b   : > { %4583 = vmatprep.subr.bf16.mxu1 %v4841_v56 }
 0x18d   : > { %4130 = vmatmul.mubr.msk.f32.vlgmr.msra.gmra.mrb[8].mxu1 %vm494_vm3, %v3616_v22  ;;  %v3611_v22 = vld [vmem:[%s5680_s7 + $0xe0] sm:$0xff] }
 0x18e   : > { %4585 = vmatpush3.bf16.msra.mxu1 %v4509_v17  ;;  %4155 = vmatprep.mubr.msk.f32.mxu1 %vm4842_vm2, %v4840_v3 }
 0x18f   : > { %4598 = vmatprep.subr.bf16.mxu1 %v4841_v56 }
 0x191   : > { %4156 = vmatmul.mubr.msk.f32.vlgmr.msra.gmra.mrb[10].mxu1 %vm494_vm3, %v3627_v23  ;;  %v3612_v23 = vld [vmem:[%s5680_s7 + $0xe8] sm:$0xff] }
 0x192   : > { %4600 = vmatpush3.bf16.msra.mxu1 %v4509_v17  ;;  %4181 = vmatprep.mubr.msk.f32.mxu1 %vm4842_vm2, %v4840_v3 }
 0x193   : > { %4613 = vmatprep.subr.bf16.mxu1 %v4841_v56 }
 0x195   : > { %4182 = vmatmul.mubr.msk.f32.vlgmr.msra.gmra.mrb[12].mxu1 %vm494_vm3, %v3638_v24  ;;  %v5244_v24 = vpack.c.bf16 %v3612_v23, %v3611_v22  ;;  %v3651_v22 = vld [vmem:[%s5680_s7 + $0x1c0] sm:$0xff]  ;;  %v3652_v23 = vld [vmem:[%s5680_s7 + $0x1c8] sm:$0xff] }
 0x196   : > { %4615 = vmatpush3.bf16.msra.mxu1 %v4509_v17  ;;  %4207 = vmatprep.mubr.msk.f32.mxu1 %vm4842_vm2, %v4840_v3 }
 0x197   : > { %4628 = vmatprep.subr.bf16.mxu1 %v4841_v56 }
 0x199   : > { %4208 = vmatmul.mubr.msk.f32.vlgmr.msra.gmra.mrb[14].mxu1 %vm494_vm3, %v3649_v25  ;;  %v3613_v25 = vld [vmem:[%s5680_s7 + $0xf0] sm:$0xff] }
 0x19a   : > { %4630 = vmatpush3.bf16.msra.mxu1 %v4509_v17  ;;  %4233 = vmatprep.mubr.msk.f32.mxu1 %vm4842_vm2, %v4840_v3 }
 0x19b   : > { %4651 = vmatprep.subr.bf16.mxu1 %v4841_v56 }
 0x19d   : > { %4234 = vmatmul.mubr.msk.f32.vlgmr.msra.gmra.mrb[16].mxu1 %vm494_vm3, %v3660_v26  ;;  %v3614_v26 = vld [vmem:[%s5680_s7 + $0xf8] sm:$0xff] }
 0x19e   : > { %4270 = vmatprep.mubr.msk.f32.mxu1 %vm4842_vm2, %v4840_v3  ;;  %v5254_v27 = vpack.c.bf16 %v3614_v26, %v3613_v25  ;;  %v5396_v25 = vpack.c.bf16 %v3652_v23, %v3651_v22  ;;  %v3653_v26 = vld [vmem:[%s5680_s7 + $0x1d0] sm:$0xff] }
 0x19f   : > { %v5408_v30 = vpack.c.bf16 %v3654_v28, %v3653_v26  ;;  %v3679_v28 = vld [vmem:[%s5676_s3 + $0x10] sm:$0xff] }
 0x250   : > { %v564_v32 = vpop.f32.mrb[0].mxu1 }
 0x251   : > { %v4027_v33 = vpop.f32.mrb[1].mxu1 }
 0x252   : > { %v3621_v33 = vld [vmem:[%s5680_s7 + $0x118] sm:$0xff] }
 0x254   : > { %v647_v37 = vpop.f32.mrb[2].mxu1 }
 0x255   : > { %v4034_v38 = vpop.f32.mrb[3].mxu1  ;;  %4052 = vmatmul.mubr.msk.f32.vlgmr.msra.gmra.mrb[2].mxu0 %vm306_vm0, %v647_v37  ;;  %v3623_v37 = vld [vmem:[%s5680_s7 + $0x128] sm:$0xff] }
 0x256   : > { %4528 = vmatpush3.bf16.msra.mxu0 %v5124_v34  ;;  %4070 = vmatprep.mubr.msk.f32.mxu0 %vm4842_vm2, %v4840_v3  ;;  %v5288_v38 = vpack.c.bf16 %v3623_v37, %v3622_v36  ;;  %v3657_v36 = vld [vmem:[%s5680_s7 + $0x1f0] sm:$0xff]  ;;  %v3658_v37 = vld [vmem:[%s5680_s7 + $0x1f8] sm:$0xff] }
 0x257   : > { %4529 = vmatprep.subr.bf16.mxu0 %v4841_v56 }
 0x258   : > { %v877_v43 = vpop.f32.mrb[4].mxu1 }
 0x259   : > { %v4079_v44 = vpop.f32.mrb[5].mxu1 }
 0x25a   : > { %4531 = vmatpush3.bf16.msra.mxu0 %v5134_v39  ;;  %v3629_v44 = vld [vmem:[%s5680_s7 + $0x140] sm:$0xff] }
 0x25b   : > { %4532 = vmatprep.subr.bf16.mxu0 %v4841_v56  ;;  %v5308_v47 = vpack.c.bf16 %v3630_v46, %v3629_v44  ;;  %v3663_v44 = vld [vmem:[%s5680_s7 + $0x208] sm:$0xff]  ;;  %v1930_v46 = vpop.permute.xlu1 %1929 }
 0x25c   : > { %v5155_v48 = vpop.f32.mrb[6].mxu1 }
 0x25d   : > { %v4105_v49 = vpop.f32.mrb[7].mxu1 }
 0x25e   : > { %4534 = vmatpush3.bf16.msra.mxu0 %v5146_v45  ;;  %v3632_v49 = vld [vmem:[%s5680_s7 + $0x158] sm:$0xff] }
 0x25f   : > { %4535 = vmatprep.subr.bf16.mxu0 %v4841_v56 }
 0x260   : > { %v5167_v53 = vpop.f32.mrb[8].mxu1 }
 0x261   : > { %v4131_v54 = vpop.f32.mrb[9].mxu1 }
 0x262   : > { %4537 = vmatpush3.bf16.msra.mxu0 %v5158_v50  ;;  %v3634_v54 = vld [vmem:[%s5680_s7 + $0x168] sm:$0xff] }
 0x263   : > { %4541 = vmatprep.subr.bf16.mxu0 %v4841_v56 }
 0x264   : > { %v5179_v59 = vpop.f32.mrb[10].mxu1 }
 0x265   : > { %4071 = vmatmul.mubr.msk.f32.vlgmr.msra.gmra.mrb[2].mxu0 %vm306_vm0, %v564_v32  ;;  %v4157_v61 = vpop.f32.mrb[11].mxu1  ;;  %v3620_v32 = vld [vmem:[%s5680_s7 + $0x110] sm:$0xff] }
 0x266   : > { %4543 = vmatpush3.bf16.msra.mxu0 %v5170_v55  ;;  %4096 = vmatprep.mubr.msk.f32.mxu0 %vm4842_vm2, %v4840_v3  ;;  %v5276_v35 = vpack.c.bf16 %v3621_v33, %v3620_v32  ;;  %v5342_v61 = vpack.c.bf16 %v3636_v58, %v3635_v57  ;;  %v3655_v32 = vld [vmem:[%s5680_s7 + $0x1e0] sm:$0xff]  ;;  %v3656_v33 = vld [vmem:[%s5680_s7 + $0x1e8] sm:$0xff]  ;;  %v1959_v57 = vpop.permute.xlu1 %1958 }
 0x267   : > { %4544 = vmatprep.subr.bf16.mxu0 %v4841_v56 }
 0x268   : > { %v5194_v4 = vpop.f32.mrb[12].mxu1 }
 0x269   : > { %v4183_v5 = vpop.f32.mrb[13].mxu1 }
 0x26a   : > { %4546 = vmatpush3.bf16.msra.mxu0 %v5183_v63  ;;  %v5352_v5 = vpack.c.bf16 %v3641_v2, %v3640_v0  ;;  %v1943_v2 = vmul.f32 %v1930_v46, %v4946_v15  ;;  %v3669_v15 = vld [vmem:[%s5680_s7 + $0x238] sm:$0xff] }
 0x26b   : > { %4547 = vmatprep.subr.bf16.mxu0 %v4841_v56 }
 0x26c   : > { %v5206_v9 = vpop.f32.mrb[14].mxu1 }
 0x26d   : > { %v4209_v10 = vpop.f32.mrb[15].mxu1 }
 0x26e   : > { %4549 = vmatpush3.bf16.msra.mxu0 %v5197_v6  ;;  %v5364_v10 = vpack.c.bf16 %v3643_v8, %v3642_v7  ;;  %v3666_v8 = vld [vmem:[%s5680_s7 + $0x220] sm:$0xff] }
 0x26f   : > { %4550 = vmatprep.subr.bf16.mxu0 %v4841_v56 }
 0x270   : > { %v5218_v16 = vpop.f32.mrb[16].mxu1 }
 0x271   : > { %v4235_v17 = vpop.f32.mrb[17].mxu1 }
 0x272   : > { %4552 = vmatpush3.bf16.msra.mxu0 %v5209_v11  ;;  %v3646_v17 = vld [vmem:[%s5680_s7 + $0x1b0] sm:$0xff] }
 0x273   : > { %4556 = vmatprep.subr.bf16.mxu0 %v4841_v56  ;;  %v5386_v20 = vpack.c.bf16 %v3647_v19, %v3646_v17 }
 0x275   : > { %4097 = vmatmul.mubr.msk.f32.vlgmr.msra.gmra.mrb[2].mxu0 %vm306_vm0, %v877_v43  ;;  %v5298_v43 = vpack.c.bf16 %v3625_v42, %v3624_v41  ;;  %v5430_v41 = vpack.c.bf16 %v3658_v37, %v3657_v36  ;;  %v3662_v42 = vld [vmem:[%s5680_s7 + $0x200] sm:$0xff] }
 0x276   : > { %4558 = vmatpush3.bf16.msra.mxu0 %v5221_v18  ;;  %4122 = vmatprep.mubr.msk.f32.mxu0 %vm4842_vm2, %v4840_v3 }
 0x277   : > { %4559 = vmatprep.subr.bf16.mxu0 %v4841_v56 }
 0x27a   : > { %4561 = vmatpush3.bf16.msra.mxu0 %v5232_v21 }
 0x27b   : > { %4562 = vmatprep.subr.bf16.mxu0 %v4841_v56 }
 0x27e   : > { %4564 = vmatpush3.bf16.msra.mxu0 %v5244_v24 }
 0x27f   : > { %4565 = vmatprep.subr.bf16.mxu0 %v4841_v56 }
 0x282   : > { %4567 = vmatpush3.bf16.msra.mxu0 %v5254_v27 }
 0x283   : > { %4571 = vmatprep.subr.bf16.mxu0 %v4841_v56 }
 0x285   : > { %4123 = vmatmul.mubr.msk.f32.vlgmr.msra.gmra.mrb[2].mxu0 %vm306_vm0, %v5155_v48  ;;  %v3631_v48 = vld [vmem:[%s5680_s7 + $0x150] sm:$0xff] }
 0x286   : > { %4573 = vmatpush3.bf16.msra.mxu0 %v5264_v31  ;;  %4148 = vmatprep.mubr.msk.f32.mxu0 %vm4842_vm2, %v4840_v3  ;;  %v5320_v51 = vpack.c.bf16 %v3632_v49, %v3631_v48  ;;  %v1925_v48 = vpop.permute.xlu0 %1924  ;;  %v5440_v49 = vpack.c.bf16 %v3663_v44, %v3662_v42 }
 0x287   : > { %4574 = vmatprep.subr.bf16.mxu0 %v4841_v56  ;;  %v1942_v7 = vmul.f32 %v1925_v48, %v4944_v14  ;;  %v3668_v14 = vld [vmem:[%s5680_s7 + $0x230] sm:$0xff] }
 0x288   : > { %v5476_v23 = vpack.c.bf16 %v3669_v15, %v3668_v14 }
 0x28a   : > { %4576 = vmatpush3.bf16.msra.mxu0 %v5276_v35  ;;  %v1954_v58 = vpop.permute.xlu0 %1953 }
 0x28b   : > { %4577 = vmatprep.subr.bf16.mxu0 %v4841_v56 }
 0x28e   : > { %4579 = vmatpush3.bf16.msra.mxu0 %v5288_v38  ;;  %v1935_v37 = vpop.permute.xlu0 %1934 }
 0x28f   : > { %4580 = vmatprep.subr.bf16.mxu0 %v4841_v56 }
 0x292   : > { %4582 = vmatpush3.bf16.msra.mxu0 %v5298_v43 }
 0x293   : > { %4586 = vmatprep.subr.bf16.mxu0 %v4841_v56 }
 0x295   : > { %4149 = vmatmul.mubr.msk.f32.vlgmr.msra.gmra.mrb[2].mxu0 %vm306_vm0, %v5167_v53  ;;  %v5332_v53 = vpack.c.bf16 %v3634_v54, %v3633_v52  ;;  %v3664_v52 = vld [vmem:[%s5680_s7 + $0x210] sm:$0xff]  ;;  %v3665_v54 = vld [vmem:[%s5680_s7 + $0x218] sm:$0xff] }
 0x296   : > { %4588 = vmatpush3.bf16.msra.mxu0 %v5308_v47  ;;  %4174 = vmatprep.mubr.msk.f32.mxu0 %vm4842_vm2, %v4840_v3  ;;  %v5452_v0 = vpack.c.bf16 %v3665_v54, %v3664_v52  ;;  %v1964_v52 = vpop.permute.xlu0 %1963 }
 0x297   : > { %4589 = vmatprep.subr.bf16.mxu0 %v4841_v56 }
 0x29a   : > { %4591 = vmatpush3.bf16.msra.mxu0 %v5320_v51 }
 0x29b   : > { %4592 = vmatprep.subr.bf16.mxu0 %v4841_v56 }
 0x29e   : > { %4594 = vmatpush3.bf16.msra.mxu0 %v5332_v53 }
 0x29f   : > { %4595 = vmatprep.subr.bf16.mxu0 %v4841_v56 }
 0x2a2   : > { %4597 = vmatpush3.bf16.msra.mxu0 %v5342_v61 }
 0x2a3   : > { %4601 = vmatprep.subr.bf16.mxu0 %v4841_v56 }
 0x2a5   : > { %4175 = vmatmul.mubr.msk.f32.vlgmr.msra.gmra.mrb[2].mxu0 %vm306_vm0, %v5179_v59  ;;  %v5376_v59 = vpack.c.bf16 %v3645_v13, %v3644_v12  ;;  %v1972_v12 = vadd.f32 %v1959_v57, %v1943_v2  ;;  %v1971_v13 = vadd.f32 %v1954_v58, %v1942_v7  ;;  %v3680_v7 = vld [vmem:[%s5676_s3 + $0x18] sm:$0xff] }
 0x2a6   : > { %4603 = vmatpush3.bf16.msra.mxu0 %v5352_v5  ;;  %4200 = vmatprep.mubr.msk.f32.mxu0 %vm4842_vm2, %v4840_v3 }
 0x2a7   : > { %4604 = vmatprep.subr.bf16.mxu0 %v4841_v56  ;;  %v1976_v19 = vmax.f32 %v1972_v12, 0.0  ;;  %v1975_v22 = vmax.f32 %v1971_v13, 0.0 }
 0x2a9   : > { %v4643_v26 = vpack.c.bf16 %v1976_v19, %v1975_v22 }
 0x2aa   : > { %4606 = vmatpush3.bf16.msra.mxu0 %v5364_v10 }
 0x2ab   : > { %4607 = vmatprep.subr.bf16.mxu0 %v4841_v56 }
 0x2ae   : > { %4609 = vmatpush3.bf16.msra.mxu0 %v5376_v59 }
 0x2af   : > { %4610 = vmatprep.subr.bf16.mxu0 %v4841_v56 }
 0x2b2   : > { %4612 = vmatpush3.bf16.msra.mxu0 %v5386_v20 }
 0x2b3   : > { %4616 = vmatprep.subr.bf16.mxu0 %v4841_v56 }
 0x2b5   : > { %4201 = vmatmul.mubr.msk.f32.vlgmr.msra.gmra.mrb[2].mxu0 %vm306_vm0, %v5194_v4  ;;  %v5420_v4 = vpack.c.bf16 %v3656_v33, %v3655_v32  ;;  %v1940_v32 = vpop.permute.xlu1 %1939 }
 0x2b6   : > { %4618 = vmatpush3.bf16.msra.mxu0 %v5396_v25  ;;  %4226 = vmatprep.mubr.msk.f32.mxu0 %vm4842_vm2, %v4840_v3  ;;  %v1945_v44 = vmul.f32 %v1940_v32, %v5002_v40 }
 0x2b7   : > { %4619 = vmatprep.subr.bf16.mxu0 %v4841_v56 }
 0x2b9   : > { %v1969_v42 = vpop.permute.xlu1 %1968 }
 0x2ba   : > { %4621 = vmatpush3.bf16.msra.mxu0 %v5408_v30  ;;  %v1974_v48 = vadd.f32 %v1969_v42, %v1945_v44 }
 0x2bb   : > { %4622 = vmatprep.subr.bf16.mxu0 %v4841_v56 }
 0x2bc   : > { %v1978_v57 = vmax.f32 %v1974_v48, 0.0 }
 0x2bd   : > { %v2074_v40 = vpop.permute.xlu1 %2073 }
 0x2be   : > { %4624 = vmatpush3.bf16.msra.mxu0 %v5420_v4 }
 0x2bf   : > { %4625 = vmatprep.subr.bf16.mxu0 %v4841_v56 }
 0x2c1   : > { %v2089_v13 = vpop.permute.xlu1 %2088 }
 0x2c2   : > { %4627 = vmatpush3.bf16.msra.mxu0 %v5430_v41 }
 0x2c3   : > { %4631 = vmatprep.subr.bf16.mxu0 %v4841_v56 }
 0x2c5   : > { %4227 = vmatmul.mubr.msk.f32.vlgmr.msra.gmra.mrb[2].mxu0 %vm306_vm0, %v5206_v9  ;;  %v3667_v9 = vld [vmem:[%s5680_s7 + $0x228] sm:$0xff] }
 0x2c6   : > { %4633 = vmatpush3.bf16.msra.mxu0 %v5440_v49  ;;  %4252 = vmatprep.mubr.msk.f32.mxu0 %vm4842_vm2, %v4840_v3  ;;  %v5466_v17 = vpack.c.bf16 %v3667_v9, %v3666_v8  ;;  %v2069_v8 = vpop.permute.xlu0 %2068 }
 0x2c7   : > { %4634 = vmatprep.subr.bf16.mxu0 %v4841_v56 }
 0x2ca   : > { %4636 = vmatpush3.bf16.msra.mxu0 %v5452_v0  ;;  %v2084_v15 = vpop.permute.xlu0 %2083 }
 0x2cb   : > { %4637 = vmatprep.subr.bf16.mxu0 %v4841_v56 }
 0x2ce   : > { %4639 = vmatpush3.bf16.msra.mxu0 %v5466_v17 }
 0x2cf   : > { %4640 = vmatprep.subr.bf16.mxu0 %v4841_v56 }
 0x2d2   : > { %4642 = vmatpush3.bf16.msra.mxu0 %v5476_v23 }
 0x2d3   : > { %4644 = vmatprep.subr.bf16.mxu0 %v4643_v26 }
 0x2d5   : > { %4253 = vmatmul.mubr.msk.f32.vlgmr.msra.gmra.mrb[2].mxu0 %vm306_vm0, %v5218_v16 }
 0x2d6   : > { %4646 = vmatpush3.bf16.msra.mxu0 %v4643_v26  ;;  %4263 = vmatprep.mubr.msk.f32.mxu0 %vm381_vm1, %v3679_v28 }
 0x3a8   : > { %v1907_v33 = vpop.f32.mrb[2].mxu0 }
 0x3a9   : > { %1912 = vst.msk [vmem:[#allocation2 + $0x10] sm:$0xff] %vm306_vm0, %v1907_v33  ;;  %v4254_v36 = vpop.f32.mrb[3].mxu0 }
 0x3aa   : > { %v3756_v36 = vld [vmem:[%s5679_s6 + $0x80] sm:$0xff] }
 0x3b0   : > { %v3509_v46 = vld [vmem:[#allocation2 + $0x10] sm:$0xff] }
 0x3b1   : > { %3513 = vst.msk [vmem:[%s4942_s14 + $0x10] sm:$0xff] %vm306_vm0, %v3509_v46  ;;  %v1944_v16 = vmul.f32 %v3509_v46, %v1935_v37 }
 0x3b3   : > { %v1973_v54 = vadd.f32 %v1964_v52, %v1944_v16 }
 0x3b5   : > { %v1977_v58 = vmax.f32 %v1973_v54, 0.0 }
 0x3b7   : > { %v4647_v2 = vpack.c.bf16 %v1978_v57, %v1977_v58 }
 0x3b9   : > { %4648 = vmatprep.subr.bf16.mxu0 %v4647_v2 }
 0x3ba   : > { %4650 = vmatpush3.bf16.msra.mxu0 %v4647_v2 }
 0x3bb   : > { %4657 = vmatprep.subr.bf16.mxu0 %v4841_v56 }
 0x3bd   : > { %4264 = vmatmul.mubr.msk.f32.vlgmr.msra.gmra.mrb[4].mxu0 %vm381_vm1, %v3680_v7 }
 0x3be   : > { %4659 = vmatpush3.bf16.msra.mxu0 %v5024_v60  ;;  %4296 = vmatprep.mubr.msk.f32.mxu0 %vm4842_vm2, %v4840_v3 }
 0x3bf   : > { %4660 = vmatprep.subr.bf16.mxu0 %v4841_v56 }
 0x3c2   : > { %4662 = vmatpush3.bf16.msra.mxu0 %v5030_v62 }
 0x3c3   : > { %4663 = vmatprep.subr.bf16.mxu0 %v4841_v56 }
 0x3c6   : > { %4665 = vmatpush3.bf16.msra.mxu0 %v5040_v1  ;;  %v3687_v1 = vld [vmem:[%s5679_s6 + $0x48] sm:$0xff] }
 0x3c7   : > { %4666 = vmatprep.subr.bf16.mxu0 %v4841_v56 }
 0x3ca   : > { %4668 = vmatpush3.bf16.msra.mxu0 %v5114_v29  ;;  %v3689_v29 = vld [vmem:[%s5679_s6 + $0x50] sm:$0xff] }
 0x3cb   : > { %4741 = vmatprep.subr.bf16.mxu0 %v4841_v56 }
 0x490   : > { %v4265_v60 = vpop.f32.mrb[4].mxu0 }
 0x491   : > { %v2077_v9 = vmul.f32 %v4265_v60, %v2074_v40  ;;  %v2054_v12 = vpop.f32.mrb[5].mxu0 }
 0x492   : > { %v2076_v14 = vmul.f32 %v2069_v8, %v2054_v12 }
 0x493   : > { %v2092_v19 = vadd.f32 %v2089_v13, %v2077_v9 }
 0x494   : > { %v2091_v62 = vadd.f32 %v2084_v15, %v2076_v14 }
 0x495   : > { %v2094_v22 = vmax.f32 %v2092_v19, 0.0 }
 0x496   : > { %v2093_v26 = vmax.f32 %v2091_v62, 0.0 }
 0x498   : > { %v5505_v28 = vpack.c.bf16 %v2094_v22, %v2093_v26 }
 0x49a   : > { %4653 = vmatpush3.bf16.msra.mxu1 %v5505_v28 }
 0x49b   : > { %4654 = vmatprep.subr.bf16.mxu1 %v4841_v56 }
 0x49d   : > { %4271 = vmatmul.mubr.msk.f32.vlgmr.msra.gmra.mrb[18].mxu1 %vm494_vm3, %v3687_v1 }
 0x49e   : > { %4656 = vmatpush3.bf16.msra.mxu1 %v5505_v28  ;;  %4277 = vmatprep.mubr.msk.f32.mxu1 %vm4842_vm2, %v4840_v3 }
 0x49f   : > { %4669 = vmatprep.subr.bf16.mxu1 %v4841_v56 }
 0x4a1   : > { %4278 = vmatmul.mubr.msk.f32.vlgmr.msra.gmra.mrb[20].mxu1 %vm494_vm3, %v3689_v29 }
 0x4a2   : > { %4671 = vmatpush3.bf16.msra.mxu1 %v5124_v34  ;;  %4315 = vmatprep.mubr.msk.f32.mxu1 %vm4842_vm2, %v4840_v3  ;;  %v3701_v34 = vld [vmem:[%s5679_s6 + $0x58] sm:$0xff] }
 0x4a3   : > { %4672 = vmatprep.subr.bf16.mxu1 %v4841_v56 }
 0x4a6   : > { %4674 = vmatpush3.bf16.msra.mxu1 %v5134_v39 }
 0x4a7   : > { %4675 = vmatprep.subr.bf16.mxu1 %v4841_v56 }
 0x4aa   : > { %4677 = vmatpush3.bf16.msra.mxu1 %v5146_v45 }
 0x4ab   : > { %4678 = vmatprep.subr.bf16.mxu1 %v4841_v56 }
 0x4ae   : > { %4680 = vmatpush3.bf16.msra.mxu1 %v5158_v50  ;;  %v3745_v50 = vld [vmem:[%s5679_s6 + $0x78] sm:$0xff] }
 0x4af   : > { %4681 = vmatprep.subr.bf16.mxu1 %v4841_v56 }
 0x570   : > { %v2166_v32 = vpop.f32.mrb[18].mxu1 }
 0x571   : > { %v4272_v33 = vpop.f32.mrb[19].mxu1  ;;  %4316 = vmatmul.mubr.msk.f32.vlgmr.msra.gmra.mrb[22].mxu1 %vm306_vm0, %v2166_v32 }
 0x572   : > { %4683 = vmatpush3.bf16.msra.mxu1 %v5505_v28  ;;  %4322 = vmatprep.mubr.msk.f32.mxu1 %vm4842_vm2, %v4840_v3 }
 0x573   : > { %4684 = vmatprep.subr.bf16.mxu1 %v4841_v56 }
 0x574   : > { %v2249_v39 = vpop.f32.mrb[20].mxu1 }
 0x575   : > { %4297 = vmatmul.mubr.msk.f32.vlgmr.msra.gmra.mrb[6].mxu0 %vm306_vm0, %v2249_v39  ;;  %4323 = vmatmul.mubr.msk.f32.vlgmr.msra.gmra.mrb[24].mxu1 %vm494_vm3, %v3701_v34  ;;  %v4279_v45 = vpop.f32.mrb[21].mxu1 }
 0x576   : > { %4743 = vmatpush3.bf16.msra.mxu0 %v5505_v28  ;;  %4426 = vmatprep.mubr.msk.f32.mxu0 %vm4842_vm2, %v4840_v3 }
 0x577   : > { %4756 = vmatprep.subr.bf16.mxu0 %v4841_v56  ;;  %4686 = vmatpush3.bf16.msra.mxu1 %v5170_v55 }
 0x578   : > { %4687 = vmatprep.subr.bf16.mxu1 %v4841_v56  ;;  %4341 = vmatprep.mubr.msk.f32.mxu1 %vm4842_vm2, %v4840_v3 }
 0x579   : > { %4427 = vmatmul.mubr.msk.f32.vlgmr.msra.gmra.mrb[8].mxu0 %vm494_vm3, %v3745_v50 }
 0x57a   : > { %4758 = vmatpush3.bf16.msra.mxu0 %v5505_v28  ;;  %4452 = vmatprep.mubr.msk.f32.mxu0 %vm4842_vm2, %v4840_v3 }
 0x57b   : > { %4771 = vmatprep.subr.bf16.mxu0 %v4841_v56  ;;  %4689 = vmatpush3.bf16.msra.mxu1 %v5183_v63 }
 0x57c   : > { %4690 = vmatprep.subr.bf16.mxu1 %v4841_v56 }
 0x57d   : > { %4453 = vmatmul.mubr.msk.f32.vlgmr.msra.gmra.mrb[10].mxu0 %vm494_vm3, %v3756_v36 }
 0x57e   : > { %4773 = vmatpush3.bf16.msra.mxu0 %v5505_v28  ;;  %4478 = vmatprep.mubr.msk.f32.mxu0 %vm4842_vm2, %v4840_v3 }
 0x57f   : > { %4692 = vmatpush3.bf16.msra.mxu1 %v5197_v6  ;;  %v3712_v6 = vld [vmem:[%s5679_s6 + $0x60] sm:$0xff] }
 0x580   : > { %4693 = vmatprep.subr.bf16.mxu1 %v4841_v56 }
 0x583   : > { %4695 = vmatpush3.bf16.msra.mxu1 %v5209_v11 }
 0x584   : > { %4696 = vmatprep.subr.bf16.mxu1 %v4841_v56 }
 0x648   : > { %v2478_v55 = vpop.f32.mrb[24].mxu1  ;;  %v5570_v37 = vpop.f32.mrb[6].mxu0 }
 0x649   : > { %v4324_v63 = vpop.f32.mrb[25].mxu1  ;;  %4342 = vmatmul.mubr.msk.f32.vlgmr.msra.gmra.mrb[22].mxu1 %vm306_vm0, %v2478_v55  ;;  %v4298_v42 = vpop.f32.mrb[7].mxu0 }
 0x64a   : > { %4698 = vmatpush3.bf16.msra.mxu1 %v5505_v28  ;;  %4348 = vmatprep.mubr.msk.f32.mxu1 %vm4842_vm2, %v4840_v3 }
 0x64b   : > { %4699 = vmatprep.subr.bf16.mxu1 %v4841_v56 }
 0x64d   : > { %4349 = vmatmul.mubr.msk.f32.vlgmr.msra.gmra.mrb[26].mxu1 %vm494_vm3, %v3712_v6 }
 0x64e   : > { %4701 = vmatpush3.bf16.msra.mxu1 %v5221_v18  ;;  %4367 = vmatprep.mubr.msk.f32.mxu1 %vm4842_vm2, %v4840_v3  ;;  %v3723_v18 = vld [vmem:[%s5679_s6 + $0x68] sm:$0xff] }
 0x64f   : > { %4702 = vmatprep.subr.bf16.mxu1 %v4841_v56 }
 0x652   : > { %4704 = vmatpush3.bf16.msra.mxu1 %v5232_v21  ;;  %v3767_v21 = vld [vmem:[%s5679_s6 + $0x88] sm:$0xff] }
 0x653   : > { %4705 = vmatprep.subr.bf16.mxu1 %v4841_v56  ;;  %4479 = vmatmul.mubr.msk.f32.vlgmr.msra.gmra.mrb[12].mxu0 %vm494_vm3, %v3767_v21 }
 0x656   : > { %4707 = vmatpush3.bf16.msra.mxu1 %v5244_v24 }
 0x657   : > { %4708 = vmatprep.subr.bf16.mxu1 %v4841_v56 }
 0x65a   : > { %4710 = vmatpush3.bf16.msra.mxu1 %v5254_v27 }
 0x65b   : > { %4711 = vmatprep.subr.bf16.mxu1 %v4841_v56 }
 0x720   : > { %v2635_v11 = vpop.f32.mrb[26].mxu1 }
 0x721   : > { %v4350_v44 = vpop.f32.mrb[27].mxu1  ;;  %4368 = vmatmul.mubr.msk.f32.vlgmr.msra.gmra.mrb[22].mxu1 %vm306_vm0, %v2635_v11 }
 0x722   : > { %4713 = vmatpush3.bf16.msra.mxu1 %v5505_v28  ;;  %4374 = vmatprep.mubr.msk.f32.mxu1 %vm4842_vm2, %v4840_v3 }
 0x723   : > { %4714 = vmatprep.subr.bf16.mxu1 %v4841_v56 }
 0x725   : > { %4375 = vmatmul.mubr.msk.f32.vlgmr.msra.gmra.mrb[28].mxu1 %vm494_vm3, %v3723_v18 }
 0x726   : > { %4716 = vmatpush3.bf16.msra.mxu1 %v5264_v31  ;;  %4393 = vmatprep.mubr.msk.f32.mxu1 %vm4842_vm2, %v4840_v3  ;;  %v3734_v31 = vld [vmem:[%s5679_s6 + $0x70] sm:$0xff] }
 0x727   : > { %4717 = vmatprep.subr.bf16.mxu1 %v4841_v56 }
 0x72a   : > { %4719 = vmatpush3.bf16.msra.mxu1 %v5276_v35  ;;  %v3106_v35 = vpop.f32.mrb[8].mxu0 }
 0x72b   : > { %4720 = vmatprep.subr.bf16.mxu1 %v4841_v56 }
 0x72e   : > { %4722 = vmatpush3.bf16.msra.mxu1 %v5288_v38  ;;  %v4428_v38 = vpop.f32.mrb[9].mxu0 }
 0x72f   : > { %4723 = vmatprep.subr.bf16.mxu1 %v4841_v56 }
 0x732   : > { %4725 = vmatpush3.bf16.msra.mxu1 %v5298_v43  ;;  %v3263_v43 = vpop.f32.mrb[10].mxu0 }
 0x733   : > { %4726 = vmatprep.subr.bf16.mxu1 %v4841_v56 }
 0x7f8   : > { %v2792_v24 = vpop.f32.mrb[28].mxu1 }
 0x7f9   : > { %v4376_v27 = vpop.f32.mrb[29].mxu1  ;;  %4394 = vmatmul.mubr.msk.f32.vlgmr.msra.gmra.mrb[22].mxu1 %vm306_vm0, %v2792_v24 }
 0x7fa   : > { %4728 = vmatpush3.bf16.msra.mxu1 %v5505_v28  ;;  %4400 = vmatprep.mubr.msk.f32.mxu1 %vm4842_vm2, %v4840_v3 }
 0x7fb   : > { %4729 = vmatprep.subr.bf16.mxu1 %v4841_v56 }
 0x7fd   : > { %4401 = vmatmul.mubr.msk.f32.vlgmr.msra.gmra.mrb[30].mxu1 %vm494_vm3, %v3734_v31 }
 0x7fe   : > { %4731 = vmatpush3.bf16.msra.mxu1 %v5308_v47  ;;  %4419 = vmatprep.mubr.msk.f32.mxu1 %vm4842_vm2, %v4840_v3  ;;  %v4454_v47 = vpop.f32.mrb[11].mxu0 }
 0x7ff   : > { %4732 = vmatprep.subr.bf16.mxu1 %v4841_v56  ;;  %v3420_v46 = vpop.f32.mrb[12].mxu0 }
 0x800   : > { %v4480_v48 = vpop.f32.mrb[13].mxu0 }
 0x802   : > { %4734 = vmatpush3.bf16.msra.mxu1 %v5320_v51 }
 0x803   : > { %4735 = vmatprep.subr.bf16.mxu1 %v4841_v56 }
 0x806   : > { %4737 = vmatpush3.bf16.msra.mxu1 %v5332_v53 }
 0x807   : > { %4738 = vmatprep.subr.bf16.mxu1 %v4841_v56 }
 0x80a   : > { %4740 = vmatpush3.bf16.msra.mxu1 %v5342_v61 }
 0x80b   : > { %4744 = vmatprep.subr.bf16.mxu1 %v4841_v56 }
 0x8d0   : > { %v2949_v16 = vpop.f32.mrb[30].mxu1 }
 0x8d1   : > { %v4402_v52 = vpop.f32.mrb[31].mxu1  ;;  %4420 = vmatmul.mubr.msk.f32.vlgmr.msra.gmra.mrb[22].mxu1 %vm306_vm0, %v2949_v16 }
 0x8d2   : > { %4746 = vmatpush3.bf16.msra.mxu1 %v5352_v5  ;;  %4445 = vmatprep.mubr.msk.f32.mxu1 %vm4842_vm2, %v4840_v3 }
 0x8d3   : > { %4747 = vmatprep.subr.bf16.mxu1 %v4841_v56 }
 0x8d6   : > { %4749 = vmatpush3.bf16.msra.mxu1 %v5364_v10 }
 0x8d7   : > { %4750 = vmatprep.subr.bf16.mxu1 %v4841_v56 }
 0x8da   : > { %4752 = vmatpush3.bf16.msra.mxu1 %v5376_v59 }
 0x8db   : > { %4753 = vmatprep.subr.bf16.mxu1 %v4841_v56 }
 0x8de   : > { %4755 = vmatpush3.bf16.msra.mxu1 %v5386_v20 }
 0x8df   : > { %4759 = vmatprep.subr.bf16.mxu1 %v4841_v56 }
 0x8e1   : > { %4446 = vmatmul.mubr.msk.f32.vlgmr.msra.gmra.mrb[22].mxu1 %vm306_vm0, %v3106_v35 }
 0x8e2   : > { %4761 = vmatpush3.bf16.msra.mxu1 %v5396_v25  ;;  %4471 = vmatprep.mubr.msk.f32.mxu1 %vm4842_vm2, %v4840_v3 }
 0x8e3   : > { %4762 = vmatprep.subr.bf16.mxu1 %v4841_v56 }
 0x8e6   : > { %4764 = vmatpush3.bf16.msra.mxu1 %v5408_v30 }
 0x8e7   : > { %4765 = vmatprep.subr.bf16.mxu1 %v4841_v56 }
 0x8ea   : > { %4767 = vmatpush3.bf16.msra.mxu1 %v5420_v4 }
 0x8eb   : > { %4768 = vmatprep.subr.bf16.mxu1 %v4841_v56 }
 0x8ee   : > { %4770 = vmatpush3.bf16.msra.mxu1 %v5430_v41 }
 0x8ef   : > { %4774 = vmatprep.subr.bf16.mxu1 %v4841_v56 }
 0x8f1   : > { %4472 = vmatmul.mubr.msk.f32.vlgmr.msra.gmra.mrb[22].mxu1 %vm306_vm0, %v3263_v43 }
 0x8f2   : > { %4776 = vmatpush3.bf16.msra.mxu1 %v5440_v49  ;;  %4497 = vmatprep.mubr.msk.f32.mxu1 %vm4842_vm2, %v4840_v3 }
 0x8f3   : > { %4777 = vmatprep.subr.bf16.mxu1 %v4841_v56 }
 0x8f6   : > { %4779 = vmatpush3.bf16.msra.mxu1 %v5452_v0 }
 0x8f7   : > { %4780 = vmatprep.subr.bf16.mxu1 %v4841_v56 }
 0x8fa   : > { %4782 = vmatpush3.bf16.msra.mxu1 %v5466_v17 }
 0x8fb   : > { %4783 = vmatprep.subr.bf16.mxu1 %v4841_v56 }
 0x8fe   : > { %4785 = vmatpush3.bf16.msra.mxu1 %v5476_v23 }
 0x901   : > { %4498 = vmatmul.mubr.msk.f32.vlgmr.msra.gmra.mrb[22].mxu1 %vm306_vm0, %v3420_v46 }
 0x9d4   : > { %v3501_v51 = vpop.f32.mrb[22].mxu1 }
 0x9d5   : > { %v4786_v53 = vadd.f32 %v3501_v51, %v5570_v37  ;;  %v4499_v61 = vpop.f32.mrb[23].mxu1 }
 0x9d7   : > { %3506 = vst.msk [vmem:[#allocation2 + $0x18] sm:$0xff] %vm306_vm0, %v4786_v53 }
 0x9de   : > { %v3510_v3 = vld [vmem:[#allocation2 + $0x18] sm:$0xff] }
 0x9df   : > { %3514 = vst.msk [vmem:[%s4942_s14 + $0x18] sm:$0xff] %vm306_vm0, %v3510_v3 }
 0x9e0 PF: > { %s18_s27 = sadd.s32 1, %s4837_s27  }
 0x9e1   : > { %p15_p4 = scmp.ge.s32.totalorder %s18_s27, 4  }
 0x9e3   :  { %17 = sbr.rel (!%p15_p4) target bundleno = 1 (0x1), region = 112 }

// kernel: densenet_bc_forward.12
= control target key start
LH: loop header
LB: loop body
LE: loop exit
PB: predicated region body
PF: predicated region fallthrough
CT: control target
= control target key end

     0   :  { %s4197_s27 = smov 0   ;;  %s4637_s0 = inlined_call_operand.vmem [shape: f32[2,16,16], index: 0, kind: input, shape index: {}]   ;;  %s4638_s1 = inlined_call_operand.vmem [shape: f32[2,32,1], index: 1, kind: input, shape index: {}]   ;;  %s4639_s2 = inlined_call_operand.vmem [shape: f32[2,32,1], index: 2, kind: input, shape index: {}]   ;;  %s4640_s3 = inlined_call_operand.vmem [shape: f32[2,16,32], index: 3, kind: input, shape index: {}]   ;;  %s4641_s4 = inlined_call_operand.vmem [shape: f32[2,16,1], index: 4, kind: input, shape index: {}]   ;;  %s4642_s5 = inlined_call_operand.vmem [shape: f32[2,16,1], index: 5, kind: input, shape index: {}]   ;;  %s4643_s6 = inlined_call_operand.vmem [shape: f32[18,8,16], index: 6, kind: input, shape index: {}]   ;;  %s4644_s7 = inlined_call_operand.vmem [shape: f32[9,16,16], index: 7, kind: input, shape index: {}]   ;;  %s4645_s8 = inlined_call_operand.vmem [shape: f32[2,32,16], index: 8, kind: output, shape index: {}]  }
   0x1 LB: > { %s3461_s28 = sadd.s32 4294967295, %s4146_s27   ;;  %p3465_p0 = scmp.ge.s32.totalorder %s4146_s27, 1  ;;  %s4146_s27 = sphi %s4197_s27, %s18_s27  }
   0x2   : > { %p262_p1 = scmp.lt.s32.totalorder %s4146_s27, 3 }
   0x4   : > { %p263_p2 = pnand %p3465_p0, %p262_p1 }
   0x5   : > { %v347_v0 = vld [vmem:[%s4639_s2] sm:$0xff] (!%p263_p2)  ;;  %p296_p3 = scmp.lt.s32.totalorder (!%p263_p2), %s3461_s28, 1  ;;  %vm306_vm0 = vcmask (!%p263_p2), 130048   ;;  %v4148_v2 = vmov (!%p263_p2), 0   ;;  %v4149_v3 = vmov (!%p263_p2), 0.0   ;;  %v348_v4 = vld [vmem:[%s4639_s2 + $0x8] sm:$0xff] (!%p263_p2) }
   0x6   : > { %266 = sbr.rel (%p263_p2) target bundleno = 1816 (0x718), region = 52  ;;  %v319_v1 = vld [vmem:[%s4638_s1] sm:$0xff] (!%p263_p2)  ;;  %4139 = vset.pattern.permute.xlu1 (!%p263_p2), %v4148_v2  ;;  %4138 = vset.pattern.permute.xlu0 (!%p263_p2), %v4148_v2  ;;  %307 = vst.msk [vmem:[#allocation2] sm:$0xff] (!%p263_p2), %vm306_vm0, %v4149_v3  ;;  %308 = vst.msk [vmem:[#allocation2 + $0x8] sm:$0xff] (!%p263_p2), %vm306_vm0, %v4149_v3  ;;  %v320_v5 = vld [vmem:[%s4638_s1 + $0x8] sm:$0xff] (!%p263_p2)  ;;  %vm381_vm1 = vcmask (!%p263_p2), 261120  }
   0x7   : > { %353 = vperm.xlu1 (!%p263_p2), %4139, %v347_v0   ;;  %325 = vperm.xlu0 (!%p263_p2), %4138, %v319_v1   ;;  %309 = vst.msk [vmem:[#allocation2 + $0x10] sm:$0xff] (!%p263_p2), %vm306_vm0, %v4149_v3  ;;  %310 = vst.msk [vmem:[#allocation2 + $0x18] sm:$0xff] (!%p263_p2), %vm306_vm0, %v4149_v3  ;;  %v322_v6 = vld [vmem:[%s4638_s1 + $0x18] sm:$0xff] (!%p263_p2)  ;;  %v321_v7 = vld [vmem:[%s4638_s1 + $0x10] sm:$0xff] (!%p263_p2)  ;;  %v4150_v56 = vmov (!%p263_p2), 0.0|0.0   ;;  %vm4151_vm2 = vmmov (!%p263_p2), 0  }
   0x8   : > { %v350_v10 = vld [vmem:[%s4639_s2 + $0x18] sm:$0xff] (!%p263_p2)  ;;  %v349_v11 = vld [vmem:[%s4639_s2 + $0x10] sm:$0xff] (!%p263_p2)  ;;  %v464_v12 = vld [vmem:[%s4641_s4 + $0x8] sm:$0xff] (!%p263_p2)  ;;  %3979 = vmatprep.subr.bf16.mxu1 (!%p263_p2), %v4150_v56  ;;  %3712 = vmatprep.mubr.msk.f32.mxu1 (!%p263_p2), %vm4151_vm2, %v4149_v3 }
   0x9   : > { %v463_v13 = vld [vmem:[%s4641_s4] sm:$0xff] (!%p263_p2)  ;;  %v478_v16 = vld [vmem:[%s4642_s5 + $0x8] sm:$0xff] (!%p263_p2)  ;;  %v3517_v23 = vld [vmem:[%s4638_s1 + $0x38] sm:$0xff] (!%p263_p2) }
   0xa   : > { %v477_v17 = vld [vmem:[%s4642_s5] sm:$0xff] (!%p263_p2)  ;;  %v3515_v19 = vld [vmem:[%s4638_s1 + $0x28] sm:$0xff] (!%p263_p2)  ;;  %v3516_v24 = vld [vmem:[%s4638_s1 + $0x30] sm:$0xff] (!%p263_p2) }
   0xb   : > { %358 = vperm.xlu1 (!%p263_p2), %4139, %v348_v4   ;;  %330 = vperm.xlu0 (!%p263_p2), %4138, %v320_v5   ;;  %v379_v18 = vld [vmem:[%s4640_s3] sm:$0xff] (!%p263_p2)  ;;  %v3519_v21 = vld [vmem:[%s4639_s2 + $0x28] sm:$0xff] (!%p263_p2)  ;;  %v3521_v25 = vld [vmem:[%s4639_s2 + $0x38] sm:$0xff] (!%p263_p2) }
   0xc   : > { %v3514_v20 = vld [vmem:[%s4638_s1 + $0x20] sm:$0xff] (!%p263_p2)  ;;  %3705 = vmatprep.mubr.msk.f32.mxu0 (!%p263_p2), %vm381_vm1, %v379_v18  ;;  %v3520_v26 = vld [vmem:[%s4639_s2 + $0x30] sm:$0xff] (!%p263_p2)  ;;  %v3527_v27 = vld [vmem:[%s4641_s4 + $0x18] sm:$0xff] (!%p263_p2) }
   0xd   : > { %s4647_s28 = smov (!%p296_p3, %s3461_s28), 1  ;;  %v3518_v22 = vld [vmem:[%s4639_s2 + $0x20] sm:$0xff]  ;;  %v3526_v28 = vld [vmem:[%s4641_s4 + $0x10] sm:$0xff]  ;;  %v3529_v29 = vld [vmem:[%s4642_s5 + $0x18] sm:$0xff] }
   0xe   : > { %s3575_s15 = sshll.u32 %s4647_s28, 4  ;;  %s3576_s29 = sshll.u32 %s4647_s28, 5  ;;  %v3528_v30 = vld [vmem:[%s4642_s5 + $0x10] sm:$0xff]  ;;  %v4311_v40 = vld [vmem:[#allocation2 + $0x18] sm:$0xff]  ;;  %v380_v55 = vld [vmem:[%s4640_s3 + $0x8] sm:$0xff] }
   0xf   : > { %s300_s18 = scalar_lea.vmem %s4637_s0, %s3575_s15  ;;  %340 = vperm.xlu1 %4139, %v322_v6   ;;  %335 = vperm.xlu0 %4138, %v321_v7   ;;  %s4251_s14 = scalar_lea.vmem %s4645_s8, %s3576_s29  ;;  %v317_v42 = vld [vmem:[#allocation2 + $0x10] sm:$0xff]  ;;  %v567_v57 = vld [vmem:[%s4644_s7] sm:$0xff]  ;;  %v568_v58 = vld [vmem:[%s4644_s7 + $0x8] sm:$0xff] }
  0x10   : > { %v311_v8 = vld [vmem:[%s300_s18] sm:$0xff]  ;;  %v312_v9 = vld [vmem:[%s300_s18 + $0x8] sm:$0xff]  ;;  %v4330_v59 = vpack.c.bf16 %v568_v58, %v567_v57  ;;  %v3497_v57 = vld [vmem:[%s4644_s7 + $0x58] sm:$0xff] }
  0x11   : > { %313 = vst.msk [vmem:[#allocation2] sm:$0xff] %vm306_vm0, %v311_v8  ;;  %314 = vst.msk [vmem:[#allocation2 + $0x8] sm:$0xff] %vm306_vm0, %v312_v9  ;;  %v3482_v18 = vld [vmem:[%s4644_s7 + $0x28] sm:$0xff] }
  0x13   : > { %368 = vperm.xlu1 %4139, %v350_v10   ;;  %363 = vperm.xlu0 %4138, %v349_v11   ;;  %v493_v10 = vld [vmem:[%s4643_s6] sm:$0xff]  ;;  %v3473_v11 = vld [vmem:[%s4643_s6 + $0x8] sm:$0xff] }
  0x17   : > { %472 = vperm.xlu1 %4139, %v464_v12   ;;  %467 = vperm.xlu0 %4138, %v463_v13   ;;  %v3475_v12 = vld [vmem:[%s4644_s7 + $0x10] sm:$0xff]  ;;  %v3476_v13 = vld [vmem:[%s4644_s7 + $0x18] sm:$0xff] }
  0x18   : > { %v4253_v14 = vld [vmem:[#allocation2] sm:$0xff]  ;;  %v4255_v15 = vld [vmem:[#allocation2 + $0x8] sm:$0xff] }
  0x19   : > { %3402 = vst.msk [vmem:[%s4251_s14] sm:$0xff] %vm306_vm0, %v4253_v14  ;;  %3403 = vst.msk [vmem:[%s4251_s14 + $0x8] sm:$0xff] %vm306_vm0, %v4255_v15 }
  0x1b   : > { %486 = vperm.xlu1 %4139, %v478_v16   ;;  %481 = vperm.xlu0 %4138, %v477_v17   ;;  %v4358_v16 = vpack.c.bf16 %v3476_v13, %v3475_v12  ;;  %v3481_v17 = vld [vmem:[%s4644_s7 + $0x20] sm:$0xff]  ;;  %v3512_v12 = vld [vmem:[%s4644_s7 + $0x88] sm:$0xff] }
  0x1f   : > { %1874 = vperm.xlu1 %4139, %v3515_v19   ;;  %1869 = vperm.xlu0 %4138, %v3514_v20   ;;  %v4368_v19 = vpack.c.bf16 %v3482_v18, %v3481_v17  ;;  %v3522_v17 = vld [vmem:[%s4640_s3 + $0x10] sm:$0xff] }
  0x23   : > { %1903 = vperm.xlu1 %4139, %v3519_v21   ;;  %1898 = vperm.xlu0 %4138, %v3518_v22  }
  0x27   : > { %1884 = vperm.xlu1 %4139, %v3517_v23   ;;  %1879 = vperm.xlu0 %4138, %v3516_v24   ;;  %v3479_v24 = vld [vmem:[%s4643_s6 + $0x10] sm:$0xff] }
  0x2b   : > { %1913 = vperm.xlu1 %4139, %v3521_v25   ;;  %1908 = vperm.xlu0 %4138, %v3520_v26   ;;  %v3484_v25 = vld [vmem:[%s4643_s6 + $0x18] sm:$0xff] }
  0x2f   : > { %2018 = vperm.xlu1 %4139, %v3527_v27   ;;  %2013 = vperm.xlu0 %4138, %v3526_v28   ;;  %v3489_v28 = vld [vmem:[%s4643_s6 + $0x20] sm:$0xff] }
  0x33   : > { %2033 = vperm.xlu1 %4139, %v3529_v29   ;;  %2028 = vperm.xlu0 %4138, %v3528_v30  }
  0x86   : > { %v354_v31 = vpop.permute.xlu1 %353  ;;  %v326_v32 = vpop.permute.xlu0 %325 }
  0x87   : > { %v343_v33 = vmul.f32 %v326_v32, %v4253_v14 }
  0x89   : > { %v371_v36 = vadd.f32 %v354_v31, %v343_v33  ;;  %v3494_v31 = vld [vmem:[%s4643_s6 + $0x28] sm:$0xff] }
  0x8a   : > { %v359_v34 = vpop.permute.xlu1 %358  ;;  %v331_v35 = vpop.permute.xlu0 %330 }
  0x8b   : > { %v344_v37 = vmul.f32 %v331_v35, %v4255_v15  ;;  %v375_v43 = vmax.f32 %v371_v36, 0.0  ;;  %v3499_v36 = vld [vmem:[%s4643_s6 + $0x30] sm:$0xff] }
  0x8d   : > { %v372_v38 = vadd.f32 %v359_v34, %v344_v37 }
  0x8e   : > { %v341_v39 = vpop.permute.xlu1 %340  ;;  %v336_v41 = vpop.permute.xlu0 %335 }
  0x8f   : > { %v376_v44 = vmax.f32 %v372_v38, 0.0  ;;  %v346_v45 = vmul.f32 %v341_v39, %v4311_v40  ;;  %v345_v46 = vmul.f32 %v336_v41, %v317_v42  ;;  %v3509_v39 = vld [vmem:[%s4643_s6 + $0x40] sm:$0xff]  ;;  %v3486_v41 = vld [vmem:[%s4644_s7 + $0x30] sm:$0xff]  ;;  %v3487_v42 = vld [vmem:[%s4644_s7 + $0x38] sm:$0xff] }
  0x91   : > { %v3971_v47 = vpack.c.bf16 %v376_v44, %v375_v43 }
  0x92   : > { %v369_v48 = vpop.permute.xlu1 %368  ;;  %v364_v49 = vpop.permute.xlu0 %363 }
  0x93   : > { %v374_v50 = vadd.f32 %v369_v48, %v346_v45  ;;  %v373_v51 = vadd.f32 %v364_v49, %v345_v46  ;;  %3972 = vmatprep.subr.bf16.mxu0 %v3971_v47  ;;  %v4439_v45 = vpack.c.bf16 %v3487_v42, %v3486_v41  ;;  %v3491_v48 = vld [vmem:[%s4644_s7 + $0x40] sm:$0xff]  ;;  %v3492_v49 = vld [vmem:[%s4644_s7 + $0x48] sm:$0xff] }
  0x94   : > { %3974 = vmatpush3.bf16.msra.mxu0 %v3971_v47 }
  0x95   : > { %v378_v52 = vmax.f32 %v374_v50, 0.0  ;;  %v377_v53 = vmax.f32 %v373_v51, 0.0 }
  0x96   : > { %v473_v60 = vpop.permute.xlu1 %472  ;;  %v468_v61 = vpop.permute.xlu0 %467 }
  0x97   : > { %v3975_v54 = vpack.c.bf16 %v378_v52, %v377_v53  ;;  %v4452_v52 = vpack.c.bf16 %v3492_v49, %v3491_v48  ;;  %v3530_v48 = vld [vmem:[%s4643_s6 + $0x48] sm:$0xff]  ;;  %v3538_v49 = vld [vmem:[%s4643_s6 + $0x58] sm:$0xff] }
  0x99   : > { %3976 = vmatprep.subr.bf16.mxu0 %v3975_v54 }
  0x9a   : > { %3978 = vmatpush3.bf16.msra.mxu0 %v3975_v54  ;;  %v487_v1 = vpop.permute.xlu1 %486  ;;  %v482_v4 = vpop.permute.xlu0 %481 }
  0x9b   : > { %3988 = vmatprep.subr.bf16.mxu0 %v4150_v56 }
  0x9d   : > { %3706 = vmatmul.mubr.msk.f32.vlgmr.msra.gmra.mrb[0].mxu0 %vm381_vm1, %v380_v55  ;;  %v3496_v55 = vld [vmem:[%s4644_s7 + $0x50] sm:$0xff] }
  0x9e   : > { %3733 = vmatprep.mubr.msk.f32.mxu0 %vm4151_vm2, %v4149_v3  ;;  %3990 = vmatpush3.bf16.msra.mxu0 %v4330_v59  ;;  %v1875_v26 = vpop.permute.xlu1 %1874  ;;  %v1870_v27 = vpop.permute.xlu0 %1869 }
  0x9f   : > { %3994 = vmatprep.subr.bf16.mxu0 %v4150_v56  ;;  %v1888_v32 = vmul.f32 %v1875_v26, %v4255_v15  ;;  %v1887_v33 = vmul.f32 %v1870_v27, %v4253_v14  ;;  %v3504_v14 = vld [vmem:[%s4643_s6 + $0x38] sm:$0xff] }
  0xa2   : > { %v1904_v29 = vpop.permute.xlu1 %1903  ;;  %v1899_v30 = vpop.permute.xlu0 %1898 }
  0xa3   : > { %v1917_v34 = vadd.f32 %v1904_v29, %v1888_v32  ;;  %v1916_v35 = vadd.f32 %v1899_v30, %v1887_v33 }
  0xa5   : > { %v1921_v15 = vmax.f32 %v1917_v34, 0.0  ;;  %v1920_v37 = vmax.f32 %v1916_v35, 0.0  ;;  %v3523_v34 = vld [vmem:[%s4640_s3 + $0x18] sm:$0xff] }
  0xa7   : > { %v4033_v38 = vpack.c.bf16 %v1921_v15, %v1920_v37 }
 0x170   : > { %v3707_v62 = vpop.f32.mrb[0].mxu0 }
 0x171   : > { %v476_v63 = vmul.f32 %v3707_v62, %v473_v60  ;;  %v454_v0 = vpop.f32.mrb[1].mxu0 }
 0x172   : > { %v475_v2 = vmul.f32 %v468_v61, %v454_v0  ;;  %v4465_v61 = vpack.c.bf16 %v3497_v57, %v3496_v55  ;;  %v3501_v0 = vld [vmem:[%s4644_s7 + $0x60] sm:$0xff]  ;;  %v3568_v55 = vld [vmem:[%s4643_s6 + $0x88] sm:$0xff] }
 0x173   : > { %v490_v5 = vadd.f32 %v487_v1, %v476_v63  ;;  %v3502_v1 = vld [vmem:[%s4644_s7 + $0x68] sm:$0xff] }
 0x174   : > { %v489_v6 = vadd.f32 %v482_v4, %v475_v2 }
 0x175   : > { %v492_v7 = vmax.f32 %v490_v5, 0.0  ;;  %v4478_v5 = vpack.c.bf16 %v3502_v1, %v3501_v0 }
 0x176   : > { %v491_v8 = vmax.f32 %v489_v6, 0.0 }
 0x178   : > { %v4334_v9 = vpack.c.bf16 %v492_v7, %v491_v8  ;;  %v3506_v8 = vld [vmem:[%s4644_s7 + $0x70] sm:$0xff] }
 0x17a   : > { %3981 = vmatpush3.bf16.msra.mxu1 %v4334_v9 }
 0x17b   : > { %3982 = vmatprep.subr.bf16.mxu1 %v4150_v56 }
 0x17d   : > { %3713 = vmatmul.mubr.msk.f32.vlgmr.msra.gmra.mrb[0].mxu1 %vm306_vm0, %v493_v10 }
 0x17e   : > { %3984 = vmatpush3.bf16.msra.mxu1 %v4334_v9  ;;  %3719 = vmatprep.mubr.msk.f32.mxu1 %vm4151_vm2, %v4149_v3 }
 0x17f   : > { %3985 = vmatprep.subr.bf16.mxu1 %v4150_v56 }
 0x181   : > { %3720 = vmatmul.mubr.msk.f32.vlgmr.msra.gmra.mrb[2].mxu1 %vm306_vm0, %v3473_v11  ;;  %v3511_v11 = vld [vmem:[%s4644_s7 + $0x80] sm:$0xff] }
 0x182   : > { %3726 = vmatprep.mubr.msk.f32.mxu1 %vm4151_vm2, %v4149_v3  ;;  %3987 = vmatpush3.bf16.msra.mxu1 %v4358_v16  ;;  %v4504_v13 = vpack.c.bf16 %v3512_v12, %v3511_v11 }
 0x183   : > { %3991 = vmatprep.subr.bf16.mxu1 %v4150_v56 }
 0x250   : > { %v563_v20 = vpop.f32.mrb[0].mxu1 }
 0x251   : > { %v3714_v21 = vpop.f32.mrb[1].mxu1  ;;  %3734 = vmatmul.mubr.msk.f32.vlgmr.msra.gmra.mrb[2].mxu0 %vm306_vm0, %v563_v20 }
 0x252   : > { %3996 = vmatpush3.bf16.msra.mxu0 %v4368_v19  ;;  %3747 = vmatprep.mubr.msk.f32.mxu0 %vm4151_vm2, %v4149_v3 }
 0x253   : > { %4000 = vmatprep.subr.bf16.mxu0 %v4150_v56 }
 0x254   : > { %v640_v22 = vpop.f32.mrb[2].mxu1 }
 0x255   : > { %v3721_v23 = vpop.f32.mrb[3].mxu1  ;;  %3727 = vmatmul.mubr.msk.f32.vlgmr.msra.gmra.mrb[4].mxu1 %vm306_vm0, %v640_v22  ;;  %v1885_v22 = vpop.permute.xlu1 %1884 }
 0x256   : > { %3993 = vmatpush3.bf16.msra.mxu1 %v4334_v9  ;;  %3740 = vmatprep.mubr.msk.f32.mxu1 %vm4151_vm2, %v4149_v3  ;;  %v1880_v23 = vpop.permute.xlu0 %1879 }
 0x257   : > { %3997 = vmatprep.subr.bf16.mxu1 %v4150_v56 }
 0x259   : > { %3741 = vmatmul.mubr.msk.f32.vlgmr.msra.gmra.mrb[6].mxu1 %vm306_vm0, %v3479_v24  ;;  %v1914_v24 = vpop.permute.xlu1 %1913 }
 0x25a   : > { %3999 = vmatpush3.bf16.msra.mxu1 %v4334_v9  ;;  %3754 = vmatprep.mubr.msk.f32.mxu1 %vm4151_vm2, %v4149_v3  ;;  %v1909_v29 = vpop.permute.xlu0 %1908 }
 0x25b   : > { %4003 = vmatprep.subr.bf16.mxu1 %v4150_v56 }
 0x25d   : > { %3755 = vmatmul.mubr.msk.f32.vlgmr.msra.gmra.mrb[8].mxu1 %vm306_vm0, %v3484_v25  ;;  %v1890_v25 = vmul.f32 %v1885_v22, %v4311_v40  ;;  %v2019_v40 = vpop.permute.xlu1 %2018 }
 0x25e   : > { %4005 = vmatpush3.bf16.msra.mxu1 %v4334_v9  ;;  %3768 = vmatprep.mubr.msk.f32.mxu1 %vm4151_vm2, %v4149_v3  ;;  %v2014_v35 = vpop.permute.xlu0 %2013 }
 0x25f   : > { %4009 = vmatprep.subr.bf16.mxu1 %v4150_v56  ;;  %v1919_v27 = vadd.f32 %v1914_v24, %v1890_v25 }
 0x261   : > { %3769 = vmatmul.mubr.msk.f32.vlgmr.msra.gmra.mrb[10].mxu1 %vm306_vm0, %v3489_v28 }
 0x262   : > { %4011 = vmatpush3.bf16.msra.mxu1 %v4334_v9  ;;  %3782 = vmatprep.mubr.msk.f32.mxu1 %vm4151_vm2, %v4149_v3 }
 0x263   : > { %4015 = vmatprep.subr.bf16.mxu1 %v4150_v56 }
 0x265   : > { %3783 = vmatmul.mubr.msk.f32.vlgmr.msra.gmra.mrb[12].mxu1 %vm306_vm0, %v3494_v31  ;;  %v1923_v31 = vmax.f32 %v1919_v27, 0.0 }
 0x266   : > { %4017 = vmatpush3.bf16.msra.mxu1 %v4334_v9  ;;  %3796 = vmatprep.mubr.msk.f32.mxu1 %vm4151_vm2, %v4149_v3 }
 0x267   : > { %4021 = vmatprep.subr.bf16.mxu1 %v4150_v56 }
 0x269   : > { %3797 = vmatmul.mubr.msk.f32.vlgmr.msra.gmra.mrb[14].mxu1 %vm306_vm0, %v3499_v36 }
 0x26a   : > { %4023 = vmatpush3.bf16.msra.mxu1 %v4334_v9  ;;  %3810 = vmatprep.mubr.msk.f32.mxu1 %vm4151_vm2, %v4149_v3 }
 0x26b   : > { %4027 = vmatprep.subr.bf16.mxu1 %v4150_v56 }
 0x26d   : > { %3811 = vmatmul.mubr.msk.f32.vlgmr.msra.gmra.mrb[16].mxu1 %vm306_vm0, %v3504_v14  ;;  %v2034_v14 = vpop.permute.xlu1 %2033 }
 0x26e   : > { %4029 = vmatpush3.bf16.msra.mxu1 %v4334_v9  ;;  %3824 = vmatprep.mubr.msk.f32.mxu1 %vm4151_vm2, %v4149_v3  ;;  %v3507_v9 = vld [vmem:[%s4644_s7 + $0x78] sm:$0xff] }
 0x26f   : > { %4034 = vmatprep.subr.bf16.mxu1 %v4033_v38  ;;  %v4491_v10 = vpack.c.bf16 %v3507_v9, %v3506_v8 }
 0x271   : > { %3825 = vmatmul.mubr.msk.f32.vlgmr.msra.gmra.mrb[18].mxu1 %vm306_vm0, %v3509_v39  ;;  %v2029_v39 = vpop.permute.xlu0 %2028 }
 0x272   : > { %4036 = vmatpush3.bf16.msra.mxu1 %v4033_v38  ;;  %3842 = vmatprep.mubr.msk.f32.mxu1 %vm381_vm1, %v3522_v17 }
 0x328   : > { %v716_v43 = vpop.f32.mrb[4].mxu1 }
 0x329   : > { %v3728_v44 = vpop.f32.mrb[5].mxu1 }
 0x32c   : > { %v864_v46 = vpop.f32.mrb[6].mxu1 }
 0x32d   : > { %v3742_v47 = vpop.f32.mrb[7].mxu1  ;;  %3748 = vmatmul.mubr.msk.f32.vlgmr.msra.gmra.mrb[2].mxu0 %vm306_vm0, %v864_v46 }
 0x32e   : > { %4002 = vmatpush3.bf16.msra.mxu0 %v4439_v45  ;;  %3761 = vmatprep.mubr.msk.f32.mxu0 %vm4151_vm2, %v4149_v3  ;;  %v3532_v47 = vld [vmem:[%s4643_s6 + $0x50] sm:$0xff] }
 0x32f   : > { %4006 = vmatprep.subr.bf16.mxu0 %v4150_v56 }
 0x330   : > { %v1016_v50 = vpop.f32.mrb[8].mxu1 }
 0x331   : > { %v3756_v51 = vpop.f32.mrb[9].mxu1 }
 0x332   : > { %v3553_v51 = vld [vmem:[%s4643_s6 + $0x70] sm:$0xff] }
 0x334   : > { %v1168_v53 = vpop.f32.mrb[10].mxu1 }
 0x335   : > { %3762 = vmatmul.mubr.msk.f32.vlgmr.msra.gmra.mrb[2].mxu0 %vm306_vm0, %v1016_v50  ;;  %v3770_v54 = vpop.f32.mrb[11].mxu1  ;;  %v3543_v50 = vld [vmem:[%s4643_s6 + $0x60] sm:$0xff] }
 0x336   : > { %4008 = vmatpush3.bf16.msra.mxu0 %v4452_v52  ;;  %3775 = vmatprep.mubr.msk.f32.mxu0 %vm4151_vm2, %v4149_v3  ;;  %v3563_v54 = vld [vmem:[%s4643_s6 + $0x80] sm:$0xff] }
 0x337   : > { %4012 = vmatprep.subr.bf16.mxu0 %v4150_v56 }
 0x338   : > { %v1320_v58 = vpop.f32.mrb[12].mxu1 }
 0x339   : > { %v3784_v60 = vpop.f32.mrb[13].mxu1 }
 0x33c   : > { %v1472_v62 = vpop.f32.mrb[14].mxu1 }
 0x33d   : > { %3776 = vmatmul.mubr.msk.f32.vlgmr.msra.gmra.mrb[2].mxu0 %vm306_vm0, %v1168_v53  ;;  %v3798_v63 = vpop.f32.mrb[15].mxu1  ;;  %v3558_v53 = vld [vmem:[%s4643_s6 + $0x78] sm:$0xff] }
 0x33e   : > { %4014 = vmatpush3.bf16.msra.mxu0 %v4465_v61  ;;  %3789 = vmatprep.mubr.msk.f32.mxu0 %vm4151_vm2, %v4149_v3 }
 0x33f   : > { %4018 = vmatprep.subr.bf16.mxu0 %v4150_v56 }
 0x340   : > { %v1624_v2 = vpop.f32.mrb[16].mxu1 }
 0x341   : > { %v3812_v4 = vpop.f32.mrb[17].mxu1 }
 0x344   : > { %v1776_v6 = vpop.f32.mrb[18].mxu1 }
 0x345   : > { %3790 = vmatmul.mubr.msk.f32.vlgmr.msra.gmra.mrb[2].mxu0 %vm306_vm0, %v1320_v58  ;;  %v3826_v7 = vpop.f32.mrb[19].mxu1 }
 0x346   : > { %4020 = vmatpush3.bf16.msra.mxu0 %v4478_v5  ;;  %3803 = vmatprep.mubr.msk.f32.mxu0 %vm4151_vm2, %v4149_v3 }
 0x347   : > { %4024 = vmatprep.subr.bf16.mxu0 %v4150_v56 }
 0x34d   : > { %3804 = vmatmul.mubr.msk.f32.vlgmr.msra.gmra.mrb[2].mxu0 %vm306_vm0, %v1472_v62 }
 0x34e   : > { %4026 = vmatpush3.bf16.msra.mxu0 %v4491_v10  ;;  %3817 = vmatprep.mubr.msk.f32.mxu0 %vm4151_vm2, %v4149_v3 }
 0x34f   : > { %4030 = vmatprep.subr.bf16.mxu0 %v4150_v56 }
 0x355   : > { %3818 = vmatmul.mubr.msk.f32.vlgmr.msra.gmra.mrb[2].mxu0 %vm306_vm0, %v1624_v2 }
 0x356   : > { %4032 = vmatpush3.bf16.msra.mxu0 %v4504_v13  ;;  %3831 = vmatprep.mubr.msk.f32.mxu0 %vm4151_vm2, %v4149_v3 }
 0x357   : > { %4041 = vmatprep.subr.bf16.mxu0 %v4150_v56 }
 0x35d   : > { %3832 = vmatmul.mubr.msk.f32.vlgmr.msra.gmra.mrb[2].mxu0 %vm306_vm0, %v1776_v6 }
 0x35e   : > { %3849 = vmatprep.mubr.msk.f32.mxu0 %vm4151_vm2, %v4149_v3 }
 0x430   : > { %v1852_v18 = vpop.f32.mrb[2].mxu0 }
 0x431   : > { %v4095_v20 = vadd.f32 %v1852_v18, %v716_v43  ;;  %v3833_v21 = vpop.f32.mrb[3].mxu0 }
 0x433   : > { %1857 = vst.msk [vmem:[#allocation2 + $0x10] sm:$0xff] %vm306_vm0, %v4095_v20 }
 0x43a   : > { %v3400_v26 = vld [vmem:[#allocation2 + $0x10] sm:$0xff] }
 0x43b   : > { %3404 = vst.msk [vmem:[%s4251_s14 + $0x10] sm:$0xff] %vm306_vm0, %v3400_v26  ;;  %v1889_v28 = vmul.f32 %v3400_v26, %v1880_v23 }
 0x43d   : > { %v1918_v30 = vadd.f32 %v1909_v29, %v1889_v28 }
 0x43f   : > { %v1922_v32 = vmax.f32 %v1918_v30, 0.0 }
 0x441   : > { %v4037_v33 = vpack.c.bf16 %v1923_v31, %v1922_v32 }
 0x443   : > { %4038 = vmatprep.subr.bf16.mxu1 %v4037_v33 }
 0x444   : > { %4040 = vmatpush3.bf16.msra.mxu1 %v4037_v33 }
 0x445   : > { %4044 = vmatprep.subr.bf16.mxu1 %v4150_v56 }
 0x447   : > { %3843 = vmatmul.mubr.msk.f32.vlgmr.msra.gmra.mrb[20].mxu1 %vm381_vm1, %v3523_v34 }
 0x448   : > { %3856 = vmatprep.mubr.msk.f32.mxu1 %vm4151_vm2, %v4149_v3 }
 0x51a   : > { %v3844_v36 = vpop.f32.mrb[20].mxu1 }
 0x51b   : > { %v2022_v15 = vmul.f32 %v3844_v36, %v2019_v40  ;;  %v1999_v37 = vpop.f32.mrb[21].mxu1 }
 0x51c   : > { %v2021_v38 = vmul.f32 %v2014_v35, %v1999_v37 }
 0x51d   : > { %v2037_v41 = vadd.f32 %v2034_v14, %v2022_v15 }
 0x51e   : > { %v2036_v42 = vadd.f32 %v2029_v39, %v2021_v38 }
 0x51f   : > { %v2039_v43 = vmax.f32 %v2037_v41, 0.0 }
 0x520   : > { %v2038_v44 = vmax.f32 %v2036_v42, 0.0 }
 0x522   : > { %v4042_v46 = vpack.c.bf16 %v2039_v43, %v2038_v44 }
 0x524   : > { %4043 = vmatpush3.bf16.msra.mxu0 %v4042_v46  ;;  %4046 = vmatpush3.bf16.msra.mxu1 %v4042_v46 }
 0x525   : > { %4053 = vmatprep.subr.bf16.mxu1 %v4150_v56  ;;  %4047 = vmatprep.subr.bf16.mxu0 %v4150_v56 }
 0x527   : > { %3857 = vmatmul.mubr.msk.f32.vlgmr.msra.gmra.mrb[22].mxu1 %vm306_vm0, %v3532_v47  ;;  %3850 = vmatmul.mubr.msk.f32.vlgmr.msra.gmra.mrb[4].mxu0 %vm306_vm0, %v3530_v48 }
 0x528   : > { %4055 = vmatpush3.bf16.msra.mxu1 %v4042_v46  ;;  %3877 = vmatprep.mubr.msk.f32.mxu1 %vm4151_vm2, %v4149_v3 }
 0x529   : > { %4059 = vmatprep.subr.bf16.mxu1 %v4150_v56  ;;  %4049 = vmatpush3.bf16.msra.mxu0 %v4358_v16  ;;  %v3548_v16 = vld [vmem:[%s4643_s6 + $0x68] sm:$0xff] }
 0x52a   : > { %3863 = vmatprep.mubr.msk.f32.mxu0 %vm4151_vm2, %v4149_v3  ;;  %4050 = vmatprep.subr.bf16.mxu0 %v4150_v56 }
 0x52b   : > { %3878 = vmatmul.mubr.msk.f32.vlgmr.msra.gmra.mrb[24].mxu1 %vm306_vm0, %v3538_v49 }
 0x52c   : > { %4061 = vmatpush3.bf16.msra.mxu1 %v4042_v46  ;;  %3891 = vmatprep.mubr.msk.f32.mxu1 %vm4151_vm2, %v4149_v3 }
 0x52d   : > { %4065 = vmatprep.subr.bf16.mxu1 %v4150_v56 }
 0x52f   : > { %3892 = vmatmul.mubr.msk.f32.vlgmr.msra.gmra.mrb[26].mxu1 %vm306_vm0, %v3543_v50 }
 0x530   : > { %4067 = vmatpush3.bf16.msra.mxu1 %v4042_v46  ;;  %3905 = vmatprep.mubr.msk.f32.mxu1 %vm4151_vm2, %v4149_v3 }
 0x531   : > { %4071 = vmatprep.subr.bf16.mxu1 %v4150_v56 }
 0x533   : > { %3906 = vmatmul.mubr.msk.f32.vlgmr.msra.gmra.mrb[28].mxu1 %vm306_vm0, %v3548_v16 }
 0x534   : > { %4073 = vmatpush3.bf16.msra.mxu1 %v4042_v46  ;;  %3919 = vmatprep.mubr.msk.f32.mxu1 %vm4151_vm2, %v4149_v3 }
 0x535   : > { %4077 = vmatprep.subr.bf16.mxu1 %v4150_v56 }
 0x537   : > { %3920 = vmatmul.mubr.msk.f32.vlgmr.msra.gmra.mrb[30].mxu1 %vm306_vm0, %v3553_v51 }
 0x538   : > { %4079 = vmatpush3.bf16.msra.mxu1 %v4042_v46  ;;  %3933 = vmatprep.mubr.msk.f32.mxu1 %vm4151_vm2, %v4149_v3 }
 0x539   : > { %4083 = vmatprep.subr.bf16.mxu1 %v4150_v56 }
 0x53b   : > { %3934 = vmatmul.mubr.msk.f32.vlgmr.msra.gmra.mrb[32].mxu1 %vm306_vm0, %v3558_v53 }
 0x53c   : > { %4085 = vmatpush3.bf16.msra.mxu1 %v4042_v46  ;;  %3947 = vmatprep.mubr.msk.f32.mxu1 %vm4151_vm2, %v4149_v3 }
 0x53d   : > { %4089 = vmatprep.subr.bf16.mxu1 %v4150_v56 }
 0x53f   : > { %3948 = vmatmul.mubr.msk.f32.vlgmr.msra.gmra.mrb[34].mxu1 %vm306_vm0, %v3563_v54 }
 0x540   : > { %4091 = vmatpush3.bf16.msra.mxu1 %v4042_v46  ;;  %3961 = vmatprep.mubr.msk.f32.mxu1 %vm4151_vm2, %v4149_v3 }
 0x543   : > { %3962 = vmatmul.mubr.msk.f32.vlgmr.msra.gmra.mrb[36].mxu1 %vm306_vm0, %v3568_v55 }
 0x5fa   : > { %v2188_v57 = vpop.f32.mrb[22].mxu1  ;;  %v2111_v58 = vpop.f32.mrb[4].mxu0 }
 0x5fb   : > { %v3858_v60 = vpop.f32.mrb[23].mxu1  ;;  %3864 = vmatmul.mubr.msk.f32.vlgmr.msra.gmra.mrb[6].mxu0 %vm306_vm0, %v2188_v57  ;;  %v3851_v62 = vpop.f32.mrb[5].mxu0 }
 0x5fc   : > { %4052 = vmatpush3.bf16.msra.mxu0 %v4330_v59  ;;  %3870 = vmatprep.mubr.msk.f32.mxu0 %vm4151_vm2, %v4149_v3 }
 0x5fd   : > { %4056 = vmatprep.subr.bf16.mxu0 %v4150_v56 }
 0x5fe   : > { %v2411_v63 = vpop.f32.mrb[24].mxu1 }
 0x5ff   : > { %v3879_v0 = vpop.f32.mrb[25].mxu1 }
 0x602   : > { %v2562_v1 = vpop.f32.mrb[26].mxu1 }
 0x603   : > { %3871 = vmatmul.mubr.msk.f32.vlgmr.msra.gmra.mrb[6].mxu0 %vm306_vm0, %v2111_v58  ;;  %v3893_v2 = vpop.f32.mrb[27].mxu1 }
 0x604   : > { %4058 = vmatpush3.bf16.msra.mxu0 %v4368_v19  ;;  %3884 = vmatprep.mubr.msk.f32.mxu0 %vm4151_vm2, %v4149_v3 }
 0x605   : > { %4062 = vmatprep.subr.bf16.mxu0 %v4150_v56 }
 0x606   : > { %v2713_v4 = vpop.f32.mrb[28].mxu1 }
 0x607   : > { %v3907_v59 = vpop.f32.mrb[29].mxu1 }
 0x60a   : > { %v2864_v6 = vpop.f32.mrb[30].mxu1 }
 0x60b   : > { %3885 = vmatmul.mubr.msk.f32.vlgmr.msra.gmra.mrb[6].mxu0 %vm306_vm0, %v2411_v63  ;;  %v3921_v7 = vpop.f32.mrb[31].mxu1 }
 0x60c   : > { %4064 = vmatpush3.bf16.msra.mxu0 %v4439_v45  ;;  %3898 = vmatprep.mubr.msk.f32.mxu0 %vm4151_vm2, %v4149_v3 }
 0x60d   : > { %4068 = vmatprep.subr.bf16.mxu0 %v4150_v56 }
 0x60e   : > { %v3015_v8 = vpop.f32.mrb[32].mxu1 }
 0x60f   : > { %v3935_v19 = vpop.f32.mrb[33].mxu1 }
 0x612   : > { %v3166_v9 = vpop.f32.mrb[34].mxu1 }
 0x613   : > { %3899 = vmatmul.mubr.msk.f32.vlgmr.msra.gmra.mrb[6].mxu0 %vm306_vm0, %v2562_v1  ;;  %v3949_v11 = vpop.f32.mrb[35].mxu1 }
 0x614   : > { %4070 = vmatpush3.bf16.msra.mxu0 %v4452_v52  ;;  %3912 = vmatprep.mubr.msk.f32.mxu0 %vm4151_vm2, %v4149_v3 }
 0x615   : > { %4074 = vmatprep.subr.bf16.mxu0 %v4150_v56 }
 0x616   : > { %v3317_v12 = vpop.f32.mrb[36].mxu1 }
 0x617   : > { %v3963_v45 = vpop.f32.mrb[37].mxu1 }
 0x61b   : > { %3913 = vmatmul.mubr.msk.f32.vlgmr.msra.gmra.mrb[6].mxu0 %vm306_vm0, %v2713_v4 }
 0x61c   : > { %4076 = vmatpush3.bf16.msra.mxu0 %v4465_v61  ;;  %3926 = vmatprep.mubr.msk.f32.mxu0 %vm4151_vm2, %v4149_v3 }
 0x61d   : > { %4080 = vmatprep.subr.bf16.mxu0 %v4150_v56 }
 0x623   : > { %3927 = vmatmul.mubr.msk.f32.vlgmr.msra.gmra.mrb[6].mxu0 %vm306_vm0, %v2864_v6 }
 0x624   : > { %4082 = vmatpush3.bf16.msra.mxu0 %v4478_v5  ;;  %3940 = vmatprep.mubr.msk.f32.mxu0 %vm4151_vm2, %v4149_v3 }
 0x625   : > { %4086 = vmatprep.subr.bf16.mxu0 %v4150_v56 }
 0x62b   : > { %3941 = vmatmul.mubr.msk.f32.vlgmr.msra.gmra.mrb[6].mxu0 %vm306_vm0, %v3015_v8 }
 0x62c   : > { %4088 = vmatpush3.bf16.msra.mxu0 %v4491_v10  ;;  %3954 = vmatprep.mubr.msk.f32.mxu0 %vm4151_vm2, %v4149_v3 }
 0x62d   : > { %4092 = vmatprep.subr.bf16.mxu0 %v4150_v56 }
 0x633   : > { %3955 = vmatmul.mubr.msk.f32.vlgmr.msra.gmra.mrb[6].mxu0 %vm306_vm0, %v3166_v9 }
 0x634   : > { %4094 = vmatpush3.bf16.msra.mxu0 %v4504_v13  ;;  %3968 = vmatprep.mubr.msk.f32.mxu0 %vm4151_vm2, %v4149_v3 }
 0x63b   : > { %3969 = vmatmul.mubr.msk.f32.vlgmr.msra.gmra.mrb[6].mxu0 %vm306_vm0, %v3317_v12 }
 0x70e   : > { %v3392_v52 = vpop.f32.mrb[6].mxu0 }
 0x70f   : > { %3397 = vst.msk [vmem:[#allocation2 + $0x18] sm:$0xff] %vm306_vm0, %v3392_v52  ;;  %v3970_v61 = vpop.f32.mrb[7].mxu0 }
 0x716   : > { %v3401_v5 = vld [vmem:[#allocation2 + $0x18] sm:$0xff] }
 0x717   : > { %3405 = vst.msk [vmem:[%s4251_s14 + $0x18] sm:$0xff] %vm306_vm0, %v3401_v5 }
 0x718 PF: > { %s18_s27 = sadd.s32 1, %s4146_s27  }
 0x719   : > { %p15_p4 = scmp.ge.s32.totalorder %s18_s27, 4  }
 0x71b   :  { %17 = sbr.rel (!%p15_p4) target bundleno = 1 (0x1), region = 112 }

// kernel: densenet_bc_forward.16
= control target key start
LH: loop header
LB: loop body
LE: loop exit
PB: predicated region body
PF: predicated region fallthrough
CT: control target
= control target key end

     0   :  { %s732_s18 = smov 0   ;;  %s822_s0 = inlined_call_operand.vmem [shape: f32[2,48,4], index: 0, kind: input, shape index: {}]   ;;  %s823_s1 = inlined_call_operand.vmem [shape: f32[48,1], index: 1, kind: input, shape index: {}]   ;;  %s824_s2 = inlined_call_operand.vmem [shape: f32[48,1], index: 2, kind: input, shape index: {}]   ;;  %s825_s3 = inlined_call_operand.vmem [shape: f32[24,48], index: 3, kind: input, shape index: {}]   ;;  %s826_s4 = inlined_call_operand.vmem [shape: f32[4,1], index: 4, kind: input, shape index: {}]   ;;  %s827_s5 = inlined_call_operand.vmem [shape: f32[2,24,1], index: 5, kind: output, shape index: {}]  }
   0x1 LB: > { %s592_s19 = sadd.s32 4294967295, %s696_s18   ;;  %p596_p0 = scmp.ge.s32.totalorder %s696_s18, 1  ;;  %s696_s18 = sphi %s732_s18, %s15_s18  }
   0x2   : > { %p187_p1 = scmp.lt.s32.totalorder %s696_s18, 3 }
   0x4   : > { %p188_p2 = pnand %p596_p0, %p187_p1 }
   0x5   : > { %v273_v0 = vld [vmem:[%s824_s2] sm:$0xff] (!%p188_p2)  ;;  %v698_v2 = vmov (!%p188_p2), 0   ;;  %v274_v3 = vld [vmem:[%s824_s2 + $0x8] sm:$0xff] (!%p188_p2)  ;;  %v234_v5 = vld [vmem:[%s823_s1 + $0x18] sm:$0xff] (!%p188_p2)  ;;  %vm341_vm0 = vcmask (!%p188_p2), 1043456   ;;  %p215_p3 = scmp.lt.s32.totalorder (!%p188_p2), %s592_s19, 1 }
   0x6   : > { %191 = sbr.rel (%p188_p2) target bundleno = 595 (0x253), region = 40  ;;  %v231_v1 = vld [vmem:[%s823_s1] sm:$0xff] (!%p188_p2)  ;;  %689 = vset.pattern.permute.xlu1 (!%p188_p2), %v698_v2  ;;  %688 = vset.pattern.permute.xlu0 (!%p188_p2), %v698_v2  ;;  %v232_v4 = vld [vmem:[%s823_s1 + $0x8] sm:$0xff] (!%p188_p2)  ;;  %v233_v6 = vld [vmem:[%s823_s1 + $0x10] sm:$0xff] (!%p188_p2)  ;;  %vm322_vm1 = vcmask (!%p188_p2), 31744   ;;  %v699_v50 = vmov (!%p188_p2), 0.0|0.0  }
   0x7   : > { %281 = vperm.xlu1 (!%p188_p2), %689, %v273_v0   ;;  %239 = vperm.xlu0 (!%p188_p2), %688, %v231_v1   ;;  %v321_v7 = vld [vmem:[%s826_s4] sm:$0xf] (!%p188_p2)  ;;  %v276_v8 = vld [vmem:[%s824_s2 + $0x18] sm:$0xff] (!%p188_p2)  ;;  %v275_v9 = vld [vmem:[%s824_s2 + $0x10] sm:$0xff] (!%p188_p2)  ;;  %vm700_vm2 = vmmov (!%p188_p2), 0   ;;  %v701_v51 = vmov (!%p188_p2), 0.0  }
   0x8   : > { %627 = vmatprep.subr.msk.mxu0 (!%p188_p2), %vm341_vm0, %v321_v7  ;;  %v236_v10 = vld [vmem:[%s823_s1 + $0x28] sm:$0xff] (!%p188_p2)  ;;  %v235_v11 = vld [vmem:[%s823_s1 + $0x20] sm:$0xff] (!%p188_p2)  ;;  %668 = vmatprep.subr.bf16.mxu1 (!%p188_p2), %v699_v50  ;;  %vm443_vm3 = vcmask (!%p188_p2), 392192   ;;  %v442_v63 = vld [vmem:[%s825_s3 + $0x10] sm:$0xff] (!%p188_p2)  ;;  %vm533_vm4 = vcmask (!%p188_p2), 7168  }
   0x9   : > { %628 = vmatpush3.msk.msra.mxu0 (!%p188_p2), %vm341_vm0, %v321_v7  ;;  %v278_v12 = vld [vmem:[%s824_s2 + $0x28] sm:$0xff] (!%p188_p2)  ;;  %v277_v13 = vld [vmem:[%s824_s2 + $0x20] sm:$0xff] (!%p188_p2)  ;;  %653 = vmatprep.mubr.msk.f32.mxu1 (!%p188_p2), %vm700_vm2, %v701_v51 }
   0xa   : > { %659 = vmatprep.subr.bf16.mxu0 (!%p188_p2), %v699_v50  ;;  %v441_v61 = vld [vmem:[%s825_s3 + $0x8] sm:$0xff] (!%p188_p2)  ;;  %v440_v62 = vld [vmem:[%s825_s3] sm:$0xff] (!%p188_p2) }
   0xb   : > { %286 = vperm.xlu1 (!%p188_p2), %689, %v274_v3   ;;  %244 = vperm.xlu0 (!%p188_p2), %688, %v232_v4  }
   0xd   : > { %s829_s19 = smov (!%p215_p3, %s592_s19), 1 }
   0xe   : > { %s674_s23 = smul.u32 48, %s829_s19 }
   0xf   : > { %254 = vperm.xlu1 %689, %v234_v5   ;;  %249 = vperm.xlu0 %688, %v233_v6   ;;  %s675_s8 = smul.u32 24, %s829_s19 }
  0x10   : > { %s789_s26 = scalar_lea.vmem %s822_s0, %s674_s23 }
  0x11   : > { %v225_v14 = vld [vmem:[%s789_s26] sm:$0xff]  ;;  %v226_v18 = vld [vmem:[%s789_s26 + $0x8] sm:$0xff]  ;;  %v228_v26 = vld [vmem:[%s789_s26 + $0x18] sm:$0xff]  ;;  %s224_s11 = scalar_lea.vmem %s827_s5, %s675_s8 }
  0x12   : > { %v227_v28 = vld [vmem:[%s789_s26 + $0x10] sm:$0xff]  ;;  %v230_v39 = vld [vmem:[%s789_s26 + $0x28] sm:$0xff]  ;;  %v229_v41 = vld [vmem:[%s789_s26 + $0x20] sm:$0xff] }
  0x13   : > { %296 = vperm.xlu1 %689, %v276_v8   ;;  %291 = vperm.xlu0 %688, %v275_v9  }
  0x17   : > { %264 = vperm.xlu1 %689, %v236_v10   ;;  %259 = vperm.xlu0 %688, %v235_v11  }
  0x1b   : > { %306 = vperm.xlu1 %689, %v278_v12   ;;  %301 = vperm.xlu0 %688, %v277_v13  }
  0x86   : > { %v282_v15 = vpop.permute.xlu1 %281  ;;  %v240_v16 = vpop.permute.xlu0 %239 }
  0x87   : > { %v267_v17 = vmul.f32 %v240_v16, %v225_v14 }
  0x89   : > { %v309_v19 = vadd.f32 %v282_v15, %v267_v17 }
  0x8a   : > { %v287_v20 = vpop.permute.xlu1 %286  ;;  %v245_v21 = vpop.permute.xlu0 %244 }
  0x8b   : > { %v268_v22 = vmul.f32 %v245_v21, %v226_v18  ;;  %v315_v23 = vmax.f32 %v309_v19, 0.0 }
  0x8d   : > { %v310_v24 = vadd.f32 %v287_v20, %v268_v22  ;;  %629 = vmatprep.mubr.msk.f32.mxu0 %vm322_vm1, %v315_v23 }
  0x8e   : > { %v255_v25 = vpop.permute.xlu1 %254  ;;  %v250_v27 = vpop.permute.xlu0 %249 }
  0x8f   : > { %v316_v29 = vmax.f32 %v310_v24, 0.0  ;;  %v270_v30 = vmul.f32 %v255_v25, %v228_v26  ;;  %v269_v31 = vmul.f32 %v250_v27, %v227_v28 }
  0x91   : > { %630 = vmatmul.mubr.msk.f32.vlgmr.msra.gmra.mrb[0].mxu0 %vm322_vm1, %v316_v29 }
  0x92   : > { %v297_v32 = vpop.permute.xlu1 %296  ;;  %v292_v33 = vpop.permute.xlu0 %291 }
  0x93   : > { %v312_v34 = vadd.f32 %v297_v32, %v270_v30  ;;  %v311_v35 = vadd.f32 %v292_v33, %v269_v31 }
  0x95   : > { %v318_v36 = vmax.f32 %v312_v34, 0.0  ;;  %v317_v37 = vmax.f32 %v311_v35, 0.0 }
  0x96   : > { %v265_v38 = vpop.permute.xlu1 %264  ;;  %v260_v40 = vpop.permute.xlu0 %259 }
  0x97   : > { %632 = vmatprep.mubr.msk.f32.mxu0 %vm322_vm1, %v317_v37  ;;  %v272_v42 = vmul.f32 %v265_v38, %v230_v39  ;;  %v271_v43 = vmul.f32 %v260_v40, %v229_v41 }
  0x98   : > { %633 = vmatmul.mubr.msk.f32.gmra.mrb[2].mxu0 %vm322_vm1, %v318_v36 }
  0x9a   : > { %v307_v44 = vpop.permute.xlu1 %306  ;;  %v302_v45 = vpop.permute.xlu0 %301 }
  0x9b   : > { %v314_v46 = vadd.f32 %v307_v44, %v272_v42  ;;  %v313_v47 = vadd.f32 %v302_v45, %v271_v43 }
  0x9d   : > { %v320_v48 = vmax.f32 %v314_v46, 0.0  ;;  %v319_v49 = vmax.f32 %v313_v47, 0.0 }
  0x9f   : > { %635 = vmatprep.mubr.msk.f32.mxu0 %vm322_vm1, %v319_v49 }
  0xa0   : > { %636 = vmatmul.mubr.msk.f32.gmra.mrb[4].mxu0 %vm322_vm1, %v320_v48 }
  0xa1   : > { %650 = vmatprep.mubr.msk.f32.mxu0 %vm700_vm2, %v701_v51 }
 0x164   : > { %v631_v52 = vpop.f32.mrb[0].mxu0 }
 0x165   : > { %v411_v53 = vpop.f32.mrb[1].mxu0 }
 0x166   : > { %v660_v54 = vpack.c.bf16 %v631_v52, %v411_v53 }
 0x168   : > { %661 = vmatpush3.bf16.msra.mxu0 %v660_v54  ;;  %671 = vmatpush3.bf16.msra.mxu1 %v660_v54 }
 0x169   : > { %662 = vmatprep.subr.bf16.mxu0 %v699_v50  ;;  %669 = vmatprep.subr.bf16.mxu1 %v699_v50 }
 0x16b   : > { %v634_v55 = vpop.f32.mrb[2].mxu0 }
 0x16c   : > { %v421_v56 = vpop.f32.mrb[3].mxu0 }
 0x16d   : > { %v663_v57 = vpack.c.bf16 %v634_v55, %v421_v56 }
 0x16f   : > { %664 = vmatpush3.bf16.msra.mxu0 %v663_v57  ;;  %672 = vmatpush3.bf16.msra.mxu1 %v663_v57 }
 0x170   : > { %665 = vmatprep.subr.bf16.mxu0 %v699_v50  ;;  %670 = vmatprep.subr.bf16.mxu1 %v699_v50 }
 0x173   : > { %v637_v58 = vpop.f32.mrb[4].mxu0 }
 0x174   : > { %v431_v59 = vpop.f32.mrb[5].mxu0 }
 0x175   : > { %v666_v60 = vpack.c.bf16 %v637_v58, %v431_v59 }
 0x177   : > { %667 = vmatpush3.bf16.msra.mxu0 %v666_v60  ;;  %673 = vmatpush3.bf16.msra.mxu1 %v666_v60 }
 0x17a   : > { %654 = vmatmul.mubr.msk.f32.vlgmr.msra.gmra.mrb[0].mxu1 %vm443_vm3, %v441_v61  ;;  %651 = vmatmul.mubr.msk.f32.vlgmr.msra.gmra.mrb[6].mxu0 %vm443_vm3, %v440_v62 }
 0x17b   : > { %656 = vmatprep.mubr.msk.f32.mxu1 %vm700_vm2, %v701_v51 }
 0x17e   : > { %657 = vmatmul.mubr.msk.f32.gmra.mrb[2].mxu1 %vm443_vm3, %v442_v63 }
 0x24d   : > { %v524_v0 = vpop.f32.mrb[0].mxu1  ;;  %v519_v1 = vpop.f32.mrb[6].mxu0 }
 0x24e   : > { %535 = vst.msk [vmem:[%s224_s11 + $0x8] sm:$0xff] %vm533_vm4, %v524_v0  ;;  %v655_v2 = vpop.f32.mrb[1].mxu1  ;;  %534 = vst.msk [vmem:[%s224_s11] sm:$0xff] %vm533_vm4, %v519_v1  ;;  %v652_v3 = vpop.f32.mrb[7].mxu0 }
 0x251   : > { %v529_v4 = vpop.f32.mrb[2].mxu1 }
 0x252   : > { %536 = vst.msk [vmem:[%s224_s11 + $0x10] sm:$0xff] %vm533_vm4, %v529_v4  ;;  %v658_v5 = vpop.f32.mrb[3].mxu1 }
 0x253 PF: > { %s15_s18 = sadd.s32 1, %s696_s18  }
 0x254   : > { %p12_p4 = scmp.ge.s32.totalorder %s15_s18, 4  }
 0x256   :  { %14 = sbr.rel (!%p12_p4) target bundleno = 1 (0x1), region = 70 }

// kernel: densenet_bc_forward.17
= control target key start
LH: loop header
LB: loop body
LE: loop exit
PB: predicated region body
PF: predicated region fallthrough
CT: control target
= control target key end

     0   :  { %s972_s27 = smov 0   ;;  %s1139_s0 = inlined_call_operand.vmem [shape: f32[2,24,1], index: 0, kind: input, shape index: {}]   ;;  %s1140_s1 = inlined_call_operand.vmem [shape: f32[2,40,1], index: 1, kind: input, shape index: {}]   ;;  %s1141_s2 = inlined_call_operand.vmem [shape: f32[2,40,1], index: 2, kind: input, shape index: {}]   ;;  %s1142_s3 = inlined_call_operand.vmem [shape: f32[2,16,40], index: 3, kind: input, shape index: {}]   ;;  %s1143_s4 = inlined_call_operand.vmem [shape: f32[2,16,1], index: 4, kind: input, shape index: {}]   ;;  %s1144_s5 = inlined_call_operand.vmem [shape: f32[2,16,1], index: 5, kind: input, shape index: {}]   ;;  %s1145_s6 = inlined_call_operand.vmem [shape: f32[18,8,16], index: 6, kind: input, shape index: {}]   ;;  %s1146_s7 = inlined_call_operand.vmem [shape: f32[9,1,1], index: 7, kind: input, shape index: {}]   ;;  %s1147_s8 = inlined_call_operand.vmem [shape: f32[2,40,1], index: 8, kind: output, shape index: {}]  }
   0x1 LB: > { %s788_s28 = sadd.s32 4294967295, %s922_s27   ;;  %p792_p0 = scmp.ge.s32.totalorder %s922_s27, 1  ;;  %s922_s27 = sphi %s972_s27, %s18_s27  }
   0x2   : > { %p262_p1 = scmp.lt.s32.totalorder %s922_s27, 3 }
   0x4   : > { %p263_p2 = pnand %p792_p0, %p262_p1 }
   0x5   : > { %p296_p3 = scmp.lt.s32.totalorder (!%p263_p2), %s788_s28, 1  ;;  %vm306_vm0 = vcmask (!%p263_p2), 7168   ;;  %v924_v0 = vmov (!%p263_p2), 0.0   ;;  %vm350_vm1 = vcmask (!%p263_p2), 326656   ;;  %v348_v1 = vld [vmem:[%s1142_s3] sm:$0xff] (!%p263_p2)  ;;  %v326_v2 = vld [vmem:[%s1140_s1 + $0x18] sm:$0xff] (!%p263_p2) }
   0x6   : > { %266 = sbr.rel (%p263_p2) target bundleno = 947 (0x3b3), region = 52  ;;  %307 = vst.msk [vmem:[#allocation2] sm:$0xff] (!%p263_p2), %vm306_vm0, %v924_v0  ;;  %308 = vst.msk [vmem:[#allocation2 + $0x8] sm:$0xff] (!%p263_p2), %vm306_vm0, %v924_v0  ;;  %851 = vmatprep.mubr.msk.f32.mxu0 (!%p263_p2), %vm350_vm1, %v348_v1  ;;  %v336_v8 = vld [vmem:[%s1141_s2 + $0x18] sm:$0xff] (!%p263_p2)  ;;  %v323_v9 = vld [vmem:[%s1140_s1] sm:$0xff] (!%p263_p2)  ;;  %v925_v38 = vmov (!%p263_p2), 0.0|0.0  }
   0x7   : > { %309 = vst.msk [vmem:[#allocation2 + $0x10] sm:$0xff] (!%p263_p2), %vm306_vm0, %v924_v0  ;;  %310 = vst.msk [vmem:[#allocation2 + $0x18] sm:$0xff] (!%p263_p2), %vm306_vm0, %v924_v0  ;;  %v324_v10 = vld [vmem:[%s1140_s1 + $0x8] sm:$0xff] (!%p263_p2)  ;;  %v333_v11 = vld [vmem:[%s1141_s2] sm:$0xff] (!%p263_p2)  ;;  %889 = vmatprep.subr.bf16.mxu1 (!%p263_p2), %v925_v38  ;;  %vm926_vm2 = vmmov (!%p263_p2), 0   ;;  %vm444_vm3 = vcmask (!%p263_p2), 130048  }
   0x8   : > { %311 = vst.msk [vmem:[#allocation2 + $0x20] sm:$0xff] (!%p263_p2), %vm306_vm0, %v924_v0  ;;  %v334_v12 = vld [vmem:[%s1141_s2 + $0x8] sm:$0xff] (!%p263_p2)  ;;  %v325_v13 = vld [vmem:[%s1140_s1 + $0x10] sm:$0xff] (!%p263_p2)  ;;  %v327_v17 = vld [vmem:[%s1140_s1 + $0x20] sm:$0xff] (!%p263_p2)  ;;  %858 = vmatprep.mubr.msk.f32.mxu1 (!%p263_p2), %vm926_vm2, %v924_v0 }
   0x9   : > { %v335_v14 = vld [vmem:[%s1141_s2 + $0x10] sm:$0xff] (!%p263_p2)  ;;  %v337_v29 = vld [vmem:[%s1141_s2 + $0x20] sm:$0xff] (!%p263_p2)  ;;  %v349_v37 = vld [vmem:[%s1142_s3 + $0x8] sm:$0xff] (!%p263_p2) }
   0xa   : > { %v433_v39 = vld [vmem:[%s1143_s4 + $0x8] sm:$0xff] (!%p263_p2)  ;;  %v432_v40 = vld [vmem:[%s1143_s4] sm:$0xff] (!%p263_p2)  ;;  %v800_v54 = vld [vmem:[%s1140_s1 + $0x30] sm:$0xff] (!%p263_p2) }
   0xb   : > { %v437_v42 = vld [vmem:[%s1144_s5 + $0x8] sm:$0xff] (!%p263_p2)  ;;  %v436_v45 = vld [vmem:[%s1144_s5] sm:$0xff] (!%p263_p2)  ;;  %v805_v58 = vld [vmem:[%s1141_s2 + $0x30] sm:$0xff] (!%p263_p2) }
   0xc   : > { %v797_v52 = vld [vmem:[%s1145_s6 + $0x20] sm:$0xff] (!%p263_p2)  ;;  %v799_v53 = vld [vmem:[%s1140_s1 + $0x28] sm:$0xff] (!%p263_p2) }
   0xd   : > { %s1149_s28 = smov (!%p296_p3, %s788_s28), 1  ;;  %v804_v57 = vld [vmem:[%s1141_s2 + $0x28] sm:$0xff] }
   0xe   : > { %s903_s30 = smul.u32 24, %s1149_s28  ;;  %v321_v6 = vld [vmem:[#allocation2 + $0x18] sm:$0xff] }
   0xf   : > { %v331_v7 = vmul.f32 %v326_v2, %v321_v6  ;;  %v1027_v16 = vld [vmem:[#allocation2 + $0x20] sm:$0xff]  ;;  %s904_s13 = smul.u32 40, %s1149_s28  ;;  %v801_v2 = vld [vmem:[%s1140_s1 + $0x38] sm:$0xff]  ;;  %v803_v6 = vld [vmem:[%s1140_s1 + $0x48] sm:$0xff] }
  0x10   : > { %s300_s11 = scalar_lea.vmem %s1139_s0, %s903_s30  ;;  %v332_v24 = vmul.f32 %v327_v17, %v1027_v16 }
  0x11   : > { %v312_v3 = vld [vmem:[%s300_s11] sm:$0xff]  ;;  %v313_v4 = vld [vmem:[%s300_s11 + $0x8] sm:$0xff]  ;;  %v314_v5 = vld [vmem:[%s300_s11 + $0x10] sm:$0xff]  ;;  %v341_v15 = vadd.f32 %v336_v8, %v331_v7  ;;  %s1049_s16 = scalar_lea.vmem %s1147_s8, %s904_s13 }
  0x12   : > { %315 = vst.msk [vmem:[#allocation2] sm:$0xff] %vm306_vm0, %v312_v3  ;;  %316 = vst.msk [vmem:[#allocation2 + $0x8] sm:$0xff] %vm306_vm0, %v313_v4  ;;  %v342_v35 = vadd.f32 %v337_v29, %v332_v24  ;;  %v802_v7 = vld [vmem:[%s1140_s1 + $0x40] sm:$0xff]  ;;  %v816_v24 = vld [vmem:[%s1144_s5 + $0x18] sm:$0xff] }
  0x13   : > { %317 = vst.msk [vmem:[#allocation2 + $0x10] sm:$0xff] %vm306_vm0, %v314_v5  ;;  %v346_v28 = vmax.f32 %v341_v15, 0.0  ;;  %v806_v5 = vld [vmem:[%s1141_s2 + $0x38] sm:$0xff] }
  0x14   : > { %v347_v36 = vmax.f32 %v342_v35, 0.0 }
  0x19   : > { %v318_v18 = vld [vmem:[#allocation2] sm:$0xff]  ;;  %v319_v19 = vld [vmem:[#allocation2 + $0x8] sm:$0xff] }
  0x1a   : > { %v1032_v20 = vld [vmem:[#allocation2 + $0x10] sm:$0xff]  ;;  %v328_v21 = vmul.f32 %v323_v9, %v318_v18  ;;  %v329_v22 = vmul.f32 %v324_v10, %v319_v19  ;;  %728 = vst.msk [vmem:[%s1049_s16] sm:$0xff] %vm306_vm0, %v318_v18  ;;  %729 = vst.msk [vmem:[%s1049_s16 + $0x8] sm:$0xff] %vm306_vm0, %v319_v19  ;;  %v530_v55 = vmul.f32 %v799_v53, %v318_v18 }
  0x1b   : > { %v330_v23 = vmul.f32 %v325_v13, %v1032_v20  ;;  %730 = vst.msk [vmem:[%s1049_s16 + $0x10] sm:$0xff] %vm306_vm0, %v1032_v20  ;;  %v531_v56 = vmul.f32 %v800_v54, %v319_v19  ;;  %v532_v4 = vmul.f32 %v801_v2, %v1032_v20  ;;  %v534_v9 = vmul.f32 %v803_v6, %v1027_v16  ;;  %v810_v16 = vld [vmem:[%s1142_s3 + $0x18] sm:$0xff] }
  0x1c   : > { %v338_v25 = vadd.f32 %v333_v11, %v328_v21  ;;  %v339_v26 = vadd.f32 %v334_v12, %v329_v22  ;;  %v541_v59 = vadd.f32 %v804_v57, %v530_v55  ;;  %v807_v11 = vld [vmem:[%s1141_s2 + $0x40] sm:$0xff]  ;;  %v808_v12 = vld [vmem:[%s1141_s2 + $0x48] sm:$0xff]  ;;  %v814_v21 = vld [vmem:[%s1143_s4 + $0x18] sm:$0xff] }
  0x1d   : > { %v340_v27 = vadd.f32 %v335_v14, %v330_v23  ;;  %v542_v60 = vadd.f32 %v805_v58, %v531_v56  ;;  %v543_v8 = vadd.f32 %v806_v5, %v532_v4  ;;  %v545_v17 = vadd.f32 %v808_v12, %v534_v9  ;;  %v813_v22 = vld [vmem:[%s1143_s4 + $0x10] sm:$0xff] }
  0x1e   : > { %v343_v30 = vmax.f32 %v338_v25, 0.0  ;;  %v344_v31 = vmax.f32 %v339_v26, 0.0  ;;  %v546_v61 = vmax.f32 %v541_v59, 0.0 }
  0x1f   : > { %v345_v32 = vmax.f32 %v340_v27, 0.0  ;;  %v547_v62 = vmax.f32 %v542_v60, 0.0  ;;  %v548_v15 = vmax.f32 %v543_v8, 0.0  ;;  %v550_v20 = vmax.f32 %v545_v17, 0.0  ;;  %v815_v27 = vld [vmem:[%s1144_s5 + $0x10] sm:$0xff] }
  0x20   : > { %v881_v33 = vpack.c.bf16 %v344_v31, %v343_v30 }
  0x21   : > { %v885_v34 = vpack.c.bf16 %v346_v28, %v345_v32  ;;  %v892_v63 = vpack.c.bf16 %v547_v62, %v546_v61 }
  0x22   : > { %882 = vmatprep.subr.bf16.mxu0 %v881_v33 }
  0x23   : > { %884 = vmatpush3.bf16.msra.mxu0 %v881_v33 }
  0x24   : > { %886 = vmatprep.subr.bf16.mxu0 %v885_v34 }
  0x27   : > { %888 = vmatpush3.bf16.msra.mxu0 %v885_v34  ;;  %v817_v34 = vld [vmem:[%s1145_s6 + $0x68] sm:$0xff] }
  0x28   : > { %849 = vmatprep.subr.mxu0 %v347_v36 }
  0x2b   : > { %850 = vmatpush3.msra.mxu0 %v347_v36 }
  0x2c   : > { %852 = vmatmul.mubr.msk.f32.vlgmr.msra.gmra.mrb[0].mxu0 %vm350_vm1, %v349_v37  ;;  %900 = vmatprep.subr.bf16.mxu0 %v925_v38 }
  0x2d   : > { %878 = vmatprep.mubr.msk.f32.mxu0 %vm926_vm2, %v924_v0  ;;  %v809_v0 = vld [vmem:[%s1142_s3 + $0x10] sm:$0xff] }
  0xff   : > { %v853_v41 = vpop.f32.mrb[0].mxu0 }
 0x100   : > { %v435_v43 = vmul.f32 %v853_v41, %v433_v39  ;;  %v423_v44 = vpop.f32.mrb[1].mxu0 }
 0x101   : > { %v434_v46 = vmul.f32 %v432_v40, %v423_v44 }
 0x102   : > { %v439_v47 = vadd.f32 %v437_v42, %v435_v43 }
 0x103   : > { %v438_v48 = vadd.f32 %v436_v45, %v434_v46 }
 0x104   : > { %v441_v49 = vmax.f32 %v439_v47, 0.0 }
 0x105   : > { %v440_v50 = vmax.f32 %v438_v48, 0.0 }
 0x107   : > { %v890_v51 = vpack.c.bf16 %v441_v49, %v440_v50 }
 0x109   : > { %891 = vmatpush3.bf16.msra.mxu1 %v890_v51 }
 0x10a   : > { %893 = vmatprep.subr.bf16.mxu1 %v892_v63 }
 0x10c   : > { %859 = vmatmul.mubr.msk.f32.vlgmr.msra.gmra.mrb[0].mxu1 %vm444_vm3, %v797_v52 }
 0x10d   : > { %895 = vmatpush3.bf16.msra.mxu1 %v892_v63  ;;  %871 = vmatprep.mubr.msk.f32.mxu1 %vm350_vm1, %v809_v0 }
 0x1df   : > { %v514_v1 = vpop.f32.mrb[0].mxu1 }
 0x1e0   : > { %518 = vst.msk [vmem:[#allocation2 + $0x18] sm:$0xff] %vm306_vm0, %v514_v1  ;;  %v860_v3 = vpop.f32.mrb[1].mxu1 }
 0x1e7   : > { %v726_v10 = vld [vmem:[#allocation2 + $0x18] sm:$0xff] }
 0x1e8   : > { %731 = vst.msk [vmem:[%s1049_s16 + $0x18] sm:$0xff] %vm306_vm0, %v726_v10  ;;  %v533_v13 = vmul.f32 %v802_v7, %v726_v10 }
 0x1ea   : > { %v544_v14 = vadd.f32 %v807_v11, %v533_v13 }
 0x1ec   : > { %v549_v18 = vmax.f32 %v544_v14, 0.0 }
 0x1ee   : > { %v896_v19 = vpack.c.bf16 %v549_v18, %v548_v15 }
 0x1f0   : > { %897 = vmatprep.subr.bf16.mxu1 %v896_v19 }
 0x1f1   : > { %899 = vmatpush3.bf16.msra.mxu1 %v896_v19 }
 0x1f2   : > { %869 = vmatprep.subr.mxu1 %v550_v20 }
 0x1f5   : > { %870 = vmatpush3.msra.mxu1 %v550_v20 }
 0x1f6   : > { %872 = vmatmul.mubr.msk.f32.vlgmr.msra.gmra.mrb[2].mxu1 %vm350_vm1, %v810_v16 }
 0x2c9   : > { %v873_v23 = vpop.f32.mrb[2].mxu1 }
 0x2ca   : > { %v639_v25 = vmul.f32 %v873_v23, %v814_v21  ;;  %v626_v26 = vpop.f32.mrb[3].mxu1 }
 0x2cb   : > { %v638_v28 = vmul.f32 %v813_v22, %v626_v26 }
 0x2cc   : > { %v644_v29 = vadd.f32 %v816_v24, %v639_v25 }
 0x2cd   : > { %v643_v30 = vadd.f32 %v815_v27, %v638_v28 }
 0x2ce   : > { %v646_v31 = vmax.f32 %v644_v29, 0.0 }
 0x2cf   : > { %v645_v32 = vmax.f32 %v643_v30, 0.0 }
 0x2d1   : > { %v901_v33 = vpack.c.bf16 %v646_v31, %v645_v32 }
 0x2d3   : > { %902 = vmatpush3.bf16.msra.mxu0 %v901_v33 }
 0x2d6   : > { %879 = vmatmul.mubr.msk.f32.vlgmr.msra.gmra.mrb[2].mxu0 %vm444_vm3, %v817_v34 }
 0x3a9   : > { %v718_v35 = vpop.f32.mrb[2].mxu0 }
 0x3aa   : > { %722 = vst.msk [vmem:[#allocation2 + $0x20] sm:$0xff] %vm306_vm0, %v718_v35  ;;  %v880_v36 = vpop.f32.mrb[3].mxu0 }
 0x3b1   : > { %v727_v37 = vld [vmem:[#allocation2 + $0x20] sm:$0xff] }
 0x3b2   : > { %732 = vst.msk [vmem:[%s1049_s16 + $0x20] sm:$0xff] %vm306_vm0, %v727_v37 }
 0x3b3 PF: > { %s18_s27 = sadd.s32 1, %s922_s27  }
 0x3b4   : > { %p15_p4 = scmp.ge.s32.totalorder %s18_s27, 4  }
 0x3b6   :  { %17 = sbr.rel (!%p15_p4) target bundleno = 1 (0x1), region = 89 }

// kernel: densenet_bc_forward.14
= control target key start
LH: loop header
LB: loop body
LE: loop exit
PB: predicated region body
PF: predicated region fallthrough
CT: control target
= control target key end

     0   :  { %s4129_s27 = smov 0   ;;  %s4551_s0 = inlined_call_operand.vmem [shape: f32[2,16,4], index: 0, kind: input, shape index: {}]   ;;  %s4552_s1 = inlined_call_operand.vmem [shape: f32[2,32,1], index: 1, kind: input, shape index: {}]   ;;  %s4553_s2 = inlined_call_operand.vmem [shape: f32[2,32,1], index: 2, kind: input, shape index: {}]   ;;  %s4554_s3 = inlined_call_operand.vmem [shape: f32[2,16,32], index: 3, kind: input, shape index: {}]   ;;  %s4555_s4 = inlined_call_operand.vmem [shape: f32[2,16,1], index: 4, kind: input, shape index: {}]   ;;  %s4556_s5 = inlined_call_operand.vmem [shape: f32[2,16,1], index: 5, kind: input, shape index: {}]   ;;  %s4557_s6 = inlined_call_operand.vmem [shape: f32[18,8,16], index: 6, kind: input, shape index: {}]   ;;  %s4558_s7 = inlined_call_operand.vmem [shape: f32[9,4,4], index: 7, kind: input, shape index: {}]   ;;  %s4559_s8 = inlined_call_operand.vmem [shape: f32[2,32,4], index: 8, kind: output, shape index: {}]  }
   0x1 LB: > { %s3499_s28 = sadd.s32 4294967295, %s4078_s27   ;;  %p3503_p0 = scmp.ge.s32.totalorder %s4078_s27, 1  ;;  %s4078_s27 = sphi %s4129_s27, %s18_s27  }
   0x2   : > { %p262_p1 = scmp.lt.s32.totalorder %s4078_s27, 3 }
   0x4   : > { %p263_p2 = pnand %p3503_p0, %p262_p1 }
   0x5   : > { %v347_v0 = vld [vmem:[%s4553_s2] sm:$0xff] (!%p263_p2)  ;;  %p296_p3 = scmp.lt.s32.totalorder (!%p263_p2), %s3499_s28, 1  ;;  %vm306_vm0 = vcmask (!%p263_p2), 31744   ;;  %v4080_v2 = vmov (!%p263_p2), 0   ;;  %v4081_v3 = vmov (!%p263_p2), 0.0   ;;  %v348_v4 = vld [vmem:[%s4553_s2 + $0x8] sm:$0xff] (!%p263_p2) }
   0x6   : > { %266 = sbr.rel (%p263_p2) target bundleno = 1816 (0x718), region = 52  ;;  %v319_v1 = vld [vmem:[%s4552_s1] sm:$0xff] (!%p263_p2)  ;;  %4071 = vset.pattern.permute.xlu1 (!%p263_p2), %v4080_v2  ;;  %4070 = vset.pattern.permute.xlu0 (!%p263_p2), %v4080_v2  ;;  %307 = vst.msk [vmem:[#allocation2] sm:$0xff] (!%p263_p2), %vm306_vm0, %v4081_v3  ;;  %308 = vst.msk [vmem:[#allocation2 + $0x8] sm:$0xff] (!%p263_p2), %vm306_vm0, %v4081_v3  ;;  %v320_v5 = vld [vmem:[%s4552_s1 + $0x8] sm:$0xff] (!%p263_p2)  ;;  %vm381_vm1 = vcmask (!%p263_p2), 261120  }
   0x7   : > { %353 = vperm.xlu1 (!%p263_p2), %4071, %v347_v0   ;;  %325 = vperm.xlu0 (!%p263_p2), %4070, %v319_v1   ;;  %309 = vst.msk [vmem:[#allocation2 + $0x10] sm:$0xff] (!%p263_p2), %vm306_vm0, %v4081_v3  ;;  %310 = vst.msk [vmem:[#allocation2 + $0x18] sm:$0xff] (!%p263_p2), %vm306_vm0, %v4081_v3  ;;  %v322_v6 = vld [vmem:[%s4552_s1 + $0x18] sm:$0xff] (!%p263_p2)  ;;  %v321_v7 = vld [vmem:[%s4552_s1 + $0x10] sm:$0xff] (!%p263_p2)  ;;  %v4082_v56 = vmov (!%p263_p2), 0.0|0.0   ;;  %vm4083_vm2 = vmmov (!%p263_p2), 0  }
   0x8   : > { %v350_v10 = vld [vmem:[%s4553_s2 + $0x18] sm:$0xff] (!%p263_p2)  ;;  %v349_v11 = vld [vmem:[%s4553_s2 + $0x10] sm:$0xff] (!%p263_p2)  ;;  %v464_v12 = vld [vmem:[%s4555_s4 + $0x8] sm:$0xff] (!%p263_p2)  ;;  %3965 = vmatprep.subr.bf16.mxu1 (!%p263_p2), %v4082_v56  ;;  %3734 = vmatprep.mubr.msk.f32.mxu1 (!%p263_p2), %vm4083_vm2, %v4081_v3  ;;  %vm494_vm3 = vcmask (!%p263_p2), 130048   ;;  %vm649_vm4 = vcmask (!%p263_p2), 1043456  }
   0x9   : > { %v463_v13 = vld [vmem:[%s4555_s4] sm:$0xff] (!%p263_p2)  ;;  %v478_v16 = vld [vmem:[%s4556_s5 + $0x8] sm:$0xff] (!%p263_p2)  ;;  %v3556_v23 = vld [vmem:[%s4552_s1 + $0x38] sm:$0xff] (!%p263_p2) }
   0xa   : > { %v477_v17 = vld [vmem:[%s4556_s5] sm:$0xff] (!%p263_p2)  ;;  %v3554_v19 = vld [vmem:[%s4552_s1 + $0x28] sm:$0xff] (!%p263_p2)  ;;  %v3555_v24 = vld [vmem:[%s4552_s1 + $0x30] sm:$0xff] (!%p263_p2) }
   0xb   : > { %358 = vperm.xlu1 (!%p263_p2), %4071, %v348_v4   ;;  %330 = vperm.xlu0 (!%p263_p2), %4070, %v320_v5   ;;  %v379_v18 = vld [vmem:[%s4554_s3] sm:$0xff] (!%p263_p2)  ;;  %v3558_v21 = vld [vmem:[%s4553_s2 + $0x28] sm:$0xff] (!%p263_p2)  ;;  %v3560_v25 = vld [vmem:[%s4553_s2 + $0x38] sm:$0xff] (!%p263_p2) }
   0xc   : > { %v3553_v20 = vld [vmem:[%s4552_s1 + $0x20] sm:$0xff] (!%p263_p2)  ;;  %3727 = vmatprep.mubr.msk.f32.mxu0 (!%p263_p2), %vm381_vm1, %v379_v18  ;;  %v3559_v26 = vld [vmem:[%s4553_s2 + $0x30] sm:$0xff] (!%p263_p2)  ;;  %v3566_v27 = vld [vmem:[%s4555_s4 + $0x18] sm:$0xff] (!%p263_p2) }
   0xd   : > { %s4561_s28 = smov (!%p296_p3, %s3499_s28), 1  ;;  %v3557_v22 = vld [vmem:[%s4553_s2 + $0x20] sm:$0xff]  ;;  %v3565_v28 = vld [vmem:[%s4555_s4 + $0x10] sm:$0xff]  ;;  %v3568_v29 = vld [vmem:[%s4556_s5 + $0x18] sm:$0xff] }
   0xe   : > { %s3615_s15 = sshll.u32 %s4561_s28, 4  ;;  %s3616_s29 = sshll.u32 %s4561_s28, 5  ;;  %v3567_v30 = vld [vmem:[%s4556_s5 + $0x10] sm:$0xff]  ;;  %v4243_v40 = vld [vmem:[#allocation2 + $0x18] sm:$0xff]  ;;  %v380_v55 = vld [vmem:[%s4554_s3 + $0x8] sm:$0xff] }
   0xf   : > { %s300_s18 = scalar_lea.vmem %s4551_s0, %s3615_s15  ;;  %340 = vperm.xlu1 %4071, %v322_v6   ;;  %335 = vperm.xlu0 %4070, %v321_v7   ;;  %s4183_s14 = scalar_lea.vmem %s4559_s8, %s3616_s29  ;;  %v317_v42 = vld [vmem:[#allocation2 + $0x10] sm:$0xff]  ;;  %v493_v7 = vld [vmem:[%s4557_s6] sm:$0xff] }
  0x10   : > { %v311_v8 = vld [vmem:[%s300_s18] sm:$0xff]  ;;  %v312_v9 = vld [vmem:[%s300_s18 + $0x8] sm:$0xff]  ;;  %v3518_v18 = vld [vmem:[%s4557_s6 + $0x10] sm:$0xff] }
  0x11   : > { %313 = vst.msk [vmem:[#allocation2] sm:$0xff] %vm306_vm0, %v311_v8  ;;  %314 = vst.msk [vmem:[#allocation2 + $0x8] sm:$0xff] %vm306_vm0, %v312_v9  ;;  %v3511_v8 = vld [vmem:[%s4557_s6 + $0x8] sm:$0xff]  ;;  %v568_v9 = vld [vmem:[%s4558_s7] sm:$0xf] }
  0x13   : > { %368 = vperm.xlu1 %4071, %v350_v10   ;;  %363 = vperm.xlu0 %4070, %v349_v11   ;;  %v3513_v10 = vld [vmem:[%s4558_s7 + $0x4] sm:$0xf]  ;;  %v3520_v11 = vld [vmem:[%s4558_s7 + $0x8] sm:$0xf] }
  0x17   : > { %472 = vperm.xlu1 %4071, %v464_v12   ;;  %467 = vperm.xlu0 %4070, %v463_v13  }
  0x18   : > { %v4185_v14 = vld [vmem:[#allocation2] sm:$0xff]  ;;  %v4187_v15 = vld [vmem:[#allocation2 + $0x8] sm:$0xff] }
  0x19   : > { %3440 = vst.msk [vmem:[%s4183_s14] sm:$0xff] %vm306_vm0, %v4185_v14  ;;  %3441 = vst.msk [vmem:[%s4183_s14 + $0x8] sm:$0xff] %vm306_vm0, %v4187_v15 }
  0x1b   : > { %486 = vperm.xlu1 %4071, %v478_v16   ;;  %481 = vperm.xlu0 %4070, %v477_v17  }
  0x1f   : > { %1894 = vperm.xlu1 %4071, %v3554_v19   ;;  %1889 = vperm.xlu0 %4070, %v3553_v20   ;;  %v3523_v19 = vld [vmem:[%s4557_s6 + $0x18] sm:$0xff] }
  0x23   : > { %1923 = vperm.xlu1 %4071, %v3558_v21   ;;  %1918 = vperm.xlu0 %4070, %v3557_v22   ;;  %v3528_v22 = vld [vmem:[%s4557_s6 + $0x20] sm:$0xff] }
  0x27   : > { %1904 = vperm.xlu1 %4071, %v3556_v23   ;;  %1899 = vperm.xlu0 %4070, %v3555_v24  }
  0x2b   : > { %1933 = vperm.xlu1 %4071, %v3560_v25   ;;  %1928 = vperm.xlu0 %4070, %v3559_v26   ;;  %v3533_v25 = vld [vmem:[%s4557_s6 + $0x28] sm:$0xff] }
  0x2f   : > { %2038 = vperm.xlu1 %4071, %v3566_v27   ;;  %2033 = vperm.xlu0 %4070, %v3565_v28  }
  0x33   : > { %2053 = vperm.xlu1 %4071, %v3568_v29   ;;  %2048 = vperm.xlu0 %4070, %v3567_v30   ;;  %v3538_v30 = vld [vmem:[%s4557_s6 + $0x30] sm:$0xff] }
  0x86   : > { %v354_v31 = vpop.permute.xlu1 %353  ;;  %v326_v32 = vpop.permute.xlu0 %325 }
  0x87   : > { %v343_v33 = vmul.f32 %v326_v32, %v4185_v14 }
  0x89   : > { %v371_v36 = vadd.f32 %v354_v31, %v343_v33  ;;  %v3548_v33 = vld [vmem:[%s4557_s6 + $0x40] sm:$0xff] }
  0x8a   : > { %v359_v34 = vpop.permute.xlu1 %358  ;;  %v331_v35 = vpop.permute.xlu0 %330 }
  0x8b   : > { %v344_v37 = vmul.f32 %v331_v35, %v4187_v15  ;;  %v375_v43 = vmax.f32 %v371_v36, 0.0  ;;  %v3525_v36 = vld [vmem:[%s4558_s7 + $0xc] sm:$0xf] }
  0x8d   : > { %v372_v38 = vadd.f32 %v359_v34, %v344_v37 }
  0x8e   : > { %v341_v39 = vpop.permute.xlu1 %340  ;;  %v336_v41 = vpop.permute.xlu0 %335 }
  0x8f   : > { %v376_v44 = vmax.f32 %v372_v38, 0.0  ;;  %v346_v45 = vmul.f32 %v341_v39, %v4243_v40  ;;  %v345_v46 = vmul.f32 %v336_v41, %v317_v42  ;;  %v3530_v42 = vld [vmem:[%s4558_s7 + $0x10] sm:$0xf] }
  0x91   : > { %v3957_v47 = vpack.c.bf16 %v376_v44, %v375_v43 }
  0x92   : > { %v369_v48 = vpop.permute.xlu1 %368  ;;  %v364_v49 = vpop.permute.xlu0 %363 }
  0x93   : > { %v374_v50 = vadd.f32 %v369_v48, %v346_v45  ;;  %v373_v51 = vadd.f32 %v364_v49, %v345_v46  ;;  %3958 = vmatprep.subr.bf16.mxu0 %v3957_v47 }
  0x94   : > { %3960 = vmatpush3.bf16.msra.mxu0 %v3957_v47  ;;  %v3535_v47 = vld [vmem:[%s4558_s7 + $0x14] sm:$0xf] }
  0x95   : > { %v378_v52 = vmax.f32 %v374_v50, 0.0  ;;  %v377_v53 = vmax.f32 %v373_v51, 0.0 }
  0x96   : > { %v473_v57 = vpop.permute.xlu1 %472  ;;  %v468_v58 = vpop.permute.xlu0 %467 }
  0x97   : > { %v3961_v54 = vpack.c.bf16 %v378_v52, %v377_v53  ;;  %v3540_v52 = vld [vmem:[%s4558_s7 + $0x18] sm:$0xf] }
  0x99   : > { %3962 = vmatprep.subr.bf16.mxu0 %v3961_v54 }
  0x9a   : > { %3964 = vmatpush3.bf16.msra.mxu0 %v3961_v54  ;;  %v487_v62 = vpop.permute.xlu1 %486  ;;  %v482_v0 = vpop.permute.xlu0 %481 }
  0x9b   : > { %3749 = vmatprep.subr.mxu0 %v4081_v3 }
  0x9d   : > { %3728 = vmatmul.mubr.msk.f32.vlgmr.msra.gmra.mrb[0].mxu0 %vm381_vm1, %v380_v55  ;;  %v3545_v55 = vld [vmem:[%s4558_s7 + $0x1c] sm:$0xf] }
  0x9e   : > { %3751 = vmatprep.mubr.msk.f32.mxu0 %vm4083_vm2, %v4081_v3  ;;  %3750 = vmatpush3.msk.msra.mxu0 %vm649_vm4, %v568_v9  ;;  %v1895_v20 = vpop.permute.xlu1 %1894  ;;  %v1890_v21 = vpop.permute.xlu0 %1889 }
  0x9f   : > { %3761 = vmatprep.subr.mxu0 %v4081_v3  ;;  %v1908_v26 = vmul.f32 %v1895_v20, %v4187_v15  ;;  %v1907_v27 = vmul.f32 %v1890_v21, %v4185_v14  ;;  %v3543_v14 = vld [vmem:[%s4557_s6 + $0x38] sm:$0xff] }
  0xa2   : > { %v1924_v23 = vpop.permute.xlu1 %1923  ;;  %v1919_v24 = vpop.permute.xlu0 %1918 }
  0xa3   : > { %v1937_v28 = vadd.f32 %v1924_v23, %v1908_v26  ;;  %v1936_v29 = vadd.f32 %v1919_v24, %v1907_v27  ;;  %v3571_v26 = vld [vmem:[%s4557_s6 + $0x50] sm:$0xff]  ;;  %v3569_v27 = vld [vmem:[%s4557_s6 + $0x48] sm:$0xff] }
  0xa5   : > { %v1941_v15 = vmax.f32 %v1937_v28, 0.0  ;;  %v1940_v31 = vmax.f32 %v1936_v29, 0.0  ;;  %v3573_v28 = vld [vmem:[%s4558_s7 + $0x4] sm:$0xf]  ;;  %v3578_v29 = vld [vmem:[%s4557_s6 + $0x58] sm:$0xff] }
  0xa7   : > { %v3992_v32 = vpack.c.bf16 %v1941_v15, %v1940_v31  ;;  %v3588_v15 = vld [vmem:[%s4557_s6 + $0x68] sm:$0xff]  ;;  %v3593_v31 = vld [vmem:[%s4557_s6 + $0x70] sm:$0xff] }
 0x170   : > { %v3729_v59 = vpop.f32.mrb[0].mxu0 }
 0x171   : > { %v476_v60 = vmul.f32 %v3729_v59, %v473_v57  ;;  %v454_v61 = vpop.f32.mrb[1].mxu0  ;;  %v3550_v57 = vld [vmem:[%s4558_s7 + $0x20] sm:$0xf] }
 0x172   : > { %v475_v63 = vmul.f32 %v468_v58, %v454_v61  ;;  %v3561_v58 = vld [vmem:[%s4554_s3 + $0x10] sm:$0xff] }
 0x173   : > { %v490_v1 = vadd.f32 %v487_v62, %v476_v60  ;;  %v1905_v62 = vpop.permute.xlu1 %1904 }
 0x174   : > { %v489_v2 = vadd.f32 %v482_v0, %v475_v63  ;;  %v1900_v63 = vpop.permute.xlu0 %1899 }
 0x175   : > { %v492_v4 = vmax.f32 %v490_v1, 0.0  ;;  %v1910_v1 = vmul.f32 %v1905_v62, %v4243_v40 }
 0x176   : > { %v491_v5 = vmax.f32 %v489_v2, 0.0 }
 0x177   : > { %v1934_v0 = vpop.permute.xlu1 %1933 }
 0x178   : > { %v4256_v6 = vpack.c.bf16 %v492_v4, %v491_v5  ;;  %v1939_v4 = vadd.f32 %v1934_v0, %v1910_v1 }
 0x17a   : > { %3967 = vmatpush3.bf16.msra.mxu1 %v4256_v6 }
 0x17b   : > { %3968 = vmatprep.subr.bf16.mxu1 %v4082_v56  ;;  %v2039_v40 = vpop.permute.xlu1 %2038 }
 0x17d   : > { %3735 = vmatmul.mubr.msk.f32.vlgmr.msra.gmra.mrb[0].mxu1 %vm494_vm3, %v493_v7 }
 0x17e   : > { %3970 = vmatpush3.bf16.msra.mxu1 %v4256_v6  ;;  %3741 = vmatprep.mubr.msk.f32.mxu1 %vm4083_vm2, %v4081_v3 }
 0x17f   : > { %3744 = vmatprep.subr.mxu1 %v4081_v3 }
 0x181   : > { %3742 = vmatmul.mubr.msk.f32.vlgmr.msra.gmra.mrb[2].mxu1 %vm494_vm3, %v3511_v8  ;;  %v1943_v8 = vmax.f32 %v1939_v4, 0.0 }
 0x182   : > { %3746 = vmatprep.mubr.msk.f32.mxu1 %vm4083_vm2, %v4081_v3  ;;  %3745 = vmatpush3.msk.msra.mxu1 %vm649_vm4, %v3513_v10 }
 0x183   : > { %3971 = vmatprep.subr.bf16.mxu1 %v4082_v56 }
 0x250   : > { %v564_v12 = vpop.f32.mrb[0].mxu1 }
 0x251   : > { %v3736_v13 = vpop.f32.mrb[1].mxu1  ;;  %3752 = vmatmul.mubr.msk.f32.vlgmr.msra.gmra.mrb[2].mxu0 %vm306_vm0, %v564_v12 }
 0x252   : > { %3762 = vmatpush3.msk.msra.mxu0 %vm649_vm4, %v3520_v11  ;;  %3763 = vmatprep.mubr.msk.f32.mxu0 %vm4083_vm2, %v4081_v3  ;;  %v3562_v11 = vld [vmem:[%s4554_s3 + $0x18] sm:$0xff] }
 0x253   : > { %3773 = vmatprep.subr.mxu0 %v4081_v3 }
 0x254   : > { %v640_v16 = vpop.f32.mrb[2].mxu1 }
 0x255   : > { %v3743_v17 = vpop.f32.mrb[3].mxu1  ;;  %3747 = vmatmul.mubr.msk.f32.vlgmr.msra.gmra.mrb[4].mxu1 %vm306_vm0, %v640_v16 }
 0x256   : > { %3973 = vmatpush3.bf16.msra.mxu1 %v4256_v6  ;;  %3758 = vmatprep.mubr.msk.f32.mxu1 %vm4083_vm2, %v4081_v3 }
 0x257   : > { %3974 = vmatprep.subr.bf16.mxu1 %v4082_v56 }
 0x259   : > { %3759 = vmatmul.mubr.msk.f32.vlgmr.msra.gmra.mrb[6].mxu1 %vm494_vm3, %v3518_v18  ;;  %v2054_v18 = vpop.permute.xlu1 %2053 }
 0x25a   : > { %3976 = vmatpush3.bf16.msra.mxu1 %v4256_v6  ;;  %3770 = vmatprep.mubr.msk.f32.mxu1 %vm4083_vm2, %v4081_v3 }
 0x25b   : > { %3977 = vmatprep.subr.bf16.mxu1 %v4082_v56 }
 0x25d   : > { %3771 = vmatmul.mubr.msk.f32.vlgmr.msra.gmra.mrb[8].mxu1 %vm494_vm3, %v3523_v19 }
 0x25e   : > { %3979 = vmatpush3.bf16.msra.mxu1 %v4256_v6  ;;  %3782 = vmatprep.mubr.msk.f32.mxu1 %vm4083_vm2, %v4081_v3 }
 0x25f   : > { %3980 = vmatprep.subr.bf16.mxu1 %v4082_v56 }
 0x261   : > { %3783 = vmatmul.mubr.msk.f32.vlgmr.msra.gmra.mrb[10].mxu1 %vm494_vm3, %v3528_v22 }
 0x262   : > { %3982 = vmatpush3.bf16.msra.mxu1 %v4256_v6  ;;  %3794 = vmatprep.mubr.msk.f32.mxu1 %vm4083_vm2, %v4081_v3 }
 0x263   : > { %3983 = vmatprep.subr.bf16.mxu1 %v4082_v56 }
 0x265   : > { %3795 = vmatmul.mubr.msk.f32.vlgmr.msra.gmra.mrb[12].mxu1 %vm494_vm3, %v3533_v25 }
 0x266   : > { %3985 = vmatpush3.bf16.msra.mxu1 %v4256_v6  ;;  %3806 = vmatprep.mubr.msk.f32.mxu1 %vm4083_vm2, %v4081_v3 }
 0x267   : > { %3986 = vmatprep.subr.bf16.mxu1 %v4082_v56 }
 0x269   : > { %3807 = vmatmul.mubr.msk.f32.vlgmr.msra.gmra.mrb[14].mxu1 %vm494_vm3, %v3538_v30  ;;  %v3583_v30 = vld [vmem:[%s4557_s6 + $0x60] sm:$0xff] }
 0x26a   : > { %3988 = vmatpush3.bf16.msra.mxu1 %v4256_v6  ;;  %3818 = vmatprep.mubr.msk.f32.mxu1 %vm4083_vm2, %v4081_v3 }
 0x26b   : > { %3989 = vmatprep.subr.bf16.mxu1 %v4082_v56 }
 0x26d   : > { %3819 = vmatmul.mubr.msk.f32.vlgmr.msra.gmra.mrb[16].mxu1 %vm494_vm3, %v3543_v14  ;;  %v3598_v14 = vld [vmem:[%s4557_s6 + $0x78] sm:$0xff] }
 0x26e   : > { %3991 = vmatpush3.bf16.msra.mxu1 %v4256_v6  ;;  %3830 = vmatprep.mubr.msk.f32.mxu1 %vm4083_vm2, %v4081_v3  ;;  %v1929_v6 = vpop.permute.xlu0 %1928 }
 0x26f   : > { %3993 = vmatprep.subr.bf16.mxu1 %v3992_v32 }
 0x271   : > { %3831 = vmatmul.mubr.msk.f32.vlgmr.msra.gmra.mrb[18].mxu1 %vm494_vm3, %v3548_v33  ;;  %v3608_v33 = vld [vmem:[%s4557_s6 + $0x88] sm:$0xff] }
 0x272   : > { %3995 = vmatpush3.bf16.msra.mxu1 %v3992_v32  ;;  %3846 = vmatprep.mubr.msk.f32.mxu1 %vm381_vm1, %v3561_v58  ;;  %v2034_v12 = vpop.permute.xlu0 %2033  ;;  %v3603_v32 = vld [vmem:[%s4557_s6 + $0x80] sm:$0xff]  ;;  %v3600_v58 = vld [vmem:[%s4558_s7 + $0x18] sm:$0xf] }
 0x276   : > { %v2049_v20 = vpop.permute.xlu0 %2048 }
 0x328   : > { %v719_v34 = vpop.f32.mrb[4].mxu1 }
 0x329   : > { %v3748_v35 = vpop.f32.mrb[5].mxu1 }
 0x32c   : > { %v870_v37 = vpop.f32.mrb[6].mxu1 }
 0x32d   : > { %v3760_v38 = vpop.f32.mrb[7].mxu1  ;;  %3764 = vmatmul.mubr.msk.f32.vlgmr.msra.gmra.mrb[2].mxu0 %vm306_vm0, %v870_v37 }
 0x32e   : > { %3774 = vmatpush3.msk.msra.mxu0 %vm649_vm4, %v3525_v36  ;;  %3775 = vmatprep.mubr.msk.f32.mxu0 %vm4083_vm2, %v4081_v3 }
 0x32f   : > { %3785 = vmatprep.subr.mxu0 %v4081_v3 }
 0x330   : > { %v1024_v39 = vpop.f32.mrb[8].mxu1 }
 0x331   : > { %v3772_v41 = vpop.f32.mrb[9].mxu1 }
 0x332   : > { %v3580_v41 = vld [vmem:[%s4558_s7 + $0x8] sm:$0xf] }
 0x334   : > { %v1178_v43 = vpop.f32.mrb[10].mxu1 }
 0x335   : > { %3776 = vmatmul.mubr.msk.f32.vlgmr.msra.gmra.mrb[2].mxu0 %vm306_vm0, %v1024_v39  ;;  %v3784_v44 = vpop.f32.mrb[11].mxu1 }
 0x336   : > { %3786 = vmatpush3.msk.msra.mxu0 %vm649_vm4, %v3530_v42  ;;  %3787 = vmatprep.mubr.msk.f32.mxu0 %vm4083_vm2, %v4081_v3 }
 0x337   : > { %3797 = vmatprep.subr.mxu0 %v4081_v3 }
 0x338   : > { %v1332_v45 = vpop.f32.mrb[12].mxu1 }
 0x339   : > { %v3796_v46 = vpop.f32.mrb[13].mxu1 }
 0x33a   : > { %v3585_v46 = vld [vmem:[%s4558_s7 + $0xc] sm:$0xf] }
 0x33c   : > { %v1486_v48 = vpop.f32.mrb[14].mxu1 }
 0x33d   : > { %3788 = vmatmul.mubr.msk.f32.vlgmr.msra.gmra.mrb[2].mxu0 %vm306_vm0, %v1178_v43  ;;  %v3808_v49 = vpop.f32.mrb[15].mxu1 }
 0x33e   : > { %3798 = vmatpush3.msk.msra.mxu0 %vm649_vm4, %v3535_v47  ;;  %3799 = vmatprep.mubr.msk.f32.mxu0 %vm4083_vm2, %v4081_v3 }
 0x33f   : > { %3809 = vmatprep.subr.mxu0 %v4081_v3 }
 0x340   : > { %v1640_v50 = vpop.f32.mrb[16].mxu1 }
 0x341   : > { %v3820_v51 = vpop.f32.mrb[17].mxu1 }
 0x342   : > { %v3590_v51 = vld [vmem:[%s4558_s7 + $0x10] sm:$0xf] }
 0x344   : > { %v1794_v53 = vpop.f32.mrb[18].mxu1 }
 0x345   : > { %3800 = vmatmul.mubr.msk.f32.vlgmr.msra.gmra.mrb[2].mxu0 %vm306_vm0, %v1332_v45  ;;  %v3832_v54 = vpop.f32.mrb[19].mxu1 }
 0x346   : > { %3810 = vmatpush3.msk.msra.mxu0 %vm649_vm4, %v3540_v52  ;;  %3811 = vmatprep.mubr.msk.f32.mxu0 %vm4083_vm2, %v4081_v3 }
 0x347   : > { %3821 = vmatprep.subr.mxu0 %v4081_v3 }
 0x34d   : > { %3812 = vmatmul.mubr.msk.f32.vlgmr.msra.gmra.mrb[2].mxu0 %vm306_vm0, %v1486_v48 }
 0x34e   : > { %3822 = vmatpush3.msk.msra.mxu0 %vm649_vm4, %v3545_v55  ;;  %3823 = vmatprep.mubr.msk.f32.mxu0 %vm4083_vm2, %v4081_v3 }
 0x34f   : > { %3833 = vmatprep.subr.mxu0 %v4081_v3 }
 0x355   : > { %3824 = vmatmul.mubr.msk.f32.vlgmr.msra.gmra.mrb[2].mxu0 %vm306_vm0, %v1640_v50 }
 0x356   : > { %3834 = vmatpush3.msk.msra.mxu0 %vm649_vm4, %v3550_v57  ;;  %3835 = vmatprep.mubr.msk.f32.mxu0 %vm4083_vm2, %v4081_v3  ;;  %v3595_v57 = vld [vmem:[%s4558_s7 + $0x14] sm:$0xf] }
 0x357   : > { %4000 = vmatprep.subr.bf16.mxu0 %v4082_v56 }
 0x35d   : > { %3836 = vmatmul.mubr.msk.f32.vlgmr.msra.gmra.mrb[2].mxu0 %vm306_vm0, %v1794_v53 }
 0x35e   : > { %3853 = vmatprep.mubr.msk.f32.mxu0 %vm4083_vm2, %v4081_v3 }
 0x430   : > { %v1872_v59 = vpop.f32.mrb[2].mxu0 }
 0x431   : > { %v4027_v60 = vadd.f32 %v1872_v59, %v719_v34  ;;  %v3837_v61 = vpop.f32.mrb[3].mxu0  ;;  %v2135_v34 = vld [vmem:[%s4558_s7] sm:$0xf]  ;;  %v3605_v59 = vld [vmem:[%s4558_s7 + $0x1c] sm:$0xf] }
 0x433   : > { %1877 = vst.msk [vmem:[#allocation2 + $0x10] sm:$0xff] %vm306_vm0, %v4027_v60  ;;  %v3610_v60 = vld [vmem:[%s4558_s7 + $0x20] sm:$0xf] }
 0x43a   : > { %v3438_v2 = vld [vmem:[#allocation2 + $0x10] sm:$0xff] }
 0x43b   : > { %3442 = vst.msk [vmem:[%s4183_s14 + $0x10] sm:$0xff] %vm306_vm0, %v3438_v2  ;;  %v1909_v5 = vmul.f32 %v3438_v2, %v1900_v63 }
 0x43d   : > { %v1938_v7 = vadd.f32 %v1929_v6, %v1909_v5 }
 0x43f   : > { %v1942_v9 = vmax.f32 %v1938_v7, 0.0 }
 0x441   : > { %v3996_v10 = vpack.c.bf16 %v1943_v8, %v1942_v9 }
 0x443   : > { %3997 = vmatprep.subr.bf16.mxu1 %v3996_v10 }
 0x444   : > { %3999 = vmatpush3.bf16.msra.mxu1 %v3996_v10 }
 0x445   : > { %4003 = vmatprep.subr.bf16.mxu1 %v4082_v56 }
 0x447   : > { %3847 = vmatmul.mubr.msk.f32.vlgmr.msra.gmra.mrb[20].mxu1 %vm381_vm1, %v3562_v11 }
 0x448   : > { %3860 = vmatprep.mubr.msk.f32.mxu1 %vm4083_vm2, %v4081_v3 }
 0x51a   : > { %v3848_v13 = vpop.f32.mrb[20].mxu1 }
 0x51b   : > { %v2042_v16 = vmul.f32 %v3848_v13, %v2039_v40  ;;  %v2019_v17 = vpop.f32.mrb[21].mxu1 }
 0x51c   : > { %v2041_v19 = vmul.f32 %v2034_v12, %v2019_v17 }
 0x51d   : > { %v2057_v21 = vadd.f32 %v2054_v18, %v2042_v16 }
 0x51e   : > { %v2056_v22 = vadd.f32 %v2049_v20, %v2041_v19 }
 0x51f   : > { %v2059_v23 = vmax.f32 %v2057_v21, 0.0 }
 0x520   : > { %v2058_v24 = vmax.f32 %v2056_v22, 0.0 }
 0x522   : > { %v4001_v25 = vpack.c.bf16 %v2059_v23, %v2058_v24 }
 0x524   : > { %4002 = vmatpush3.bf16.msra.mxu0 %v4001_v25  ;;  %4005 = vmatpush3.bf16.msra.mxu1 %v4001_v25 }
 0x525   : > { %4006 = vmatprep.subr.bf16.mxu1 %v4082_v56  ;;  %3863 = vmatprep.subr.mxu0 %v4081_v3 }
 0x527   : > { %3861 = vmatmul.mubr.msk.f32.vlgmr.msra.gmra.mrb[22].mxu1 %vm494_vm3, %v3571_v26  ;;  %3854 = vmatmul.mubr.msk.f32.vlgmr.msra.gmra.mrb[4].mxu0 %vm494_vm3, %v3569_v27 }
 0x528   : > { %4008 = vmatpush3.bf16.msra.mxu1 %v4001_v25  ;;  %3877 = vmatprep.mubr.msk.f32.mxu1 %vm4083_vm2, %v4081_v3 }
 0x529   : > { %4009 = vmatprep.subr.bf16.mxu1 %v4082_v56  ;;  %3864 = vmatpush3.msk.msra.mxu0 %vm649_vm4, %v3573_v28 }
 0x52a   : > { %3865 = vmatprep.mubr.msk.f32.mxu0 %vm4083_vm2, %v4081_v3  ;;  %3868 = vmatprep.subr.mxu0 %v4081_v3 }
 0x52b   : > { %3878 = vmatmul.mubr.msk.f32.vlgmr.msra.gmra.mrb[24].mxu1 %vm494_vm3, %v3578_v29 }
 0x52c   : > { %4011 = vmatpush3.bf16.msra.mxu1 %v4001_v25  ;;  %3889 = vmatprep.mubr.msk.f32.mxu1 %vm4083_vm2, %v4081_v3 }
 0x52d   : > { %4012 = vmatprep.subr.bf16.mxu1 %v4082_v56 }
 0x52f   : > { %3890 = vmatmul.mubr.msk.f32.vlgmr.msra.gmra.mrb[26].mxu1 %vm494_vm3, %v3583_v30 }
 0x530   : > { %4014 = vmatpush3.bf16.msra.mxu1 %v4001_v25  ;;  %3901 = vmatprep.mubr.msk.f32.mxu1 %vm4083_vm2, %v4081_v3 }
 0x531   : > { %4015 = vmatprep.subr.bf16.mxu1 %v4082_v56 }
 0x533   : > { %3902 = vmatmul.mubr.msk.f32.vlgmr.msra.gmra.mrb[28].mxu1 %vm494_vm3, %v3588_v15 }
 0x534   : > { %4017 = vmatpush3.bf16.msra.mxu1 %v4001_v25  ;;  %3913 = vmatprep.mubr.msk.f32.mxu1 %vm4083_vm2, %v4081_v3 }
 0x535   : > { %4018 = vmatprep.subr.bf16.mxu1 %v4082_v56 }
 0x537   : > { %3914 = vmatmul.mubr.msk.f32.vlgmr.msra.gmra.mrb[30].mxu1 %vm494_vm3, %v3593_v31 }
 0x538   : > { %4020 = vmatpush3.bf16.msra.mxu1 %v4001_v25  ;;  %3925 = vmatprep.mubr.msk.f32.mxu1 %vm4083_vm2, %v4081_v3 }
 0x539   : > { %4021 = vmatprep.subr.bf16.mxu1 %v4082_v56 }
 0x53b   : > { %3926 = vmatmul.mubr.msk.f32.vlgmr.msra.gmra.mrb[32].mxu1 %vm494_vm3, %v3598_v14 }
 0x53c   : > { %4023 = vmatpush3.bf16.msra.mxu1 %v4001_v25  ;;  %3937 = vmatprep.mubr.msk.f32.mxu1 %vm4083_vm2, %v4081_v3 }
 0x53d   : > { %4024 = vmatprep.subr.bf16.mxu1 %v4082_v56 }
 0x53f   : > { %3938 = vmatmul.mubr.msk.f32.vlgmr.msra.gmra.mrb[34].mxu1 %vm494_vm3, %v3603_v32 }
 0x540   : > { %4026 = vmatpush3.bf16.msra.mxu1 %v4001_v25  ;;  %3949 = vmatprep.mubr.msk.f32.mxu1 %vm4083_vm2, %v4081_v3 }
 0x543   : > { %3950 = vmatmul.mubr.msk.f32.vlgmr.msra.gmra.mrb[36].mxu1 %vm494_vm3, %v3608_v33 }
 0x5fa   : > { %v2207_v35 = vpop.f32.mrb[22].mxu1  ;;  %v2131_v36 = vpop.f32.mrb[4].mxu0 }
 0x5fb   : > { %v3862_v37 = vpop.f32.mrb[23].mxu1  ;;  %3866 = vmatmul.mubr.msk.f32.vlgmr.msra.gmra.mrb[6].mxu0 %vm306_vm0, %v2207_v35  ;;  %v3855_v56 = vpop.f32.mrb[5].mxu0 }
 0x5fc   : > { %3869 = vmatpush3.msk.msra.mxu0 %vm649_vm4, %v2135_v34  ;;  %3870 = vmatprep.mubr.msk.f32.mxu0 %vm4083_vm2, %v4081_v3 }
 0x5fd   : > { %3880 = vmatprep.subr.mxu0 %v4081_v3 }
 0x5fe   : > { %v2435_v38 = vpop.f32.mrb[24].mxu1 }
 0x5ff   : > { %v3879_v39 = vpop.f32.mrb[25].mxu1 }
 0x602   : > { %v2588_v42 = vpop.f32.mrb[26].mxu1 }
 0x603   : > { %3871 = vmatmul.mubr.msk.f32.vlgmr.msra.gmra.mrb[6].mxu0 %vm306_vm0, %v2131_v36  ;;  %v3891_v43 = vpop.f32.mrb[27].mxu1 }
 0x604   : > { %3881 = vmatpush3.msk.msra.mxu0 %vm649_vm4, %v3580_v41  ;;  %3882 = vmatprep.mubr.msk.f32.mxu0 %vm4083_vm2, %v4081_v3 }
 0x605   : > { %3892 = vmatprep.subr.mxu0 %v4081_v3 }
 0x606   : > { %v2741_v44 = vpop.f32.mrb[28].mxu1 }
 0x607   : > { %v3903_v45 = vpop.f32.mrb[29].mxu1 }
 0x60a   : > { %v2894_v47 = vpop.f32.mrb[30].mxu1 }
 0x60b   : > { %3883 = vmatmul.mubr.msk.f32.vlgmr.msra.gmra.mrb[6].mxu0 %vm306_vm0, %v2435_v38  ;;  %v3915_v48 = vpop.f32.mrb[31].mxu1 }
 0x60c   : > { %3893 = vmatpush3.msk.msra.mxu0 %vm649_vm4, %v3585_v46  ;;  %3894 = vmatprep.mubr.msk.f32.mxu0 %vm4083_vm2, %v4081_v3 }
 0x60d   : > { %3904 = vmatprep.subr.mxu0 %v4081_v3 }
 0x60e   : > { %v3047_v49 = vpop.f32.mrb[32].mxu1 }
 0x60f   : > { %v3927_v50 = vpop.f32.mrb[33].mxu1 }
 0x612   : > { %v3200_v52 = vpop.f32.mrb[34].mxu1 }
 0x613   : > { %3895 = vmatmul.mubr.msk.f32.vlgmr.msra.gmra.mrb[6].mxu0 %vm306_vm0, %v2588_v42  ;;  %v3939_v53 = vpop.f32.mrb[35].mxu1 }
 0x614   : > { %3905 = vmatpush3.msk.msra.mxu0 %vm649_vm4, %v3590_v51  ;;  %3906 = vmatprep.mubr.msk.f32.mxu0 %vm4083_vm2, %v4081_v3 }
 0x615   : > { %3916 = vmatprep.subr.mxu0 %v4081_v3 }
 0x616   : > { %v3353_v54 = vpop.f32.mrb[36].mxu1 }
 0x617   : > { %v3951_v55 = vpop.f32.mrb[37].mxu1 }
 0x61b   : > { %3907 = vmatmul.mubr.msk.f32.vlgmr.msra.gmra.mrb[6].mxu0 %vm306_vm0, %v2741_v44 }
 0x61c   : > { %3917 = vmatpush3.msk.msra.mxu0 %vm649_vm4, %v3595_v57  ;;  %3918 = vmatprep.mubr.msk.f32.mxu0 %vm4083_vm2, %v4081_v3 }
 0x61d   : > { %3928 = vmatprep.subr.mxu0 %v4081_v3 }
 0x623   : > { %3919 = vmatmul.mubr.msk.f32.vlgmr.msra.gmra.mrb[6].mxu0 %vm306_vm0, %v2894_v47 }
 0x624   : > { %3929 = vmatpush3.msk.msra.mxu0 %vm649_vm4, %v3600_v58  ;;  %3930 = vmatprep.mubr.msk.f32.mxu0 %vm4083_vm2, %v4081_v3 }
 0x625   : > { %3940 = vmatprep.subr.mxu0 %v4081_v3 }
 0x62b   : > { %3931 = vmatmul.mubr.msk.f32.vlgmr.msra.gmra.mrb[6].mxu0 %vm306_vm0, %v3047_v49 }
 0x62c   : > { %3941 = vmatpush3.msk.msra.mxu0 %vm649_vm4, %v3605_v59  ;;  %3942 = vmatprep.mubr.msk.f32.mxu0 %vm4083_vm2, %v4081_v3 }
 0x62d   : > { %3952 = vmatprep.subr.mxu0 %v4081_v3 }
 0x633   : > { %3943 = vmatmul.mubr.msk.f32.vlgmr.msra.gmra.mrb[6].mxu0 %vm306_vm0, %v3200_v52 }
 0x634   : > { %3953 = vmatpush3.msk.msra.mxu0 %vm649_vm4, %v3610_v60  ;;  %3954 = vmatprep.mubr.msk.f32.mxu0 %vm4083_vm2, %v4081_v3 }
 0x63b   : > { %3955 = vmatmul.mubr.msk.f32.vlgmr.msra.gmra.mrb[6].mxu0 %vm306_vm0, %v3353_v54 }
 0x70e   : > { %v3430_v61 = vpop.f32.mrb[6].mxu0 }
 0x70f   : > { %3435 = vst.msk [vmem:[#allocation2 + $0x18] sm:$0xff] %vm306_vm0, %v3430_v61  ;;  %v3956_v62 = vpop.f32.mrb[7].mxu0 }
 0x716   : > { %v3439_v63 = vld [vmem:[#allocation2 + $0x18] sm:$0xff] }
 0x717   : > { %3443 = vst.msk [vmem:[%s4183_s14 + $0x18] sm:$0xff] %vm306_vm0, %v3439_v63 }
 0x718 PF: > { %s18_s27 = sadd.s32 1, %s4078_s27  }
 0x719   : > { %p15_p4 = scmp.ge.s32.totalorder %s18_s27, 4  }
 0x71b   :  { %17 = sbr.rel (!%p15_p4) target bundleno = 1 (0x1), region = 112 }

// kernel: densenet_bc_forward.15
= control target key start
LH: loop header
LB: loop body
LE: loop exit
PB: predicated region body
PF: predicated region fallthrough
CT: control target
= control target key end

     0   :  { %s4227_s27 = smov 0   ;;  %s4697_s0 = inlined_call_operand.vmem [shape: f32[2,32,4], index: 0, kind: input, shape index: {}]   ;;  %s4698_s1 = inlined_call_operand.vmem [shape: f32[2,48,1], index: 1, kind: input, shape index: {}]   ;;  %s4699_s2 = inlined_call_operand.vmem [shape: f32[2,48,1], index: 2, kind: input, shape index: {}]   ;;  %s4700_s3 = inlined_call_operand.vmem [shape: f32[2,16,48], index: 3, kind: input, shape index: {}]   ;;  %s4701_s4 = inlined_call_operand.vmem [shape: f32[2,16,1], index: 4, kind: input, shape index: {}]   ;;  %s4702_s5 = inlined_call_operand.vmem [shape: f32[2,16,1], index: 5, kind: input, shape index: {}]   ;;  %s4703_s6 = inlined_call_operand.vmem [shape: f32[18,8,16], index: 6, kind: input, shape index: {}]   ;;  %s4704_s7 = inlined_call_operand.vmem [shape: f32[9,4,4], index: 7, kind: input, shape index: {}]   ;;  %s4705_s8 = inlined_call_operand.vmem [shape: f32[2,48,4], index: 8, kind: output, shape index: {}]  }
   0x1 LB: > { %s3573_s28 = sadd.s32 4294967295, %s4176_s27   ;;  %p3577_p0 = scmp.ge.s32.totalorder %s4176_s27, 1  ;;  %s4176_s27 = sphi %s4227_s27, %s18_s27  }
   0x2   : > { %p262_p1 = scmp.lt.s32.totalorder %s4176_s27, 3 }
   0x4   : > { %p263_p2 = pnand %p3577_p0, %p262_p1 }
   0x5   : > { %v369_v0 = vld [vmem:[%s4699_s2] sm:$0xff] (!%p263_p2)  ;;  %p296_p3 = scmp.lt.s32.totalorder (!%p263_p2), %s3573_s28, 1  ;;  %vm306_vm0 = vcmask (!%p263_p2), 31744   ;;  %v4178_v2 = vmov (!%p263_p2), 0   ;;  %v4179_v3 = vmov (!%p263_p2), 0.0   ;;  %v370_v4 = vld [vmem:[%s4699_s2 + $0x8] sm:$0xff] (!%p263_p2) }
   0x6   : > { %266 = sbr.rel (%p263_p2) target bundleno = 1834 (0x72a), region = 52  ;;  %v327_v1 = vld [vmem:[%s4698_s1] sm:$0xff] (!%p263_p2)  ;;  %4169 = vset.pattern.permute.xlu1 (!%p263_p2), %v4178_v2  ;;  %4168 = vset.pattern.permute.xlu0 (!%p263_p2), %v4178_v2  ;;  %307 = vst.msk [vmem:[#allocation2] sm:$0xff] (!%p263_p2), %vm306_vm0, %v4179_v3  ;;  %308 = vst.msk [vmem:[#allocation2 + $0x8] sm:$0xff] (!%p263_p2), %vm306_vm0, %v4179_v3  ;;  %v328_v5 = vld [vmem:[%s4698_s1 + $0x8] sm:$0xff] (!%p263_p2)  ;;  %vm419_vm1 = vcmask (!%p263_p2), 392192  }
   0x7   : > { %377 = vperm.xlu1 (!%p263_p2), %4169, %v369_v0   ;;  %335 = vperm.xlu0 (!%p263_p2), %4168, %v327_v1   ;;  %309 = vst.msk [vmem:[#allocation2 + $0x10] sm:$0xff] (!%p263_p2), %vm306_vm0, %v4179_v3  ;;  %310 = vst.msk [vmem:[#allocation2 + $0x18] sm:$0xff] (!%p263_p2), %vm306_vm0, %v4179_v3  ;;  %v330_v6 = vld [vmem:[%s4698_s1 + $0x18] sm:$0xff] (!%p263_p2)  ;;  %v329_v7 = vld [vmem:[%s4698_s1 + $0x10] sm:$0xff] (!%p263_p2)  ;;  %vm4181_vm2 = vmmov (!%p263_p2), 0   ;;  %vm532_vm3 = vcmask (!%p263_p2), 130048  }
   0x8   : > { %311 = vst.msk [vmem:[#allocation2 + $0x20] sm:$0xff] (!%p263_p2), %vm306_vm0, %v4179_v3  ;;  %312 = vst.msk [vmem:[#allocation2 + $0x28] sm:$0xff] (!%p263_p2), %vm306_vm0, %v4179_v3  ;;  %v372_v8 = vld [vmem:[%s4699_s2 + $0x18] sm:$0xff] (!%p263_p2)  ;;  %v371_v9 = vld [vmem:[%s4699_s2 + $0x10] sm:$0xff] (!%p263_p2)  ;;  %3818 = vmatprep.mubr.msk.f32.mxu1 (!%p263_p2), %vm4181_vm2, %v4179_v3  ;;  %vm687_vm4 = vcmask (!%p263_p2), 1043456  }
   0x9   : > { %v332_v14 = vld [vmem:[%s4698_s1 + $0x28] sm:$0xff] (!%p263_p2)  ;;  %v331_v15 = vld [vmem:[%s4698_s1 + $0x20] sm:$0xff] (!%p263_p2)  ;;  %v3627_v27 = vld [vmem:[%s4698_s1 + $0x38] sm:$0xff] (!%p263_p2) }
   0xa   : > { %v374_v16 = vld [vmem:[%s4699_s2 + $0x28] sm:$0xff] (!%p263_p2)  ;;  %v373_v17 = vld [vmem:[%s4699_s2 + $0x20] sm:$0xff] (!%p263_p2)  ;;  %v3626_v28 = vld [vmem:[%s4698_s1 + $0x30] sm:$0xff] (!%p263_p2) }
   0xb   : > { %382 = vperm.xlu1 (!%p263_p2), %4169, %v370_v4   ;;  %340 = vperm.xlu0 (!%p263_p2), %4168, %v328_v5   ;;  %v502_v22 = vld [vmem:[%s4701_s4 + $0x8] sm:$0xff] (!%p263_p2)  ;;  %v501_v23 = vld [vmem:[%s4701_s4] sm:$0xff] (!%p263_p2)  ;;  %v3633_v29 = vld [vmem:[%s4699_s2 + $0x38] sm:$0xff] (!%p263_p2) }
   0xc   : > { %v516_v24 = vld [vmem:[%s4702_s5 + $0x8] sm:$0xff] (!%p263_p2)  ;;  %v515_v25 = vld [vmem:[%s4702_s5] sm:$0xff] (!%p263_p2)  ;;  %v3632_v30 = vld [vmem:[%s4699_s2 + $0x30] sm:$0xff] (!%p263_p2) }
   0xd   : > { %s4707_s28 = smov (!%p296_p3, %s3573_s28), 1  ;;  %v417_v26 = vld [vmem:[%s4700_s3] sm:$0xff]  ;;  %v3629_v31 = vld [vmem:[%s4698_s1 + $0x48] sm:$0xff]  ;;  %v3631_v35 = vld [vmem:[%s4698_s1 + $0x58] sm:$0xff] }
   0xe   : > { %s3692_s15 = sshll.u32 %s4707_s28, 5  ;;  %s4155_s29 = smul.u32 48, %s4707_s28  ;;  %3811 = vmatprep.mubr.msk.f32.mxu0 %vm419_vm1, %v417_v26  ;;  %v3628_v32 = vld [vmem:[%s4698_s1 + $0x40] sm:$0xff]  ;;  %v3635_v33 = vld [vmem:[%s4699_s2 + $0x48] sm:$0xff]  ;;  %v3630_v36 = vld [vmem:[%s4698_s1 + $0x50] sm:$0xff] }
   0xf   : > { %s300_s22 = scalar_lea.vmem %s4697_s0, %s3692_s15  ;;  %350 = vperm.xlu1 %4169, %v330_v6   ;;  %345 = vperm.xlu0 %4168, %v329_v7   ;;  %v3634_v34 = vld [vmem:[%s4699_s2 + $0x40] sm:$0xff]  ;;  %v3637_v37 = vld [vmem:[%s4699_s2 + $0x58] sm:$0xff]  ;;  %v3636_v38 = vld [vmem:[%s4699_s2 + $0x50] sm:$0xff] }
  0x10   : > { %v313_v10 = vld [vmem:[%s300_s22] sm:$0xff]  ;;  %v314_v11 = vld [vmem:[%s300_s22 + $0x8] sm:$0xff]  ;;  %v316_v12 = vld [vmem:[%s300_s22 + $0x18] sm:$0xff]  ;;  %s4297_s17 = scalar_lea.vmem %s4705_s8, %s4155_s29 }
  0x11   : > { %317 = vst.msk [vmem:[#allocation2] sm:$0xff] %vm306_vm0, %v313_v10  ;;  %v315_v13 = vld [vmem:[%s300_s22 + $0x10] sm:$0xff]  ;;  %318 = vst.msk [vmem:[#allocation2 + $0x8] sm:$0xff] %vm306_vm0, %v314_v11  ;;  %v3643_v39 = vld [vmem:[%s4701_s4 + $0x18] sm:$0xff] }
  0x12   : > { %320 = vst.msk [vmem:[#allocation2 + $0x18] sm:$0xff] %vm306_vm0, %v316_v12  ;;  %319 = vst.msk [vmem:[#allocation2 + $0x10] sm:$0xff] %vm306_vm0, %v315_v13  ;;  %v3642_v40 = vld [vmem:[%s4701_s4 + $0x10] sm:$0xff]  ;;  %v3645_v41 = vld [vmem:[%s4702_s5 + $0x18] sm:$0xff] }
  0x13   : > { %392 = vperm.xlu1 %4169, %v372_v8   ;;  %387 = vperm.xlu0 %4168, %v371_v9   ;;  %v3644_v42 = vld [vmem:[%s4702_s5 + $0x10] sm:$0xff]  ;;  %v4387_v1 = vld [vmem:[#allocation2 + $0x28] sm:$0xff]  ;;  %v325_v4 = vld [vmem:[#allocation2 + $0x20] sm:$0xff] }
  0x17   : > { %360 = vperm.xlu1 %4169, %v332_v14   ;;  %355 = vperm.xlu0 %4168, %v331_v15   ;;  %v418_v15 = vld [vmem:[%s4700_s3 + $0x8] sm:$0xff] }
  0x18   : > { %v4299_v18 = vld [vmem:[#allocation2] sm:$0xff]  ;;  %v4304_v19 = vld [vmem:[#allocation2 + $0x8] sm:$0xff] }
  0x19   : > { %3512 = vst.msk [vmem:[%s4297_s17] sm:$0xff] %vm306_vm0, %v4299_v18  ;;  %v4306_v20 = vld [vmem:[#allocation2 + $0x18] sm:$0xff]  ;;  %v4308_v21 = vld [vmem:[#allocation2 + $0x10] sm:$0xff]  ;;  %3513 = vst.msk [vmem:[%s4297_s17 + $0x8] sm:$0xff] %vm306_vm0, %v4304_v19 }
  0x1a   : > { %3515 = vst.msk [vmem:[%s4297_s17 + $0x18] sm:$0xff] %vm306_vm0, %v4306_v20  ;;  %3514 = vst.msk [vmem:[%s4297_s17 + $0x10] sm:$0xff] %vm306_vm0, %v4308_v21 }
  0x1b   : > { %402 = vperm.xlu1 %4169, %v374_v16   ;;  %397 = vperm.xlu0 %4168, %v373_v17   ;;  %v4180_v16 = vmov 0.0|0.0  }
  0x1c   : > { %4057 = vmatprep.subr.bf16.mxu1 %v4180_v16 }
  0x1f   : > { %510 = vperm.xlu1 %4169, %v502_v22   ;;  %505 = vperm.xlu0 %4168, %v501_v23  }
  0x23   : > { %524 = vperm.xlu1 %4169, %v516_v24   ;;  %519 = vperm.xlu0 %4168, %v515_v25  }
  0x27   : > { %1936 = vperm.xlu1 %4169, %v3627_v27   ;;  %1931 = vperm.xlu0 %4168, %v3626_v28  }
  0x2b   : > { %1979 = vperm.xlu1 %4169, %v3633_v29   ;;  %1974 = vperm.xlu0 %4168, %v3632_v30  }
  0x2f   : > { %1946 = vperm.xlu1 %4169, %v3629_v31   ;;  %1941 = vperm.xlu0 %4168, %v3628_v32  }
  0x33   : > { %1989 = vperm.xlu1 %4169, %v3635_v33   ;;  %1984 = vperm.xlu0 %4168, %v3634_v34  }
  0x37   : > { %1956 = vperm.xlu1 %4169, %v3631_v35   ;;  %1951 = vperm.xlu0 %4168, %v3630_v36  }
  0x3b   : > { %1999 = vperm.xlu1 %4169, %v3637_v37   ;;  %1994 = vperm.xlu0 %4168, %v3636_v38   ;;  %v531_v38 = vld [vmem:[%s4703_s6] sm:$0xff] }
  0x3f   : > { %2108 = vperm.xlu1 %4169, %v3643_v39   ;;  %2103 = vperm.xlu0 %4168, %v3642_v40   ;;  %v3596_v39 = vld [vmem:[%s4703_s6 + $0x18] sm:$0xff]  ;;  %v3584_v40 = vld [vmem:[%s4703_s6 + $0x8] sm:$0xff] }
  0x43   : > { %2123 = vperm.xlu1 %4169, %v3645_v41   ;;  %2118 = vperm.xlu0 %4168, %v3644_v42   ;;  %v3601_v41 = vld [vmem:[%s4703_s6 + $0x20] sm:$0xff] }
  0x86   : > { %v378_v43 = vpop.permute.xlu1 %377  ;;  %v336_v44 = vpop.permute.xlu0 %335 }
  0x87   : > { %v363_v45 = vmul.f32 %v336_v44, %v4299_v18  ;;  %v3606_v44 = vld [vmem:[%s4703_s6 + $0x28] sm:$0xff] }
  0x89   : > { %v405_v48 = vadd.f32 %v378_v43, %v363_v45 }
  0x8a   : > { %v383_v46 = vpop.permute.xlu1 %382  ;;  %v341_v47 = vpop.permute.xlu0 %340 }
  0x8b   : > { %v364_v49 = vmul.f32 %v341_v47, %v4304_v19  ;;  %v411_v53 = vmax.f32 %v405_v48, 0.0 }
  0x8d   : > { %v406_v50 = vadd.f32 %v383_v46, %v364_v49 }
  0x8e   : > { %v351_v51 = vpop.permute.xlu1 %350  ;;  %v346_v52 = vpop.permute.xlu0 %345 }
  0x8f   : > { %v412_v54 = vmax.f32 %v406_v50, 0.0  ;;  %v366_v55 = vmul.f32 %v351_v51, %v4306_v20  ;;  %v365_v56 = vmul.f32 %v346_v52, %v4308_v21 }
  0x91   : > { %v4045_v57 = vpack.c.bf16 %v412_v54, %v411_v53 }
  0x92   : > { %v393_v58 = vpop.permute.xlu1 %392  ;;  %v388_v59 = vpop.permute.xlu0 %387 }
  0x93   : > { %v408_v60 = vadd.f32 %v393_v58, %v366_v55  ;;  %v407_v61 = vadd.f32 %v388_v59, %v365_v56  ;;  %4046 = vmatprep.subr.bf16.mxu0 %v4045_v57  ;;  %v3616_v56 = vld [vmem:[%s4703_s6 + $0x38] sm:$0xff]  ;;  %v3621_v58 = vld [vmem:[%s4703_s6 + $0x40] sm:$0xff] }
  0x94   : > { %4048 = vmatpush3.bf16.msra.mxu0 %v4045_v57 }
  0x95   : > { %v414_v62 = vmax.f32 %v408_v60, 0.0  ;;  %v413_v63 = vmax.f32 %v407_v61, 0.0  ;;  %v3586_v60 = vld [vmem:[%s4704_s7 + $0x4] sm:$0xf] }
  0x96   : > { %v361_v0 = vpop.permute.xlu1 %360  ;;  %v356_v2 = vpop.permute.xlu0 %355 }
  0x97   : > { %v4049_v5 = vpack.c.bf16 %v414_v62, %v413_v63  ;;  %v368_v6 = vmul.f32 %v361_v0, %v4387_v1  ;;  %v367_v7 = vmul.f32 %v356_v2, %v325_v4  ;;  %v606_v63 = vld [vmem:[%s4704_s7] sm:$0xf]  ;;  %v3591_v4 = vld [vmem:[%s4703_s6 + $0x10] sm:$0xff] }
  0x99   : > { %4050 = vmatprep.subr.bf16.mxu0 %v4049_v5 }
  0x9a   : > { %v403_v8 = vpop.permute.xlu1 %402  ;;  %v398_v9 = vpop.permute.xlu0 %397  ;;  %4052 = vmatpush3.bf16.msra.mxu0 %v4049_v5  ;;  %v3593_v5 = vld [vmem:[%s4704_s7 + $0x8] sm:$0xf] }
  0x9b   : > { %v410_v10 = vadd.f32 %v403_v8, %v368_v6  ;;  %v409_v11 = vadd.f32 %v398_v9, %v367_v7 }
  0x9d   : > { %v416_v12 = vmax.f32 %v410_v10, 0.0  ;;  %v415_v13 = vmax.f32 %v409_v11, 0.0 }
  0x9e   : > { %v511_v17 = vpop.permute.xlu1 %510  ;;  %v506_v22 = vpop.permute.xlu0 %505 }
  0x9f   : > { %v4053_v14 = vpack.c.bf16 %v416_v12, %v415_v13 }
  0xa1   : > { %4054 = vmatprep.subr.bf16.mxu0 %v4053_v14 }
  0xa2   : > { %4056 = vmatpush3.bf16.msra.mxu0 %v4053_v14  ;;  %v525_v23 = vpop.permute.xlu1 %524  ;;  %v520_v24 = vpop.permute.xlu0 %519 }
  0xa3   : > { %4066 = vmatprep.subr.bf16.mxu0 %v4180_v16 }
  0xa5   : > { %3812 = vmatmul.mubr.msk.f32.vlgmr.msra.gmra.mrb[0].mxu0 %vm419_vm1, %v418_v15 }
  0xa6   : > { %3854 = vmatprep.mubr.msk.f32.mxu0 %vm4181_vm2, %v4179_v3  ;;  %v1937_v30 = vpop.permute.xlu1 %1936  ;;  %v1932_v31 = vpop.permute.xlu0 %1931 }
  0xa7   : > { %v1960_v45 = vmul.f32 %v1937_v30, %v4304_v19  ;;  %v1959_v46 = vmul.f32 %v1932_v31, %v4299_v18  ;;  %v3611_v18 = vld [vmem:[%s4703_s6 + $0x30] sm:$0xff]  ;;  %v3623_v30 = vld [vmem:[%s4704_s7 + $0x20] sm:$0xf] }
  0xa8   : > { %v3638_v31 = vld [vmem:[%s4700_s3 + $0x10] sm:$0xff] }
  0xaa   : > { %v1980_v36 = vpop.permute.xlu1 %1979  ;;  %v1975_v37 = vpop.permute.xlu0 %1974 }
  0xab   : > { %v2003_v47 = vadd.f32 %v1980_v36, %v1960_v45  ;;  %v2002_v48 = vadd.f32 %v1975_v37, %v1959_v46  ;;  %v3639_v46 = vld [vmem:[%s4700_s3 + $0x18] sm:$0xff] }
  0xad   : > { %v2009_v52 = vmax.f32 %v2003_v47, 0.0  ;;  %v2008_v53 = vmax.f32 %v2002_v48, 0.0 }
  0xae   : > { %v1947_v42 = vpop.permute.xlu1 %1946  ;;  %v1942_v43 = vpop.permute.xlu0 %1941 }
  0xaf   : > { %v1962_v19 = vmul.f32 %v1947_v42, %v4306_v20  ;;  %v1961_v51 = vmul.f32 %v1942_v43, %v4308_v21  ;;  %v4084_v20 = vpack.c.bf16 %v2009_v52, %v2008_v53 }
  0xb2   : > { %v1990_v49 = vpop.permute.xlu1 %1989  ;;  %v1985_v50 = vpop.permute.xlu0 %1984 }
  0xb3   : > { %v2005_v54 = vadd.f32 %v1990_v49, %v1962_v19  ;;  %v2004_v55 = vadd.f32 %v1985_v50, %v1961_v51 }
  0xb5   : > { %v2011_v21 = vmax.f32 %v2005_v54, 0.0  ;;  %v2010_v57 = vmax.f32 %v2004_v55, 0.0 }
  0xb7   : > { %v4088_v59 = vpack.c.bf16 %v2011_v21, %v2010_v57  ;;  %v3648_v21 = vld [vmem:[%s4703_s6 + $0x50] sm:$0xff]  ;;  %v3655_v57 = vld [vmem:[%s4703_s6 + $0x58] sm:$0xff] }
 0x178   : > { %v3813_v25 = vpop.f32.mrb[0].mxu0 }
 0x179   : > { %v514_v26 = vmul.f32 %v3813_v25, %v511_v17  ;;  %v492_v27 = vpop.f32.mrb[1].mxu0 }
 0x17a   : > { %v513_v28 = vmul.f32 %v506_v22, %v492_v27  ;;  %v3608_v27 = vld [vmem:[%s4704_s7 + $0x14] sm:$0xf] }
 0x17b   : > { %v528_v29 = vadd.f32 %v525_v23, %v514_v26  ;;  %v3598_v23 = vld [vmem:[%s4704_s7 + $0xc] sm:$0xf]  ;;  %v3603_v26 = vld [vmem:[%s4704_s7 + $0x10] sm:$0xf] }
 0x17c   : > { %v527_v32 = vadd.f32 %v520_v24, %v513_v28  ;;  %v3613_v28 = vld [vmem:[%s4704_s7 + $0x18] sm:$0xf] }
 0x17d   : > { %v530_v33 = vmax.f32 %v528_v29, 0.0  ;;  %v3618_v29 = vld [vmem:[%s4704_s7 + $0x1c] sm:$0xf] }
 0x17e   : > { %v529_v34 = vmax.f32 %v527_v32, 0.0  ;;  %v1957_v32 = vpop.permute.xlu1 %1956 }
 0x17f   : > { %v1964_v37 = vmul.f32 %v1957_v32, %v4387_v1  ;;  %v3687_v32 = vld [vmem:[%s4704_s7 + $0x20] sm:$0xf] }
 0x180   : > { %v4400_v35 = vpack.c.bf16 %v530_v33, %v529_v34 }
 0x182   : > { %4059 = vmatpush3.bf16.msra.mxu1 %v4400_v35  ;;  %4068 = vmatpush3.bf16.msra.mxu0 %v4400_v35  ;;  %v2000_v36 = vpop.permute.xlu1 %1999 }
 0x183   : > { %4060 = vmatprep.subr.bf16.mxu1 %v4180_v16  ;;  %4069 = vmatprep.subr.bf16.mxu0 %v4180_v16 }
 0x185   : > { %3819 = vmatmul.mubr.msk.f32.vlgmr.msra.gmra.mrb[0].mxu1 %vm532_vm3, %v531_v38  ;;  %3855 = vmatmul.mubr.msk.f32.vlgmr.msra.gmra.mrb[2].mxu0 %vm532_vm3, %v3596_v39  ;;  %v2007_v39 = vadd.f32 %v2000_v36, %v1964_v37 }
 0x186   : > { %4062 = vmatpush3.bf16.msra.mxu1 %v4400_v35  ;;  %4071 = vmatpush3.bf16.msra.mxu0 %v4400_v35  ;;  %v2109_v1 = vpop.permute.xlu1 %2108 }
 0x187   : > { %3825 = vmatprep.mubr.msk.f32.mxu1 %vm4181_vm2, %v4179_v3  ;;  %3866 = vmatprep.mubr.msk.f32.mxu0 %vm4181_vm2, %v4179_v3  ;;  %v2013_v43 = vmax.f32 %v2007_v39, 0.0 }
 0x188   : > { %4072 = vmatprep.subr.bf16.mxu0 %v4180_v16  ;;  %3828 = vmatprep.subr.mxu1 %v4179_v3 }
 0x189   : > { %3826 = vmatmul.mubr.msk.f32.vlgmr.msra.gmra.mrb[2].mxu1 %vm532_vm3, %v3584_v40  ;;  %3867 = vmatmul.mubr.msk.f32.vlgmr.msra.gmra.mrb[4].mxu0 %vm532_vm3, %v3601_v41 }
 0x18a   : > { %4074 = vmatpush3.bf16.msra.mxu0 %v4400_v35  ;;  %3878 = vmatprep.mubr.msk.f32.mxu0 %vm4181_vm2, %v4179_v3 }
 0x18b   : > { %4075 = vmatprep.subr.bf16.mxu0 %v4180_v16  ;;  %3830 = vmatprep.mubr.msk.f32.mxu1 %vm4181_vm2, %v4179_v3 }
 0x18c   : > { %3829 = vmatpush3.msk.msra.mxu1 %vm687_vm4, %v3586_v60  ;;  %v3670_v60 = vld [vmem:[%s4703_s6 + $0x70] sm:$0xff] }
 0x18d   : > { %3879 = vmatmul.mubr.msk.f32.vlgmr.msra.gmra.mrb[6].mxu0 %vm532_vm3, %v3606_v44  ;;  %3833 = vmatprep.subr.mxu1 %v4179_v3 }
 0x18e   : > { %4077 = vmatpush3.bf16.msra.mxu0 %v4400_v35  ;;  %3890 = vmatprep.mubr.msk.f32.mxu0 %vm4181_vm2, %v4179_v3 }
 0x18f   : > { %4078 = vmatprep.subr.bf16.mxu0 %v4180_v16 }
 0x191   : > { %3891 = vmatmul.mubr.msk.f32.vlgmr.msra.gmra.mrb[8].mxu0 %vm532_vm3, %v3611_v18  ;;  %v2124_v18 = vpop.permute.xlu1 %2123 }
 0x192   : > { %4080 = vmatpush3.bf16.msra.mxu0 %v4400_v35  ;;  %3902 = vmatprep.mubr.msk.f32.mxu0 %vm4181_vm2, %v4179_v3 }
 0x193   : > { %4081 = vmatprep.subr.bf16.mxu0 %v4180_v16 }
 0x195   : > { %3903 = vmatmul.mubr.msk.f32.vlgmr.msra.gmra.mrb[10].mxu0 %vm532_vm3, %v3616_v56 }
 0x196   : > { %4083 = vmatpush3.bf16.msra.mxu0 %v4400_v35  ;;  %3914 = vmatprep.mubr.msk.f32.mxu0 %vm4181_vm2, %v4179_v3 }
 0x197   : > { %4085 = vmatprep.subr.bf16.mxu0 %v4084_v20 }
 0x199   : > { %3915 = vmatmul.mubr.msk.f32.vlgmr.msra.gmra.mrb[12].mxu0 %vm532_vm3, %v3621_v58  ;;  %v3660_v58 = vld [vmem:[%s4703_s6 + $0x60] sm:$0xff] }
 0x19a   : > { %4087 = vmatpush3.bf16.msra.mxu0 %v4084_v20  ;;  %3934 = vmatprep.mubr.msk.f32.mxu0 %vm419_vm1, %v3638_v31  ;;  %v3646_v20 = vld [vmem:[%s4703_s6 + $0x48] sm:$0xff]  ;;  %v3682_v31 = vld [vmem:[%s4704_s7 + $0x1c] sm:$0xf] }
 0x19b   : > { %4089 = vmatprep.subr.bf16.mxu0 %v4088_v59 }
 0x19e   : > { %4091 = vmatpush3.bf16.msra.mxu0 %v4088_v59  ;;  %v3665_v59 = vld [vmem:[%s4703_s6 + $0x68] sm:$0xff] }
 0x258   : > { %v602_v61 = vpop.f32.mrb[0].mxu1  ;;  %v1062_v6 = vpop.f32.mrb[2].mxu0 }
 0x259   : > { %v3820_v62 = vpop.f32.mrb[1].mxu1  ;;  %v3856_v7 = vpop.f32.mrb[3].mxu0 }
 0x25a   : > { %v3680_v62 = vld [vmem:[%s4703_s6 + $0x80] sm:$0xff] }
 0x25c   : > { %v678_v0 = vpop.f32.mrb[2].mxu1  ;;  %v1216_v8 = vpop.f32.mrb[4].mxu0 }
 0x25d   : > { %v3827_v2 = vpop.f32.mrb[3].mxu1  ;;  %3831 = vmatmul.mubr.msk.f32.vlgmr.msra.gmra.mrb[4].mxu1 %vm306_vm0, %v678_v0  ;;  %v3868_v9 = vpop.f32.mrb[5].mxu0  ;;  %v3650_v0 = vld [vmem:[%s4704_s7 + $0x4] sm:$0xf] }
 0x25e   : > { %3834 = vmatpush3.msk.msra.mxu1 %vm687_vm4, %v606_v63  ;;  %3835 = vmatprep.mubr.msk.f32.mxu1 %vm4181_vm2, %v4179_v3  ;;  %v3685_v63 = vld [vmem:[%s4703_s6 + $0x88] sm:$0xff] }
 0x25f   : > { %4063 = vmatprep.subr.bf16.mxu1 %v4180_v16  ;;  %v3657_v9 = vld [vmem:[%s4704_s7 + $0x8] sm:$0xf] }
 0x260   : > { %v1370_v10 = vpop.f32.mrb[6].mxu0 }
 0x261   : > { %v3880_v11 = vpop.f32.mrb[7].mxu0 }
 0x264   : > { %v1524_v12 = vpop.f32.mrb[8].mxu0 }
 0x265   : > { %3836 = vmatmul.mubr.msk.f32.vlgmr.msra.gmra.mrb[4].mxu1 %vm306_vm0, %v602_v61  ;;  %v3892_v13 = vpop.f32.mrb[9].mxu0  ;;  %v3675_v61 = vld [vmem:[%s4703_s6 + $0x78] sm:$0xff] }
 0x266   : > { %4065 = vmatpush3.bf16.msra.mxu1 %v4400_v35  ;;  %3842 = vmatprep.mubr.msk.f32.mxu1 %vm4181_vm2, %v4179_v3  ;;  %v1952_v35 = vpop.permute.xlu0 %1951 }
 0x267   : > { %3845 = vmatprep.subr.mxu1 %v4179_v3 }
 0x268   : > { %v1678_v14 = vpop.f32.mrb[10].mxu0 }
 0x269   : > { %3843 = vmatmul.mubr.msk.f32.vlgmr.msra.gmra.mrb[6].mxu1 %vm532_vm3, %v3591_v4  ;;  %v3904_v15 = vpop.f32.mrb[11].mxu0  ;;  %v2205_v4 = vld [vmem:[%s4704_s7] sm:$0xf] }
 0x26a   : > { %3846 = vmatpush3.msk.msra.mxu1 %vm687_vm4, %v3593_v5  ;;  %3847 = vmatprep.mubr.msk.f32.mxu1 %vm4181_vm2, %v4179_v3  ;;  %v1995_v41 = vpop.permute.xlu0 %1994 }
 0x26b   : > { %3857 = vmatprep.subr.mxu1 %v4179_v3 }
 0x26c   : > { %v1832_v17 = vpop.f32.mrb[12].mxu0 }
 0x26d   : > { %v3916_v22 = vpop.f32.mrb[13].mxu0 }
 0x26e   : > { %v2104_v47 = vpop.permute.xlu0 %2103 }
 0x272   : > { %v2119_v51 = vpop.permute.xlu0 %2118 }
 0x33c   : > { %v908_v24 = vpop.f32.mrb[6].mxu1 }
 0x33d   : > { %v3844_v25 = vpop.f32.mrb[7].mxu1  ;;  %3848 = vmatmul.mubr.msk.f32.vlgmr.msra.gmra.mrb[4].mxu1 %vm306_vm0, %v908_v24  ;;  %v3667_v24 = vld [vmem:[%s4704_s7 + $0x10] sm:$0xf] }
 0x33e   : > { %3858 = vmatpush3.msk.msra.mxu1 %vm687_vm4, %v3598_v23  ;;  %3859 = vmatprep.mubr.msk.f32.mxu1 %vm4181_vm2, %v4179_v3 }
 0x33f   : > { %3869 = vmatprep.subr.mxu1 %v4179_v3 }
 0x345   : > { %3860 = vmatmul.mubr.msk.f32.vlgmr.msra.gmra.mrb[4].mxu1 %vm306_vm0, %v1062_v6 }
 0x346   : > { %3870 = vmatpush3.msk.msra.mxu1 %vm687_vm4, %v3603_v26  ;;  %3871 = vmatprep.mubr.msk.f32.mxu1 %vm4181_vm2, %v4179_v3 }
 0x347   : > { %3881 = vmatprep.subr.mxu1 %v4179_v3 }
 0x34d   : > { %3872 = vmatmul.mubr.msk.f32.vlgmr.msra.gmra.mrb[4].mxu1 %vm306_vm0, %v1216_v8 }
 0x34e   : > { %3882 = vmatpush3.msk.msra.mxu1 %vm687_vm4, %v3608_v27  ;;  %3883 = vmatprep.mubr.msk.f32.mxu1 %vm4181_vm2, %v4179_v3 }
 0x34f   : > { %3893 = vmatprep.subr.mxu1 %v4179_v3 }
 0x355   : > { %3884 = vmatmul.mubr.msk.f32.vlgmr.msra.gmra.mrb[4].mxu1 %vm306_vm0, %v1370_v10 }
 0x356   : > { %3894 = vmatpush3.msk.msra.mxu1 %vm687_vm4, %v3613_v28  ;;  %3895 = vmatprep.mubr.msk.f32.mxu1 %vm4181_vm2, %v4179_v3 }
 0x357   : > { %3905 = vmatprep.subr.mxu1 %v4179_v3 }
 0x35d   : > { %3896 = vmatmul.mubr.msk.f32.vlgmr.msra.gmra.mrb[4].mxu1 %vm306_vm0, %v1524_v12 }
 0x35e   : > { %3906 = vmatpush3.msk.msra.mxu1 %vm687_vm4, %v3618_v29  ;;  %3907 = vmatprep.mubr.msk.f32.mxu1 %vm4181_vm2, %v4179_v3  ;;  %v3672_v29 = vld [vmem:[%s4704_s7 + $0x14] sm:$0xf] }
 0x35f   : > { %3917 = vmatprep.subr.mxu1 %v4179_v3 }
 0x365   : > { %3908 = vmatmul.mubr.msk.f32.vlgmr.msra.gmra.mrb[4].mxu1 %vm306_vm0, %v1678_v14  ;;  %v3662_v14 = vld [vmem:[%s4704_s7 + $0xc] sm:$0xf] }
 0x366   : > { %3918 = vmatpush3.msk.msra.mxu1 %vm687_vm4, %v3623_v30  ;;  %3919 = vmatprep.mubr.msk.f32.mxu1 %vm4181_vm2, %v4179_v3  ;;  %v3677_v30 = vld [vmem:[%s4704_s7 + $0x18] sm:$0xf] }
 0x367   : > { %4096 = vmatprep.subr.bf16.mxu1 %v4180_v16 }
 0x36d   : > { %3920 = vmatmul.mubr.msk.f32.vlgmr.msra.gmra.mrb[4].mxu1 %vm306_vm0, %v1832_v17 }
 0x36e   : > { %3941 = vmatprep.mubr.msk.f32.mxu1 %vm4181_vm2, %v4179_v3 }
 0x440   : > { %v1910_v33 = vpop.f32.mrb[4].mxu1 }
 0x441   : > { %1915 = vst.msk [vmem:[#allocation2 + $0x20] sm:$0xff] %vm306_vm0, %v1910_v33  ;;  %v3921_v34 = vpop.f32.mrb[5].mxu1 }
 0x448   : > { %v3510_v38 = vld [vmem:[#allocation2 + $0x20] sm:$0xff] }
 0x449   : > { %3516 = vst.msk [vmem:[%s4297_s17 + $0x20] sm:$0xff] %vm306_vm0, %v3510_v38  ;;  %v1963_v40 = vmul.f32 %v3510_v38, %v1952_v35 }
 0x44b   : > { %v2006_v42 = vadd.f32 %v1995_v41, %v1963_v40 }
 0x44d   : > { %v2012_v44 = vmax.f32 %v2006_v42, 0.0 }
 0x44f   : > { %v4092_v45 = vpack.c.bf16 %v2013_v43, %v2012_v44 }
 0x451   : > { %4093 = vmatprep.subr.bf16.mxu0 %v4092_v45 }
 0x452   : > { %4095 = vmatpush3.bf16.msra.mxu0 %v4092_v45 }
 0x453   : > { %3951 = vmatprep.subr.mxu0 %v4179_v3 }
 0x455   : > { %3935 = vmatmul.mubr.msk.f32.vlgmr.msra.gmra.mrb[14].mxu0 %vm419_vm1, %v3639_v46 }
 0x456   : > { %3953 = vmatprep.mubr.msk.f32.mxu0 %vm4181_vm2, %v4179_v3  ;;  %3952 = vmatpush3.msk.msra.mxu0 %vm687_vm4, %v3650_v0 }
 0x457   : > { %3956 = vmatprep.subr.mxu0 %v4179_v3 }
 0x528   : > { %v3936_v48 = vpop.f32.mrb[14].mxu0 }
 0x529   : > { %v2112_v49 = vmul.f32 %v3936_v48, %v2109_v1  ;;  %v2089_v50 = vpop.f32.mrb[15].mxu0 }
 0x52a   : > { %v2111_v19 = vmul.f32 %v2104_v47, %v2089_v50 }
 0x52b   : > { %v2127_v52 = vadd.f32 %v2124_v18, %v2112_v49 }
 0x52c   : > { %v2126_v53 = vadd.f32 %v2119_v51, %v2111_v19 }
 0x52d   : > { %v2129_v54 = vmax.f32 %v2127_v52, 0.0 }
 0x52e   : > { %v2128_v55 = vmax.f32 %v2126_v53, 0.0 }
 0x530   : > { %v4097_v56 = vpack.c.bf16 %v2129_v54, %v2128_v55 }
 0x532   : > { %4098 = vmatpush3.bf16.msra.mxu1 %v4097_v56 }
 0x533   : > { %4099 = vmatprep.subr.bf16.mxu1 %v4180_v16 }
 0x535   : > { %3942 = vmatmul.mubr.msk.f32.vlgmr.msra.gmra.mrb[8].mxu1 %vm532_vm3, %v3646_v20 }
 0x536   : > { %4101 = vmatpush3.bf16.msra.mxu1 %v4097_v56  ;;  %3948 = vmatprep.mubr.msk.f32.mxu1 %vm4181_vm2, %v4179_v3 }
 0x537   : > { %4102 = vmatprep.subr.bf16.mxu1 %v4180_v16 }
 0x539   : > { %3949 = vmatmul.mubr.msk.f32.vlgmr.msra.gmra.mrb[10].mxu1 %vm532_vm3, %v3648_v21 }
 0x53a   : > { %4104 = vmatpush3.bf16.msra.mxu1 %v4097_v56  ;;  %3965 = vmatprep.mubr.msk.f32.mxu1 %vm4181_vm2, %v4179_v3 }
 0x53b   : > { %4105 = vmatprep.subr.bf16.mxu1 %v4180_v16 }
 0x53d   : > { %3966 = vmatmul.mubr.msk.f32.vlgmr.msra.gmra.mrb[12].mxu1 %vm532_vm3, %v3655_v57 }
 0x53e   : > { %4107 = vmatpush3.bf16.msra.mxu1 %v4097_v56  ;;  %3977 = vmatprep.mubr.msk.f32.mxu1 %vm4181_vm2, %v4179_v3 }
 0x53f   : > { %4108 = vmatprep.subr.bf16.mxu1 %v4180_v16 }
 0x541   : > { %3978 = vmatmul.mubr.msk.f32.vlgmr.msra.gmra.mrb[14].mxu1 %vm532_vm3, %v3660_v58 }
 0x542   : > { %4110 = vmatpush3.bf16.msra.mxu1 %v4097_v56  ;;  %3989 = vmatprep.mubr.msk.f32.mxu1 %vm4181_vm2, %v4179_v3 }
 0x543   : > { %4111 = vmatprep.subr.bf16.mxu1 %v4180_v16 }
 0x545   : > { %3990 = vmatmul.mubr.msk.f32.vlgmr.msra.gmra.mrb[16].mxu1 %vm532_vm3, %v3665_v59 }
 0x546   : > { %4113 = vmatpush3.bf16.msra.mxu1 %v4097_v56  ;;  %4001 = vmatprep.mubr.msk.f32.mxu1 %vm4181_vm2, %v4179_v3 }
 0x547   : > { %4114 = vmatprep.subr.bf16.mxu1 %v4180_v16 }
 0x549   : > { %4002 = vmatmul.mubr.msk.f32.vlgmr.msra.gmra.mrb[18].mxu1 %vm532_vm3, %v3670_v60 }
 0x54a   : > { %4116 = vmatpush3.bf16.msra.mxu1 %v4097_v56  ;;  %4013 = vmatprep.mubr.msk.f32.mxu1 %vm4181_vm2, %v4179_v3 }
 0x54b   : > { %4117 = vmatprep.subr.bf16.mxu1 %v4180_v16 }
 0x54d   : > { %4014 = vmatmul.mubr.msk.f32.vlgmr.msra.gmra.mrb[20].mxu1 %vm532_vm3, %v3675_v61 }
 0x54e   : > { %4119 = vmatpush3.bf16.msra.mxu1 %v4097_v56  ;;  %4025 = vmatprep.mubr.msk.f32.mxu1 %vm4181_vm2, %v4179_v3 }
 0x54f   : > { %4120 = vmatprep.subr.bf16.mxu1 %v4180_v16 }
 0x551   : > { %4026 = vmatmul.mubr.msk.f32.vlgmr.msra.gmra.mrb[22].mxu1 %vm532_vm3, %v3680_v62 }
 0x552   : > { %4122 = vmatpush3.bf16.msra.mxu1 %v4097_v56  ;;  %4037 = vmatprep.mubr.msk.f32.mxu1 %vm4181_vm2, %v4179_v3 }
 0x555   : > { %4038 = vmatmul.mubr.msk.f32.vlgmr.msra.gmra.mrb[24].mxu1 %vm532_vm3, %v3685_v63 }
 0x608   : > { %v2201_v16 = vpop.f32.mrb[8].mxu1 }
 0x609   : > { %v3943_v2 = vpop.f32.mrb[9].mxu1 }
 0x60c   : > { %v2277_v5 = vpop.f32.mrb[10].mxu1 }
 0x60d   : > { %v3950_v6 = vpop.f32.mrb[11].mxu1  ;;  %3954 = vmatmul.mubr.msk.f32.vlgmr.msra.gmra.mrb[16].mxu0 %vm306_vm0, %v2277_v5 }
 0x60e   : > { %3957 = vmatpush3.msk.msra.mxu0 %vm687_vm4, %v2205_v4  ;;  %3958 = vmatprep.mubr.msk.f32.mxu0 %vm4181_vm2, %v4179_v3 }
 0x60f   : > { %3968 = vmatprep.subr.mxu0 %v4179_v3 }
 0x610   : > { %v2505_v7 = vpop.f32.mrb[12].mxu1 }
 0x611   : > { %v3967_v8 = vpop.f32.mrb[13].mxu1 }
 0x614   : > { %v2658_v10 = vpop.f32.mrb[14].mxu1 }
 0x615   : > { %3959 = vmatmul.mubr.msk.f32.vlgmr.msra.gmra.mrb[16].mxu0 %vm306_vm0, %v2201_v16  ;;  %v3979_v11 = vpop.f32.mrb[15].mxu1 }
 0x616   : > { %3969 = vmatpush3.msk.msra.mxu0 %vm687_vm4, %v3657_v9  ;;  %3970 = vmatprep.mubr.msk.f32.mxu0 %vm4181_vm2, %v4179_v3 }
 0x617   : > { %3980 = vmatprep.subr.mxu0 %v4179_v3 }
 0x618   : > { %v2811_v12 = vpop.f32.mrb[16].mxu1 }
 0x619   : > { %v3991_v13 = vpop.f32.mrb[17].mxu1 }
 0x61c   : > { %v2964_v15 = vpop.f32.mrb[18].mxu1 }
 0x61d   : > { %3971 = vmatmul.mubr.msk.f32.vlgmr.msra.gmra.mrb[16].mxu0 %vm306_vm0, %v2505_v7  ;;  %v4003_v17 = vpop.f32.mrb[19].mxu1 }
 0x61e   : > { %3981 = vmatpush3.msk.msra.mxu0 %vm687_vm4, %v3662_v14  ;;  %3982 = vmatprep.mubr.msk.f32.mxu0 %vm4181_vm2, %v4179_v3 }
 0x61f   : > { %3992 = vmatprep.subr.mxu0 %v4179_v3 }
 0x620   : > { %v3117_v22 = vpop.f32.mrb[20].mxu1 }
 0x621   : > { %v4015_v23 = vpop.f32.mrb[21].mxu1 }
 0x624   : > { %v3270_v25 = vpop.f32.mrb[22].mxu1 }
 0x625   : > { %3983 = vmatmul.mubr.msk.f32.vlgmr.msra.gmra.mrb[16].mxu0 %vm306_vm0, %v2658_v10  ;;  %v4027_v26 = vpop.f32.mrb[23].mxu1 }
 0x626   : > { %3993 = vmatpush3.msk.msra.mxu0 %vm687_vm4, %v3667_v24  ;;  %3994 = vmatprep.mubr.msk.f32.mxu0 %vm4181_vm2, %v4179_v3 }
 0x627   : > { %4004 = vmatprep.subr.mxu0 %v4179_v3 }
 0x628   : > { %v3423_v27 = vpop.f32.mrb[24].mxu1 }
 0x629   : > { %v4039_v28 = vpop.f32.mrb[25].mxu1 }
 0x62d   : > { %3995 = vmatmul.mubr.msk.f32.vlgmr.msra.gmra.mrb[16].mxu0 %vm306_vm0, %v2811_v12 }
 0x62e   : > { %4005 = vmatpush3.msk.msra.mxu0 %vm687_vm4, %v3672_v29  ;;  %4006 = vmatprep.mubr.msk.f32.mxu0 %vm4181_vm2, %v4179_v3 }
 0x62f   : > { %4016 = vmatprep.subr.mxu0 %v4179_v3 }
 0x635   : > { %4007 = vmatmul.mubr.msk.f32.vlgmr.msra.gmra.mrb[16].mxu0 %vm306_vm0, %v2964_v15 }
 0x636   : > { %4017 = vmatpush3.msk.msra.mxu0 %vm687_vm4, %v3677_v30  ;;  %4018 = vmatprep.mubr.msk.f32.mxu0 %vm4181_vm2, %v4179_v3 }
 0x637   : > { %4028 = vmatprep.subr.mxu0 %v4179_v3 }
 0x63d   : > { %4019 = vmatmul.mubr.msk.f32.vlgmr.msra.gmra.mrb[16].mxu0 %vm306_vm0, %v3117_v22 }
 0x63e   : > { %4029 = vmatpush3.msk.msra.mxu0 %vm687_vm4, %v3682_v31  ;;  %4030 = vmatprep.mubr.msk.f32.mxu0 %vm4181_vm2, %v4179_v3 }
 0x63f   : > { %4040 = vmatprep.subr.mxu0 %v4179_v3 }
 0x645   : > { %4031 = vmatmul.mubr.msk.f32.vlgmr.msra.gmra.mrb[16].mxu0 %vm306_vm0, %v3270_v25 }
 0x646   : > { %4041 = vmatpush3.msk.msra.mxu0 %vm687_vm4, %v3687_v32  ;;  %4042 = vmatprep.mubr.msk.f32.mxu0 %vm4181_vm2, %v4179_v3 }
 0x64d   : > { %4043 = vmatmul.mubr.msk.f32.vlgmr.msra.gmra.mrb[16].mxu0 %vm306_vm0, %v3423_v27 }
 0x720   : > { %v3500_v33 = vpop.f32.mrb[16].mxu0 }
 0x721   : > { %3505 = vst.msk [vmem:[#allocation2 + $0x28] sm:$0xff] %vm306_vm0, %v3500_v33  ;;  %v4044_v34 = vpop.f32.mrb[17].mxu0 }
 0x728   : > { %v3511_v35 = vld [vmem:[#allocation2 + $0x28] sm:$0xff] }
 0x729   : > { %3517 = vst.msk [vmem:[%s4297_s17 + $0x28] sm:$0xff] %vm306_vm0, %v3511_v35 }
 0x72a PF: > { %s18_s27 = sadd.s32 1, %s4176_s27  }
 0x72b   : > { %p15_p4 = scmp.ge.s32.totalorder %s18_s27, 4  }
 0x72d   :  { %17 = sbr.rel (!%p15_p4) target bundleno = 1 (0x1), region = 112 }

</bundles_post_ra>
